<compile_context>
chip_gen: v5e
topology: v5e:2x2
jax: 0.10.0
libtpu: 0.0.40
codegen_flags: <defaults>
</compile_context>

<pallas_src>
import functools

import jax
import jax.numpy as jnp
import numpy as np
from jax.experimental import pallas as pl
from jax.experimental.pallas import tpu as pltpu


# ---------------------------------------------------------------------------
# Fused kernel: collapsed 1x1 residual block + fused 3x3 conv_loc/conv_conf.
# ---------------------------------------------------------------------------
def _pred_head_kernel(xp_ref, mask_ref, weff_ref, beff_ref, wlc_ref, blc_ref,
                      o_ref, *, wp):
    # xp_ref  : (G, P_in, Cin) bf16  zero-padded input, flattened padded
    #                                spatial.  P_in = (H+2)*(W+2) + 2 tail
    #                                zero rows (keeps every tap slice in range)
    # mask_ref: (P_in, 1) f32        1.0 on interior positions, 0.0 on padding
    # weff_ref: (Cin, C)  bf16       collapsed 1x1-chain weight
    # beff_ref: (1, C)    f32        collapsed 1x1-chain bias
    # wlc_ref : (C, 9*cp) bf16       fused 3x3 loc||conf weights; tap t lives
    #                                in columns [t*cp, (t+1)*cp)
    # blc_ref : (1, cp)   f32        fused loc||conf bias (lane-padded)
    # o_ref   : (G, Mout, cp) bf16   Mout = H*(W+2); row r = h*(W+2) + w
    g, p_in, cin = xp_ref.shape
    c = weff_ref.shape[1]
    cp = blc_ref.shape[1]
    mout = o_ref.shape[1]

    # ---- collapsed 1x1 residual block, computed on the padded layout --------
    x = xp_ref[...].reshape(g * p_in, cin)          # leading-dim merge: free
    y = jnp.dot(x, weff_ref[...], preferred_element_type=jnp.float32)
    # Add the bias only on interior positions: the conv's zero-padding ring of
    # y stays exactly 0 (x is zero there, so x@Weff is already 0).
    y = y.reshape(g, p_in, c) + mask_ref[...] * beff_ref[...]
    yb = y.astype(jnp.bfloat16).reshape(g * p_in, c)        # single bf16 cast

    # ---- all 9 taps of the fused 3x3 loc/conf conv in ONE MXU matmul --------
    z = jnp.dot(yb, wlc_ref[...], preferred_element_type=jnp.float32)
    # z: (g*p_in, 9*cp);  out[r] = b + sum_t z[r + s_t, t-block],
    # with s_t = dh*(W+2) + dw realized as static row slices of the small f32
    # result (no rolls, no unaligned slices of the 1024-channel operand).
    bias = jnp.broadcast_to(blc_ref[...], (mout, cp))
    for gi in range(g):                              # static unroll over group
        base = gi * p_in
        acc = bias
        for t in range(9):                           # static unroll over taps
            s = base + (t // 3) * wp + (t % 3)
            acc = acc + z[s:s + mout, t * cp:(t + 1) * cp]
        o_ref[gi] = acc.astype(o_ref.dtype)


# ---------------------------------------------------------------------------
# Spec helpers
# ---------------------------------------------------------------------------
def _single_buffered(block_shape, index_map):
    """Grid-invariant operand (weights): request single buffering to save the
    ~3.25 MiB a second copy would cost; fall back silently on JAX versions
    without BlockSpec(pipeline_mode=...)."""
    try:
        return pl.BlockSpec(block_shape, index_map, pipeline_mode=pl.Buffered(1))
    except Exception:  # pragma: no cover - older JAX
        return pl.BlockSpec(block_shape, index_map)


def _pick_group(n, p_in, row_budget=512):
    """Images per grid step.  Raise rows-per-matmul (MXU occupancy, v6e/v7x)
    while (a) keeping >=2 grid steps when the batch allows (v7x has 2 TCs) and
    (b) keeping per-step VMEM conservative (~row_budget * 12 KB of temporaries
    + 3.25 MiB of weights), which fits every generation's scoped VMEM."""
    g = 1
    for cand in range(1, n + 1):
        if n % cand:
            continue
        if cand * p_in > row_budget:
            break
        if n >= 2 and n // cand < 2:
            continue
        g = cand
    return g


# ---------------------------------------------------------------------------
# Wrapper
# ---------------------------------------------------------------------------
def pred_module_forward(x_nchw, params):
    N, Cin, H, W = x_nchw.shape
    assert Cin == 512
    C = 1024
    Hp, Wp = H + 2, W + 2
    P_in = Hp * Wp + 2            # +2 zero tail rows so every tap slice is in bounds
    Mout = H * Wp
    hp = jax.lax.Precision.HIGHEST

    # ---- fold the 1x1 chain conv1->conv2->conv3 (+) conv_bypath -------------
    w1, w2, w3, wb = params["w1"], params["w2"], params["w3"], params["wb"]
    b1, b2, b3, bb = params["b1"], params["b2"], params["b3"], params["bb"]
    w_eff = (jnp.dot(jnp.dot(w1, w2, precision=hp), w3, precision=hp) + wb
             ).astype(jnp.bfloat16)                                     # (512, 1024)
    b_eff = (jnp.dot(jnp.dot(b1, w2, precision=hp), w3, precision=hp)
             + jnp.dot(b2, w3, precision=hp) + b3 + bb)                 # (1, 1024) f32

    # ---- fused 3x3 loc||conf weights, zero-padded to a 128-lane multiple ----
    cl = params["wl"].shape[-1]               # bbox_num * 4
    cc = params["wc"].shape[-1]               # bbox_num
    cp = ((cl + cc + 127) // 128) * 128
    w_lc = jnp.concatenate([params["wl"], params["wc"]], axis=-1)       # (9, C, cl+cc)
    w_lc = jnp.pad(w_lc, ((0, 0), (0, 0), (0, cp - (cl + cc))))
    w_lc = jnp.transpose(w_lc, (1, 0, 2)).reshape(C, 9 * cp).astype(jnp.bfloat16)
    b_lc = jnp.pad(jnp.concatenate([params["bl"], params["bc"]], axis=-1),
                   ((0, 0), (0, cp - (cl + cc))))                       # (1, cp) f32

    # ---- input: NCHW -> (N, P_in, 512) zero-padded flattened spatial --------
    # One small pass over the 512-ch input; the 1024-ch intermediate never
    # leaves the kernel.
    # TODO(synk): consume NCHW directly via a transposed-LHS dot to drop even
    # this pass (kept as layout glue: channels-in-lanes is used everywhere in
    # the kernel).
    x_nhwc = jnp.transpose(x_nchw, (0, 2, 3, 1)).astype(jnp.bfloat16)
    xp = jnp.pad(x_nhwc, ((0, 0), (1, 1), (1, 1), (0, 0))).reshape(N, Hp * Wp, Cin)
    xp = jnp.pad(xp, ((0, 0), (0, 2), (0, 0)))                          # (N, P_in, 512)

    # Interior mask (1 inside the original HxW, 0 on the padding ring + tail).
    m = np.zeros((Hp, Wp), np.float32)
    m[1:H + 1, 1:W + 1] = 1.0
    mask = jnp.asarray(np.concatenate([m.reshape(-1),
                                       np.zeros(2, np.float32)]).reshape(P_in, 1))

    G = _pick_group(N, P_in)
    kernel = functools.partial(_pred_head_kernel, wp=Wp)

    out = pl.pallas_call(
        kernel,
        out_shape=jax.ShapeDtypeStruct((N, Mout, cp), jnp.bfloat16),
        grid_spec=pltpu.PrefetchScalarGridSpec(
            num_scalar_prefetch=0,
            grid=(N // G,),
            in_specs=[
                pl.BlockSpec((G, P_in, Cin), lambda i: (i, 0, 0)),
                pl.BlockSpec((P_in, 1), lambda i: (0, 0)),
                _single_buffered((Cin, C), lambda i: (0, 0)),
                pl.BlockSpec((1, C), lambda i: (0, 0)),
                _single_buffered((C, 9 * cp), lambda i: (0, 0)),
                pl.BlockSpec((1, cp), lambda i: (0, 0)),
            ],
            out_specs=pl.BlockSpec((G, Mout, cp), lambda i: (i, 0, 0)),
        ),
        compiler_params=pltpu.CompilerParams(
            dimension_semantics=("parallel",),
            vmem_limit_bytes=32 * 1024 * 1024),
    )(xp, mask, w_eff, b_eff, w_lc, b_lc)

    # ---- back to PyTorch NCHW; drop lane padding and the 2 garbage columns --
    out = out.reshape(N, H, Wp, cp)[:, :, :W, :].astype(jnp.float32)
    loc = jnp.transpose(out[..., :cl], (0, 3, 1, 2))
    conf = jnp.transpose(out[..., cl:cl + cc], (0, 3, 1, 2))
    return loc, conf


# ---------------------------------------------------------------------------
# Deterministic parameter init (shapes from PredModule.__init__)
# ---------------------------------------------------------------------------
def init_params(key, bbox_num):
    ks = jax.random.split(key, 12)

    def w(k, cin, cout, kh=1, kw=1):
        scale = 1.0 / np.sqrt(cin * kh * kw)
        return (scale * jax.random.normal(k, (kh * kw, cin, cout))).astype(jnp.float32)

    def b(k, cout):
        return (0.01 * jax.random.normal(k, (1, cout))).astype(jnp.float32)

    cl, cc = bbox_num * 4, bbox_num
    return {
        "w1": w(ks[0], 512, 256)[0],  "b1": b(ks[1], 256),
        "w2": w(ks[2], 256, 256)[0],  "b2": b(ks[3], 256),
        "w3": w(ks[4], 256, 1024)[0], "b3": b(ks[5], 1024),
        "wb": w(ks[6], 512, 1024)[0], "bb": b(ks[7], 1024),
        "wl": w(ks[8], 1024, cl, 3, 3),  "bl": b(ks[9], cl),    # (9, 1024, cl)
        "wc": w(ks[10], 1024, cc, 3, 3), "bc": b(ks[11], cc),   # (9, 1024, cc)
    }


# ---------------------------------------------------------------------------
# Pure-JAX f32 reference (lax.conv) for a sanity check
# ---------------------------------------------------------------------------
def reference_forward(x_nchw, p):
    dn = ("NHWC", "HWIO", "NHWC")
    hp = jax.lax.Precision.HIGHEST

    def conv(inp, w_hwio, bias, pad):
        out = jax.lax.conv_general_dilated(inp, w_hwio, (1, 1), pad,
                                           dimension_numbers=dn, precision=hp)
        return out + bias.reshape(1, 1, 1, -1)

    x = jnp.transpose(x_nchw, (0, 2, 3, 1))
    h = conv(x, p["w1"].reshape(1, 1, 512, 256), p["b1"], "VALID")
    h = conv(h, p["w2"].reshape(1, 1, 256, 256), p["b2"], "VALID")
    h = conv(h, p["w3"].reshape(1, 1, 256, 1024), p["b3"], "VALID")
    h = h + conv(x, p["wb"].reshape(1, 1, 512, 1024), p["bb"], "VALID")
    loc = conv(h, p["wl"].reshape(3, 3, 1024, -1), p["bl"], "SAME")
    conf = conv(h, p["wc"].reshape(3, 3, 1024, -1), p["bc"], "SAME")
    return (jnp.transpose(loc, (0, 3, 1, 2)), jnp.transpose(conf, (0, 3, 1, 2)))


if __name__ == "__main__":
    key = jax.random.PRNGKey(0)
    k_x, k_p = jax.random.split(key)

    bbox_num = 4
    N, Cch, H, W = 2, 512, 8, 8        # input channels fixed to 512 by the module
    x = jax.random.normal(k_x, (N, Cch, H, W), jnp.float32)
    params = init_params(k_p, bbox_num)

    loc, conf = jax.jit(pred_module_forward)(x, params)
    jax.block_until_ready((loc, conf))

    assert loc.shape == (N, bbox_num * 4, H, W)
    assert conf.shape == (N, bbox_num, H, W)

    loc_ref, conf_ref = reference_forward(x, params)
    # bf16 MXU operands + bf16 output store -> loosened tolerance vs pure f32.
    np.testing.assert_allclose(np.asarray(loc), np.asarray(loc_ref), rtol=6e-2, atol=6e-2)
    np.testing.assert_allclose(np.asarray(conf), np.asarray(conf_ref), rtol=6e-2, atol=6e-2)

    print("KERNEL_OK")
</pallas_src>

<mosaic_0001>
module attributes {stable_mosaic.version = 11 : i64} {
  func.func @_pred_head_kernel(%arg0: i32, %arg1: memref<1x102x512xbf16, #tpu.memory_space<vmem>>, %arg2: memref<102x1xf32, #tpu.memory_space<vmem>>, %arg3: memref<512x1024xbf16, #tpu.memory_space<vmem>>, %arg4: memref<1x1024xf32, #tpu.memory_space<vmem>>, %arg5: memref<1024x1152xbf16, #tpu.memory_space<vmem>>, %arg6: memref<1x128xf32, #tpu.memory_space<vmem>>, %arg7: memref<1x80x128xbf16, #tpu.memory_space<vmem>>) attributes {dimension_semantics = [#tpu.dimension_semantics<parallel>], iteration_bounds = array<i64: 2>, scalar_prefetch = 0 : i64, scratch_operands = 0 : i64, tpu.core_type = #tpu.core_type<tc>, window_params = [{transform_indices = @transform_0, window_bounds = array<i64: 1, 102, 512>}, {pipeline_mode = #tpu.pipeline_mode<synchronous>, transform_indices = @transform_1, window_bounds = array<i64: 102, 1>}, {pipeline_mode = #tpu.pipeline_mode<synchronous>, transform_indices = @transform_2, window_bounds = array<i64: 512, 1024>}, {pipeline_mode = #tpu.pipeline_mode<synchronous>, transform_indices = @transform_3, window_bounds = array<i64: 1, 1024>}, {pipeline_mode = #tpu.pipeline_mode<synchronous>, transform_indices = @transform_4, window_bounds = array<i64: 1024, 1152>}, {pipeline_mode = #tpu.pipeline_mode<synchronous>, transform_indices = @transform_5, window_bounds = array<i64: 1, 128>}, {transform_indices = @transform_6, window_bounds = array<i64: 1, 80, 128>}]} {
    %c0 = arith.constant 0 : index
    %c0_0 = arith.constant 0 : index
    %c0_1 = arith.constant 0 : index
    %0 = vector.load %arg1[%c0, %c0_0, %c0_1] : memref<1x102x512xbf16, #tpu.memory_space<vmem>>, vector<1x102x512xbf16>
    %1 = vector.shape_cast %0 : vector<1x102x512xbf16> to vector<102x512xbf16>
    %c0_2 = arith.constant 0 : index
    %c0_3 = arith.constant 0 : index
    %2 = vector.load %arg3[%c0_2, %c0_3] : memref<512x1024xbf16, #tpu.memory_space<vmem>>, vector<512x1024xbf16>
    %cst = arith.constant dense<0.000000e+00> : vector<102x1024xf32>
    %3 = tpu.matmul %1, %2, %cst {dimension_numbers = #tpu.dot_dimension_numbers<[1], [0], [0], [1], [0, 0, 1, 1], [], []>} : vector<102x512xbf16>, vector<512x1024xbf16>, vector<102x1024xf32> -> vector<102x1024xf32>
    %4 = vector.shape_cast %3 : vector<102x1024xf32> to vector<1x102x1024xf32>
    %c0_4 = arith.constant 0 : index
    %c0_5 = arith.constant 0 : index
    %5 = vector.load %arg2[%c0_4, %c0_5] : memref<102x1xf32, #tpu.memory_space<vmem>>, vector<102x1xf32>
    %c0_6 = arith.constant 0 : index
    %c0_7 = arith.constant 0 : index
    %6 = vector.load %arg4[%c0_6, %c0_7] : memref<1x1024xf32, #tpu.memory_space<vmem>>, vector<1x1024xf32>
    %7 = vector.broadcast %5 : vector<102x1xf32> to vector<102x1024xf32>
    %8 = vector.broadcast %6 : vector<1x1024xf32> to vector<102x1024xf32>
    %9 = arith.mulf %7, %8 : vector<102x1024xf32>
    %10 = vector.shape_cast %9 : vector<102x1024xf32> to vector<1x102x1024xf32>
    %11 = arith.addf %4, %10 : vector<1x102x1024xf32>
    %12 = arith.truncf %11 : vector<1x102x1024xf32> to vector<1x102x1024xbf16>
    %13 = vector.shape_cast %12 : vector<1x102x1024xbf16> to vector<102x1024xbf16>
    %c0_8 = arith.constant 0 : index
    %c0_9 = arith.constant 0 : index
    %14 = vector.load %arg5[%c0_8, %c0_9] : memref<1024x1152xbf16, #tpu.memory_space<vmem>>, vector<1024x1152xbf16>
    %cst_10 = arith.constant dense<0.000000e+00> : vector<102x1152xf32>
    %15 = tpu.matmul %13, %14, %cst_10 {dimension_numbers = #tpu.dot_dimension_numbers<[1], [0], [0], [1], [0, 0, 1, 1], [], []>} : vector<102x1024xbf16>, vector<1024x1152xbf16>, vector<102x1152xf32> -> vector<102x1152xf32>
    %c0_11 = arith.constant 0 : index
    %c0_12 = arith.constant 0 : index
    %16 = vector.load %arg6[%c0_11, %c0_12] : memref<1x128xf32, #tpu.memory_space<vmem>>, vector<1x128xf32>
    %17 = vector.shape_cast %16 : vector<1x128xf32> to vector<1x128xf32>
    %18 = vector.broadcast %17 : vector<1x128xf32> to vector<80x128xf32>
    %19 = vector.extract_strided_slice %15 {offsets = [0, 0], sizes = [80, 128], strides = [1, 1]} : vector<102x1152xf32> to vector<80x128xf32>
    %20 = arith.addf %18, %19 : vector<80x128xf32>
    %21 = vector.extract_strided_slice %15 {offsets = [1, 128], sizes = [80, 128], strides = [1, 1]} : vector<102x1152xf32> to vector<80x128xf32>
    %22 = arith.addf %20, %21 : vector<80x128xf32>
    %23 = vector.extract_strided_slice %15 {offsets = [2, 256], sizes = [80, 128], strides = [1, 1]} : vector<102x1152xf32> to vector<80x128xf32>
    %24 = arith.addf %22, %23 : vector<80x128xf32>
    %25 = vector.extract_strided_slice %15 {offsets = [10, 384], sizes = [80, 128], strides = [1, 1]} : vector<102x1152xf32> to vector<80x128xf32>
    %26 = arith.addf %24, %25 : vector<80x128xf32>
    %27 = vector.extract_strided_slice %15 {offsets = [11, 512], sizes = [80, 128], strides = [1, 1]} : vector<102x1152xf32> to vector<80x128xf32>
    %28 = arith.addf %26, %27 : vector<80x128xf32>
    %29 = vector.extract_strided_slice %15 {offsets = [12, 640], sizes = [80, 128], strides = [1, 1]} : vector<102x1152xf32> to vector<80x128xf32>
    %30 = arith.addf %28, %29 : vector<80x128xf32>
    %31 = vector.extract_strided_slice %15 {offsets = [20, 768], sizes = [80, 128], strides = [1, 1]} : vector<102x1152xf32> to vector<80x128xf32>
    %32 = arith.addf %30, %31 : vector<80x128xf32>
    %33 = vector.extract_strided_slice %15 {offsets = [21, 896], sizes = [80, 128], strides = [1, 1]} : vector<102x1152xf32> to vector<80x128xf32>
    %34 = arith.addf %32, %33 : vector<80x128xf32>
    %35 = vector.extract_strided_slice %15 {offsets = [22, 1024], sizes = [80, 128], strides = [1, 1]} : vector<102x1152xf32> to vector<80x128xf32>
    %36 = arith.addf %34, %35 : vector<80x128xf32>
    %37 = arith.truncf %36 : vector<80x128xf32> to vector<80x128xbf16>
    %c0_13 = arith.constant 0 : index
    %c0_14 = arith.constant 0 : index
    %c0_15 = arith.constant 0 : index
    %38 = vector.load %arg7[%c0_13, %c0_14, %c0_15] : memref<1x80x128xbf16, #tpu.memory_space<vmem>>, vector<1x80x128xbf16>
    %39 = vector.shape_cast %38 : vector<1x80x128xbf16> to vector<80x128xbf16>
    %40 = vector.shape_cast %37 : vector<80x128xbf16> to vector<1x80x128xbf16>
    tpu.vector_store %arg7[%c0_13, %c0_14, %c0_15], %40 {strides = array<i32>} : memref<1x80x128xbf16, #tpu.memory_space<vmem>>, vector<1x80x128xbf16>,
    return
  }
  func.func @transform_0(%arg0: i32) -> (i32, i32, i32) {
    %c0_i32 = arith.constant 0 : i32
    %c0_i32_0 = arith.constant 0 : i32
    %c0_i32_1 = arith.constant 0 : i32
    return %arg0, %c0_i32, %c0_i32_0 : i32, i32, i32
  }
  func.func @transform_1(%arg0: i32) -> (i32, i32) {
    %c0_i32 = arith.constant 0 : i32
    %c0_i32_0 = arith.constant 0 : i32
    %c0_i32_1 = arith.constant 0 : i32
    return %c0_i32, %c0_i32_0 : i32, i32
  }
  func.func @transform_2(%arg0: i32) -> (i32, i32) {
    %c0_i32 = arith.constant 0 : i32
    %c0_i32_0 = arith.constant 0 : i32
    %c0_i32_1 = arith.constant 0 : i32
    return %c0_i32, %c0_i32_0 : i32, i32
  }
  func.func @transform_3(%arg0: i32) -> (i32, i32) {
    %c0_i32 = arith.constant 0 : i32
    %c0_i32_0 = arith.constant 0 : i32
    %c0_i32_1 = arith.constant 0 : i32
    return %c0_i32, %c0_i32_0 : i32, i32
  }
  func.func @transform_4(%arg0: i32) -> (i32, i32) {
    %c0_i32 = arith.constant 0 : i32
    %c0_i32_0 = arith.constant 0 : i32
    %c0_i32_1 = arith.constant 0 : i32
    return %c0_i32, %c0_i32_0 : i32, i32
  }
  func.func @transform_5(%arg0: i32) -> (i32, i32) {
    %c0_i32 = arith.constant 0 : i32
    %c0_i32_0 = arith.constant 0 : i32
    %c0_i32_1 = arith.constant 0 : i32
    return %c0_i32, %c0_i32_0 : i32, i32
  }
  func.func @transform_6(%arg0: i32) -> (i32, i32, i32) {
    %c0_i32 = arith.constant 0 : i32
    %c0_i32_0 = arith.constant 0 : i32
    %c0_i32_1 = arith.constant 0 : i32
    return %arg0, %c0_i32, %c0_i32_0 : i32, i32, i32
  }
}

</mosaic_0001>

<bundles_post_ra>
// kernel: pred_module_forward.1
= control target key start
LH: loop header
LB: loop body
LE: loop exit
PB: predicated region body
PF: predicated region fallthrough
CT: control target
= control target key end

     0   :  { %s15368_s21 = smov 0   ;;  %s22444_s0 = inlined_call_operand.vmem [shape: bf16[2,102,512], index: 0, kind: input, shape index: {}]   ;;  %s22445_s1 = inlined_call_operand.vmem [shape: f32[102,1], index: 1, kind: input, shape index: {}]   ;;  %s22446_s2 = inlined_call_operand.vmem [shape: bf16[512,1024], index: 2, kind: input, shape index: {}]   ;;  %s22447_s3 = inlined_call_operand.vmem [shape: f32[1,1024], index: 3, kind: input, shape index: {}]   ;;  %s22448_s4 = inlined_call_operand.vmem [shape: bf16[1024,1152], index: 4, kind: input, shape index: {}]   ;;  %s22449_s5 = inlined_call_operand.vmem [shape: f32[1,128], index: 5, kind: input, shape index: {}]   ;;  %s22450_s6 = inlined_call_operand.vmem [shape: bf16[2,80,128], index: 6, kind: output, shape index: {}]  }
   0x1 LB: > { %s10987_s22 = sadd.s32 4294967295, %s15330_s21   ;;  %p10991_p0 = scmp.ge.s32.totalorder %s15330_s21, 1  ;;  %s15330_s21 = sphi %s15368_s21, %s16_s21  }
   0x2   : > { %p212_p1 = scmp.lt.s32.totalorder %s15330_s21, 3 }
   0x4   : > { %p213_p2 = pnand %p10991_p0, %p212_p1 }
   0x6   : > { %216 = sbr.rel (%p213_p2) target bundleno = 3119 (0xc2f), region = 44 }
   0xb   : > { %v11316_v0 = vld [vmem:[%s22446_s2 + $0x1c0] sm:$0xf]  ;;  %p242_p3 = scmp.lt.s32.totalorder %s10987_s22, 1  ;;  %vm10501_vm0 = vcmask 1046528   ;;  %vm10554_vm1 = vcmask 1045504   ;;  %vm10659_vm2 = vcmask 1044480  }
   0xc   : > { %v14504_v1 = vld [vmem:[%s22446_s2 + $0x1dc] sm:$0xf0]  ;;  %vm10712_vm3 = vcmask 1043456   ;;  %vm10817_vm4 = vcmask 1042432   ;;  %vm10870_vm5 = vcmask 1041408  }
   0xd   : > { %v11572_v2 = vld [vmem:[%s22446_s2 + $0x3c0] sm:$0xf]  ;;  %v11317_v3 = vor.u32 %v14504_v1, %v11316_v0  ;;  %s22970_s22 = smov (!%p242_p3, %s10987_s22), 1 }
   0xe   : > { %v14568_v4 = vld [vmem:[%s22446_s2 + $0x3dc] sm:$0xf0]  ;;  %s15305_s17 = smul.u32 208, %s22970_s22 }
   0xf   : > { %v11828_v5 = vld [vmem:[%s22446_s2 + $0x5c0] sm:$0xf]  ;;  %v11573_v7 = vor.u32 %v14568_v4, %v11572_v2  ;;  %1948 = vmatpush.bf16.msra.mxu0 %v11317_v3  ;;  %s15306_s10 = smul.u32 40, %s22970_s22 }
  0x10   : > { %v14632_v6 = vld [vmem:[%s22446_s2 + $0x5dc] sm:$0xf0]  ;;  %s15587_s28 = scalar_lea.vmem %s22444_s0, %s15305_s17 }
  0x11   : > { %v11829_v8 = vor.u32 %v14632_v6, %v11828_v5  ;;  %v12084_v9 = vld [vmem:[%s22446_s2 + $0x7c0] sm:$0xf]  ;;  %1991 = vmatpush.bf16.msra.mxu1 %v11573_v7  ;;  %s22411_s13 = scalar_lea.vmem %s22450_s6, %s15306_s10 }
  0x12   : > { %v14696_v10 = vld [vmem:[%s22446_s2 + $0x7dc] sm:$0xf0] }
  0x13   : > { %v11284_v11 = vld [vmem:[%s22446_s2 + $0x180] sm:$0xf]  ;;  %v12085_v12 = vor.u32 %v14696_v10, %v12084_v9  ;;  %2034 = vmatpush.bf16.msra.mxu2 %v11829_v8 }
  0x14   : > { %v14496_v13 = vld [vmem:[%s22446_s2 + $0x19c] sm:$0xf0] }
  0x15   : > { %v11540_v14 = vld [vmem:[%s22446_s2 + $0x380] sm:$0xf]  ;;  %v11285_v16 = vor.u32 %v14496_v13, %v11284_v11  ;;  %2077 = vmatpush.bf16.msra.mxu3 %v12085_v12 }
  0x16   : > { %v14560_v15 = vld [vmem:[%s22446_s2 + $0x39c] sm:$0xf0] }
  0x17   : > { %v11541_v17 = vor.u32 %v14560_v15, %v11540_v14  ;;  %v11796_v18 = vld [vmem:[%s22446_s2 + $0x580] sm:$0xf]  ;;  %1949 = vmatpush.bf16.msra.mxu0 %v11285_v16  ;;  %v15332_v16 = vmov 0  }
  0x18   : > { %v14624_v19 = vld [vmem:[%s22446_s2 + $0x59c] sm:$0xf0]  ;;  %15316 = vset.pattern.permute.xlu0 %v15332_v16  ;;  %15317 = vset.pattern.permute.xlu1 %v15332_v16 }
  0x19   : > { %v12052_v20 = vld [vmem:[%s22446_s2 + $0x780] sm:$0xf]  ;;  %v11797_v21 = vor.u32 %v14624_v19, %v11796_v18  ;;  %1992 = vmatpush.bf16.msra.mxu1 %v11541_v17  ;;  %15318 = vset.pattern.permute.xlu2 %v15332_v16  ;;  %v11510_v16 = vld [vmem:[%s22446_s2 + $0x360] sm:$0xf0] }
  0x1a   : > { %v14688_v22 = vld [vmem:[%s22446_s2 + $0x79c] sm:$0xf0] }
  0x1b   : > { %v11252_v23 = vld [vmem:[%s22446_s2 + $0x140] sm:$0xf]  ;;  %v12053_v25 = vor.u32 %v14688_v22, %v12052_v20  ;;  %2035 = vmatpush.bf16.msra.mxu2 %v11797_v21 }
  0x1c   : > { %v14488_v24 = vld [vmem:[%s22446_s2 + $0x15c] sm:$0xf0] }
  0x1d   : > { %v11508_v26 = vld [vmem:[%s22446_s2 + $0x340] sm:$0xf]  ;;  %v11253_v29 = vor.u32 %v14488_v24, %v11252_v23  ;;  %2078 = vmatpush.bf16.msra.mxu3 %v12053_v25 }
  0x1e   : > { %v14552_v27 = vld [vmem:[%s22446_s2 + $0x35c] sm:$0xf0] }
  0x1f   : > { %v11764_v28 = vld [vmem:[%s22446_s2 + $0x540] sm:$0xf]  ;;  %v11509_v33 = vor.u32 %v14552_v27, %v11508_v26  ;;  %1950 = vmatpush.bf16.msra.mxu0 %v11253_v29 }
  0x20   : > { %v14616_v30 = vld [vmem:[%s22446_s2 + $0x55c] sm:$0xf0] }
  0x21   : > { %v12020_v31 = vld [vmem:[%s22446_s2 + $0x740] sm:$0xf]  ;;  %v11765_v34 = vor.u32 %v14616_v30, %v11764_v28  ;;  %1993 = vmatpush.bf16.msra.mxu1 %v11509_v33  ;;  %v14628_v30 = vld [vmem:[%s22446_s2 + $0x5c4] sm:$0xf] }
  0x22   : > { %v14680_v32 = vld [vmem:[%s22446_s2 + $0x75c] sm:$0xf0]  ;;  %v14500_v33 = vld [vmem:[%s22446_s2 + $0x1c4] sm:$0xf] }
  0x23   : > { %v11220_v35 = vld [vmem:[%s22446_s2 + $0x100] sm:$0xf]  ;;  %v12021_v38 = vor.u32 %v14680_v32, %v12020_v31  ;;  %2036 = vmatpush.bf16.msra.mxu2 %v11765_v34  ;;  %v11830_v31 = vld [vmem:[%s22446_s2 + $0x5e0] sm:$0xf0] }
  0x24   : > { %v14480_v36 = vld [vmem:[%s22446_s2 + $0x11c] sm:$0xf0]  ;;  %v11318_v34 = vld [vmem:[%s22446_s2 + $0x1e0] sm:$0xf0] }
  0x25   : > { %v11476_v37 = vld [vmem:[%s22446_s2 + $0x300] sm:$0xf]  ;;  %v11221_v44 = vor.u32 %v14480_v36, %v11220_v35  ;;  %2079 = vmatpush.bf16.msra.mxu3 %v12021_v38  ;;  %v14692_v35 = vld [vmem:[%s22446_s2 + $0x7c4] sm:$0xf] }
  0x26   : > { %v14544_v39 = vld [vmem:[%s22446_s2 + $0x31c] sm:$0xf0]  ;;  %v12086_v36 = vld [vmem:[%s22446_s2 + $0x7e0] sm:$0xf0] }
  0x27   : > { %v11732_v40 = vld [vmem:[%s22446_s2 + $0x500] sm:$0xf]  ;;  %v11477_v45 = vor.u32 %v14544_v39, %v11476_v37  ;;  %1951 = vmatpush.bf16.msra.mxu0 %v11221_v44  ;;  %v14620_v44 = vld [vmem:[%s22446_s2 + $0x584] sm:$0xf] }
  0x28   : > { %v14608_v41 = vld [vmem:[%s22446_s2 + $0x51c] sm:$0xf0] }
  0x29   : > { %v11988_v42 = vld [vmem:[%s22446_s2 + $0x700] sm:$0xf]  ;;  %v11733_v46 = vor.u32 %v14608_v41, %v11732_v40  ;;  %1994 = vmatpush.bf16.msra.mxu1 %v11477_v45  ;;  %v14422_v40 = vld [vmem:[%s15587_s28 + $0xc] sm:$0xf0]  ;;  %v14420_v41 = vld [vmem:[%s15587_s28 + $0x4] sm:$0xf] }
  0x2a   : > { %v14672_v43 = vld [vmem:[%s22446_s2 + $0x71c] sm:$0xf0] }
  0x2b   : > { %v11188_v47 = vld [vmem:[%s22446_s2 + $0xc0] sm:$0xf]  ;;  %v11989_v50 = vor.u32 %v14672_v43, %v11988_v42  ;;  %2037 = vmatpush.bf16.msra.mxu2 %v11733_v46  ;;  %v14564_v42 = vld [vmem:[%s22446_s2 + $0x3c4] sm:$0xf]  ;;  %v10998_v46 = vld [vmem:[%s15587_s28 + $0x10] sm:$0xf0] }
  0x2c   : > { %v14472_v48 = vld [vmem:[%s22446_s2 + $0xdc] sm:$0xf0]  ;;  %v11574_v43 = vld [vmem:[%s22446_s2 + $0x3e0] sm:$0xf0] }
  0x2d   : > { %v11444_v49 = vld [vmem:[%s22446_s2 + $0x2c0] sm:$0xf]  ;;  %v11189_v56 = vor.u32 %v14472_v48, %v11188_v47  ;;  %2080 = vmatpush.bf16.msra.mxu3 %v11989_v50  ;;  %v11004_v47 = vld [vmem:[%s15587_s28 + $0x8] sm:$0xf]  ;;  %v14423_v48 = vld [vmem:[%s15587_s28 + $0x14] sm:$0xf0] }
  0x2e   : > { %v14536_v51 = vld [vmem:[%s22446_s2 + $0x2dc] sm:$0xf0] }
  0x2f   : > { %v11700_v52 = vld [vmem:[%s22446_s2 + $0x4c0] sm:$0xf]  ;;  %v11445_v57 = vor.u32 %v14536_v51, %v11444_v49  ;;  %1952 = vmatpush.bf16.msra.mxu0 %v11189_v56  ;;  %v11833_v49 = vor.u32 %v14628_v30, %v11830_v31  ;;  %v14421_v51 = vld [vmem:[%s15587_s28 + $0xc] sm:$0xf]  ;;  %v15625_v56 = vor.u32 %v14423_v48, %v11004_v47  ;;  %v11478_v30 = vld [vmem:[%s22446_s2 + $0x320] sm:$0xf0] }
  0x30   : > { %v14600_v53 = vld [vmem:[%s22446_s2 + $0x4dc] sm:$0xf0]  ;;  %v14426_v31 = vld [vmem:[%s15587_s28 + $0x2c] sm:$0xf0]  ;;  %v14468_v47 = vld [vmem:[%s22446_s2 + $0xc4] sm:$0xf] }
  0x31   : > { %v11956_v54 = vld [vmem:[%s22446_s2 + $0x6c0] sm:$0xf]  ;;  %v11701_v58 = vor.u32 %v14600_v53, %v11700_v52  ;;  %1995 = vmatpush.bf16.msra.mxu1 %v11445_v57  ;;  %v11006_v52 = vld [vmem:[%s15587_s28 + $0x18] sm:$0xf0]  ;;  %v12089_v53 = vor.u32 %v14692_v35, %v12086_v36  ;;  %v14684_v57 = vld [vmem:[%s22446_s2 + $0x784] sm:$0xf] }
  0x32   : > { %v14664_v55 = vld [vmem:[%s22446_s2 + $0x6dc] sm:$0xf0]  ;;  %v14427_v35 = vld [vmem:[%s15587_s28 + $0x34] sm:$0xf0] }
  0x33   : > { %v11156_v59 = vld [vmem:[%s22446_s2 + $0x80] sm:$0xf]  ;;  %v11957_v62 = vor.u32 %v14664_v55, %v11956_v54  ;;  %2038 = vmatpush.bf16.msra.mxu2 %v11701_v58  ;;  %v11798_v54 = vld [vmem:[%s22446_s2 + $0x5a0] sm:$0xf0]  ;;  %v15623_v55 = vor.u32 %v14420_v41, %v10998_v46  ;;  %v3327_v36 = vld [vmem:[%s22445_s1 + $0x18] sm:$0xff] }
  0x34   : > { %v14464_v60 = vld [vmem:[%s22446_s2 + $0x9c] sm:$0xf0]  ;;  %v12054_v58 = vld [vmem:[%s22446_s2 + $0x7a0] sm:$0xf0] }
  0x35   : > { %v11412_v61 = vld [vmem:[%s22446_s2 + $0x280] sm:$0xf]  ;;  %v11157_v4 = vor.u32 %v14464_v60, %v11156_v59  ;;  %2081 = vmatpush.bf16.msra.mxu3 %v11957_v62  ;;  %v15633_v59 = vor.u32 %v14421_v51, %v11006_v52  ;;  %v11321_v60 = vor.u32 %v14500_v33, %v11318_v34  ;;  %v11801_v62 = vor.u32 %v14620_v44, %v11798_v54  ;;  %v11014_v33 = vld [vmem:[%s15587_s28 + $0x30] sm:$0xf0]  ;;  %v11020_v34 = vld [vmem:[%s15587_s28 + $0x28] sm:$0xf] }
  0x36   : > { %v14528_v63 = vld [vmem:[%s22446_s2 + $0x29c] sm:$0xf0]  ;;  %v11702_v46 = vld [vmem:[%s22446_s2 + $0x4e0] sm:$0xf0] }
  0x37   : > { %v11668_v0 = vld [vmem:[%s22446_s2 + $0x480] sm:$0xf]  ;;  %v11413_v6 = vor.u32 %v14528_v63, %v11412_v61  ;;  %1953 = vmatpush.bf16.msra.mxu0 %v11157_v4  ;;  %v11577_v61 = vor.u32 %v14564_v42, %v11574_v43  ;;  %v14492_v63 = vld [vmem:[%s22446_s2 + $0x184] sm:$0xf]  ;;  %v15720_v43 = vor.u32 %v14427_v35, %v11020_v34 }
  0x38   : > { %v14592_v1 = vld [vmem:[%s22446_s2 + $0x49c] sm:$0xf0]  ;;  %v14612_v4 = vld [vmem:[%s22446_s2 + $0x544] sm:$0xf] }
  0x39   : > { %v11924_v2 = vld [vmem:[%s22446_s2 + $0x680] sm:$0xf]  ;;  %v11669_v7 = vor.u32 %v14592_v1, %v11668_v0  ;;  %1996 = vmatpush.bf16.msra.mxu1 %v11413_v6  ;;  %v11286_v0 = vld [vmem:[%s22446_s2 + $0x1a0] sm:$0xf0]  ;;  %v3325_v6 = vld [vmem:[%s22445_s1 + $0x8] sm:$0xff]  ;;  %22583 = vst [vmem:[#allocation3_spill] sm:$0xff] %v15720_v43 }
  0x3a   : > { %v14656_v3 = vld [vmem:[%s22446_s2 + $0x69c] sm:$0xf0]  ;;  %v14556_v1 = vld [vmem:[%s22446_s2 + $0x384] sm:$0xf] }
  0x3b   : > { %v11124_v5 = vld [vmem:[%s22446_s2 + $0x40] sm:$0xf]  ;;  %v11925_v11 = vor.u32 %v14656_v3, %v11924_v2  ;;  %2039 = vmatpush.bf16.msra.mxu2 %v11669_v7  ;;  %v12057_v2 = vor.u32 %v14684_v57, %v12054_v58  ;;  %v11542_v3 = vld [vmem:[%s22446_s2 + $0x3a0] sm:$0xf0] }
  0x3c   : > { %v14456_v8 = vld [vmem:[%s22446_s2 + $0x5c] sm:$0xf0]  ;;  %v14676_v7 = vld [vmem:[%s22446_s2 + $0x744] sm:$0xf] }
  0x3d   : > { %v11380_v9 = vld [vmem:[%s22446_s2 + $0x240] sm:$0xf]  ;;  %v11125_v17 = vor.u32 %v14456_v8, %v11124_v5  ;;  %2082 = vmatpush.bf16.msra.mxu3 %v11925_v11  ;;  %v11766_v5 = vld [vmem:[%s22446_s2 + $0x560] sm:$0xf0] }
  0x3e   : > { %v14520_v10 = vld [vmem:[%s22446_s2 + $0x25c] sm:$0xf0]  ;;  %v12022_v8 = vld [vmem:[%s22446_s2 + $0x760] sm:$0xf0]  ;;  %v11769_v11 = vor.u32 %v14612_v4, %v11766_v5  ;;  %v11038_v4 = vld [vmem:[%s15587_s28 + $0x58] sm:$0xf0] }
  0x3f   : > { %v11636_v12 = vld [vmem:[%s22446_s2 + $0x440] sm:$0xf]  ;;  %v11381_v21 = vor.u32 %v14520_v10, %v11380_v9  ;;  %1954 = vmatpush.bf16.msra.mxu0 %v11125_v17  ;;  %v11289_v9 = vor.u32 %v14492_v63, %v11286_v0  ;;  %v11545_v10 = vor.u32 %v14556_v1, %v11542_v3  ;;  %v3326_v17 = vld [vmem:[%s22445_s1 + $0x10] sm:$0xff]  ;;  %v14660_v51 = vld [vmem:[%s22446_s2 + $0x6c4] sm:$0xf] }
  0x40   : > { %v14584_v13 = vld [vmem:[%s22446_s2 + $0x45c] sm:$0xf0]  ;;  %3350 = vperm.xlu1 %15317, %v3326_v17   ;;  %v11958_v52 = vld [vmem:[%s22446_s2 + $0x6e0] sm:$0xf0]  ;;  %v11030_v0 = vld [vmem:[%s15587_s28 + $0x50] sm:$0xf0] }
  0x41   : > { %v11892_v14 = vld [vmem:[%s22446_s2 + $0x640] sm:$0xf]  ;;  %v11637_v22 = vor.u32 %v14584_v13, %v11636_v12  ;;  %1997 = vmatpush.bf16.msra.mxu1 %v11381_v21  ;;  %v14484_v12 = vld [vmem:[%s22446_s2 + $0x144] sm:$0xf]  ;;  %v11961_v54 = vor.u32 %v14660_v51, %v11958_v52  ;;  %v11036_v1 = vld [vmem:[%s15587_s28 + $0x48] sm:$0xf] }
  0x42   : > { %v14648_v15 = vld [vmem:[%s22446_s2 + $0x65c] sm:$0xf0]  ;;  %v11254_v13 = vld [vmem:[%s22446_s2 + $0x160] sm:$0xf0]  ;;  %v14429_v3 = vld [vmem:[%s15587_s28 + $0x4c] sm:$0xf] }
  0x43   : > { %v11092_v18 = vld [vmem:[%s22446_s2] sm:$0xf]  ;;  %v11893_v26 = vor.u32 %v14648_v15, %v11892_v14  ;;  %2040 = vmatpush.bf16.msra.mxu2 %v11637_v22  ;;  %v14548_v14 = vld [vmem:[%s22446_s2 + $0x344] sm:$0xf]  ;;  %v12025_v15 = vor.u32 %v14676_v7, %v12022_v8  ;;  %v15766_v8 = vor.u32 %v14429_v3, %v11038_v4 }
  0x44   : > { %v14448_v19 = vld [vmem:[%s22446_s2 + $0x1c] sm:$0xf0]  ;;  %v14668_v21 = vld [vmem:[%s22446_s2 + $0x704] sm:$0xf] }
  0x45   : > { %v3324_v20 = vld [vmem:[%s22445_s1] sm:$0xff]  ;;  %v11093_v32 = vor.u32 %v14448_v19, %v11092_v18  ;;  %2083 = vmatpush.bf16.msra.mxu3 %v11893_v26 }
  0x46   : > { %v11348_v23 = vld [vmem:[%s22446_s2 + $0x200] sm:$0xf]  ;;  %3340 = vperm.xlu0 %15316, %v3324_v20   ;;  %v14604_v18 = vld [vmem:[%s22446_s2 + $0x504] sm:$0xf]  ;;  %v11257_v20 = vor.u32 %v14484_v12, %v11254_v13 }
  0x47   : > { %v14512_v24 = vld [vmem:[%s22446_s2 + $0x21c] sm:$0xf0]  ;;  %1955 = vmatpush.bf16.msra.mxu0 %v11093_v32  ;;  %v11734_v19 = vld [vmem:[%s22446_s2 + $0x520] sm:$0xf0] }
  0x48   : > { %v11604_v25 = vld [vmem:[%s22446_s2 + $0x400] sm:$0xf]  ;;  %v11349_v37 = vor.u32 %v14512_v24, %v11348_v23  ;;  %v11990_v22 = vld [vmem:[%s22446_s2 + $0x720] sm:$0xf0]  ;;  %v11513_v24 = vor.u32 %v14548_v14, %v11510_v16  ;;  %3355 = vperm.xlu1 %15317, %v3327_v36   ;;  %v3329_v36 = vld [vmem:[%s22445_s1 + $0x28] sm:$0xff] }
  0x49   : > { %v14576_v27 = vld [vmem:[%s22446_s2 + $0x41c] sm:$0xf0]  ;;  %v14476_v26 = vld [vmem:[%s22446_s2 + $0x104] sm:$0xf] }
  0x4a   : > { %v11860_v28 = vld [vmem:[%s22446_s2 + $0x600] sm:$0xf]  ;;  %v11605_v38 = vor.u32 %v14576_v27, %v11604_v25  ;;  %1998 = vmatpush.bf16.msra.mxu1 %v11349_v37  ;;  %v11737_v25 = vor.u32 %v14604_v18, %v11734_v19  ;;  %v11222_v27 = vld [vmem:[%s22446_s2 + $0x120] sm:$0xf0] }
  0x4b   : > { %v14640_v29 = vld [vmem:[%s22446_s2 + $0x61c] sm:$0xf0]  ;;  %2120 = vmatpush.bf16.msrb.mxu0 %v11321_v60  ;;  %v14424_v32 = vld [vmem:[%s15587_s28 + $0x24] sm:$0xf]  ;;  %v11225_v37 = vor.u32 %v14476_v26, %v11222_v27  ;;  %v11046_v27 = vld [vmem:[%s15587_s28 + $0x70] sm:$0xf0] }
  0x4c   : > { %v10996_v39 = vld [vmem:[%s15587_s28] sm:$0xf]  ;;  %v11861_v45 = vor.u32 %v14640_v29, %v11860_v28  ;;  %2041 = vmatpush.bf16.msra.mxu2 %v11605_v38  ;;  %v11993_v28 = vor.u32 %v14668_v21, %v11990_v22  ;;  %v14540_v29 = vld [vmem:[%s22446_s2 + $0x304] sm:$0xf]  ;;  %v14425_v38 = vld [vmem:[%s15587_s28 + $0x2c] sm:$0xf]  ;;  %v15718_v42 = vor.u32 %v14424_v32, %v11014_v33 }
  0x4d   : > { %v15616_v50 = vor.u32 %v14422_v40, %v10996_v39  ;;  %1999 = vmatmul.bf16.vlgmr.msra.gmra.mxu1 %v15623_v55  ;;  %v11012_v23 = vld [vmem:[%s15587_s28 + $0x20] sm:$0xf]  ;;  %v11022_v39 = vld [vmem:[%s15587_s28 + $0x38] sm:$0xf0]  ;;  %v11481_v40 = vor.u32 %v14540_v29, %v11478_v30  ;;  %v14532_v57 = vld [vmem:[%s22446_s2 + $0x2c4] sm:$0xf] }
  0x4e   : > { %2084 = vmatpush.bf16.msra.mxu3 %v11861_v45  ;;  %2163 = vmatpush.bf16.msrb.mxu1 %v11577_v61  ;;  %v15716_v41 = vor.u32 %v14426_v31, %v11012_v23  ;;  %22582 = vst [vmem:[#allocation2_spill] sm:$0xff] %v15718_v42  ;;  %v15722_v44 = vor.u32 %v14425_v38, %v11022_v39  ;;  %v14596_v45 = vld [vmem:[%s22446_s2 + $0x4c4] sm:$0xf]  ;;  %v11028_v61 = vld [vmem:[%s15587_s28 + $0x40] sm:$0xf]  ;;  %v3331_v23 = vld [vmem:[%s22445_s1 + $0x38] sm:$0xff] }
  0x4f   : > { %1956 = vmatmul.bf16.vlgmr.msra.gmra.mxu0 %v15616_v50  ;;  %2042 = vmatmul.bf16.vlgmr.msra.gmra.mxu2 %v15625_v56  ;;  %v11705_v48 = vor.u32 %v14596_v45, %v11702_v46  ;;  %v11446_v58 = vld [vmem:[%s22446_s2 + $0x2e0] sm:$0xf0]  ;;  %v14435_v29 = vld [vmem:[%s15587_s28 + $0x74] sm:$0xf0]  ;;  %v14433_v30 = vld [vmem:[%s15587_s28 + $0x6c] sm:$0xf] }
  0x50   : > { %2206 = vmatpush.bf16.msrb.mxu2 %v11833_v49  ;;  %3345 = vperm.xlu0 %15316, %v3325_v6   ;;  %22584 = vst [vmem:[#allocation4_spill] sm:$0xff] %v15722_v44  ;;  %v11190_v49 = vld [vmem:[%s22446_s2 + $0xe0] sm:$0xf0]  ;;  %v11449_v60 = vor.u32 %v14532_v57, %v11446_v58  ;;  %v11054_v31 = vld [vmem:[%s15587_s28 + $0x78] sm:$0xf0] }
  0x51   : > { %2085 = vmatmul.bf16.vlgmr.msra.gmra.mxu3 %v15633_v59  ;;  %2121 = vmatpush.bf16.msrb.mxu0 %v11289_v9  ;;  %v14428_v63 = vld [vmem:[%s15587_s28 + $0x44] sm:$0xf]  ;;  %v3330_v9 = vld [vmem:[%s22445_s1 + $0x30] sm:$0xff]  ;;  %v15819_v35 = vor.u32 %v14433_v30, %v11054_v31  ;;  %v11060_v57 = vld [vmem:[%s15587_s28 + $0x80] sm:$0xf] }
  0x52   : > { %2249 = vmatpush.bf16.msrb.mxu3 %v12089_v53  ;;  %2164 = vmatpush.bf16.msrb.mxu1 %v11545_v10  ;;  %v11193_v53 = vor.u32 %v14468_v47, %v11190_v49  ;;  %v15762_v6 = vor.u32 %v14428_v63, %v11030_v0  ;;  %v14588_v10 = vld [vmem:[%s22446_s2 + $0x484] sm:$0xf]  ;;  %v14438_v58 = vld [vmem:[%s15587_s28 + $0x8c] sm:$0xf0]  ;;  %v14439_v63 = vld [vmem:[%s15587_s28 + $0x94] sm:$0xf0] }
  0x53   : > { %v14460_v13 = vld [vmem:[%s22446_s2 + $0x84] sm:$0xf]  ;;  %3375 = vperm.xlu1 %15317, %v3331_v23   ;;  %v14437_v0 = vld [vmem:[%s15587_s28 + $0x8c] sm:$0xf]  ;;  %v11086_v31 = vld [vmem:[%s15587_s28 + $0xb8] sm:$0xf0] }
  0x54   : > { %2207 = vmatpush.bf16.msrb.mxu2 %v11801_v62  ;;  %v14430_v62 = vld [vmem:[%s15587_s28 + $0x4c] sm:$0xf0]  ;;  %v11158_v14 = vld [vmem:[%s22446_s2 + $0xa0] sm:$0xf0]  ;;  %v14441_v30 = vld [vmem:[%s15587_s28 + $0xac] sm:$0xf] }
  0x55   : > { %2122 = vmatpush.bf16.msrb.mxu0 %v11257_v20  ;;  %v15760_v5 = vor.u32 %v14430_v62, %v11028_v61  ;;  %v11161_v16 = vor.u32 %v14460_v13, %v11158_v14  ;;  %v11926_v17 = vld [vmem:[%s22446_s2 + $0x6a0] sm:$0xf0]  ;;  %v11062_v61 = vld [vmem:[%s15587_s28 + $0x90] sm:$0xf0]  ;;  %v11068_v62 = vld [vmem:[%s15587_s28 + $0x88] sm:$0xf] }
  0x56   : > { %2250 = vmatpush.bf16.msrb.mxu3 %v12057_v2  ;;  %2165 = vmatpush.bf16.msrb.mxu1 %v11513_v24  ;;  %v14431_v2 = vld [vmem:[%s15587_s28 + $0x54] sm:$0xf0]  ;;  %v14524_v18 = vld [vmem:[%s22446_s2 + $0x284] sm:$0xf]  ;;  %v11044_v24 = vld [vmem:[%s15587_s28 + $0x60] sm:$0xf]  ;;  %v15867_v4 = vor.u32 %v14439_v63, %v11068_v62 }
  0x57   : > { %v15764_v7 = vor.u32 %v14431_v2, %v11036_v1  ;;  %v11414_v19 = vld [vmem:[%s22446_s2 + $0x2a0] sm:$0xf0]  ;;  %v11070_v1 = vld [vmem:[%s15587_s28 + $0x98] sm:$0xf0]  ;;  %v15863_v2 = vor.u32 %v14438_v58, %v11060_v57  ;;  %v11580_v57 = vld [vmem:[%s22446_s2 + $0x3c8] sm:$0xf] }
  0x58   : > { %2208 = vmatpush.bf16.msrb.mxu2 %v11769_v11  ;;  %v11670_v11 = vld [vmem:[%s22446_s2 + $0x4a0] sm:$0xf0]  ;;  %3370 = vperm.xlu0 %15316, %v3330_v9   ;;  %v11417_v21 = vor.u32 %v14524_v18, %v11414_v19  ;;  %v15869_v9 = vor.u32 %v14437_v0, %v11070_v1  ;;  %v14569_v58 = vld [vmem:[%s22446_s2 + $0x3e4] sm:$0xf0] }
  0x59   : > { %2123 = vmatpush.bf16.msrb.mxu0 %v11225_v37  ;;  %v11673_v12 = vor.u32 %v14588_v10, %v11670_v11  ;;  %v3328_v22 = vld [vmem:[%s22445_s1 + $0x20] sm:$0xff]  ;;  %v277_v62 = vld [vmem:[%s15587_s28 + $0xc8] sm:$0x77] }
  0x5a   : > { %2251 = vmatpush.bf16.msrb.mxu3 %v12025_v15  ;;  %2166 = vmatpush.bf16.msrb.mxu1 %v11481_v40  ;;  %v14652_v15 = vld [vmem:[%s22446_s2 + $0x684] sm:$0xf]  ;;  %v610_v1 = vunpack.c.l.b16 %v277_v62 }
  0x5b   : > { %v11929_v20 = vor.u32 %v14652_v15, %v11926_v17  ;;  %3360 = vperm.xlu2 %15318, %v3328_v22   ;;  %v14432_v26 = vld [vmem:[%s15587_s28 + $0x64] sm:$0xf] }
  0x5c   : > { %2209 = vmatpush.bf16.msrb.mxu2 %v11737_v25  ;;  %v14434_v25 = vld [vmem:[%s15587_s28 + $0x6c] sm:$0xf0]  ;;  %v15815_v33 = vor.u32 %v14432_v26, %v11046_v27  ;;  %v14580_v37 = vld [vmem:[%s22446_s2 + $0x444] sm:$0xf]  ;;  %v11078_v27 = vld [vmem:[%s15587_s28 + $0xb0] sm:$0xf0] }
  0x5d   : > { %2004 = vmatmul.bf16.gmra.mxu1 %v15718_v42  ;;  %2124 = vmatpush.bf16.msrb.mxu0 %v11193_v53  ;;  %v15813_v32 = vor.u32 %v14434_v25, %v11044_v24  ;;  %v11638_v38 = vld [vmem:[%s22446_s2 + $0x460] sm:$0xf0]  ;;  %v11076_v24 = vld [vmem:[%s15587_s28 + $0xa0] sm:$0xf]  ;;  %v14442_v25 = vld [vmem:[%s15587_s28 + $0xac] sm:$0xf0] }
  0x5e   : > { %2252 = vmatpush.bf16.msrb.mxu3 %v11993_v28  ;;  %2167 = vmatpush.bf16.msrb.mxu1 %v11449_v60  ;;  %v11052_v28 = vld [vmem:[%s15587_s28 + $0x68] sm:$0xf]  ;;  %v11641_v39 = vor.u32 %v14580_v37, %v11638_v38  ;;  %v14452_v40 = vld [vmem:[%s22446_s2 + $0x44] sm:$0xf] }
  0x5f   : > { %1961 = vmatmul.bf16.gmra.mxu0 %v15716_v41  ;;  %2047 = vmatmul.bf16.gmra.mxu2 %v15720_v43  ;;  %v15817_v34 = vor.u32 %v14435_v29, %v11052_v28  ;;  %v11126_v45 = vld [vmem:[%s22446_s2 + $0x60] sm:$0xf0]  ;;  %v11084_v28 = vld [vmem:[%s15587_s28 + $0xa8] sm:$0xf]  ;;  %v14443_v29 = vld [vmem:[%s15587_s28 + $0xb4] sm:$0xf0] }
  0x60   : > { %2210 = vmatpush.bf16.msrb.mxu2 %v11705_v48  ;;  %v14644_v46 = vld [vmem:[%s22446_s2 + $0x644] sm:$0xf]  ;;  %v11129_v47 = vor.u32 %v14452_v40, %v11126_v45  ;;  %v15917_v38 = vor.u32 %v14443_v29, %v11084_v28  ;;  %v11836_v40 = vld [vmem:[%s22446_s2 + $0x5c8] sm:$0xf] }
  0x61   : > { %2090 = vmatmul.bf16.gmra.mxu3 %v15722_v44  ;;  %2125 = vmatpush.bf16.msrb.mxu0 %v11161_v16  ;;  %v11894_v48 = vld [vmem:[%s22446_s2 + $0x660] sm:$0xf0]  ;;  %v14633_v45 = vld [vmem:[%s22446_s2 + $0x5e4] sm:$0xf0] }
  0x62   : > { %2253 = vmatpush.bf16.msrb.mxu3 %v11961_v54  ;;  %2168 = vmatpush.bf16.msrb.mxu1 %v11417_v21  ;;  %v14516_v49 = vld [vmem:[%s22446_s2 + $0x244] sm:$0xf]  ;;  %v11897_v52 = vor.u32 %v14644_v46, %v11894_v48  ;;  %v3333_v54 = vld [vmem:[%s22445_s1 + $0x48] sm:$0xff] }
  0x63   : > { %3365 = vperm.xlu2 %15318, %v3329_v36   ;;  %v11382_v51 = vld [vmem:[%s22446_s2 + $0x260] sm:$0xf0]  ;;  %3385 = vperm.xlu0 %15316, %v3333_v54   ;;  %v15913_v36 = vor.u32 %v14442_v25, %v11076_v24  ;;  %v11324_v46 = vld [vmem:[%s22446_s2 + $0x1c8] sm:$0xf] }
  0x64   : > { %2211 = vmatpush.bf16.msrb.mxu2 %v11673_v12  ;;  %v11385_v53 = vor.u32 %v14516_v49, %v11382_v51  ;;  %v14436_v60 = vld [vmem:[%s15587_s28 + $0x84] sm:$0xf]  ;;  %v3334_v12 = vld [vmem:[%s22445_s1 + $0x50] sm:$0xff]  ;;  %v14505_v48 = vld [vmem:[%s22446_s2 + $0x1e4] sm:$0xf0] }
  0x65   : > { %2126 = vmatpush.bf16.msrb.mxu0 %v11129_v47  ;;  %v15865_v3 = vor.u32 %v14436_v60, %v11062_v61  ;;  %v14572_v10 = vld [vmem:[%s22446_s2 + $0x404] sm:$0xf]  ;;  %3390 = vperm.xlu1 %15317, %v3334_v12   ;;  %v11837_v47 = vor.u32 %v14633_v45, %v11836_v40  ;;  %v12092_v49 = vld [vmem:[%s22446_s2 + $0x7c8] sm:$0xf]  ;;  %v11581_v61 = vor.u32 %v14569_v58, %v11580_v57 }
  0x66   : > { %2254 = vmatpush.bf16.msrb.mxu3 %v11929_v20  ;;  %2169 = vmatpush.bf16.msrb.mxu1 %v11385_v53  ;;  %v11606_v11 = vld [vmem:[%s22446_s2 + $0x420] sm:$0xf0]  ;;  %v14697_v51 = vld [vmem:[%s22446_s2 + $0x7e4] sm:$0xf0] }
  0x67   : > { %v11609_v13 = vor.u32 %v14572_v10, %v11606_v11  ;;  %v14444_v14 = vld [vmem:[%s22446_s2 + $0x4] sm:$0xf]  ;;  %v12093_v53 = vor.u32 %v14697_v51, %v12092_v49  ;;  %v611_v10 = vunpack.c.h.b16 %v277_v62  ;;  %v14561_v24 = vld [vmem:[%s22446_s2 + $0x3a4] sm:$0xf0] }
  0x68   : > { %2212 = vmatpush.bf16.msrb.mxu2 %v11641_v39  ;;  %v11094_v15 = vld [vmem:[%s22446_s2 + $0x20] sm:$0xf0]  ;;  %v15919_v39 = vor.u32 %v14441_v30, %v11086_v31  ;;  %v11772_v28 = vld [vmem:[%s22446_s2 + $0x548] sm:$0xf] }
  0x69   : > { %v14636_v16 = vld [vmem:[%s22446_s2 + $0x604] sm:$0xf]  ;;  %v11097_v17 = vor.u32 %v14444_v14, %v11094_v15  ;;  %v15960_v14 = vpack.c.b16 %v611_v10, %v611_v10  ;;  %v11804_v15 = vld [vmem:[%s22446_s2 + $0x588] sm:$0xf] }
  0x6a   : > { %2255 = vmatpush.bf16.msrb.mxu3 %v11897_v52  ;;  %v11862_v18 = vld [vmem:[%s22446_s2 + $0x620] sm:$0xf0]  ;;  %v11325_v52 = vor.u32 %v14505_v48, %v11324_v46  ;;  %v14617_v29 = vld [vmem:[%s22446_s2 + $0x564] sm:$0xf0] }
  0x6b   : > { %v14508_v19 = vld [vmem:[%s22446_s2 + $0x204] sm:$0xf]  ;;  %v11865_v21 = vor.u32 %v14636_v16, %v11862_v18  ;;  %2127 = vmatpush.bf16.msrb.mxu0 %v11097_v17  ;;  %22587 = vst [vmem:[#allocation7_spill] sm:$0xff] %v15960_v14  ;;  %v14625_v16 = vld [vmem:[%s22446_s2 + $0x5a4] sm:$0xf0]  ;;  %v11773_v31 = vor.u32 %v14617_v29, %v11772_v28 }
  0x6c   : > { %v11350_v20 = vld [vmem:[%s22446_s2 + $0x220] sm:$0xf0]  ;;  %2213 = vmatpush.bf16.msrb.mxu2 %v11609_v13  ;;  %v15958_v13 = vpack.c.b16 %v610_v1, %v610_v1  ;;  %v11805_v17 = vor.u32 %v14625_v16, %v11804_v15  ;;  %v11292_v18 = vld [vmem:[%s22446_s2 + $0x188] sm:$0xf] }
  0x6d   : > { %2009 = vmatmul.bf16.gmra.mxu1 %v15762_v6  ;;  %v11353_v22 = vor.u32 %v14508_v19, %v11350_v20  ;;  %v3332_v23 = vld [vmem:[%s22445_s1 + $0x40] sm:$0xff]  ;;  %v14497_v19 = vld [vmem:[%s22446_s2 + $0x1a4] sm:$0xf0] }
  0x6e   : > { %3380 = vperm.xlu2 %15318, %v3332_v23   ;;  %2256 = vmatpush.bf16.msrb.mxu3 %v11865_v21  ;;  %v14440_v26 = vld [vmem:[%s15587_s28 + $0xa4] sm:$0xf]  ;;  %22586 = vst [vmem:[#allocation6_spill] sm:$0xff] %v15958_v13  ;;  %v12060_v20 = vld [vmem:[%s22446_s2 + $0x788] sm:$0xf]  ;;  %v11293_v21 = vor.u32 %v14497_v19, %v11292_v18 }
  0x6f   : > { %1966 = vmatmul.bf16.gmra.mxu0 %v15760_v5  ;;  %2052 = vmatmul.bf16.gmra.mxu2 %v15764_v7  ;;  %v15915_v37 = vor.u32 %v14440_v26, %v11078_v27  ;;  %v3336_v54 = vld [vmem:[%s22445_s1 + $0x60] sm:$0x3f]  ;;  %v11548_v23 = vld [vmem:[%s22446_s2 + $0x388] sm:$0xf]  ;;  %v3335_v27 = vld [vmem:[%s22445_s1 + $0x58] sm:$0xff] }
  0x70   : > { %2170 = vmatpush.bf16.msrb.mxu1 %v11353_v22  ;;  %v276_v60 = vld [vmem:[%s15587_s28 + $0xc0] sm:$0x77]  ;;  %2378 = vmatpush.bf16.msra.mxu2 %v11837_v47  ;;  %v14689_v22 = vld [vmem:[%s22446_s2 + $0x7a4] sm:$0xf0]  ;;  %v11549_v26 = vor.u32 %v14561_v24, %v11548_v23 }
  0x71   : > { %2095 = vmatmul.bf16.gmra.mxu3 %v15766_v8  ;;  %3400 = vperm.xlu0 %15316, %v3336_v54   ;;  %v608_v63 = vunpack.c.l.b16 %v276_v60  ;;  %v609_v0 = vunpack.c.h.b16 %v276_v60  ;;  %v12061_v25 = vor.u32 %v14689_v22, %v12060_v20  ;;  %v11260_v30 = vld [vmem:[%s22446_s2 + $0x148] sm:$0xf] }
  0x72   : > { %2292 = vmatpush.bf16.msra.mxu0 %v11325_v52  ;;  %2421 = vmatpush.bf16.msra.mxu3 %v12093_v53  ;;  %v14489_v40 = vld [vmem:[%s22446_s2 + $0x164] sm:$0xf0] }
  0x73   : > { %v15954_v11 = vpack.c.b16 %v608_v63, %v608_v63  ;;  %v15956_v12 = vpack.c.b16 %v609_v0, %v609_v0  ;;  %v12028_v45 = vld [vmem:[%s22446_s2 + $0x748] sm:$0xf]  ;;  %v11261_v47 = vor.u32 %v14489_v40, %v11260_v30 }
  0x74   : > { %2335 = vmatpush.bf16.msra.mxu1 %v11581_v61  ;;  %2379 = vmatpush.bf16.msra.mxu2 %v11805_v17  ;;  %v14681_v46 = vld [vmem:[%s22446_s2 + $0x764] sm:$0xf0] }
  0x75   : > { %22585 = vst [vmem:[#allocation5_spill] sm:$0xff] %v15956_v12  ;;  %v12029_v48 = vor.u32 %v14681_v46, %v12028_v45  ;;  %v11516_v49 = vld [vmem:[%s22446_s2 + $0x348] sm:$0xf] }
  0x76   : > { %2293 = vmatpush.bf16.msra.mxu0 %v11293_v21  ;;  %3395 = vperm.xlu2 %15318, %v3335_v27   ;;  %v14553_v51 = vld [vmem:[%s22446_s2 + $0x364] sm:$0xf0] }
  0x77   : > { %2422 = vmatpush.bf16.msra.mxu3 %v12061_v25  ;;  %v11517_v52 = vor.u32 %v14553_v51, %v11516_v49  ;;  %v11740_v53 = vld [vmem:[%s22446_s2 + $0x508] sm:$0xf] }
  0x78   : > { %2336 = vmatpush.bf16.msra.mxu1 %v11549_v26  ;;  %2380 = vmatpush.bf16.msra.mxu2 %v11773_v31  ;;  %v14609_v54 = vld [vmem:[%s22446_s2 + $0x524] sm:$0xf0] }
  0x79   : > { %v11741_v57 = vor.u32 %v14609_v54, %v11740_v53  ;;  %v11228_v62 = vld [vmem:[%s22446_s2 + $0x108] sm:$0xf] }
  0x7a   : > { %2294 = vmatpush.bf16.msra.mxu0 %v11261_v47  ;;  %v14481_v63 = vld [vmem:[%s22446_s2 + $0x124] sm:$0xf0] }
  0x7b   : > { %2423 = vmatpush.bf16.msra.mxu3 %v12029_v48  ;;  %v11996_v0 = vld [vmem:[%s22446_s2 + $0x708] sm:$0xf]  ;;  %v11229_v1 = vor.u32 %v14481_v63, %v11228_v62 }
  0x7c   : > { %2337 = vmatpush.bf16.msra.mxu1 %v11517_v52  ;;  %2381 = vmatpush.bf16.msra.mxu2 %v11741_v57  ;;  %v14673_v10 = vld [vmem:[%s22446_s2 + $0x724] sm:$0xf0] }
  0x7d   : > { %2014 = vmatmul.bf16.gmra.mxu1 %v15815_v33  ;;  %v11484_v15 = vld [vmem:[%s22446_s2 + $0x308] sm:$0xf]  ;;  %v11997_v17 = vor.u32 %v14673_v10, %v11996_v0 }
  0x7e   : > { %v14545_v16 = vld [vmem:[%s22446_s2 + $0x324] sm:$0xf0]  ;;  %2295 = vmatpush.bf16.msra.mxu0 %v11229_v1 }
  0x7f   : > { %1971 = vmatmul.bf16.gmra.mxu0 %v15813_v32  ;;  %2057 = vmatmul.bf16.gmra.mxu2 %v15817_v34  ;;  %v11485_v18 = vor.u32 %v14545_v16, %v11484_v15  ;;  %v11708_v26 = vld [vmem:[%s22446_s2 + $0x4c8] sm:$0xf] }
  0x80   : > { %2424 = vmatpush.bf16.msra.mxu3 %v11997_v17  ;;  %v14601_v27 = vld [vmem:[%s22446_s2 + $0x4e4] sm:$0xf0] }
  0x81   : > { %2100 = vmatmul.bf16.gmra.mxu3 %v15819_v35  ;;  %2338 = vmatpush.bf16.msra.mxu1 %v11485_v18  ;;  %v11196_v28 = vld [vmem:[%s22446_s2 + $0xc8] sm:$0xf]  ;;  %v11709_v29 = vor.u32 %v14601_v27, %v11708_v26 }
  0x82   : > { %v14473_v30 = vld [vmem:[%s22446_s2 + $0xe4] sm:$0xf0] }
  0x83   : > { %v11964_v31 = vld [vmem:[%s22446_s2 + $0x6c8] sm:$0xf]  ;;  %v11197_v45 = vor.u32 %v14473_v30, %v11196_v28  ;;  %2382 = vmatpush.bf16.msra.mxu2 %v11709_v29 }
  0x84   : > { %v14665_v40 = vld [vmem:[%s22446_s2 + $0x6e4] sm:$0xf0] }
  0x85   : > { %v11965_v46 = vor.u32 %v14665_v40, %v11964_v31  ;;  %2296 = vmatpush.bf16.msra.mxu0 %v11197_v45  ;;  %v11452_v57 = vld [vmem:[%s22446_s2 + $0x2c8] sm:$0xf] }
  0x86   : > { %v11676_v16 = vld [vmem:[%s22446_s2 + $0x488] sm:$0xf] }
  0x87   : > { %2425 = vmatpush.bf16.msra.mxu3 %v11965_v46  ;;  %v14593_v17 = vld [vmem:[%s22446_s2 + $0x4a4] sm:$0xf0] }
  0x88   : > { %v11164_v18 = vld [vmem:[%s22446_s2 + $0x88] sm:$0xf] }
  0x89   : > { %v11420_v26 = vld [vmem:[%s22446_s2 + $0x288] sm:$0xf] }
  0x8a   : > { %v14529_v27 = vld [vmem:[%s22446_s2 + $0x2a4] sm:$0xf0] }
  0x8b   : > { %v11421_v28 = vor.u32 %v14529_v27, %v11420_v26 }
  0x8d   : > { %2019 = vmatmul.bf16.gmra.mxu1 %v15865_v3 }
  0x8f   : > { %1976 = vmatmul.bf16.gmra.mxu0 %v15863_v2  ;;  %2062 = vmatmul.bf16.gmra.mxu2 %v15867_v4 }
  0x91   : > { %2105 = vmatmul.bf16.gmra.mxu3 %v15869_v9 }
  0x9d   : > { %2024 = vmatmul.bf16.gmra.mxu1 %v15915_v37 }
  0x9f   : > { %1981 = vmatmul.bf16.gmra.mxu0 %v15913_v36  ;;  %2067 = vmatmul.bf16.gmra.mxu2 %v15917_v38 }
  0xa1   : > { %2110 = vmatmul.bf16.gmra.mxu3 %v15919_v39 }
  0xad   : > { %2029 = vmatmul.bf16.gmra.mxu1 %v15956_v12 }
  0xaf   : > { %1986 = vmatmul.bf16.gmra.mxu0 %v15954_v11  ;;  %2072 = vmatmul.bf16.gmra.mxu2 %v15958_v13 }
  0xb1   : > { %2115 = vmatmul.bf16.gmra.mxu3 %v15960_v14 }
  0xbd   : > { %2171 = vmatmul.bf16.vlgmr.msrb.gmra.mxu1 %v15623_v55 }
  0xbf   : > { %2128 = vmatmul.bf16.vlgmr.msrb.gmra.mxu0 %v15616_v50  ;;  %2214 = vmatmul.bf16.vlgmr.msrb.gmra.mxu2 %v15625_v56 }
  0xc1   : > { %2257 = vmatmul.bf16.vlgmr.msrb.gmra.mxu3 %v15633_v59 }
  0xca   : > { %v2000_v60 = vpop.f32.mrf.mxu1 }
  0xcc   : > { %v1957_v58 = vpop.f32.mrf.mxu0 }
  0xcd   : > { %v2001_v61 = vadd.f32 %v2000_v60, %v1957_v58  ;;  %2176 = vmatmul.bf16.gmra.mxu1 %v15718_v42  ;;  %v14537_v58 = vld [vmem:[%s22446_s2 + $0x2e4] sm:$0xf0] }
  0xce   : > { %v11453_v60 = vor.u32 %v14537_v58, %v11452_v57 }
  0xcf   : > { %2133 = vmatmul.bf16.gmra.mxu0 %v15716_v41  ;;  %2219 = vmatmul.bf16.gmra.mxu2 %v15720_v43 }
  0xd0   : > { %2339 = vmatpush.bf16.msra.mxu1 %v11453_v60  ;;  %v11644_v60 = vld [vmem:[%s22446_s2 + $0x448] sm:$0xf] }
  0xd1   : > { %2262 = vmatmul.bf16.gmra.mxu3 %v15722_v44 }
  0xd2   : > { %v2043_v19 = vpop.f32.mrf.mxu2  ;;  %v2002_v23 = vpop.f32.mrf.mxu1 }
  0xd3   : > { %v2044_v20 = vadd.f32 %v2043_v19, %v2001_v61  ;;  %v11677_v19 = vor.u32 %v14593_v17, %v11676_v16 }
  0xd4   : > { %v2086_v21 = vpop.f32.mrf.mxu3  ;;  %v1959_v22 = vpop.f32.mrf.mxu0  ;;  %2340 = vmatpush.bf16.msra.mxu1 %v11421_v28 }
  0xd5   : > { %v16049_v24 = vadd.f32 %v2086_v21, %v2044_v20  ;;  %v2003_v25 = vadd.f32 %v2002_v23, %v1959_v22  ;;  %v14465_v20 = vld [vmem:[%s22446_s2 + $0xa4] sm:$0xf0]  ;;  %2383 = vmatpush.bf16.msra.mxu2 %v11677_v19 }
  0xd6   : > { %v11932_v21 = vld [vmem:[%s22446_s2 + $0x688] sm:$0xf]  ;;  %v11165_v23 = vor.u32 %v14465_v20, %v11164_v18 }
  0xd7   : > { %v14657_v22 = vld [vmem:[%s22446_s2 + $0x6a4] sm:$0xf0] }
  0xd8   : > { %2297 = vmatpush.bf16.msra.mxu0 %v11165_v23  ;;  %v11388_v18 = vld [vmem:[%s22446_s2 + $0x248] sm:$0xf] }
  0xd9   : > { %v14521_v19 = vld [vmem:[%s22446_s2 + $0x264] sm:$0xf0] }
  0xda   : > { %v2045_v47 = vpop.f32.mrf.mxu2  ;;  %v2005_v52 = vpop.f32.mrf.mxu1  ;;  %v11389_v20 = vor.u32 %v14521_v19, %v11388_v18 }
  0xdb   : > { %v2046_v48 = vadd.f32 %v2045_v47, %v2003_v25  ;;  %v11933_v25 = vor.u32 %v14657_v22, %v11932_v21 }
  0xdc   : > { %v2088_v49 = vpop.f32.mrf.mxu3  ;;  %v1962_v51 = vpop.f32.mrf.mxu0  ;;  %2341 = vmatpush.bf16.msra.mxu1 %v11389_v20 }
  0xdd   : > { %v16069_v53 = vadd.f32 %v2088_v49, %v2046_v48  ;;  %v2006_v54 = vadd.f32 %v2005_v52, %v1962_v51  ;;  %2181 = vmatmul.bf16.gmra.mxu1 %v15762_v6  ;;  %2426 = vmatpush.bf16.msra.mxu3 %v11933_v25 }
  0xdf   : > { %2138 = vmatmul.bf16.gmra.mxu0 %v15760_v5  ;;  %2224 = vmatmul.bf16.gmra.mxu2 %v15764_v7 }
  0xe1   : > { %2267 = vmatmul.bf16.gmra.mxu3 %v15766_v8 }
  0xe2   : > { %v2048_v61 = vpop.f32.mrf.mxu2  ;;  %v2007_v1 = vpop.f32.mrf.mxu1 }
  0xe3   : > { %v2049_v62 = vadd.f32 %v2048_v61, %v2006_v54  ;;  %v14585_v61 = vld [vmem:[%s22446_s2 + $0x464] sm:$0xf0] }
  0xe4   : > { %v2091_v63 = vpop.f32.mrf.mxu3  ;;  %v1964_v0 = vpop.f32.mrf.mxu0 }
  0xe5   : > { %v16081_v10 = vadd.f32 %v2091_v63, %v2049_v62  ;;  %v2008_v15 = vadd.f32 %v2007_v1, %v1964_v0  ;;  %v11132_v62 = vld [vmem:[%s22446_s2 + $0x48] sm:$0xf]  ;;  %v11645_v63 = vor.u32 %v14585_v61, %v11644_v60 }
  0xe6   : > { %v14457_v0 = vld [vmem:[%s22446_s2 + $0x64] sm:$0xf0] }
  0xe7   : > { %v11900_v1 = vld [vmem:[%s22446_s2 + $0x648] sm:$0xf]  ;;  %v11133_v16 = vor.u32 %v14457_v0, %v11132_v62  ;;  %2384 = vmatpush.bf16.msra.mxu2 %v11645_v63 }
  0xe8   : > { %v11868_v60 = vld [vmem:[%s22446_s2 + $0x608] sm:$0xf] }
  0xe9   : > { %2298 = vmatpush.bf16.msra.mxu0 %v11133_v16  ;;  %v14641_v62 = vld [vmem:[%s22446_s2 + $0x624] sm:$0xf0] }
  0xea   : > { %v2050_v29 = vpop.f32.mrf.mxu2  ;;  %v2010_v45 = vpop.f32.mrf.mxu1  ;;  %v11356_v63 = vld [vmem:[%s22446_s2 + $0x208] sm:$0xf] }
  0xeb   : > { %v2051_v30 = vadd.f32 %v2050_v29, %v2008_v15  ;;  %v14649_v15 = vld [vmem:[%s22446_s2 + $0x664] sm:$0xf0] }
  0xec   : > { %v2093_v31 = vpop.f32.mrf.mxu3  ;;  %v1967_v40 = vpop.f32.mrf.mxu0  ;;  %v11901_v17 = vor.u32 %v14649_v15, %v11900_v1  ;;  %v11612_v29 = vld [vmem:[%s22446_s2 + $0x408] sm:$0xf]  ;;  %v11869_v1 = vor.u32 %v14641_v62, %v11868_v60  ;;  %v11582_v62 = vld [vmem:[%s22446_s2 + $0x3e8] sm:$0xf0] }
  0xed   : > { %v16107_v46 = vadd.f32 %v2093_v31, %v2051_v30  ;;  %v2011_v47 = vadd.f32 %v2010_v45, %v1967_v40  ;;  %2186 = vmatmul.bf16.gmra.mxu1 %v15815_v33  ;;  %v14577_v30 = vld [vmem:[%s22446_s2 + $0x424] sm:$0xf0] }
  0xee   : > { %2427 = vmatpush.bf16.msra.mxu3 %v11901_v17  ;;  %v11613_v31 = vor.u32 %v14577_v30, %v11612_v29  ;;  %v14513_v0 = vld [vmem:[%s22446_s2 + $0x224] sm:$0xf0]  ;;  %v11326_v29 = vld [vmem:[%s22446_s2 + $0x1e8] sm:$0xf0] }
  0xef   : > { %2143 = vmatmul.bf16.gmra.mxu0 %v15813_v32  ;;  %2229 = vmatmul.bf16.gmra.mxu2 %v15817_v34  ;;  %v11357_v15 = vor.u32 %v14513_v0, %v11356_v63  ;;  %v14693_v30 = vld [vmem:[%s22446_s2 + $0x7cc] sm:$0xf] }
  0xf0   : > { %2385 = vmatpush.bf16.msra.mxu2 %v11613_v31  ;;  %v12094_v31 = vld [vmem:[%s22446_s2 + $0x7e8] sm:$0xf0] }
  0xf1   : > { %2272 = vmatmul.bf16.gmra.mxu3 %v15819_v35  ;;  %2342 = vmatpush.bf16.msra.mxu1 %v11357_v15 }
  0xf2   : > { %v2053_v48 = vpop.f32.mrf.mxu2  ;;  %v2012_v54 = vpop.f32.mrf.mxu1  ;;  %2428 = vmatpush.bf16.msra.mxu3 %v11869_v1 }
  0xf3   : > { %v2054_v49 = vadd.f32 %v2053_v48, %v2011_v47 }
  0xf4   : > { %v2096_v51 = vpop.f32.mrf.mxu3  ;;  %v1969_v52 = vpop.f32.mrf.mxu0 }
  0xf5   : > { %v16113_v57 = vadd.f32 %v2096_v51, %v2054_v49  ;;  %v2013_v58 = vadd.f32 %v2012_v54, %v1969_v52  ;;  %v11100_v54 = vld [vmem:[%s22446_s2 + $0x8] sm:$0xf] }
  0xfa   : > { %v2055_v21 = vpop.f32.mrf.mxu2  ;;  %v2015_v26 = vpop.f32.mrf.mxu1 }
  0xfb   : > { %v2056_v22 = vadd.f32 %v2055_v21, %v2013_v58  ;;  %v14449_v58 = vld [vmem:[%s22446_s2 + $0x24] sm:$0xf0] }
  0xfc   : > { %v2098_v23 = vpop.f32.mrf.mxu3  ;;  %v1972_v25 = vpop.f32.mrf.mxu0  ;;  %v11101_v61 = vor.u32 %v14449_v58, %v11100_v54 }
  0xfd   : > { %v16139_v27 = vadd.f32 %v2098_v23, %v2056_v22  ;;  %v2016_v28 = vadd.f32 %v2015_v26, %v1972_v25  ;;  %2191 = vmatmul.bf16.gmra.mxu1 %v15865_v3  ;;  %v14629_v23 = vld [vmem:[%s22446_s2 + $0x5cc] sm:$0xf] }
  0xfe   : > { %2299 = vmatpush.bf16.msra.mxu0 %v11101_v61  ;;  %v11838_v25 = vld [vmem:[%s22446_s2 + $0x5e8] sm:$0xf0] }
  0xff   : > { %2148 = vmatmul.bf16.gmra.mxu0 %v15863_v2  ;;  %2234 = vmatmul.bf16.gmra.mxu2 %v15867_v4  ;;  %v14501_v26 = vld [vmem:[%s22446_s2 + $0x1cc] sm:$0xf] }
 0x100   : > { %v14565_v61 = vld [vmem:[%s22446_s2 + $0x3cc] sm:$0xf] }
 0x101   : > { %2277 = vmatmul.bf16.gmra.mxu3 %v15869_v9  ;;  %v11585_v63 = vor.u32 %v14565_v61, %v11582_v62 }
 0x102   : > { %v2058_v40 = vpop.f32.mrf.mxu2  ;;  %v2017_v49 = vpop.f32.mrf.mxu1 }
 0x103   : > { %v2059_v45 = vadd.f32 %v2058_v40, %v2016_v28  ;;  %v11841_v28 = vor.u32 %v14629_v23, %v11838_v25  ;;  %2507 = vmatpush.bf16.msrb.mxu1 %v11585_v63  ;;  %v14493_v25 = vld [vmem:[%s22446_s2 + $0x18c] sm:$0xf] }
 0x104   : > { %v2101_v47 = vpop.f32.mrf.mxu3  ;;  %v1974_v48 = vpop.f32.mrf.mxu0 }
 0x105   : > { %v16151_v51 = vadd.f32 %v2101_v47, %v2059_v45  ;;  %v2018_v52 = vadd.f32 %v2017_v49, %v1974_v48  ;;  %v11329_v45 = vor.u32 %v14501_v26, %v11326_v29  ;;  %v12097_v47 = vor.u32 %v14693_v30, %v12094_v31  ;;  %2550 = vmatpush.bf16.msrb.mxu2 %v11841_v28  ;;  %v11294_v26 = vld [vmem:[%s22446_s2 + $0x1a8] sm:$0xf0] }
 0x106   : > { %v14685_v28 = vld [vmem:[%s22446_s2 + $0x78c] sm:$0xf]  ;;  %v11297_v29 = vor.u32 %v14493_v25, %v11294_v26 }
 0x107   : > { %2464 = vmatpush.bf16.msrb.mxu0 %v11329_v45  ;;  %2593 = vmatpush.bf16.msrb.mxu3 %v12097_v47  ;;  %v12062_v30 = vld [vmem:[%s22446_s2 + $0x7a8] sm:$0xf0] }
 0x108   : > { %v14557_v31 = vld [vmem:[%s22446_s2 + $0x38c] sm:$0xf]  ;;  %v12065_v47 = vor.u32 %v14685_v28, %v12062_v30 }
 0x109   : > { %v11774_v30 = vld [vmem:[%s22446_s2 + $0x568] sm:$0xf0] }
 0x10a   : > { %v2060_v16 = vpop.f32.mrf.mxu2  ;;  %v2020_v20 = vpop.f32.mrf.mxu1 }
 0x10b   : > { %v2061_v17 = vadd.f32 %v2060_v16, %v2018_v52  ;;  %2465 = vmatpush.bf16.msrb.mxu0 %v11297_v29  ;;  %2594 = vmatpush.bf16.msrb.mxu3 %v12065_v47  ;;  %v14613_v29 = vld [vmem:[%s22446_s2 + $0x54c] sm:$0xf] }
 0x10c   : > { %v2103_v18 = vpop.f32.mrf.mxu3  ;;  %v1977_v19 = vpop.f32.mrf.mxu0  ;;  %v14677_v47 = vld [vmem:[%s22446_s2 + $0x74c] sm:$0xf] }
 0x10d   : > { %v16171_v21 = vadd.f32 %v2103_v18, %v2061_v17  ;;  %v2021_v22 = vadd.f32 %v2020_v20, %v1977_v19  ;;  %2196 = vmatmul.bf16.gmra.mxu1 %v15915_v37  ;;  %v14621_v20 = vld [vmem:[%s22446_s2 + $0x58c] sm:$0xf] }
 0x10f   : > { %2153 = vmatmul.bf16.gmra.mxu0 %v15913_v36  ;;  %2239 = vmatmul.bf16.gmra.mxu2 %v15917_v38 }
 0x111   : > { %2282 = vmatmul.bf16.gmra.mxu3 %v15919_v39 }
 0x112   : > { %v2063_v40 = vpop.f32.mrf.mxu2  ;;  %v2022_v54 = vpop.f32.mrf.mxu1 }
 0x113   : > { %v2064_v48 = vadd.f32 %v2063_v40, %v2021_v22  ;;  %v11806_v22 = vld [vmem:[%s22446_s2 + $0x5a8] sm:$0xf0] }
 0x114   : > { %v2106_v49 = vpop.f32.mrf.mxu3  ;;  %v1979_v52 = vpop.f32.mrf.mxu0  ;;  %v11809_v23 = vor.u32 %v14621_v20, %v11806_v22  ;;  %v11550_v40 = vld [vmem:[%s22446_s2 + $0x3a8] sm:$0xf0] }
 0x115   : > { %v16195_v58 = vadd.f32 %v2106_v49, %v2064_v48  ;;  %v2023_v60 = vadd.f32 %v2022_v54, %v1979_v52  ;;  %v11553_v48 = vor.u32 %v14557_v31, %v11550_v40  ;;  %v14485_v31 = vld [vmem:[%s22446_s2 + $0x14c] sm:$0xf]  ;;  %v11777_v40 = vor.u32 %v14613_v29, %v11774_v30 }
 0x116   : > { %2551 = vmatpush.bf16.msrb.mxu2 %v11809_v23 }
 0x117   : > { %2508 = vmatpush.bf16.msrb.mxu1 %v11553_v48  ;;  %v12030_v48 = vld [vmem:[%s22446_s2 + $0x768] sm:$0xf0] }
 0x11a   : > { %v2065_v0 = vpop.f32.mrf.mxu2  ;;  %v2025_v17 = vpop.f32.mrf.mxu1  ;;  %2552 = vmatpush.bf16.msrb.mxu2 %v11777_v40 }
 0x11b   : > { %v2066_v1 = vadd.f32 %v2065_v0, %v2023_v60 }
 0x11c   : > { %v2108_v15 = vpop.f32.mrf.mxu3  ;;  %v1982_v16 = vpop.f32.mrf.mxu0 }
 0x11d   : > { %v16203_v18 = vadd.f32 %v2108_v15, %v2066_v1  ;;  %v2026_v19 = vadd.f32 %v2025_v17, %v1982_v16  ;;  %2201 = vmatmul.bf16.gmra.mxu1 %v15956_v12 }
 0x11f   : > { %2158 = vmatmul.bf16.gmra.mxu0 %v15954_v11  ;;  %2244 = vmatmul.bf16.gmra.mxu2 %v15958_v13 }
 0x121   : > { %2287 = vmatmul.bf16.gmra.mxu3 %v15960_v14 }
 0x122   : > { %v2068_v45 = vpop.f32.mrf.mxu2  ;;  %v2027_v60 = vpop.f32.mrf.mxu1 }
 0x123   : > { %v2069_v49 = vadd.f32 %v2068_v45, %v2026_v19  ;;  %v11262_v45 = vld [vmem:[%s22446_s2 + $0x168] sm:$0xf0] }
 0x124   : > { %v2111_v52 = vpop.f32.mrf.mxu3  ;;  %v1984_v54 = vpop.f32.mrf.mxu0 }
 0x125   : > { %v16233_v61 = vadd.f32 %v2111_v52, %v2069_v49  ;;  %v2028_v62 = vadd.f32 %v2027_v60, %v1984_v54  ;;  %v11265_v49 = vor.u32 %v14485_v31, %v11262_v45  ;;  %v12033_v52 = vor.u32 %v14677_v47, %v12030_v48  ;;  %v14549_v54 = vld [vmem:[%s22446_s2 + $0x34c] sm:$0xf] }
 0x126   : > { %v11518_v60 = vld [vmem:[%s22446_s2 + $0x368] sm:$0xf0] }
 0x127   : > { %2466 = vmatpush.bf16.msrb.mxu0 %v11265_v49  ;;  %2595 = vmatpush.bf16.msrb.mxu3 %v12033_v52 }
 0x12a   : > { %v2070_v63 = vpop.f32.mrf.mxu2  ;;  %v2030_v16 = vpop.f32.mrf.mxu1 }
 0x12b   : > { %v2071_v0 = vadd.f32 %v2070_v63, %v2028_v62  ;;  %v11521_v62 = vor.u32 %v14549_v54, %v11518_v60  ;;  %v14477_v60 = vld [vmem:[%s22446_s2 + $0x10c] sm:$0xf] }
 0x12c   : > { %v2113_v1 = vpop.f32.mrf.mxu3  ;;  %v1987_v15 = vpop.f32.mrf.mxu0 }
 0x12d   : > { %v16235_v17 = vadd.f32 %v2113_v1, %v2071_v0  ;;  %v2031_v20 = vadd.f32 %v2030_v16, %v1987_v15  ;;  %2343 = vmatmul.bf16.vlgmr.msra.gmra.mxu1 %v15623_v55  ;;  %v14605_v15 = vld [vmem:[%s22446_s2 + $0x50c] sm:$0xf] }
 0x12e   : > { %2509 = vmatpush.bf16.msrb.mxu1 %v11521_v62  ;;  %v11742_v16 = vld [vmem:[%s22446_s2 + $0x528] sm:$0xf0] }
 0x12f   : > { %2300 = vmatmul.bf16.vlgmr.msra.gmra.mxu0 %v15616_v50  ;;  %2386 = vmatmul.bf16.vlgmr.msra.gmra.mxu2 %v15625_v56  ;;  %v11230_v62 = vld [vmem:[%s22446_s2 + $0x128] sm:$0xf0] }
 0x131   : > { %2429 = vmatmul.bf16.vlgmr.msra.gmra.mxu3 %v15633_v59 }
 0x132   : > { %v2073_v19 = vpop.f32.mrf.mxu2  ;;  %v2032_v26 = vpop.f32.mrf.mxu1 }
 0x133   : > { %v2074_v22 = vadd.f32 %v2073_v19, %v2031_v20  ;;  %v3337_v19 = vld [vmem:[%s22447_s3] sm:$0xff] }
 0x134   : > { %v2116_v23 = vpop.f32.mrf.mxu3  ;;  %v1989_v25 = vpop.f32.mrf.mxu0  ;;  %v16281_v26 = vperm.slane %v3337_v19, 0  ;;  %v16283_v29 = vperm.slane %v3337_v19, 1 }
 0x135   : > { %v16241_v28 = vadd.f32 %v2116_v23, %v2074_v22  ;;  %v11745_v22 = vor.u32 %v14605_v15, %v11742_v16  ;;  %v16276_v25 = vpop.permute.xlu0 %3340  ;;  %v14541_v15 = vld [vmem:[%s22446_s2 + $0x30c] sm:$0xf] }
 0x136   : > { %22588 = vst [vmem:[#allocation8_spill] sm:$0xff] %v16276_v25  ;;  %v3420_v45 = vmul.f32 %v16281_v26, %v16276_v25  ;;  %v3421_v47 = vmul.f32 %v16283_v29, %v16276_v25  ;;  %v11486_v16 = vld [vmem:[%s22446_s2 + $0x328] sm:$0xf0] }
 0x137   : > { %2553 = vmatpush.bf16.msrb.mxu2 %v11745_v22 }
 0x13a   : > { %v2075_v63 = vpop.f32.mrf.mxu2  ;;  %v2172_v20 = vpop.f32.mrf.mxu1 }
 0x13b   : > { %v14669_v63 = vld [vmem:[%s22446_s2 + $0x70c] sm:$0xf] }
 0x13c   : > { %v2118_v0 = vpop.f32.mrf.mxu3  ;;  %v2129_v1 = vpop.f32.mrf.mxu0 }
 0x13d   : > { %v2173_v23 = vadd.f32 %v2172_v20, %v2129_v1  ;;  %2348 = vmatmul.bf16.gmra.mxu1 %v15718_v42  ;;  %v11233_v0 = vor.u32 %v14477_v60, %v11230_v62  ;;  %v11998_v1 = vld [vmem:[%s22446_s2 + $0x728] sm:$0xf0]  ;;  %v3524_v20 = vadd.f32 %v3420_v45, %v16049_v24 }
 0x13e   : > { %v12001_v22 = vor.u32 %v14669_v63, %v11998_v1  ;;  %v14597_v24 = vld [vmem:[%s22446_s2 + $0x4cc] sm:$0xf] }
 0x13f   : > { %2305 = vmatmul.bf16.gmra.mxu0 %v15716_v41  ;;  %2391 = vmatmul.bf16.gmra.mxu2 %v15720_v43  ;;  %v11710_v45 = vld [vmem:[%s22446_s2 + $0x4e8] sm:$0xf0] }
 0x140   : > { %2467 = vmatpush.bf16.msrb.mxu0 %v11233_v0  ;;  %2596 = vmatpush.bf16.msrb.mxu3 %v12001_v22  ;;  %v11198_v63 = vld [vmem:[%s22446_s2 + $0xe8] sm:$0xf0]  ;;  %v16333_v22 = vpop.permute.xlu1 %3350 }
 0x141   : > { %2434 = vmatmul.bf16.gmra.mxu3 %v15722_v44  ;;  %v14661_v0 = vld [vmem:[%s22446_s2 + $0x6cc] sm:$0xf]  ;;  %22589 = vst [vmem:[#allocation9_spill] sm:$0xff] %v16333_v22 }
 0x142   : > { %v2215_v30 = vpop.f32.mrf.mxu2  ;;  %v2174_v49 = vpop.f32.mrf.mxu1  ;;  %v11966_v1 = vld [vmem:[%s22446_s2 + $0x6e8] sm:$0xf0] }
 0x143   : > { %v2216_v31 = vadd.f32 %v2215_v30, %v2173_v23  ;;  %v11489_v23 = vor.u32 %v14541_v15, %v11486_v16  ;;  %v16309_v30 = vpop.permute.xlu0 %3345 }
 0x144   : > { %v2258_v40 = vpop.f32.mrf.mxu3  ;;  %v2131_v48 = vpop.f32.mrf.mxu0  ;;  %v3428_v60 = vmul.f32 %v16281_v26, %v16309_v30  ;;  %v3429_v62 = vmul.f32 %v16283_v29, %v16309_v30 }
 0x145   : > { %v2259_v52 = vadd.f32 %v2258_v40, %v2216_v31  ;;  %v2175_v54 = vadd.f32 %v2174_v49, %v2131_v48  ;;  %2510 = vmatpush.bf16.msrb.mxu1 %v11489_v23 }
 0x146   : > { %v3532_v23 = vadd.f32 %v3428_v60, %v16069_v53 }
 0x147   : > { %v3525_v19 = vadd.f32 %v3421_v47, %v2259_v52  ;;  %v14469_v47 = vld [vmem:[%s22446_s2 + $0xcc] sm:$0xf] }
 0x149   : > { %v3628_v31 = vpack.c.bf16 %v3525_v19, %v3524_v20  ;;  %v11201_v20 = vor.u32 %v14469_v47, %v11198_v63  ;;  %v11969_v19 = vor.u32 %v14661_v0, %v11966_v1 }
 0x14a   : > { %v2217_v40 = vpop.f32.mrf.mxu2  ;;  %v2177_v52 = vpop.f32.mrf.mxu1 }
 0x14b   : > { %v2218_v48 = vadd.f32 %v2217_v40, %v2175_v54  ;;  %v11713_v54 = vor.u32 %v14597_v24, %v11710_v45  ;;  %2468 = vmatpush.bf16.msrb.mxu0 %v11201_v20  ;;  %2597 = vmatpush.bf16.msrb.mxu3 %v11969_v19  ;;  %v3437_v45 = vmul.f32 %v16283_v29, %v16333_v22  ;;  %v4373_v47 = vunpack.c.h.b16 %v3628_v31  ;;  %v14533_v19 = vld [vmem:[%s22446_s2 + $0x2cc] sm:$0xf] }
 0x14c   : > { %v2260_v49 = vpop.f32.mrf.mxu3  ;;  %v2134_v25 = vpop.f32.mrf.mxu0 }
 0x14d   : > { %v2261_v15 = vadd.f32 %v2260_v49, %v2218_v48  ;;  %v2178_v16 = vadd.f32 %v2177_v52, %v2134_v25  ;;  %2554 = vmatpush.bf16.msrb.mxu2 %v11713_v54  ;;  %2353 = vmatmul.bf16.gmra.mxu1 %v15762_v6  ;;  %v4372_v25 = vunpack.c.l.b16 %v3628_v31  ;;  %v3436_v49 = vmul.f32 %v16281_v26, %v16333_v22  ;;  %v11454_v31 = vld [vmem:[%s22446_s2 + $0x2e8] sm:$0xf0] }
 0x14f   : > { %2310 = vmatmul.bf16.gmra.mxu0 %v15760_v5  ;;  %v3533_v40 = vadd.f32 %v3429_v62, %v2261_v15  ;;  %2396 = vmatmul.bf16.gmra.mxu2 %v15764_v7 }
 0x151   : > { %2439 = vmatmul.bf16.gmra.mxu3 %v15766_v8  ;;  %v3632_v24 = vpack.c.bf16 %v3533_v40, %v3532_v23  ;;  %v11457_v23 = vor.u32 %v14533_v19, %v11454_v31  ;;  %v11934_v19 = vld [vmem:[%s22446_s2 + $0x6a8] sm:$0xf0] }
 0x152   : > { %v2220_v48 = vpop.f32.mrf.mxu2  ;;  %v2179_v63 = vpop.f32.mrf.mxu1 }
 0x153   : > { %v4380_v53 = vunpack.c.l.b16 %v3632_v24  ;;  %v4381_v60 = vunpack.c.h.b16 %v3632_v24  ;;  %v2221_v62 = vadd.f32 %v2220_v48, %v2178_v16  ;;  %v3540_v16 = vadd.f32 %v3436_v49, %v16081_v10  ;;  %v16355_v24 = vpop.permute.xlu1 %3355  ;;  %2511 = vmatpush.bf16.msrb.mxu1 %v11457_v23  ;;  %v11678_v10 = vld [vmem:[%s22446_s2 + $0x4a8] sm:$0xf0] }
 0x154   : > { %v2263_v52 = vpop.f32.mrf.mxu3  ;;  %v2136_v54 = vpop.f32.mrf.mxu0  ;;  %22592 = vst [vmem:[#allocation12_spill] sm:$0xff] %v16355_v24  ;;  %v14461_v49 = vld [vmem:[%s22446_s2 + $0x8c] sm:$0xf] }
 0x155   : > { %v16344_v0 = vpack.c.b16 %v4380_v53, %v4372_v25  ;;  %v16346_v1 = vpack.c.b16 %v4381_v60, %v4373_v47  ;;  %v2264_v15 = vadd.f32 %v2263_v52, %v2221_v62  ;;  %v2180_v20 = vadd.f32 %v2179_v63, %v2136_v54  ;;  %v14589_v54 = vld [vmem:[%s22446_s2 + $0x48c] sm:$0xf] }
 0x156   : > { %v3444_v60 = vmul.f32 %v16281_v26, %v16355_v24  ;;  %v3445_v62 = vmul.f32 %v16283_v29, %v16355_v24  ;;  %v11681_v63 = vor.u32 %v14589_v54, %v11678_v10  ;;  %v11422_v54 = vld [vmem:[%s22446_s2 + $0x2a8] sm:$0xf0]  ;;  %v16385_v10 = vpop.permute.xlu2 %3360 }
 0x157   : > { %22590 = vst [vmem:[#allocation10_spill] sm:$0xff] %v16344_v0  ;;  %v3541_v40 = vadd.f32 %v3437_v45, %v2264_v15  ;;  %v11166_v15 = vld [vmem:[%s22446_s2 + $0xa8] sm:$0xf0] }
 0x158   : > { %22591 = vst [vmem:[#allocation11_spill] sm:$0xff] %v16346_v1  ;;  %2555 = vmatpush.bf16.msrb.mxu2 %v11681_v63  ;;  %v3548_v0 = vadd.f32 %v3444_v60, %v16107_v46  ;;  %v3453_v63 = vmul.f32 %v16283_v29, %v16385_v10 }
 0x159   : > { %v3636_v25 = vpack.c.bf16 %v3541_v40, %v3540_v16  ;;  %v11169_v16 = vor.u32 %v14461_v49, %v11166_v15  ;;  %22593 = vst [vmem:[#allocation13_spill] sm:$0xff] %v16385_v10 }
 0x15a   : > { %v2222_v48 = vpop.f32.mrf.mxu2  ;;  %v2182_v45 = vpop.f32.mrf.mxu1 }
 0x15b   : > { %v2223_v47 = vadd.f32 %v2222_v48, %v2180_v20  ;;  %v14653_v20 = vld [vmem:[%s22446_s2 + $0x68c] sm:$0xf]  ;;  %2469 = vmatpush.bf16.msrb.mxu0 %v11169_v16  ;;  %v4389_v46 = vunpack.c.h.b16 %v3636_v25 }
 0x15c   : > { %v2265_v53 = vpop.f32.mrf.mxu3  ;;  %v2139_v52 = vpop.f32.mrf.mxu0  ;;  %v11937_v40 = vor.u32 %v14653_v20, %v11934_v19  ;;  %v14525_v48 = vld [vmem:[%s22446_s2 + $0x28c] sm:$0xf] }
 0x15d   : > { %v2266_v31 = vadd.f32 %v2265_v53, %v2223_v47  ;;  %v2183_v23 = vadd.f32 %v2182_v45, %v2139_v52  ;;  %v11425_v1 = vor.u32 %v14525_v48, %v11422_v54  ;;  %2358 = vmatmul.bf16.gmra.mxu1 %v15815_v33  ;;  %v4388_v52 = vunpack.c.l.b16 %v3636_v25 }
 0x15e   : > { %2598 = vmatpush.bf16.msrb.mxu3 %v11937_v40  ;;  %v3452_v45 = vmul.f32 %v16281_v26, %v16385_v10 }
 0x15f   : > { %2315 = vmatmul.bf16.gmra.mxu0 %v15813_v32  ;;  %v3549_v47 = vadd.f32 %v3445_v62, %v2266_v31  ;;  %2401 = vmatmul.bf16.gmra.mxu2 %v15817_v34 }
 0x160   : > { %2512 = vmatpush.bf16.msrb.mxu1 %v11425_v1  ;;  %v3556_v40 = vadd.f32 %v3452_v45, %v16113_v57  ;;  %v11646_v57 = vld [vmem:[%s22446_s2 + $0x468] sm:$0xf0] }
 0x161   : > { %2444 = vmatmul.bf16.gmra.mxu3 %v15819_v35  ;;  %v3640_v53 = vpack.c.bf16 %v3549_v47, %v3548_v0  ;;  %v16401_v47 = vpop.permute.xlu2 %3365 }
 0x162   : > { %v2225_v49 = vpop.f32.mrf.mxu2  ;;  %v2184_v31 = vpop.f32.mrf.mxu1 }
 0x163   : > { %v4396_v60 = vunpack.c.l.b16 %v3640_v53  ;;  %v4397_v62 = vunpack.c.h.b16 %v3640_v53  ;;  %v2226_v15 = vadd.f32 %v2225_v49, %v2183_v23  ;;  %v3460_v23 = vmul.f32 %v16281_v26, %v16401_v47  ;;  %v14581_v49 = vld [vmem:[%s22446_s2 + $0x44c] sm:$0xf] }
 0x164   : > { %v2268_v20 = vpop.f32.mrf.mxu3  ;;  %v2141_v19 = vpop.f32.mrf.mxu0  ;;  %v3461_v53 = vmul.f32 %v16283_v29, %v16401_v47 }
 0x165   : > { %v16396_v48 = vpack.c.b16 %v4396_v60, %v4388_v52  ;;  %v16398_v0 = vpack.c.b16 %v4397_v62, %v4389_v46  ;;  %v2269_v1 = vadd.f32 %v2268_v20, %v2226_v15  ;;  %v2185_v16 = vadd.f32 %v2184_v31, %v2141_v19  ;;  %v11134_v46 = vld [vmem:[%s22446_s2 + $0x68] sm:$0xf0] }
 0x166   : > { %v14645_v60 = vld [vmem:[%s22446_s2 + $0x64c] sm:$0xf] }
 0x167   : > { %22594 = vst [vmem:[#allocation14_spill] sm:$0xff] %v16396_v48  ;;  %v3557_v54 = vadd.f32 %v3453_v63, %v2269_v1  ;;  %v11649_v63 = vor.u32 %v14581_v49, %v11646_v57  ;;  %v11902_v62 = vld [vmem:[%s22446_s2 + $0x668] sm:$0xf0]  ;;  %v3564_v49 = vadd.f32 %v3460_v23, %v16139_v27 }
 0x168   : > { %22595 = vst [vmem:[#allocation15_spill] sm:$0xff] %v16398_v0  ;;  %v11905_v31 = vor.u32 %v14645_v60, %v11902_v62  ;;  %v14517_v1 = vld [vmem:[%s22446_s2 + $0x24c] sm:$0xf] }
 0x169   : > { %v3644_v24 = vpack.c.bf16 %v3557_v54, %v3556_v40  ;;  %2556 = vmatpush.bf16.msrb.mxu2 %v11649_v63  ;;  %v16432_v54 = vpop.permute.xlu0 %3370 }
 0x16a   : > { %v2227_v10 = vpop.f32.mrf.mxu2  ;;  %v2187_v45 = vpop.f32.mrf.mxu1  ;;  %2599 = vmatpush.bf16.msrb.mxu3 %v11905_v31 }
 0x16b   : > { %v2228_v25 = vadd.f32 %v2227_v10, %v2185_v16  ;;  %v14453_v10 = vld [vmem:[%s22446_s2 + $0x4c] sm:$0xf]  ;;  %v4405_v27 = vunpack.c.h.b16 %v3644_v24 }
 0x16c   : > { %v2270_v22 = vpop.f32.mrf.mxu3  ;;  %v2144_v52 = vpop.f32.mrf.mxu0  ;;  %v11137_v19 = vor.u32 %v14453_v10, %v11134_v46  ;;  %v11390_v16 = vld [vmem:[%s22446_s2 + $0x268] sm:$0xf0]  ;;  %v3468_v10 = vmul.f32 %v16281_v26, %v16432_v54 }
 0x16d   : > { %v2271_v15 = vadd.f32 %v2270_v22, %v2228_v25  ;;  %v2188_v20 = vadd.f32 %v2187_v45, %v2144_v52  ;;  %v11393_v40 = vor.u32 %v14517_v1, %v11390_v16  ;;  %2363 = vmatmul.bf16.gmra.mxu1 %v15865_v3  ;;  %v4404_v52 = vunpack.c.l.b16 %v3644_v24  ;;  %v14573_v16 = vld [vmem:[%s22446_s2 + $0x40c] sm:$0xf] }
 0x16e   : > { %2470 = vmatpush.bf16.msrb.mxu0 %v11137_v19  ;;  %v3469_v45 = vmul.f32 %v16283_v29, %v16432_v54  ;;  %v11614_v24 = vld [vmem:[%s22446_s2 + $0x428] sm:$0xf0] }
 0x16f   : > { %2320 = vmatmul.bf16.gmra.mxu0 %v15863_v2  ;;  %v3565_v22 = vadd.f32 %v3461_v53, %v2271_v15  ;;  %2406 = vmatmul.bf16.gmra.mxu2 %v15867_v4 }
 0x170   : > { %2513 = vmatpush.bf16.msrb.mxu1 %v11393_v40  ;;  %v11617_v40 = vor.u32 %v14573_v16, %v11614_v24 }
 0x171   : > { %2449 = vmatmul.bf16.gmra.mxu3 %v15869_v9  ;;  %v3648_v25 = vpack.c.bf16 %v3565_v22, %v3564_v49  ;;  %v16453_v22 = vpop.permute.xlu1 %3375 }
 0x172   : > { %v2230_v57 = vpop.f32.mrf.mxu2  ;;  %v2189_v62 = vpop.f32.mrf.mxu1  ;;  %2557 = vmatpush.bf16.msrb.mxu2 %v11617_v40 }
 0x173   : > { %v4412_v23 = vunpack.c.l.b16 %v3648_v25  ;;  %v4413_v53 = vunpack.c.h.b16 %v3648_v25  ;;  %v2231_v63 = vadd.f32 %v2230_v57, %v2188_v20  ;;  %v3572_v20 = vadd.f32 %v3468_v10, %v16151_v51  ;;  %v14445_v57 = vld [vmem:[%s22446_s2 + $0xc] sm:$0xf] }
 0x174   : > { %v2273_v46 = vpop.f32.mrf.mxu3  ;;  %v2146_v60 = vpop.f32.mrf.mxu0  ;;  %v3476_v10 = vmul.f32 %v16281_v26, %v16453_v22 }
 0x175   : > { %v16442_v15 = vpack.c.b16 %v4412_v23, %v4404_v52  ;;  %v16444_v19 = vpack.c.b16 %v4413_v53, %v4405_v27  ;;  %v2274_v31 = vadd.f32 %v2273_v46, %v2231_v63  ;;  %v2190_v1 = vadd.f32 %v2189_v62, %v2146_v60  ;;  %v11102_v27 = vld [vmem:[%s22446_s2 + $0x28] sm:$0xf0] }
 0x176   : > { %v14637_v23 = vld [vmem:[%s22446_s2 + $0x60c] sm:$0xf]  ;;  %v11105_v46 = vor.u32 %v14445_v57, %v11102_v27 }
 0x177   : > { %22596 = vst [vmem:[#allocation16_spill] sm:$0xff] %v16442_v15  ;;  %v3573_v49 = vadd.f32 %v3469_v45, %v2274_v31  ;;  %v3477_v45 = vmul.f32 %v16283_v29, %v16453_v22  ;;  %v11870_v60 = vld [vmem:[%s22446_s2 + $0x628] sm:$0xf0] }
 0x178   : > { %22597 = vst [vmem:[#allocation17_spill] sm:$0xff] %v16444_v19  ;;  %v14509_v62 = vld [vmem:[%s22446_s2 + $0x20c] sm:$0xf]  ;;  %v11873_v16 = vor.u32 %v14637_v23, %v11870_v60  ;;  %2471 = vmatpush.bf16.msrb.mxu0 %v11105_v46 }
 0x179   : > { %v3652_v25 = vpack.c.bf16 %v3573_v49, %v3572_v20  ;;  %v11358_v31 = vld [vmem:[%s22446_s2 + $0x228] sm:$0xf0]  ;;  %v16478_v49 = vpop.permute.xlu2 %3380 }
 0x17a   : > { %v2232_v52 = vpop.f32.mrf.mxu2  ;;  %v11361_v24 = vor.u32 %v14509_v62, %v11358_v31  ;;  %2600 = vmatpush.bf16.msrb.mxu3 %v11873_v16 }
 0x17b   : > { %v2233_v53 = vadd.f32 %v2232_v52, %v2190_v1  ;;  %v2192_v1 = vpop.f32.mrf.mxu1  ;;  %v3580_v52 = vadd.f32 %v3476_v10, %v16171_v21  ;;  %v4420_v23 = vunpack.c.l.b16 %v3652_v25  ;;  %v4421_v46 = vunpack.c.h.b16 %v3652_v25  ;;  %v14634_v25 = vld [vmem:[%s22446_s2 + $0x5ec] sm:$0xf0] }
 0x17c   : > { %v2275_v51 = vpop.f32.mrf.mxu3  ;;  %v2149_v63 = vpop.f32.mrf.mxu0  ;;  %2514 = vmatpush.bf16.msrb.mxu1 %v11361_v24 }
 0x17d   : > { %v2276_v40 = vadd.f32 %v2275_v51, %v2233_v53  ;;  %v2193_v20 = vadd.f32 %v2192_v1, %v2149_v63  ;;  %2368 = vmatmul.bf16.gmra.mxu1 %v15915_v37  ;;  %v3484_v51 = vmul.f32 %v16281_v26, %v16478_v49  ;;  %v3485_v63 = vmul.f32 %v16283_v29, %v16478_v49 }
 0x17f   : > { %2325 = vmatmul.bf16.gmra.mxu0 %v15913_v36  ;;  %v3581_v57 = vadd.f32 %v3477_v45, %v2276_v40  ;;  %2411 = vmatmul.bf16.gmra.mxu2 %v15917_v38 }
 0x181   : > { %2454 = vmatmul.bf16.gmra.mxu3 %v15919_v39  ;;  %v3656_v27 = vpack.c.bf16 %v3581_v57, %v3580_v52  ;;  %v11844_v52 = vld [vmem:[%s22446_s2 + $0x5d0] sm:$0xf] }
 0x182   : > { %v2235_v53 = vpop.f32.mrf.mxu2  ;;  %v11845_v57 = vor.u32 %v14634_v25, %v11844_v52 }
 0x183   : > { %v4428_v60 = vunpack.c.l.b16 %v3656_v27  ;;  %v4429_v21 = vunpack.c.h.b16 %v3656_v27  ;;  %v2236_v10 = vadd.f32 %v2235_v53, %v2193_v20  ;;  %v2194_v31 = vpop.f32.mrf.mxu1  ;;  %v11332_v20 = vld [vmem:[%s22446_s2 + $0x1d0] sm:$0xf] }
 0x184   : > { %v2278_v45 = vpop.f32.mrf.mxu3  ;;  %v2151_v62 = vpop.f32.mrf.mxu0  ;;  %v14506_v27 = vld [vmem:[%s22446_s2 + $0x1ec] sm:$0xf0]  ;;  %2722 = vmatpush.bf16.msra.mxu2 %v11845_v57 }
 0x185   : > { %v16488_v1 = vpack.c.b16 %v4428_v60, %v4420_v23  ;;  %v16490_v16 = vpack.c.b16 %v4429_v21, %v4421_v46  ;;  %v2279_v24 = vadd.f32 %v2278_v45, %v2236_v10  ;;  %v2195_v40 = vadd.f32 %v2194_v31, %v2151_v62  ;;  %v12100_v23 = vld [vmem:[%s22446_s2 + $0x7d0] sm:$0xf]  ;;  %v16511_v45 = vpop.permute.xlu0 %3385  ;;  %v16526_v57 = vpop.permute.xlu1 %3390 }
 0x186   : > { %v14698_v53 = vld [vmem:[%s22446_s2 + $0x7ec] sm:$0xf0]  ;;  %v3588_v46 = vadd.f32 %v3484_v51, %v16195_v58  ;;  %v11333_v21 = vor.u32 %v14506_v27, %v11332_v20  ;;  %22600 = vst [vmem:[#allocation20_spill] sm:$0xff] %v16511_v45 }
 0x187   : > { %22598 = vst [vmem:[#allocation18_spill] sm:$0xff] %v16488_v1  ;;  %v3589_v60 = vadd.f32 %v3485_v63, %v2279_v24  ;;  %v12101_v10 = vor.u32 %v14698_v53, %v12100_v23  ;;  %v3493_v1 = vmul.f32 %v16283_v29, %v16511_v45  ;;  %v11588_v24 = vld [vmem:[%s22446_s2 + $0x3d0] sm:$0xf] }
 0x188   : > { %22599 = vst [vmem:[#allocation19_spill] sm:$0xff] %v16490_v16  ;;  %2636 = vmatpush.bf16.msra.mxu0 %v11333_v21  ;;  %v3492_v16 = vmul.f32 %v16281_v26, %v16511_v45  ;;  %v14570_v20 = vld [vmem:[%s22446_s2 + $0x3ec] sm:$0xf0] }
 0x189   : > { %v3660_v62 = vpack.c.bf16 %v3589_v60, %v3588_v46  ;;  %2765 = vmatpush.bf16.msra.mxu3 %v12101_v10  ;;  %22601 = vst [vmem:[#allocation21_spill] sm:$0xff] %v16526_v57  ;;  %v11589_v27 = vor.u32 %v14570_v20, %v11588_v24  ;;  %v11300_v60 = vld [vmem:[%s22446_s2 + $0x190] sm:$0xf]  ;;  %v3501_v24 = vmul.f32 %v16283_v29, %v16526_v57 }
 0x18a   : > { %v2237_v31 = vpop.f32.mrf.mxu2  ;;  %v3596_v23 = vadd.f32 %v3492_v16, %v16203_v18  ;;  %v14498_v21 = vld [vmem:[%s22446_s2 + $0x1ac] sm:$0xf0]  ;;  %v3500_v16 = vmul.f32 %v16281_v26, %v16526_v57 }
 0x18b   : > { %v2238_v52 = vadd.f32 %v2237_v31, %v2195_v40  ;;  %v2197_v58 = vpop.f32.mrf.mxu1  ;;  %v11812_v40 = vld [vmem:[%s22446_s2 + $0x590] sm:$0xf]  ;;  %2679 = vmatpush.bf16.msra.mxu1 %v11589_v27  ;;  %v11301_v10 = vor.u32 %v14498_v21, %v11300_v60  ;;  %v4437_v27 = vunpack.c.h.b16 %v3660_v62 }
 0x18c   : > { %v2280_v25 = vpop.f32.mrf.mxu3  ;;  %v2154_v19 = vpop.f32.mrf.mxu0  ;;  %v12068_v18 = vld [vmem:[%s22446_s2 + $0x790] sm:$0xf]  ;;  %v3604_v57 = vadd.f32 %v3500_v16, %v16233_v61 }
 0x18d   : > { %v2281_v51 = vadd.f32 %v2280_v25, %v2238_v52  ;;  %v2198_v63 = vadd.f32 %v2197_v58, %v2154_v19  ;;  %v14626_v19 = vld [vmem:[%s22446_s2 + $0x5ac] sm:$0xf0]  ;;  %2373 = vmatmul.bf16.gmra.mxu1 %v15956_v12  ;;  %v4436_v58 = vunpack.c.l.b16 %v3660_v62  ;;  %2637 = vmatpush.bf16.msra.mxu0 %v11301_v10  ;;  %v16570_v61 = vpop.permute.xlu0 %3400 }
 0x18e   : > { %v11813_v46 = vor.u32 %v14626_v19, %v11812_v40  ;;  %v14690_v31 = vld [vmem:[%s22446_s2 + $0x7ac] sm:$0xf0]  ;;  %22605 = vst [vmem:[#allocation25_spill] sm:$0xff] %v16570_v61 }
 0x18f   : > { %2330 = vmatmul.bf16.gmra.mxu0 %v15954_v11  ;;  %v3597_v53 = vadd.f32 %v3493_v1, %v2281_v51  ;;  %2416 = vmatmul.bf16.gmra.mxu2 %v15958_v13  ;;  %v11556_v52 = vld [vmem:[%s22446_s2 + $0x390] sm:$0xf]  ;;  %v12069_v20 = vor.u32 %v14690_v31, %v12068_v18  ;;  %v16563_v31 = vpop.permute.xlu2 %3395 }
 0x190   : > { %2723 = vmatpush.bf16.msra.mxu2 %v11813_v46  ;;  %v14562_v25 = vld [vmem:[%s22446_s2 + $0x3ac] sm:$0xf0]  ;;  %22604 = vst [vmem:[#allocation24_spill] sm:$0xff] %v16563_v31  ;;  %v3508_v10 = vmul.f32 %v16281_v26, %v16563_v31 }
 0x191   : > { %2459 = vmatmul.bf16.gmra.mxu3 %v15960_v14  ;;  %v3664_v1 = vpack.c.bf16 %v3597_v53, %v3596_v23  ;;  %v11557_v40 = vor.u32 %v14562_v25, %v11556_v52  ;;  %v3509_v25 = vmul.f32 %v16283_v29, %v16563_v31  ;;  %v14618_v16 = vld [vmem:[%s22446_s2 + $0x56c] sm:$0xf0] }
 0x192   : > { %v2240_v51 = vpop.f32.mrf.mxu2  ;;  %2766 = vmatpush.bf16.msra.mxu3 %v12069_v20 }
 0x193   : > { %v4444_v19 = vunpack.c.l.b16 %v3664_v1  ;;  %v4445_v23 = vunpack.c.h.b16 %v3664_v1  ;;  %v2241_v53 = vadd.f32 %v2240_v51, %v2198_v63  ;;  %v2199_v21 = vpop.f32.mrf.mxu1  ;;  %2680 = vmatpush.bf16.msra.mxu1 %v11557_v40 }
 0x194   : > { %v2283_v46 = vpop.f32.mrf.mxu3  ;;  %v2156_v60 = vpop.f32.mrf.mxu0 }
 0x195   : > { %v16558_v15 = vpack.c.b16 %v4444_v19, %v4436_v58  ;;  %v16560_v0 = vpack.c.b16 %v4445_v23, %v4437_v27  ;;  %v2284_v48 = vadd.f32 %v2283_v46, %v2241_v53  ;;  %v2200_v45 = vadd.f32 %v2199_v21, %v2156_v60  ;;  %v14490_v27 = vld [vmem:[%s22446_s2 + $0x16c] sm:$0xf0] }
 0x196   : > { %v12036_v19 = vld [vmem:[%s22446_s2 + $0x750] sm:$0xf] }
 0x197   : > { %22602 = vst [vmem:[#allocation22_spill] sm:$0xff] %v16558_v15  ;;  %v3605_v18 = vadd.f32 %v3501_v24, %v2284_v48  ;;  %v3612_v48 = vadd.f32 %v3508_v10, %v16235_v17  ;;  %v11268_v24 = vld [vmem:[%s22446_s2 + $0x150] sm:$0xf]  ;;  %v3517_v10 = vmul.f32 %v16283_v29, %v16570_v61 }
 0x198   : > { %22603 = vst [vmem:[#allocation23_spill] sm:$0xff] %v16560_v0  ;;  %v14682_v23 = vld [vmem:[%s22446_s2 + $0x76c] sm:$0xf0]  ;;  %v11269_v46 = vor.u32 %v14490_v27, %v11268_v24 }
 0x199   : > { %v3668_v62 = vpack.c.bf16 %v3605_v18, %v3604_v57  ;;  %v12037_v60 = vor.u32 %v14682_v23, %v12036_v19  ;;  %v11524_v21 = vld [vmem:[%s22446_s2 + $0x350] sm:$0xf] }
 0x19a   : > { %v2242_v1 = vpop.f32.mrf.mxu2  ;;  %v14554_v18 = vld [vmem:[%s22446_s2 + $0x36c] sm:$0xf0]  ;;  %2638 = vmatpush.bf16.msra.mxu0 %v11269_v46 }
 0x19b   : > { %v2243_v63 = vadd.f32 %v2242_v1, %v2200_v45  ;;  %v2202_v51 = vpop.f32.mrf.mxu1  ;;  %v11780_v45 = vld [vmem:[%s22446_s2 + $0x550] sm:$0xf]  ;;  %v4452_v1 = vunpack.c.l.b16 %v3668_v62  ;;  %2767 = vmatpush.bf16.msra.mxu3 %v12037_v60 }
 0x19c   : > { %v2285_v52 = vpop.f32.mrf.mxu3  ;;  %v2159_v58 = vpop.f32.mrf.mxu0  ;;  %v11781_v17 = vor.u32 %v14618_v16, %v11780_v45 }
 0x19d   : > { %v2286_v20 = vadd.f32 %v2285_v52, %v2243_v63  ;;  %v2203_v40 = vadd.f32 %v2202_v51, %v2159_v58  ;;  %2515 = vmatmul.bf16.vlgmr.msrb.gmra.mxu1 %v15623_v55  ;;  %v3516_v52 = vmul.f32 %v16281_v26, %v16570_v61  ;;  %v4453_v58 = vunpack.c.h.b16 %v3668_v62  ;;  %v11748_v62 = vld [vmem:[%s22446_s2 + $0x510] sm:$0xf] }
 0x19e   : > { %2724 = vmatpush.bf16.msra.mxu2 %v11781_v17 }
 0x19f   : > { %2472 = vmatmul.bf16.vlgmr.msrb.gmra.mxu0 %v15616_v50  ;;  %v3613_v57 = vadd.f32 %v3509_v25, %v2286_v20  ;;  %2558 = vmatmul.bf16.vlgmr.msrb.gmra.mxu2 %v15625_v56  ;;  %v11525_v25 = vor.u32 %v14554_v18, %v11524_v21  ;;  %v3620_v19 = vadd.f32 %v3516_v52, %v16241_v28  ;;  %v11236_v28 = vld [vmem:[%s22446_s2 + $0x110] sm:$0xf] }
 0x1a1   : > { %2601 = vmatmul.bf16.vlgmr.msrb.gmra.mxu3 %v15633_v59  ;;  %v3672_v53 = vpack.c.bf16 %v3613_v57, %v3612_v48  ;;  %2681 = vmatpush.bf16.msra.mxu1 %v11525_v25  ;;  %v11492_v25 = vld [vmem:[%s22446_s2 + $0x310] sm:$0xf] }
 0x1a2   : > { %v2245_v63 = vpop.f32.mrf.mxu2 }
 0x1a3   : > { %v4460_v51 = vunpack.c.l.b16 %v3672_v53  ;;  %v4461_v20 = vunpack.c.h.b16 %v3672_v53  ;;  %v2246_v48 = vadd.f32 %v2245_v63, %v2203_v40  ;;  %v2204_v16 = vpop.f32.mrf.mxu1  ;;  %v14610_v40 = vld [vmem:[%s22446_s2 + $0x52c] sm:$0xf0] }
 0x1a4   : > { %v2288_v57 = vpop.f32.mrf.mxu3  ;;  %v2161_v45 = vpop.f32.mrf.mxu0  ;;  %v11749_v17 = vor.u32 %v14610_v40, %v11748_v62  ;;  %v12004_v63 = vld [vmem:[%s22446_s2 + $0x710] sm:$0xf] }
 0x1a5   : > { %v16604_v24 = vpack.c.b16 %v4460_v51, %v4452_v1  ;;  %v16606_v27 = vpack.c.b16 %v4461_v20, %v4453_v58  ;;  %v2289_v26 = vadd.f32 %v2288_v57, %v2246_v48  ;;  %v14482_v1 = vld [vmem:[%s22446_s2 + $0x12c] sm:$0xf0] }
 0x1a6   : > { %2725 = vmatpush.bf16.msra.mxu2 %v11749_v17  ;;  %v11237_v52 = vor.u32 %v14482_v1, %v11236_v28  ;;  %v14546_v58 = vld [vmem:[%s22446_s2 + $0x32c] sm:$0xf0] }
 0x1a7   : > { %22606 = vst [vmem:[#allocation26_spill] sm:$0xff] %v16604_v24  ;;  %v3621_v29 = vadd.f32 %v3517_v10, %v2289_v26  ;;  %v14674_v10 = vld [vmem:[%s22446_s2 + $0x72c] sm:$0xf0]  ;;  %v11493_v20 = vor.u32 %v14546_v58, %v11492_v25 }
 0x1a8   : > { %22607 = vst [vmem:[#allocation27_spill] sm:$0xff] %v16606_v27  ;;  %v12005_v51 = vor.u32 %v14674_v10, %v12004_v63  ;;  %2639 = vmatpush.bf16.msra.mxu0 %v11237_v52  ;;  %v11716_v62 = vld [vmem:[%s22446_s2 + $0x4d0] sm:$0xf] }
 0x1a9   : > { %v16615_v23 = vpack.c.bf16 %v3621_v29, %v3620_v19  ;;  %2682 = vmatpush.bf16.msra.mxu1 %v11493_v20  ;;  %v14602_v40 = vld [vmem:[%s22446_s2 + $0x4ec] sm:$0xf0] }
 0x1aa   : > { %v2247_v53 = vpop.f32.mrf.mxu2  ;;  %2768 = vmatpush.bf16.msra.mxu3 %v12005_v51  ;;  %v11204_v17 = vld [vmem:[%s22446_s2 + $0xd0] sm:$0xf] }
 0x1ab   : > { %22608 = vst [vmem:[#allocation28_spill] sm:$0xff] %v16615_v23  ;;  %v2344_v21 = vpop.f32.mrf.mxu1  ;;  %v11717_v53 = vor.u32 %v14602_v40, %v11716_v62  ;;  %v11460_v20 = vld [vmem:[%s22446_s2 + $0x2d0] sm:$0xf]  ;;  %v11590_v23 = vld [vmem:[%s22446_s2 + $0x3f0] sm:$0xf0] }
 0x1ac   : > { %v2290_v46 = vpop.f32.mrf.mxu3  ;;  %v2301_v60 = vpop.f32.mrf.mxu0 }
 0x1ad   : > { %v2345_v18 = vadd.f32 %v2344_v21, %v2301_v60  ;;  %2520 = vmatmul.bf16.gmra.mxu1 %v15718_v42  ;;  %v14474_v46 = vld [vmem:[%s22446_s2 + $0xec] sm:$0xf0]  ;;  %2726 = vmatpush.bf16.msra.mxu2 %v11717_v53 }
 0x1ae   : > { %v11972_v60 = vld [vmem:[%s22446_s2 + $0x6d0] sm:$0xf] }
 0x1af   : > { %2477 = vmatmul.bf16.gmra.mxu0 %v15716_v41  ;;  %2563 = vmatmul.bf16.gmra.mxu2 %v15720_v43  ;;  %v14666_v21 = vld [vmem:[%s22446_s2 + $0x6ec] sm:$0xf0] }
 0x1b0   : > { %v11973_v28 = vor.u32 %v14666_v21, %v11972_v60  ;;  %v11684_v53 = vld [vmem:[%s22446_s2 + $0x490] sm:$0xf] }
 0x1b1   : > { %2606 = vmatmul.bf16.gmra.mxu3 %v15722_v44  ;;  %v11172_v60 = vld [vmem:[%s22446_s2 + $0x90] sm:$0xf] }
 0x1b2   : > { %v2387_v48 = vpop.f32.mrf.mxu2  ;;  %2769 = vmatpush.bf16.msra.mxu3 %v11973_v28  ;;  %v11940_v28 = vld [vmem:[%s22446_s2 + $0x690] sm:$0xf] }
 0x1b3   : > { %v2388_v57 = vadd.f32 %v2387_v48, %v2345_v18  ;;  %v2346_v26 = vpop.f32.mrf.mxu1  ;;  %v11205_v18 = vor.u32 %v14474_v46, %v11204_v17  ;;  %v14538_v48 = vld [vmem:[%s22446_s2 + $0x2ec] sm:$0xf0] }
 0x1b4   : > { %v2430_v45 = vpop.f32.mrf.mxu3  ;;  %v2303_v16 = vpop.f32.mrf.mxu0  ;;  %v14594_v46 = vld [vmem:[%s22446_s2 + $0x4ac] sm:$0xf0] }
 0x1b5   : > { %v16639_v19 = vadd.f32 %v2430_v45, %v2388_v57  ;;  %v2347_v29 = vadd.f32 %v2346_v26, %v2303_v16  ;;  %2640 = vmatpush.bf16.msra.mxu0 %v11205_v18  ;;  %v11461_v57 = vor.u32 %v14538_v48, %v11460_v20  ;;  %v11685_v21 = vor.u32 %v14594_v46, %v11684_v53  ;;  %v14466_v18 = vld [vmem:[%s22446_s2 + $0xac] sm:$0xf0] }
 0x1b7   : > { %2683 = vmatpush.bf16.msra.mxu1 %v11461_v57  ;;  %2727 = vmatpush.bf16.msra.mxu2 %v11685_v21 }
 0x1ba   : > { %v2389_v1 = vpop.f32.mrf.mxu2 }
 0x1bb   : > { %v2390_v63 = vadd.f32 %v2389_v1, %v2347_v29  ;;  %v2349_v25 = vpop.f32.mrf.mxu1  ;;  %v14658_v1 = vld [vmem:[%s22446_s2 + $0x6ac] sm:$0xf0] }
 0x1bc   : > { %v2432_v52 = vpop.f32.mrf.mxu3  ;;  %v2306_v10 = vpop.f32.mrf.mxu0 }
 0x1bd   : > { %v16659_v58 = vadd.f32 %v2432_v52, %v2390_v63  ;;  %v2350_v51 = vadd.f32 %v2349_v25, %v2306_v10  ;;  %2525 = vmatmul.bf16.gmra.mxu1 %v15762_v6  ;;  %v11173_v63 = vor.u32 %v14466_v18, %v11172_v60  ;;  %v11941_v52 = vor.u32 %v14658_v1, %v11940_v28  ;;  %v11428_v10 = vld [vmem:[%s22446_s2 + $0x290] sm:$0xf] }
 0x1be   : > { %v14530_v25 = vld [vmem:[%s22446_s2 + $0x2ac] sm:$0xf0] }
 0x1bf   : > { %2482 = vmatmul.bf16.gmra.mxu0 %v15760_v5  ;;  %2568 = vmatmul.bf16.gmra.mxu2 %v15764_v7  ;;  %v11429_v20 = vor.u32 %v14530_v25, %v11428_v10  ;;  %v11652_v28 = vld [vmem:[%s22446_s2 + $0x450] sm:$0xf] }
 0x1c0   : > { %2641 = vmatpush.bf16.msra.mxu0 %v11173_v63  ;;  %2770 = vmatpush.bf16.msra.mxu3 %v11941_v52  ;;  %v14586_v1 = vld [vmem:[%s22446_s2 + $0x46c] sm:$0xf0] }
 0x1c1   : > { %2611 = vmatmul.bf16.gmra.mxu3 %v15766_v8  ;;  %2684 = vmatpush.bf16.msra.mxu1 %v11429_v20  ;;  %v11140_v63 = vld [vmem:[%s22446_s2 + $0x50] sm:$0xf]  ;;  %v11653_v52 = vor.u32 %v14586_v1, %v11652_v28 }
 0x1c2   : > { %v2392_v45 = vpop.f32.mrf.mxu2  ;;  %v14458_v10 = vld [vmem:[%s22446_s2 + $0x6c] sm:$0xf0] }
 0x1c3   : > { %v2393_v16 = vadd.f32 %v2392_v45, %v2350_v51  ;;  %v2351_v62 = vpop.f32.mrf.mxu1  ;;  %v11908_v25 = vld [vmem:[%s22446_s2 + $0x650] sm:$0xf]  ;;  %v11141_v20 = vor.u32 %v14458_v10, %v11140_v63  ;;  %2728 = vmatpush.bf16.msra.mxu2 %v11653_v52 }
 0x1c4   : > { %v2435_v26 = vpop.f32.mrf.mxu3  ;;  %v2308_v29 = vpop.f32.mrf.mxu0  ;;  %v14578_v1 = vld [vmem:[%s22446_s2 + $0x42c] sm:$0xf0] }
 0x1c5   : > { %v16671_v40 = vadd.f32 %v2435_v26, %v2393_v16  ;;  %v2352_v17 = vadd.f32 %v2351_v62, %v2308_v29  ;;  %2642 = vmatpush.bf16.msra.mxu0 %v11141_v20 }
 0x1ca   : > { %v2394_v51 = vpop.f32.mrf.mxu2 }
 0x1cb   : > { %v2395_v48 = vadd.f32 %v2394_v51, %v2352_v17  ;;  %v2354_v16 = vpop.f32.mrf.mxu1  ;;  %v14650_v51 = vld [vmem:[%s22446_s2 + $0x66c] sm:$0xf0] }
 0x1cc   : > { %v2437_v57 = vpop.f32.mrf.mxu3  ;;  %v2311_v45 = vpop.f32.mrf.mxu0 }
 0x1cd   : > { %v16697_v26 = vadd.f32 %v2437_v57, %v2395_v48  ;;  %v2355_v29 = vadd.f32 %v2354_v16, %v2311_v45  ;;  %2530 = vmatmul.bf16.gmra.mxu1 %v15815_v33  ;;  %v11909_v48 = vor.u32 %v14650_v51, %v11908_v25  ;;  %v11396_v57 = vld [vmem:[%s22446_s2 + $0x250] sm:$0xf] }
 0x1ce   : > { %v14522_v45 = vld [vmem:[%s22446_s2 + $0x26c] sm:$0xf0] }
 0x1cf   : > { %2487 = vmatmul.bf16.gmra.mxu0 %v15813_v32  ;;  %2573 = vmatmul.bf16.gmra.mxu2 %v15817_v34 }
 0x1d0   : > { %2771 = vmatpush.bf16.msra.mxu3 %v11909_v48 }
 0x1d1   : > { %2616 = vmatmul.bf16.gmra.mxu3 %v15819_v35 }
 0x1d2   : > { %v2397_v62 = vpop.f32.mrf.mxu2 }
 0x1d3   : > { %v2398_v53 = vadd.f32 %v2397_v62, %v2355_v29  ;;  %v2356_v60 = vpop.f32.mrf.mxu1  ;;  %v11397_v29 = vor.u32 %v14522_v45, %v11396_v57  ;;  %v11108_v45 = vld [vmem:[%s22446_s2 + $0x10] sm:$0xf] }
 0x1d4   : > { %v2440_v17 = vpop.f32.mrf.mxu3  ;;  %v2313_v46 = vpop.f32.mrf.mxu0 }
 0x1d5   : > { %v16703_v21 = vadd.f32 %v2440_v17, %v2398_v53  ;;  %v2357_v18 = vadd.f32 %v2356_v60, %v2313_v46  ;;  %2685 = vmatpush.bf16.msra.mxu1 %v11397_v29  ;;  %v11876_v29 = vld [vmem:[%s22446_s2 + $0x610] sm:$0xf] }
 0x1da   : > { %v2399_v16 = vpop.f32.mrf.mxu2 }
 0x1db   : > { %v2400_v62 = vadd.f32 %v2399_v16, %v2357_v18  ;;  %v2359_v46 = vpop.f32.mrf.mxu1  ;;  %v11620_v18 = vld [vmem:[%s22446_s2 + $0x410] sm:$0xf] }
 0x1dc   : > { %v2442_v53 = vpop.f32.mrf.mxu3  ;;  %v2316_v17 = vpop.f32.mrf.mxu0  ;;  %v11621_v63 = vor.u32 %v14578_v1, %v11620_v18  ;;  %v14450_v16 = vld [vmem:[%s22446_s2 + $0x2c] sm:$0xf0] }
 0x1dd   : > { %v16729_v60 = vadd.f32 %v2442_v53, %v2400_v62  ;;  %v2360_v28 = vadd.f32 %v2359_v46, %v2316_v17  ;;  %2535 = vmatmul.bf16.gmra.mxu1 %v15865_v3  ;;  %v11109_v62 = vor.u32 %v14450_v16, %v11108_v45  ;;  %v14642_v53 = vld [vmem:[%s22446_s2 + $0x62c] sm:$0xf0]  ;;  %v11846_v45 = vld [vmem:[%s22446_s2 + $0x5f0] sm:$0xf0] }
 0x1de   : > { %2729 = vmatpush.bf16.msra.mxu2 %v11621_v63  ;;  %v11364_v17 = vld [vmem:[%s22446_s2 + $0x210] sm:$0xf]  ;;  %v14502_v16 = vld [vmem:[%s22446_s2 + $0x1d4] sm:$0xf] }
 0x1df   : > { %2492 = vmatmul.bf16.gmra.mxu0 %v15863_v2  ;;  %2578 = vmatmul.bf16.gmra.mxu2 %v15867_v4  ;;  %v14514_v46 = vld [vmem:[%s22446_s2 + $0x22c] sm:$0xf0] }
 0x1e0   : > { %v11365_v18 = vor.u32 %v14514_v46, %v11364_v17  ;;  %2643 = vmatpush.bf16.msra.mxu0 %v11109_v62  ;;  %v11334_v62 = vld [vmem:[%s22446_s2 + $0x1f0] sm:$0xf0] }
 0x1e1   : > { %2621 = vmatmul.bf16.gmra.mxu3 %v15869_v9  ;;  %v12102_v17 = vld [vmem:[%s22446_s2 + $0x7f0] sm:$0xf0] }
 0x1e2   : > { %v2402_v52 = vpop.f32.mrf.mxu2  ;;  %2686 = vmatpush.bf16.msra.mxu1 %v11365_v18 }
 0x1e3   : > { %v2403_v10 = vadd.f32 %v2402_v52, %v2360_v28  ;;  %v2361_v20 = vpop.f32.mrf.mxu1  ;;  %v11877_v28 = vor.u32 %v14642_v53, %v11876_v29  ;;  %v14694_v53 = vld [vmem:[%s22446_s2 + $0x7d4] sm:$0xf] }
 0x1e4   : > { %v2445_v25 = vpop.f32.mrf.mxu3  ;;  %v2318_v51 = vpop.f32.mrf.mxu0  ;;  %v12105_v18 = vor.u32 %v14694_v53, %v12102_v17 }
 0x1e5   : > { %v16741_v48 = vadd.f32 %v2445_v25, %v2403_v10  ;;  %v2362_v57 = vadd.f32 %v2361_v20, %v2318_v51  ;;  %2772 = vmatpush.bf16.msra.mxu3 %v11877_v28  ;;  %v11337_v28 = vor.u32 %v14502_v16, %v11334_v62 }
 0x1e7   : > { %2808 = vmatpush.bf16.msrb.mxu0 %v11337_v28 }
 0x1e9   : > { %2937 = vmatpush.bf16.msrb.mxu3 %v12105_v18  ;;  %v14622_v18 = vld [vmem:[%s22446_s2 + $0x594] sm:$0xf] }
 0x1ea   : > { %v2404_v1 = vpop.f32.mrf.mxu2 }
 0x1eb   : > { %v2405_v63 = vadd.f32 %v2404_v1, %v2362_v57  ;;  %v2364_v25 = vpop.f32.mrf.mxu1  ;;  %v14630_v57 = vld [vmem:[%s22446_s2 + $0x5d4] sm:$0xf] }
 0x1ec   : > { %v2447_v52 = vpop.f32.mrf.mxu3  ;;  %v2321_v10 = vpop.f32.mrf.mxu0  ;;  %v11849_v29 = vor.u32 %v14630_v57, %v11846_v45  ;;  %v14566_v45 = vld [vmem:[%s22446_s2 + $0x3d4] sm:$0xf] }
 0x1ed   : > { %v16761_v51 = vadd.f32 %v2447_v52, %v2405_v63  ;;  %v2365_v20 = vadd.f32 %v2364_v25, %v2321_v10  ;;  %2540 = vmatmul.bf16.gmra.mxu1 %v15915_v37  ;;  %v11593_v16 = vor.u32 %v14566_v45, %v11590_v23  ;;  %v12070_v45 = vld [vmem:[%s22446_s2 + $0x7b0] sm:$0xf0] }
 0x1ee   : > { %2894 = vmatpush.bf16.msrb.mxu2 %v11849_v29 }
 0x1ef   : > { %2497 = vmatmul.bf16.gmra.mxu0 %v15913_v36  ;;  %2583 = vmatmul.bf16.gmra.mxu2 %v15917_v38 }
 0x1f0   : > { %2851 = vmatpush.bf16.msrb.mxu1 %v11593_v16  ;;  %v14558_v16 = vld [vmem:[%s22446_s2 + $0x394] sm:$0xf] }
 0x1f1   : > { %2626 = vmatmul.bf16.gmra.mxu3 %v15919_v39 }
 0x1f2   : > { %v2407_v46 = vpop.f32.mrf.mxu2 }
 0x1f3   : > { %v2408_v1 = vadd.f32 %v2407_v46, %v2365_v20  ;;  %v2366_v10 = vpop.f32.mrf.mxu1 }
 0x1f4   : > { %v2450_v63 = vpop.f32.mrf.mxu3  ;;  %v2323_v52 = vpop.f32.mrf.mxu0 }
 0x1f5   : > { %v16785_v25 = vadd.f32 %v2450_v63, %v2408_v1  ;;  %v2367_v57 = vadd.f32 %v2366_v10, %v2323_v52  ;;  %v11814_v1 = vld [vmem:[%s22446_s2 + $0x5b0] sm:$0xf0] }
 0x1f6   : > { %v11817_v23 = vor.u32 %v14622_v18, %v11814_v1  ;;  %v14494_v63 = vld [vmem:[%s22446_s2 + $0x194] sm:$0xf] }
 0x1f7   : > { %v11302_v52 = vld [vmem:[%s22446_s2 + $0x1b0] sm:$0xf0] }
 0x1f8   : > { %2895 = vmatpush.bf16.msrb.mxu2 %v11817_v23  ;;  %v14686_v10 = vld [vmem:[%s22446_s2 + $0x794] sm:$0xf] }
 0x1fa   : > { %v2409_v62 = vpop.f32.mrf.mxu2 }
 0x1fb   : > { %v2410_v20 = vadd.f32 %v2409_v62, %v2367_v57  ;;  %v2369_v17 = vpop.f32.mrf.mxu1  ;;  %v11305_v57 = vor.u32 %v14494_v63, %v11302_v52  ;;  %v11558_v62 = vld [vmem:[%s22446_s2 + $0x3b0] sm:$0xf0] }
 0x1fc   : > { %v2452_v53 = vpop.f32.mrf.mxu3  ;;  %v2326_v29 = vpop.f32.mrf.mxu0 }
 0x1fd   : > { %v16793_v46 = vadd.f32 %v2452_v53, %v2410_v20  ;;  %v2370_v28 = vadd.f32 %v2369_v17, %v2326_v29  ;;  %2545 = vmatmul.bf16.gmra.mxu1 %v15956_v12  ;;  %v12073_v53 = vor.u32 %v14686_v10, %v12070_v45  ;;  %v11561_v29 = vor.u32 %v14558_v16, %v11558_v62  ;;  %v14678_v62 = vld [vmem:[%s22446_s2 + $0x754] sm:$0xf] }
 0x1fe   : > { %2809 = vmatpush.bf16.msrb.mxu0 %v11305_v57 }
 0x1ff   : > { %2502 = vmatmul.bf16.gmra.mxu0 %v15954_v11  ;;  %2588 = vmatmul.bf16.gmra.mxu2 %v15958_v13 }
 0x200   : > { %2938 = vmatpush.bf16.msrb.mxu3 %v12073_v53  ;;  %2852 = vmatpush.bf16.msrb.mxu1 %v11561_v29 }
 0x201   : > { %2631 = vmatmul.bf16.gmra.mxu3 %v15960_v14 }
 0x202   : > { %v2412_v20 = vpop.f32.mrf.mxu2 }
 0x203   : > { %v2413_v17 = vadd.f32 %v2412_v20, %v2370_v28  ;;  %v2371_v23 = vpop.f32.mrf.mxu1  ;;  %v12038_v20 = vld [vmem:[%s22446_s2 + $0x770] sm:$0xf0] }
 0x204   : > { %v2455_v18 = vpop.f32.mrf.mxu3  ;;  %v2328_v1 = vpop.f32.mrf.mxu0  ;;  %v12041_v29 = vor.u32 %v14678_v62, %v12038_v20  ;;  %v22609_v62 = vld [vmem:[#allocation8_spill] sm:$0xff] }
 0x205   : > { %v16823_v63 = vadd.f32 %v2455_v18, %v2413_v17  ;;  %v2372_v52 = vadd.f32 %v2371_v23, %v2328_v1  ;;  %v14550_v17 = vld [vmem:[%s22446_s2 + $0x354] sm:$0xf] }
 0x206   : > { %v11526_v18 = vld [vmem:[%s22446_s2 + $0x370] sm:$0xf0]  ;;  %2939 = vmatpush.bf16.msrb.mxu3 %v12041_v29 }
 0x207   : > { %v11529_v1 = vor.u32 %v14550_v17, %v11526_v18 }
 0x209   : > { %2853 = vmatpush.bf16.msrb.mxu1 %v11529_v1 }
 0x20a   : > { %v2414_v27 = vpop.f32.mrf.mxu2 }
 0x20b   : > { %v2415_v24 = vadd.f32 %v2414_v27, %v2372_v52  ;;  %v2374_v61 = vpop.f32.mrf.mxu1 }
 0x20c   : > { %v2457_v0 = vpop.f32.mrf.mxu3  ;;  %v2331_v15 = vpop.f32.mrf.mxu0 }
 0x20d   : > { %v16825_v31 = vadd.f32 %v2457_v0, %v2415_v24  ;;  %v2375_v14 = vadd.f32 %v2374_v61, %v2331_v15  ;;  %2687 = vmatmul.bf16.vlgmr.msra.gmra.mxu1 %v15623_v55  ;;  %v14614_v0 = vld [vmem:[%s22446_s2 + $0x554] sm:$0xf] }
 0x20e   : > { %v11782_v15 = vld [vmem:[%s22446_s2 + $0x570] sm:$0xf0] }
 0x20f   : > { %2644 = vmatmul.bf16.vlgmr.msra.gmra.mxu0 %v15616_v50  ;;  %2730 = vmatmul.bf16.vlgmr.msra.gmra.mxu2 %v15625_v56  ;;  %v14486_v61 = vld [vmem:[%s22446_s2 + $0x154] sm:$0xf]  ;;  %v11785_v24 = vor.u32 %v14614_v0, %v11782_v15  ;;  %v15320_v15 = vld [vmem:[%s22447_s3] sm:$0xff] }
 0x211   : > { %2773 = vmatmul.bf16.vlgmr.msra.gmra.mxu3 %v15633_v59  ;;  %2896 = vmatpush.bf16.msrb.mxu2 %v11785_v24  ;;  %v16871_v24 = vperm.slane %v15320_v15, 3 }
 0x212   : > { %v2417_v28 = vpop.f32.mrf.mxu2 }
 0x213   : > { %v2418_v10 = vadd.f32 %v2417_v28, %v2375_v14  ;;  %v2376_v16 = vpop.f32.mrf.mxu1  ;;  %v11270_v14 = vld [vmem:[%s22446_s2 + $0x170] sm:$0xf0]  ;;  %v3423_v17 = vmul.f32 %v16871_v24, %v22609_v62 }
 0x214   : > { %v2460_v57 = vpop.f32.mrf.mxu3  ;;  %v2333_v45 = vpop.f32.mrf.mxu0  ;;  %v11273_v53 = vor.u32 %v14486_v61, %v11270_v14  ;;  %v16867_v61 = vperm.slane %v15320_v15, 2  ;;  %v11494_v15 = vld [vmem:[%s22446_s2 + $0x330] sm:$0xf0] }
 0x215   : > { %v16831_v27 = vadd.f32 %v2460_v57, %v2418_v10  ;;  %v14606_v10 = vld [vmem:[%s22446_s2 + $0x514] sm:$0xf] }
 0x216   : > { %2810 = vmatpush.bf16.msrb.mxu0 %v11273_v53  ;;  %v11750_v57 = vld [vmem:[%s22446_s2 + $0x530] sm:$0xf0]  ;;  %v3422_v20 = vmul.f32 %v16867_v61, %v22609_v62 }
 0x217   : > { %v11753_v16 = vor.u32 %v14606_v10, %v11750_v57  ;;  %v11238_v10 = vld [vmem:[%s22446_s2 + $0x130] sm:$0xf0] }
 0x218   : > { %v14670_v57 = vld [vmem:[%s22446_s2 + $0x714] sm:$0xf] }
 0x219   : > { %2897 = vmatpush.bf16.msrb.mxu2 %v11753_v16  ;;  %v12006_v16 = vld [vmem:[%s22446_s2 + $0x730] sm:$0xf0] }
 0x21a   : > { %v2419_v23 = vpop.f32.mrf.mxu2 }
 0x21b   : > { %v2516_v45 = vpop.f32.mrf.mxu1 }
 0x21c   : > { %v2462_v52 = vpop.f32.mrf.mxu3  ;;  %v2473_v28 = vpop.f32.mrf.mxu0 }
 0x21d   : > { %v2517_v0 = vadd.f32 %v2516_v45, %v2473_v28  ;;  %2692 = vmatmul.bf16.gmra.mxu1 %v15718_v42  ;;  %v14478_v28 = vld [vmem:[%s22446_s2 + $0x114] sm:$0xf] }
 0x21e   : > { %v11241_v45 = vor.u32 %v14478_v28, %v11238_v10  ;;  %v3430_v10 = vmul.f32 %v16867_v61, %v16309_v30 }
 0x21f   : > { %2649 = vmatmul.bf16.gmra.mxu0 %v15716_v41  ;;  %2735 = vmatmul.bf16.gmra.mxu2 %v15720_v43  ;;  %v3431_v43 = vmul.f32 %v16871_v24, %v16309_v30 }
 0x220   : > { %2811 = vmatpush.bf16.msrb.mxu0 %v11241_v45  ;;  %v14662_v45 = vld [vmem:[%s22446_s2 + $0x6d4] sm:$0xf] }
 0x221   : > { %2778 = vmatmul.bf16.gmra.mxu3 %v15722_v44 }
 0x222   : > { %v2559_v14 = vpop.f32.mrf.mxu2 }
 0x223   : > { %v2560_v53 = vadd.f32 %v2559_v14, %v2517_v0  ;;  %v2518_v1 = vpop.f32.mrf.mxu1  ;;  %v14542_v0 = vld [vmem:[%s22446_s2 + $0x314] sm:$0xf]  ;;  %v3526_v14 = vadd.f32 %v3422_v20, %v16639_v19 }
 0x224   : > { %v2602_v29 = vpop.f32.mrf.mxu3  ;;  %v2475_v18 = vpop.f32.mrf.mxu0  ;;  %v14598_v19 = vld [vmem:[%s22446_s2 + $0x4d4] sm:$0xf] }
 0x225   : > { %v2603_v23 = vadd.f32 %v2602_v29, %v2560_v53  ;;  %v2519_v52 = vadd.f32 %v2518_v1, %v2475_v18  ;;  %v12009_v29 = vor.u32 %v14670_v57, %v12006_v16  ;;  %v11497_v18 = vor.u32 %v14542_v0, %v11494_v15  ;;  %v11718_v20 = vld [vmem:[%s22446_s2 + $0x4f0] sm:$0xf0] }
 0x226   : > { %v11721_v57 = vor.u32 %v14598_v19, %v11718_v20  ;;  %v11974_v16 = vld [vmem:[%s22446_s2 + $0x6f0] sm:$0xf0]  ;;  %v22610_v19 = vld [vmem:[#allocation9_spill] sm:$0xff] }
 0x227   : > { %v3527_v53 = vadd.f32 %v3423_v17, %v2603_v23  ;;  %2940 = vmatpush.bf16.msrb.mxu3 %v12009_v29  ;;  %2854 = vmatpush.bf16.msrb.mxu1 %v11497_v18  ;;  %v14470_v17 = vld [vmem:[%s22446_s2 + $0xd4] sm:$0xf]  ;;  %v3534_v29 = vadd.f32 %v3430_v10, %v16659_v58  ;;  %v3439_v20 = vmul.f32 %v16871_v24, %v22610_v19 }
 0x228   : > { %2898 = vmatpush.bf16.msrb.mxu2 %v11721_v57 }
 0x229   : > { %v3629_v1 = vpack.c.bf16 %v3527_v53, %v3526_v14  ;;  %v11977_v53 = vor.u32 %v14662_v45, %v11974_v16 }
 0x22a   : > { %v2561_v28 = vpop.f32.mrf.mxu2 }
 0x22b   : > { %v2562_v62 = vadd.f32 %v2561_v28, %v2519_v52  ;;  %v2521_v23 = vpop.f32.mrf.mxu1  ;;  %v11206_v52 = vld [vmem:[%s22446_s2 + $0xf0] sm:$0xf0]  ;;  %2941 = vmatpush.bf16.msrb.mxu3 %v11977_v53 }
 0x22c   : > { %v2604_v44 = vpop.f32.mrf.mxu3  ;;  %v2478_v42 = vpop.f32.mrf.mxu0  ;;  %v11209_v14 = vor.u32 %v14470_v17, %v11206_v52  ;;  %v4375_v17 = vunpack.c.h.b16 %v3629_v1  ;;  %v14534_v53 = vld [vmem:[%s22446_s2 + $0x2d4] sm:$0xf] }
 0x22d   : > { %v2605_v0 = vadd.f32 %v2604_v44, %v2562_v62  ;;  %v2522_v15 = vadd.f32 %v2521_v23, %v2478_v42  ;;  %2697 = vmatmul.bf16.gmra.mxu1 %v15762_v6  ;;  %v3438_v42 = vmul.f32 %v16867_v61, %v22610_v19  ;;  %v4374_v44 = vunpack.c.l.b16 %v3629_v1  ;;  %v11462_v1 = vld [vmem:[%s22446_s2 + $0x2f0] sm:$0xf0] }
 0x22e   : > { %2812 = vmatpush.bf16.msrb.mxu0 %v11209_v14 }
 0x22f   : > { %2654 = vmatmul.bf16.gmra.mxu0 %v15760_v5  ;;  %v3535_v18 = vadd.f32 %v3431_v43, %v2605_v0  ;;  %2740 = vmatmul.bf16.gmra.mxu2 %v15764_v7 }
 0x231   : > { %2783 = vmatmul.bf16.gmra.mxu3 %v15766_v8  ;;  %v3633_v28 = vpack.c.bf16 %v3535_v18, %v3534_v29  ;;  %v11465_v29 = vor.u32 %v14534_v53, %v11462_v1  ;;  %v11942_v53 = vld [vmem:[%s22446_s2 + $0x6b0] sm:$0xf0] }
 0x232   : > { %v2564_v62 = vpop.f32.mrf.mxu2 }
 0x233   : > { %v4382_v58 = vunpack.c.l.b16 %v3633_v28  ;;  %v4383_v43 = vunpack.c.h.b16 %v3633_v28  ;;  %v2565_v10 = vadd.f32 %v2564_v62, %v2522_v15  ;;  %v2523_v52 = vpop.f32.mrf.mxu1  ;;  %v3542_v15 = vadd.f32 %v3438_v42, %v16671_v40  ;;  %2855 = vmatpush.bf16.msrb.mxu1 %v11465_v29  ;;  %v22613_v62 = vld [vmem:[#allocation12_spill] sm:$0xff] }
 0x234   : > { %v2607_v23 = vpop.f32.mrf.mxu3  ;;  %v2480_v57 = vpop.f32.mrf.mxu0  ;;  %v11686_v40 = vld [vmem:[%s22446_s2 + $0x4b0] sm:$0xf0] }
 0x235   : > { %v16928_v45 = vpack.c.b16 %v4382_v58, %v4374_v44  ;;  %v16930_v16 = vpack.c.b16 %v4383_v43, %v4375_v17  ;;  %v2608_v0 = vadd.f32 %v2607_v23, %v2565_v10  ;;  %v2524_v14 = vadd.f32 %v2523_v52, %v2480_v57  ;;  %v14590_v57 = vld [vmem:[%s22446_s2 + $0x494] sm:$0xf] }
 0x236   : > { %v3446_v17 = vmul.f32 %v16867_v61, %v22613_v62  ;;  %v3447_v10 = vmul.f32 %v16871_v24, %v22613_v62  ;;  %v14462_v42 = vld [vmem:[%s22446_s2 + $0x94] sm:$0xf]  ;;  %v11689_v52 = vor.u32 %v14590_v57, %v11686_v40 }
 0x237   : > { %22611 = vst [vmem:[#allocation9_spill] sm:$0xff] %v16928_v45  ;;  %v3543_v18 = vadd.f32 %v3439_v20, %v2608_v0  ;;  %v11174_v0 = vld [vmem:[%s22446_s2 + $0xb0] sm:$0xf0] }
 0x238   : > { %22612 = vst [vmem:[#allocation29_spill] sm:$0xff] %v16930_v16  ;;  %v11430_v57 = vld [vmem:[%s22446_s2 + $0x2b0] sm:$0xf0]  ;;  %2899 = vmatpush.bf16.msrb.mxu2 %v11689_v52  ;;  %v3550_v16 = vadd.f32 %v3446_v17, %v16697_v26 }
 0x239   : > { %v3637_v28 = vpack.c.bf16 %v3543_v18, %v3542_v15  ;;  %v11177_v15 = vor.u32 %v14462_v42, %v11174_v0 }
 0x23a   : > { %v2566_v44 = vpop.f32.mrf.mxu2 }
 0x23b   : > { %v2567_v58 = vadd.f32 %v2566_v44, %v2524_v14  ;;  %v2526_v20 = vpop.f32.mrf.mxu1  ;;  %v14654_v14 = vld [vmem:[%s22446_s2 + $0x694] sm:$0xf]  ;;  %2813 = vmatpush.bf16.msrb.mxu0 %v11177_v15  ;;  %v4390_v42 = vunpack.c.l.b16 %v3637_v28  ;;  %v4391_v26 = vunpack.c.h.b16 %v3637_v28  ;;  %v3462_v28 = vmul.f32 %v16867_v61, %v16401_v47 }
 0x23c   : > { %v2609_v43 = vpop.f32.mrf.mxu3  ;;  %v2483_v23 = vpop.f32.mrf.mxu0  ;;  %v11945_v18 = vor.u32 %v14654_v14, %v11942_v53  ;;  %v14526_v44 = vld [vmem:[%s22446_s2 + $0x294] sm:$0xf] }
 0x23d   : > { %v2610_v1 = vadd.f32 %v2609_v43, %v2567_v58  ;;  %v2527_v29 = vadd.f32 %v2526_v20, %v2483_v23  ;;  %v11433_v40 = vor.u32 %v14526_v44, %v11430_v57  ;;  %2702 = vmatmul.bf16.gmra.mxu1 %v15815_v33  ;;  %v22614_v43 = vld [vmem:[#allocation13_spill] sm:$0xff] }
 0x23e   : > { %2942 = vmatpush.bf16.msrb.mxu3 %v11945_v18  ;;  %v3454_v23 = vmul.f32 %v16867_v61, %v22614_v43  ;;  %v3455_v52 = vmul.f32 %v16871_v24, %v22614_v43 }
 0x23f   : > { %2659 = vmatmul.bf16.gmra.mxu0 %v15813_v32  ;;  %v3551_v45 = vadd.f32 %v3447_v10, %v2610_v1  ;;  %2745 = vmatmul.bf16.gmra.mxu2 %v15817_v34 }
 0x240   : > { %2856 = vmatpush.bf16.msrb.mxu1 %v11433_v40  ;;  %v3558_v18 = vadd.f32 %v3454_v23, %v16703_v21  ;;  %v11654_v21 = vld [vmem:[%s22446_s2 + $0x470] sm:$0xf0] }
 0x241   : > { %2788 = vmatmul.bf16.gmra.mxu3 %v15819_v35  ;;  %v3641_v58 = vpack.c.bf16 %v3551_v45, %v3550_v16  ;;  %v14454_v23 = vld [vmem:[%s22446_s2 + $0x54] sm:$0xf] }
 0x242   : > { %v2569_v20 = vpop.f32.mrf.mxu2 }
 0x243   : > { %v4398_v17 = vunpack.c.l.b16 %v3641_v58  ;;  %v4399_v10 = vunpack.c.h.b16 %v3641_v58  ;;  %v2570_v0 = vadd.f32 %v2569_v20, %v2527_v29  ;;  %v2528_v1 = vpop.f32.mrf.mxu1  ;;  %v3463_v29 = vmul.f32 %v16871_v24, %v16401_v47 }
 0x244   : > { %v2612_v14 = vpop.f32.mrf.mxu3  ;;  %v2485_v53 = vpop.f32.mrf.mxu0 }
 0x245   : > { %v16976_v44 = vpack.c.b16 %v4398_v17, %v4390_v42  ;;  %v16978_v45 = vpack.c.b16 %v4399_v10, %v4391_v26  ;;  %v2613_v16 = vadd.f32 %v2612_v14, %v2570_v0  ;;  %v2529_v15 = vadd.f32 %v2528_v1, %v2485_v53  ;;  %v14582_v42 = vld [vmem:[%s22446_s2 + $0x454] sm:$0xf] }
 0x246   : > { %v11657_v26 = vor.u32 %v14582_v42, %v11654_v21  ;;  %v14646_v17 = vld [vmem:[%s22446_s2 + $0x654] sm:$0xf] }
 0x247   : > { %22615 = vst [vmem:[#allocation30_spill] sm:$0xff] %v16976_v44  ;;  %v3559_v57 = vadd.f32 %v3455_v52, %v2613_v16  ;;  %v11910_v10 = vld [vmem:[%s22446_s2 + $0x670] sm:$0xf0] }
 0x248   : > { %22616 = vst [vmem:[#allocation31_spill] sm:$0xff] %v16978_v45  ;;  %v11913_v1 = vor.u32 %v14646_v17, %v11910_v10  ;;  %v14518_v16 = vld [vmem:[%s22446_s2 + $0x254] sm:$0xf]  ;;  %2900 = vmatpush.bf16.msrb.mxu2 %v11657_v26 }
 0x249   : > { %v3645_v40 = vpack.c.bf16 %v3559_v57, %v3558_v18  ;;  %v3566_v57 = vadd.f32 %v3462_v28, %v16729_v60 }
 0x24a   : > { %v2571_v62 = vpop.f32.mrf.mxu2  ;;  %2943 = vmatpush.bf16.msrb.mxu3 %v11913_v1 }
 0x24b   : > { %v2572_v43 = vadd.f32 %v2571_v62, %v2529_v15  ;;  %v2531_v52 = vpop.f32.mrf.mxu1  ;;  %v11142_v62 = vld [vmem:[%s22446_s2 + $0x70] sm:$0xf0]  ;;  %v4407_v60 = vunpack.c.h.b16 %v3645_v40 }
 0x24c   : > { %v2614_v58 = vpop.f32.mrf.mxu3  ;;  %v2488_v20 = vpop.f32.mrf.mxu0  ;;  %v11145_v53 = vor.u32 %v14454_v23, %v11142_v62  ;;  %v11398_v15 = vld [vmem:[%s22446_s2 + $0x270] sm:$0xf0]  ;;  %v3471_v23 = vmul.f32 %v16871_v24, %v16432_v54 }
 0x24d   : > { %v2615_v0 = vadd.f32 %v2614_v58, %v2572_v43  ;;  %v2532_v14 = vadd.f32 %v2531_v52, %v2488_v20  ;;  %v11401_v18 = vor.u32 %v14518_v16, %v11398_v15  ;;  %2707 = vmatmul.bf16.gmra.mxu1 %v15865_v3  ;;  %v3470_v58 = vmul.f32 %v16867_v61, %v16432_v54  ;;  %v14574_v16 = vld [vmem:[%s22446_s2 + $0x414] sm:$0xf] }
 0x24e   : > { %2814 = vmatpush.bf16.msrb.mxu0 %v11145_v53  ;;  %v4406_v20 = vunpack.c.l.b16 %v3645_v40  ;;  %v11622_v40 = vld [vmem:[%s22446_s2 + $0x430] sm:$0xf0] }
 0x24f   : > { %2664 = vmatmul.bf16.gmra.mxu0 %v15863_v2  ;;  %v3567_v42 = vadd.f32 %v3463_v29, %v2615_v0  ;;  %2750 = vmatmul.bf16.gmra.mxu2 %v15867_v4  ;;  %v11625_v15 = vor.u32 %v14574_v16, %v11622_v40 }
 0x250   : > { %2857 = vmatpush.bf16.msrb.mxu1 %v11401_v18 }
 0x251   : > { %2793 = vmatmul.bf16.gmra.mxu3 %v15869_v9  ;;  %v3649_v43 = vpack.c.bf16 %v3567_v42, %v3566_v57  ;;  %2901 = vmatpush.bf16.msrb.mxu2 %v11625_v15 }
 0x252   : > { %v2574_v21 = vpop.f32.mrf.mxu2 }
 0x253   : > { %v4414_v28 = vunpack.c.l.b16 %v3649_v43  ;;  %v4415_v29 = vunpack.c.h.b16 %v3649_v43  ;;  %v2575_v52 = vadd.f32 %v2574_v21, %v2532_v14  ;;  %v2533_v17 = vpop.f32.mrf.mxu1  ;;  %v3574_v14 = vadd.f32 %v3470_v58, %v16741_v48  ;;  %v14446_v43 = vld [vmem:[%s22446_s2 + $0x14] sm:$0xf] }
 0x254   : > { %v2617_v26 = vpop.f32.mrf.mxu3  ;;  %v2490_v62 = vpop.f32.mrf.mxu0  ;;  %v14638_v21 = vld [vmem:[%s22446_s2 + $0x614] sm:$0xf] }
 0x255   : > { %v17018_v10 = vpack.c.b16 %v4414_v28, %v4406_v20  ;;  %v17020_v0 = vpack.c.b16 %v4415_v29, %v4407_v60  ;;  %v2618_v53 = vadd.f32 %v2617_v26, %v2575_v52  ;;  %v2534_v1 = vadd.f32 %v2533_v17, %v2490_v62  ;;  %v11110_v20 = vld [vmem:[%s22446_s2 + $0x30] sm:$0xf0] }
 0x256   : > { %v3478_v60 = vmul.f32 %v16867_v61, %v16453_v22  ;;  %v11113_v29 = vor.u32 %v14446_v43, %v11110_v20  ;;  %v11878_v52 = vld [vmem:[%s22446_s2 + $0x630] sm:$0xf0] }
 0x257   : > { %22617 = vst [vmem:[#allocation32_spill] sm:$0xff] %v17018_v10  ;;  %v3575_v18 = vadd.f32 %v3471_v23, %v2618_v53  ;;  %v3479_v23 = vmul.f32 %v16871_v24, %v16453_v22  ;;  %v14510_v26 = vld [vmem:[%s22446_s2 + $0x214] sm:$0xf]  ;;  %v11881_v53 = vor.u32 %v14638_v21, %v11878_v52  ;;  %v3487_v21 = vmul.f32 %v16871_v24, %v16478_v49 }
 0x258   : > { %22618 = vst [vmem:[#allocation33_spill] sm:$0xff] %v17020_v0  ;;  %v11366_v62 = vld [vmem:[%s22446_s2 + $0x230] sm:$0xf0]  ;;  %2815 = vmatpush.bf16.msrb.mxu0 %v11113_v29  ;;  %v3582_v15 = vadd.f32 %v3478_v60, %v16761_v51 }
 0x259   : > { %v3653_v57 = vpack.c.bf16 %v3575_v18, %v3574_v14  ;;  %2944 = vmatpush.bf16.msrb.mxu3 %v11881_v53  ;;  %v11852_v53 = vld [vmem:[%s22446_s2 + $0x5d8] sm:$0xf] }
 0x25a   : > { %v2576_v42 = vpop.f32.mrf.mxu2 }
 0x25b   : > { %v2577_v48 = vadd.f32 %v2576_v42, %v2534_v1  ;;  %v2536_v17 = vpop.f32.mrf.mxu1  ;;  %v11369_v1 = vor.u32 %v14510_v26, %v11366_v62  ;;  %v3486_v42 = vmul.f32 %v16867_v61, %v16478_v49  ;;  %v4422_v43 = vunpack.c.l.b16 %v3653_v57 }
 0x25c   : > { %v2619_v58 = vpop.f32.mrf.mxu3  ;;  %v2493_v28 = vpop.f32.mrf.mxu0 }
 0x25d   : > { %v2620_v16 = vadd.f32 %v2619_v58, %v2577_v48  ;;  %v2537_v40 = vadd.f32 %v2536_v17, %v2493_v28  ;;  %2712 = vmatmul.bf16.gmra.mxu1 %v15915_v37  ;;  %v4423_v48 = vunpack.c.h.b16 %v3653_v57  ;;  %v14635_v57 = vld [vmem:[%s22446_s2 + $0x5f4] sm:$0xf0] }
 0x25e   : > { %2858 = vmatpush.bf16.msrb.mxu1 %v11369_v1  ;;  %v11340_v1 = vld [vmem:[%s22446_s2 + $0x1d8] sm:$0xf] }
 0x25f   : > { %2669 = vmatmul.bf16.gmra.mxu0 %v15913_v36  ;;  %v3583_v14 = vadd.f32 %v3479_v23, %v2620_v16  ;;  %2755 = vmatmul.bf16.gmra.mxu2 %v15917_v38  ;;  %v11853_v16 = vor.u32 %v14635_v57, %v11852_v53 }
 0x261   : > { %2798 = vmatmul.bf16.gmra.mxu3 %v15919_v39  ;;  %v3657_v18 = vpack.c.bf16 %v3583_v14, %v3582_v15  ;;  %v12108_v15 = vld [vmem:[%s22446_s2 + $0x7d8] sm:$0xf]  ;;  %3066 = vmatpush.bf16.msra.mxu2 %v11853_v16 }
 0x262   : > { %v2579_v20 = vpop.f32.mrf.mxu2  ;;  %v14699_v14 = vld [vmem:[%s22446_s2 + $0x7f4] sm:$0xf0] }
 0x263   : > { %v4430_v58 = vunpack.c.l.b16 %v3657_v18  ;;  %v4431_v51 = vunpack.c.h.b16 %v3657_v18  ;;  %v2580_v60 = vadd.f32 %v2579_v20, %v2537_v40  ;;  %v2538_v29 = vpop.f32.mrf.mxu1  ;;  %v14507_v40 = vld [vmem:[%s22446_s2 + $0x1f4] sm:$0xf0]  ;;  %v3590_v18 = vadd.f32 %v3486_v42, %v16785_v25 }
 0x264   : > { %v2622_v23 = vpop.f32.mrf.mxu3  ;;  %v2495_v28 = vpop.f32.mrf.mxu0  ;;  %v11341_v20 = vor.u32 %v14507_v40, %v11340_v1  ;;  %v11596_v42 = vld [vmem:[%s22446_s2 + $0x3d8] sm:$0xf] }
 0x265   : > { %v17060_v52 = vpack.c.b16 %v4430_v58, %v4422_v43  ;;  %v17062_v26 = vpack.c.b16 %v4431_v51, %v4423_v48  ;;  %v2623_v62 = vadd.f32 %v2622_v23, %v2580_v60  ;;  %v2539_v17 = vadd.f32 %v2538_v29, %v2495_v28  ;;  %v22621_v60 = vld [vmem:[#allocation20_spill] sm:$0xff]  ;;  %v14627_v1 = vld [vmem:[%s22446_s2 + $0x5b4] sm:$0xf0] }
 0x266   : > { %v12109_v48 = vor.u32 %v14699_v14, %v12108_v15  ;;  %2980 = vmatpush.bf16.msra.mxu0 %v11341_v20  ;;  %v3494_v23 = vmul.f32 %v16867_v61, %v22621_v60  ;;  %v3495_v53 = vmul.f32 %v16871_v24, %v22621_v60  ;;  %v22622_v15 = vld [vmem:[#allocation7_spill] sm:$0xff]  ;;  %v11308_v14 = vld [vmem:[%s22446_s2 + $0x198] sm:$0xf] }
 0x267   : > { %22619 = vst [vmem:[#allocation34_spill] sm:$0xff] %v17060_v52  ;;  %v3591_v43 = vadd.f32 %v3487_v21, %v2623_v62  ;;  %v14571_v21 = vld [vmem:[%s22446_s2 + $0x3f4] sm:$0xf0] }
 0x268   : > { %22620 = vst [vmem:[#allocation35_spill] sm:$0xff] %v17062_v26  ;;  %3109 = vmatpush.bf16.msra.mxu3 %v12109_v48  ;;  %v11820_v62 = vld [vmem:[%s22446_s2 + $0x598] sm:$0xf] }
 0x269   : > { %v3661_v58 = vpack.c.bf16 %v3591_v43, %v3590_v18  ;;  %v11821_v40 = vor.u32 %v14627_v1, %v11820_v62  ;;  %v14499_v18 = vld [vmem:[%s22446_s2 + $0x1b4] sm:$0xf0] }
 0x26a   : > { %v2581_v51 = vpop.f32.mrf.mxu2  ;;  %v11309_v48 = vor.u32 %v14499_v18, %v11308_v14 }
 0x26b   : > { %v2582_v28 = vadd.f32 %v2581_v51, %v2539_v17  ;;  %v2541_v26 = vpop.f32.mrf.mxu1  ;;  %v11597_v17 = vor.u32 %v14571_v21, %v11596_v42  ;;  %3067 = vmatpush.bf16.msra.mxu2 %v11821_v40  ;;  %v14691_v51 = vld [vmem:[%s22446_s2 + $0x7b4] sm:$0xf0]  ;;  %v4439_v62 = vunpack.c.h.b16 %v3661_v58 }
 0x26c   : > { %v2624_v29 = vpop.f32.mrf.mxu3  ;;  %v2498_v57 = vpop.f32.mrf.mxu0  ;;  %2981 = vmatpush.bf16.msra.mxu0 %v11309_v48 }
 0x26d   : > { %v2625_v52 = vadd.f32 %v2624_v29, %v2582_v28  ;;  %v2542_v25 = vadd.f32 %v2541_v26, %v2498_v57  ;;  %v3598_v26 = vadd.f32 %v3494_v23, %v16793_v46  ;;  %2717 = vmatmul.bf16.gmra.mxu1 %v15956_v12  ;;  %v12076_v46 = vld [vmem:[%s22446_s2 + $0x798] sm:$0xf]  ;;  %v4438_v29 = vunpack.c.l.b16 %v3661_v58 }
 0x26e   : > { %3023 = vmatpush.bf16.msra.mxu1 %v11597_v17  ;;  %v11564_v23 = vld [vmem:[%s22446_s2 + $0x398] sm:$0xf]  ;;  %v12077_v42 = vor.u32 %v14691_v51, %v12076_v46 }
 0x26f   : > { %2674 = vmatmul.bf16.gmra.mxu0 %v15954_v11  ;;  %v3599_v16 = vadd.f32 %v3495_v53, %v2625_v52  ;;  %2760 = vmatmul.bf16.gmra.mxu2 %v15958_v13  ;;  %v22623_v52 = vld [vmem:[#allocation21_spill] sm:$0xff] }
 0x270   : > { %v3502_v43 = vmul.f32 %v16867_v61, %v22623_v52  ;;  %v14563_v28 = vld [vmem:[%s22446_s2 + $0x3b4] sm:$0xf0]  ;;  %v3503_v57 = vmul.f32 %v16871_v24, %v22623_v52  ;;  %3110 = vmatpush.bf16.msra.mxu3 %v12077_v42 }
 0x271   : > { %2803 = vmatmul.bf16.gmra.mxu3 %v22622_v15  ;;  %v3665_v20 = vpack.c.bf16 %v3599_v16, %v3598_v26  ;;  %v11565_v21 = vor.u32 %v14563_v28, %v11564_v23  ;;  %v22626_v23 = vld [vmem:[#allocation24_spill] sm:$0xff] }
 0x272   : > { %v2584_v53 = vpop.f32.mrf.mxu2  ;;  %v3606_v44 = vadd.f32 %v3502_v43, %v16823_v63  ;;  %v3511_v48 = vmul.f32 %v16871_v24, %v22626_v23  ;;  %v14491_v43 = vld [vmem:[%s22446_s2 + $0x174] sm:$0xf0] }
 0x273   : > { %v4446_v17 = vunpack.c.l.b16 %v3665_v20  ;;  %v4447_v1 = vunpack.c.h.b16 %v3665_v20  ;;  %v2585_v26 = vadd.f32 %v2584_v53, %v2542_v25  ;;  %v2543_v14 = vpop.f32.mrf.mxu1  ;;  %3024 = vmatpush.bf16.msra.mxu1 %v11565_v21  ;;  %v3510_v25 = vmul.f32 %v16867_v61, %v22626_v23 }
 0x274   : > { %v2627_v16 = vpop.f32.mrf.mxu3  ;;  %v2500_v40 = vpop.f32.mrf.mxu0 }
 0x275   : > { %v17126_v18 = vpack.c.b16 %v4446_v17, %v4438_v29  ;;  %v17128_v0 = vpack.c.b16 %v4447_v1, %v4439_v62  ;;  %v2628_v10 = vadd.f32 %v2627_v16, %v2585_v26  ;;  %v2544_v45 = vadd.f32 %v2543_v14, %v2500_v40  ;;  %v14683_v17 = vld [vmem:[%s22446_s2 + $0x774] sm:$0xf0] }
 0x276   : > { %v3614_v62 = vadd.f32 %v3510_v25, %v16825_v31  ;;  %v11532_v40 = vld [vmem:[%s22446_s2 + $0x358] sm:$0xf] }
 0x277   : > { %22624 = vst [vmem:[#allocation20_spill] sm:$0xff] %v17126_v18  ;;  %v3607_v46 = vadd.f32 %v3503_v57, %v2628_v10  ;;  %v11276_v10 = vld [vmem:[%s22446_s2 + $0x158] sm:$0xf] }
 0x278   : > { %22625 = vst [vmem:[#allocation36_spill] sm:$0xff] %v17128_v0  ;;  %v12044_v57 = vld [vmem:[%s22446_s2 + $0x758] sm:$0xf]  ;;  %v11277_v26 = vor.u32 %v14491_v43, %v11276_v10  ;;  %v11598_v0 = vld [vmem:[%s22446_s2 + $0x3f8] sm:$0xf0] }
 0x279   : > { %v3669_v51 = vpack.c.bf16 %v3607_v46, %v3606_v44  ;;  %v11788_v44 = vld [vmem:[%s22446_s2 + $0x558] sm:$0xf]  ;;  %v12045_v16 = vor.u32 %v14683_v17, %v12044_v57 }
 0x27a   : > { %v2586_v58 = vpop.f32.mrf.mxu2  ;;  %v14555_v14 = vld [vmem:[%s22446_s2 + $0x374] sm:$0xf0]  ;;  %2982 = vmatpush.bf16.msra.mxu0 %v11277_v26 }
 0x27b   : > { %v2587_v20 = vadd.f32 %v2586_v58, %v2544_v45  ;;  %v2546_v29 = vpop.f32.mrf.mxu1  ;;  %v14619_v45 = vld [vmem:[%s22446_s2 + $0x574] sm:$0xf0]  ;;  %v4454_v25 = vunpack.c.l.b16 %v3669_v51  ;;  %3111 = vmatpush.bf16.msra.mxu3 %v12045_v16 }
 0x27c   : > { %v2629_v28 = vpop.f32.mrf.mxu3  ;;  %v2503_v53 = vpop.f32.mrf.mxu0  ;;  %v11789_v31 = vor.u32 %v14619_v45, %v11788_v44  ;;  %v22627_v46 = vld [vmem:[#allocation25_spill] sm:$0xff] }
 0x27d   : > { %v2630_v42 = vadd.f32 %v2629_v28, %v2587_v20  ;;  %v2547_v21 = vadd.f32 %v2546_v29, %v2503_v53  ;;  %2859 = vmatmul.bf16.vlgmr.msrb.gmra.mxu1 %v15623_v55  ;;  %v3518_v58 = vmul.f32 %v16867_v61, %v22627_v46  ;;  %v3519_v28 = vmul.f32 %v16871_v24, %v22627_v46 }
 0x27e   : > { %3068 = vmatpush.bf16.msra.mxu2 %v11789_v31  ;;  %v4455_v53 = vunpack.c.h.b16 %v3669_v51  ;;  %v11756_v51 = vld [vmem:[%s22446_s2 + $0x518] sm:$0xf] }
 0x27f   : > { %2816 = vmatmul.bf16.vlgmr.msrb.gmra.mxu0 %v15616_v50  ;;  %v3615_v63 = vadd.f32 %v3511_v48, %v2630_v42  ;;  %2902 = vmatmul.bf16.vlgmr.msrb.gmra.mxu2 %v15625_v56  ;;  %v11533_v48 = vor.u32 %v14555_v14, %v11532_v40  ;;  %v3622_v57 = vadd.f32 %v3518_v58, %v16831_v27  ;;  %v22631_v27 = vld [vmem:[#allocation2_spill] sm:$0xff]  ;;  %v22632_v58 = vld [vmem:[#allocation3_spill] sm:$0xff] }
 0x281   : > { %2945 = vmatmul.bf16.vlgmr.msrb.gmra.mxu3 %v15633_v59  ;;  %v3673_v1 = vpack.c.bf16 %v3615_v63, %v3614_v62  ;;  %3025 = vmatpush.bf16.msra.mxu1 %v11533_v48  ;;  %v22633_v48 = vld [vmem:[#allocation4_spill] sm:$0xff] }
 0x282   : > { %v2589_v20 = vpop.f32.mrf.mxu2 }
 0x283   : > { %v4462_v29 = vunpack.c.l.b16 %v3673_v1  ;;  %v4463_v42 = vunpack.c.h.b16 %v3673_v1  ;;  %v2590_v62 = vadd.f32 %v2589_v20, %v2547_v21  ;;  %v2548_v45 = vpop.f32.mrf.mxu1  ;;  %v14611_v21 = vld [vmem:[%s22446_s2 + $0x534] sm:$0xf0] }
 0x284   : > { %v2632_v63 = vpop.f32.mrf.mxu3  ;;  %v2505_v44 = vpop.f32.mrf.mxu0  ;;  %v11757_v31 = vor.u32 %v14611_v21, %v11756_v51  ;;  %v14483_v20 = vld [vmem:[%s22446_s2 + $0x134] sm:$0xf0] }
 0x285   : > { %v17168_v10 = vpack.c.b16 %v4462_v29, %v4454_v25  ;;  %v17170_v61 = vpack.c.b16 %v4463_v42, %v4455_v53  ;;  %v2633_v43 = vadd.f32 %v2632_v63, %v2590_v62  ;;  %v11244_v25 = vld [vmem:[%s22446_s2 + $0x118] sm:$0xf] }
 0x286   : > { %3069 = vmatpush.bf16.msra.mxu2 %v11757_v31  ;;  %v11245_v53 = vor.u32 %v14483_v20, %v11244_v25  ;;  %v14675_v29 = vld [vmem:[%s22446_s2 + $0x734] sm:$0xf0] }
 0x287   : > { %22628 = vst [vmem:[#allocation37_spill] sm:$0xff] %v17168_v10  ;;  %v3623_v24 = vadd.f32 %v3519_v28, %v2633_v43  ;;  %v12012_v28 = vld [vmem:[%s22446_s2 + $0x718] sm:$0xf]  ;;  %v14567_v10 = vld [vmem:[%s22446_s2 + $0x3dc] sm:$0xf] }
 0x288   : > { %22629 = vst [vmem:[#allocation38_spill] sm:$0xff] %v17170_v61  ;;  %v11500_v42 = vld [vmem:[%s22446_s2 + $0x318] sm:$0xf]  ;;  %v12013_v63 = vor.u32 %v14675_v29, %v12012_v28  ;;  %2983 = vmatpush.bf16.msra.mxu0 %v11245_v53 }
 0x289   : > { %v17179_v17 = vpack.c.bf16 %v3623_v24, %v3622_v57  ;;  %v14547_v62 = vld [vmem:[%s22446_s2 + $0x334] sm:$0xf0] }
 0x28a   : > { %v2591_v1 = vpop.f32.mrf.mxu2  ;;  %v11501_v44 = vor.u32 %v14547_v62, %v11500_v42  ;;  %3112 = vmatpush.bf16.msra.mxu3 %v12013_v63  ;;  %v11980_v25 = vld [vmem:[%s22446_s2 + $0x6d8] sm:$0xf] }
 0x28b   : > { %22630 = vst [vmem:[#allocation39_spill] sm:$0xff] %v17179_v17  ;;  %v2688_v40 = vpop.f32.mrf.mxu1  ;;  %v11724_v1 = vld [vmem:[%s22446_s2 + $0x4d8] sm:$0xf] }
 0x28c   : > { %v2634_v26 = vpop.f32.mrf.mxu3  ;;  %v2645_v16 = vpop.f32.mrf.mxu0  ;;  %3026 = vmatpush.bf16.msra.mxu1 %v11501_v44  ;;  %v14667_v20 = vld [vmem:[%s22446_s2 + $0x6f4] sm:$0xf0] }
 0x28d   : > { %v2689_v14 = vadd.f32 %v2688_v40, %v2645_v16  ;;  %2864 = vmatmul.bf16.gmra.mxu1 %v22631_v27  ;;  %v14603_v26 = vld [vmem:[%s22446_s2 + $0x4f4] sm:$0xf0]  ;;  %v11981_v53 = vor.u32 %v14667_v20, %v11980_v25 }
 0x28e   : > { %v11212_v16 = vld [vmem:[%s22446_s2 + $0xd8] sm:$0xf]  ;;  %v11725_v40 = vor.u32 %v14603_v26, %v11724_v1 }
 0x28f   : > { %2821 = vmatmul.bf16.gmra.mxu0 %v15716_v41  ;;  %2907 = vmatmul.bf16.gmra.mxu2 %v22632_v58  ;;  %v11692_v20 = vld [vmem:[%s22446_s2 + $0x498] sm:$0xf] }
 0x290   : > { %3070 = vmatpush.bf16.msra.mxu2 %v11725_v40  ;;  %3113 = vmatpush.bf16.msra.mxu3 %v11981_v53  ;;  %v11180_v53 = vld [vmem:[%s22446_s2 + $0x98] sm:$0xf] }
 0x291   : > { %2950 = vmatmul.bf16.gmra.mxu3 %v22633_v48 }
 0x292   : > { %v2731_v45 = vpop.f32.mrf.mxu2 }
 0x293   : > { %v2732_v43 = vadd.f32 %v2731_v45, %v2689_v14  ;;  %v2690_v51 = vpop.f32.mrf.mxu1  ;;  %v14475_v14 = vld [vmem:[%s22446_s2 + $0xf4] sm:$0xf0] }
 0x294   : > { %v2774_v57 = vpop.f32.mrf.mxu3  ;;  %v2647_v24 = vpop.f32.mrf.mxu0  ;;  %v11213_v28 = vor.u32 %v14475_v14, %v11212_v16 }
 0x295   : > { %v17203_v21 = vadd.f32 %v2774_v57, %v2732_v43  ;;  %v2691_v31 = vadd.f32 %v2690_v51, %v2647_v24  ;;  %v11468_v57 = vld [vmem:[%s22446_s2 + $0x2d8] sm:$0xf] }
 0x296   : > { %2984 = vmatpush.bf16.msra.mxu0 %v11213_v28  ;;  %v14539_v24 = vld [vmem:[%s22446_s2 + $0x2f4] sm:$0xf0] }
 0x297   : > { %v11469_v51 = vor.u32 %v14539_v24, %v11468_v57  ;;  %v14595_v28 = vld [vmem:[%s22446_s2 + $0x4b4] sm:$0xf0] }
 0x298   : > { %v11436_v57 = vld [vmem:[%s22446_s2 + $0x298] sm:$0xf] }
 0x299   : > { %3027 = vmatpush.bf16.msra.mxu1 %v11469_v51  ;;  %v14531_v24 = vld [vmem:[%s22446_s2 + $0x2b4] sm:$0xf0] }
 0x29a   : > { %v2733_v29 = vpop.f32.mrf.mxu2 }
 0x29b   : > { %v2734_v42 = vadd.f32 %v2733_v29, %v2691_v31  ;;  %v2693_v44 = vpop.f32.mrf.mxu1  ;;  %v11693_v29 = vor.u32 %v14595_v28, %v11692_v20 }
 0x29c   : > { %v2776_v62 = vpop.f32.mrf.mxu3  ;;  %v2650_v63 = vpop.f32.mrf.mxu0 }
 0x29d   : > { %v17223_v45 = vadd.f32 %v2776_v62, %v2734_v42  ;;  %v2694_v43 = vadd.f32 %v2693_v44, %v2650_v63  ;;  %2869 = vmatmul.bf16.gmra.mxu1 %v15762_v6  ;;  %v14467_v42 = vld [vmem:[%s22446_s2 + $0xb4] sm:$0xf0]  ;;  %3071 = vmatpush.bf16.msra.mxu2 %v11693_v29 }
 0x29e   : > { %v11948_v62 = vld [vmem:[%s22446_s2 + $0x698] sm:$0xf]  ;;  %v11181_v44 = vor.u32 %v14467_v42, %v11180_v53 }
 0x29f   : > { %2826 = vmatmul.bf16.gmra.mxu0 %v15760_v5  ;;  %2912 = vmatmul.bf16.gmra.mxu2 %v15764_v7  ;;  %v14659_v63 = vld [vmem:[%s22446_s2 + $0x6b4] sm:$0xf0] }
 0x2a0   : > { %2985 = vmatpush.bf16.msra.mxu0 %v11181_v44 }
 0x2a1   : > { %2955 = vmatmul.bf16.gmra.mxu3 %v15766_v8 }
 0x2a2   : > { %v2736_v31 = vpop.f32.mrf.mxu2 }
 0x2a3   : > { %v2737_v1 = vadd.f32 %v2736_v31, %v2694_v43  ;;  %v2695_v40 = vpop.f32.mrf.mxu1  ;;  %v11949_v43 = vor.u32 %v14659_v63, %v11948_v62  ;;  %v11437_v31 = vor.u32 %v14531_v24, %v11436_v57  ;;  %v14587_v57 = vld [vmem:[%s22446_s2 + $0x474] sm:$0xf0] }
 0x2a4   : > { %v2779_v26 = vpop.f32.mrf.mxu3  ;;  %v2652_v16 = vpop.f32.mrf.mxu0  ;;  %v11148_v24 = vld [vmem:[%s22446_s2 + $0x58] sm:$0xf] }
 0x2a5   : > { %v17235_v14 = vadd.f32 %v2779_v26, %v2737_v1  ;;  %v2696_v25 = vadd.f32 %v2695_v40, %v2652_v16  ;;  %3114 = vmatpush.bf16.msra.mxu3 %v11949_v43  ;;  %3028 = vmatpush.bf16.msra.mxu1 %v11437_v31  ;;  %v11660_v43 = vld [vmem:[%s22446_s2 + $0x458] sm:$0xf] }
 0x2a6   : > { %v14459_v31 = vld [vmem:[%s22446_s2 + $0x74] sm:$0xf0] }
 0x2aa   : > { %v2738_v51 = vpop.f32.mrf.mxu2 }
 0x2ab   : > { %v2739_v1 = vadd.f32 %v2738_v51, %v2696_v25  ;;  %v2698_v40 = vpop.f32.mrf.mxu1  ;;  %v11661_v51 = vor.u32 %v14587_v57, %v11660_v43 }
 0x2ac   : > { %v2781_v26 = vpop.f32.mrf.mxu3  ;;  %v2655_v16 = vpop.f32.mrf.mxu0 }
 0x2ad   : > { %v17261_v20 = vadd.f32 %v2781_v26, %v2739_v1  ;;  %v2699_v28 = vadd.f32 %v2698_v40, %v2655_v16  ;;  %2874 = vmatmul.bf16.gmra.mxu1 %v15815_v33  ;;  %v11916_v1 = vld [vmem:[%s22446_s2 + $0x658] sm:$0xf]  ;;  %v11149_v16 = vor.u32 %v14459_v31, %v11148_v24  ;;  %3072 = vmatpush.bf16.msra.mxu2 %v11661_v51 }
 0x2ae   : > { %v14651_v26 = vld [vmem:[%s22446_s2 + $0x674] sm:$0xf0] }
 0x2af   : > { %2831 = vmatmul.bf16.gmra.mxu0 %v15813_v32  ;;  %2917 = vmatmul.bf16.gmra.mxu2 %v15817_v34  ;;  %v11917_v40 = vor.u32 %v14651_v26, %v11916_v1  ;;  %v14579_v51 = vld [vmem:[%s22446_s2 + $0x434] sm:$0xf0] }
 0x2b0   : > { %2986 = vmatpush.bf16.msra.mxu0 %v11149_v16 }
 0x2b1   : > { %2960 = vmatmul.bf16.gmra.mxu3 %v15819_v35 }
 0x2b2   : > { %v2741_v53 = vpop.f32.mrf.mxu2  ;;  %3115 = vmatpush.bf16.msra.mxu3 %v11917_v40 }
 0x2b3   : > { %v2742_v29 = vadd.f32 %v2741_v53, %v2699_v28  ;;  %v2700_v62 = vpop.f32.mrf.mxu1  ;;  %v11404_v28 = vld [vmem:[%s22446_s2 + $0x258] sm:$0xf] }
 0x2b4   : > { %v2784_v25 = vpop.f32.mrf.mxu3  ;;  %v2657_v42 = vpop.f32.mrf.mxu0  ;;  %v14523_v53 = vld [vmem:[%s22446_s2 + $0x274] sm:$0xf0] }
 0x2b5   : > { %v17267_v63 = vadd.f32 %v2784_v25, %v2742_v29  ;;  %v2701_v44 = vadd.f32 %v2700_v62, %v2657_v42  ;;  %v11405_v25 = vor.u32 %v14523_v53, %v11404_v28 }
 0x2b7   : > { %3029 = vmatpush.bf16.msra.mxu1 %v11405_v25 }
 0x2ba   : > { %v2743_v29 = vpop.f32.mrf.mxu2 }
 0x2bb   : > { %v2744_v42 = vadd.f32 %v2743_v29, %v2701_v44  ;;  %v2703_v57 = vpop.f32.mrf.mxu1  ;;  %v11628_v44 = vld [vmem:[%s22446_s2 + $0x418] sm:$0xf] }
 0x2bc   : > { %v2786_v62 = vpop.f32.mrf.mxu3  ;;  %v2660_v43 = vpop.f32.mrf.mxu0  ;;  %v11629_v1 = vor.u32 %v14579_v51, %v11628_v44  ;;  %v11372_v44 = vld [vmem:[%s22446_s2 + $0x218] sm:$0xf] }
 0x2bd   : > { %v17293_v24 = vadd.f32 %v2786_v62, %v2744_v42  ;;  %v2704_v31 = vadd.f32 %v2703_v57, %v2660_v43  ;;  %2879 = vmatmul.bf16.gmra.mxu1 %v15865_v3  ;;  %v11116_v42 = vld [vmem:[%s22446_s2 + $0x18] sm:$0xf] }
 0x2be   : > { %3073 = vmatpush.bf16.msra.mxu2 %v11629_v1  ;;  %v14451_v62 = vld [vmem:[%s22446_s2 + $0x34] sm:$0xf0] }
 0x2bf   : > { %2836 = vmatmul.bf16.gmra.mxu0 %v15863_v2  ;;  %2922 = vmatmul.bf16.gmra.mxu2 %v15867_v4  ;;  %v11884_v43 = vld [vmem:[%s22446_s2 + $0x618] sm:$0xf]  ;;  %v11117_v57 = vor.u32 %v14451_v62, %v11116_v42 }
 0x2c0   : > { %v14515_v51 = vld [vmem:[%s22446_s2 + $0x234] sm:$0xf0] }
 0x2c1   : > { %2965 = vmatmul.bf16.gmra.mxu3 %v15869_v9  ;;  %2987 = vmatpush.bf16.msra.mxu0 %v11117_v57  ;;  %v14503_v57 = vld [vmem:[%s22446_s2 + $0x1dc] sm:$0xf] }
 0x2c2   : > { %v2746_v26 = vpop.f32.mrf.mxu2 }
 0x2c3   : > { %v2747_v16 = vadd.f32 %v2746_v26, %v2704_v31  ;;  %v2705_v53 = vpop.f32.mrf.mxu1  ;;  %v14643_v31 = vld [vmem:[%s22446_s2 + $0x634] sm:$0xf0]  ;;  %v11373_v26 = vor.u32 %v14515_v51, %v11372_v44  ;;  %v11342_v44 = vld [vmem:[%s22446_s2 + $0x1f8] sm:$0xf0] }
 0x2c4   : > { %v2789_v40 = vpop.f32.mrf.mxu3  ;;  %v2662_v28 = vpop.f32.mrf.mxu0  ;;  %v11885_v1 = vor.u32 %v14643_v31, %v11884_v43  ;;  %v11854_v43 = vld [vmem:[%s22446_s2 + $0x5f8] sm:$0xf0] }
 0x2c5   : > { %v17305_v29 = vadd.f32 %v2789_v40, %v2747_v16  ;;  %v2706_v25 = vadd.f32 %v2705_v53, %v2662_v28  ;;  %3030 = vmatpush.bf16.msra.mxu1 %v11373_v26  ;;  %v14695_v51 = vld [vmem:[%s22446_s2 + $0x7dc] sm:$0xf] }
 0x2c6   : > { %3116 = vmatpush.bf16.msra.mxu3 %v11885_v1  ;;  %v12110_v1 = vld [vmem:[%s22446_s2 + $0x7f8] sm:$0xf0] }
 0x2ca   : > { %v2748_v16 = vpop.f32.mrf.mxu2 }
 0x2cb   : > { %v2749_v40 = vadd.f32 %v2748_v16, %v2706_v25  ;;  %v2708_v42 = vpop.f32.mrf.mxu1  ;;  %v14631_v25 = vld [vmem:[%s22446_s2 + $0x5dc] sm:$0xf]  ;;  %v11345_v16 = vor.u32 %v14503_v57, %v11342_v44  ;;  %v11601_v57 = vor.u32 %v14567_v10, %v11598_v0 }
 0x2cc   : > { %v2791_v28 = vpop.f32.mrf.mxu3  ;;  %v2665_v53 = vpop.f32.mrf.mxu0  ;;  %v11857_v31 = vor.u32 %v14631_v25, %v11854_v43  ;;  %v14495_v10 = vld [vmem:[%s22446_s2 + $0x19c] sm:$0xf] }
 0x2cd   : > { %v17325_v62 = vadd.f32 %v2791_v28, %v2749_v40  ;;  %v2709_v17 = vadd.f32 %v2708_v42, %v2665_v53  ;;  %2884 = vmatmul.bf16.gmra.mxu1 %v15915_v37  ;;  %v12113_v40 = vor.u32 %v14695_v51, %v12110_v1  ;;  %3152 = vmatpush.bf16.msrb.mxu0 %v11345_v16 }
 0x2ce   : > { %3238 = vmatpush.bf16.msrb.mxu2 %v11857_v31  ;;  %3195 = vmatpush.bf16.msrb.mxu1 %v11601_v57  ;;  %v14559_v57 = vld [vmem:[%s22446_s2 + $0x39c] sm:$0xf] }
 0x2cf   : > { %2841 = vmatmul.bf16.gmra.mxu0 %v15913_v36  ;;  %2927 = vmatmul.bf16.gmra.mxu2 %v15917_v38 }
 0x2d0   : > { %3281 = vmatpush.bf16.msrb.mxu3 %v12113_v40  ;;  %v14623_v40 = vld [vmem:[%s22446_s2 + $0x59c] sm:$0xf] }
 0x2d1   : > { %2970 = vmatmul.bf16.gmra.mxu3 %v15919_v39 }
 0x2d2   : > { %v2751_v26 = vpop.f32.mrf.mxu2 }
 0x2d3   : > { %v2752_v28 = vadd.f32 %v2751_v26, %v2709_v17  ;;  %v2710_v25 = vpop.f32.mrf.mxu1 }
 0x2d4   : > { %v2794_v53 = vpop.f32.mrf.mxu3  ;;  %v2667_v42 = vpop.f32.mrf.mxu0 }
 0x2d5   : > { %v17349_v43 = vadd.f32 %v2794_v53, %v2752_v28  ;;  %v2711_v61 = vadd.f32 %v2710_v25, %v2667_v42  ;;  %v11822_v28 = vld [vmem:[%s22446_s2 + $0x5b8] sm:$0xf0] }
 0x2d6   : > { %v11825_v0 = vor.u32 %v14623_v40, %v11822_v28  ;;  %v14687_v53 = vld [vmem:[%s22446_s2 + $0x79c] sm:$0xf] }
 0x2d7   : > { %v12078_v25 = vld [vmem:[%s22446_s2 + $0x7b8] sm:$0xf0] }
 0x2d8   : > { %3239 = vmatpush.bf16.msrb.mxu2 %v11825_v0 }
 0x2da   : > { %v2753_v44 = vpop.f32.mrf.mxu2 }
 0x2db   : > { %v2754_v17 = vadd.f32 %v2753_v44, %v2711_v61  ;;  %v2713_v1 = vpop.f32.mrf.mxu1  ;;  %v11310_v61 = vld [vmem:[%s22446_s2 + $0x1b8] sm:$0xf0] }
 0x2dc   : > { %v2796_v51 = vpop.f32.mrf.mxu3  ;;  %v2670_v31 = vpop.f32.mrf.mxu0  ;;  %v11313_v42 = vor.u32 %v14495_v10, %v11310_v61  ;;  %v11566_v44 = vld [vmem:[%s22446_s2 + $0x3b8] sm:$0xf0] }
 0x2dd   : > { %v17357_v26 = vadd.f32 %v2796_v51, %v2754_v17  ;;  %v2714_v16 = vadd.f32 %v2713_v1, %v2670_v31  ;;  %2889 = vmatmul.bf16.gmra.mxu1 %v15956_v12  ;;  %v12081_v51 = vor.u32 %v14687_v53, %v12078_v25  ;;  %v11569_v31 = vor.u32 %v14559_v57, %v11566_v44  ;;  %v14679_v44 = vld [vmem:[%s22446_s2 + $0x75c] sm:$0xf] }
 0x2de   : > { %3153 = vmatpush.bf16.msrb.mxu0 %v11313_v42 }
 0x2df   : > { %2846 = vmatmul.bf16.gmra.mxu0 %v15954_v11  ;;  %2932 = vmatmul.bf16.gmra.mxu2 %v15958_v13 }
 0x2e0   : > { %3282 = vmatpush.bf16.msrb.mxu3 %v12081_v51  ;;  %3196 = vmatpush.bf16.msrb.mxu1 %v11569_v31 }
 0x2e1   : > { %2975 = vmatmul.bf16.gmra.mxu3 %v22622_v15 }
 0x2e2   : > { %v2756_v17 = vpop.f32.mrf.mxu2 }
 0x2e3   : > { %v2757_v1 = vadd.f32 %v2756_v17, %v2714_v16  ;;  %v2715_v0 = vpop.f32.mrf.mxu1  ;;  %v12046_v17 = vld [vmem:[%s22446_s2 + $0x778] sm:$0xf0] }
 0x2e4   : > { %v2799_v40 = vpop.f32.mrf.mxu3  ;;  %v2672_v28 = vpop.f32.mrf.mxu0  ;;  %v12049_v31 = vor.u32 %v14679_v44, %v12046_v17  ;;  %v22634_v44 = vld [vmem:[#allocation8_spill] sm:$0xff] }
 0x2e5   : > { %v17387_v10 = vadd.f32 %v2799_v40, %v2757_v1  ;;  %v2716_v61 = vadd.f32 %v2715_v0, %v2672_v28  ;;  %v14551_v1 = vld [vmem:[%s22446_s2 + $0x35c] sm:$0xf] }
 0x2e6   : > { %v11534_v40 = vld [vmem:[%s22446_s2 + $0x378] sm:$0xf0]  ;;  %3283 = vmatpush.bf16.msrb.mxu3 %v12049_v31 }
 0x2e7   : > { %v11537_v28 = vor.u32 %v14551_v1, %v11534_v40 }
 0x2e9   : > { %3197 = vmatpush.bf16.msrb.mxu1 %v11537_v28 }
 0x2ea   : > { %v2758_v18 = vpop.f32.mrf.mxu2 }
 0x2eb   : > { %v2759_v46 = vadd.f32 %v2758_v18, %v2716_v61  ;;  %v2718_v15 = vpop.f32.mrf.mxu1 }
 0x2ec   : > { %v2801_v23 = vpop.f32.mrf.mxu3  ;;  %v2675_v52 = vpop.f32.mrf.mxu0 }
 0x2ed   : > { %v17389_v13 = vadd.f32 %v2801_v23, %v2759_v46  ;;  %v2719_v12 = vadd.f32 %v2718_v15, %v2675_v52  ;;  %3031 = vmatmul.bf16.vlgmr.msra.gmra.mxu1 %v15623_v55  ;;  %v14615_v23 = vld [vmem:[%s22446_s2 + $0x55c] sm:$0xf] }
 0x2ee   : > { %v11790_v15 = vld [vmem:[%s22446_s2 + $0x578] sm:$0xf0] }
 0x2ef   : > { %2988 = vmatmul.bf16.vlgmr.msra.gmra.mxu0 %v15616_v50  ;;  %3074 = vmatmul.bf16.vlgmr.msra.gmra.mxu2 %v15625_v56  ;;  %v14487_v52 = vld [vmem:[%s22446_s2 + $0x15c] sm:$0xf]  ;;  %v11793_v46 = vor.u32 %v14615_v23, %v11790_v15  ;;  %v15321_v15 = vld [vmem:[%s22447_s3] sm:$0xff] }
 0x2f1   : > { %3117 = vmatmul.bf16.vlgmr.msra.gmra.mxu3 %v15633_v59  ;;  %3240 = vmatpush.bf16.msrb.mxu2 %v11793_v46  ;;  %v17435_v46 = vperm.slane %v15321_v15, 5 }
 0x2f2   : > { %v2761_v16 = vpop.f32.mrf.mxu2 }
 0x2f3   : > { %v2762_v53 = vadd.f32 %v2761_v16, %v2719_v12  ;;  %v2720_v57 = vpop.f32.mrf.mxu1  ;;  %v11278_v12 = vld [vmem:[%s22446_s2 + $0x178] sm:$0xf0]  ;;  %v3425_v1 = vmul.f32 %v17435_v46, %v22634_v44 }
 0x2f4   : > { %v2804_v42 = vpop.f32.mrf.mxu3  ;;  %v2677_v25 = vpop.f32.mrf.mxu0  ;;  %v11281_v51 = vor.u32 %v14487_v52, %v11278_v12  ;;  %v17431_v52 = vperm.slane %v15321_v15, 4  ;;  %v11502_v15 = vld [vmem:[%s22446_s2 + $0x338] sm:$0xf0] }
 0x2f5   : > { %v17395_v18 = vadd.f32 %v2804_v42, %v2762_v53  ;;  %v14607_v53 = vld [vmem:[%s22446_s2 + $0x51c] sm:$0xf] }
 0x2f6   : > { %3154 = vmatpush.bf16.msrb.mxu0 %v11281_v51  ;;  %v11758_v42 = vld [vmem:[%s22446_s2 + $0x538] sm:$0xf0]  ;;  %v3424_v17 = vmul.f32 %v17431_v52, %v22634_v44 }
 0x2f7   : > { %v11761_v57 = vor.u32 %v14607_v53, %v11758_v42  ;;  %v11246_v53 = vld [vmem:[%s22446_s2 + $0x138] sm:$0xf0] }
 0x2f8   : > { %v14671_v42 = vld [vmem:[%s22446_s2 + $0x71c] sm:$0xf] }
 0x2f9   : > { %3241 = vmatpush.bf16.msrb.mxu2 %v11761_v57  ;;  %v12014_v57 = vld [vmem:[%s22446_s2 + $0x738] sm:$0xf0] }
 0x2fa   : > { %v2763_v0 = vpop.f32.mrf.mxu2 }
 0x2fb   : > { %v2860_v25 = vpop.f32.mrf.mxu1 }
 0x2fc   : > { %v2806_v61 = vpop.f32.mrf.mxu3  ;;  %v2817_v16 = vpop.f32.mrf.mxu0 }
 0x2fd   : > { %v2861_v23 = vadd.f32 %v2860_v25, %v2817_v16  ;;  %3036 = vmatmul.bf16.gmra.mxu1 %v22631_v27  ;;  %v14479_v16 = vld [vmem:[%s22446_s2 + $0x11c] sm:$0xf] }
 0x2fe   : > { %v11249_v25 = vor.u32 %v14479_v16, %v11246_v53  ;;  %v3432_v53 = vmul.f32 %v17431_v52, %v16309_v30 }
 0x2ff   : > { %2993 = vmatmul.bf16.gmra.mxu0 %v15716_v41  ;;  %3079 = vmatmul.bf16.gmra.mxu2 %v22632_v58  ;;  %v3433_v58 = vmul.f32 %v17435_v46, %v16309_v30 }
 0x300   : > { %3155 = vmatpush.bf16.msrb.mxu0 %v11249_v25  ;;  %v14663_v25 = vld [vmem:[%s22446_s2 + $0x6dc] sm:$0xf] }
 0x301   : > { %3122 = vmatmul.bf16.gmra.mxu3 %v22633_v48 }
 0x302   : > { %v2903_v12 = vpop.f32.mrf.mxu2 }
 0x303   : > { %v2904_v51 = vadd.f32 %v2903_v12, %v2861_v23  ;;  %v2862_v28 = vpop.f32.mrf.mxu1  ;;  %v14543_v23 = vld [vmem:[%s22446_s2 + $0x31c] sm:$0xf]  ;;  %v3528_v12 = vadd.f32 %v3424_v17, %v17203_v21 }
 0x304   : > { %v2946_v31 = vpop.f32.mrf.mxu3  ;;  %v2819_v40 = vpop.f32.mrf.mxu0  ;;  %v14599_v21 = vld [vmem:[%s22446_s2 + $0x4dc] sm:$0xf] }
 0x305   : > { %v2947_v0 = vadd.f32 %v2946_v31, %v2904_v51  ;;  %v2863_v61 = vadd.f32 %v2862_v28, %v2819_v40  ;;  %v12017_v31 = vor.u32 %v14671_v42, %v12014_v57  ;;  %v11505_v40 = vor.u32 %v14543_v23, %v11502_v15  ;;  %v11726_v17 = vld [vmem:[%s22446_s2 + $0x4f8] sm:$0xf0] }
 0x306   : > { %v11729_v42 = vor.u32 %v14599_v21, %v11726_v17  ;;  %v11982_v57 = vld [vmem:[%s22446_s2 + $0x6f8] sm:$0xf0]  ;;  %v3441_v21 = vmul.f32 %v17435_v46, %v22610_v19 }
 0x307   : > { %v3529_v51 = vadd.f32 %v3425_v1, %v2947_v0  ;;  %3284 = vmatpush.bf16.msrb.mxu3 %v12017_v31  ;;  %3198 = vmatpush.bf16.msrb.mxu1 %v11505_v40  ;;  %v14471_v1 = vld [vmem:[%s22446_s2 + $0xdc] sm:$0xf]  ;;  %v3536_v31 = vadd.f32 %v3432_v53, %v17223_v45 }
 0x308   : > { %3242 = vmatpush.bf16.msrb.mxu2 %v11729_v42 }
 0x309   : > { %v3630_v28 = vpack.c.bf16 %v3529_v51, %v3528_v12  ;;  %v11985_v51 = vor.u32 %v14663_v25, %v11982_v57 }
 0x30a   : > { %v2905_v16 = vpop.f32.mrf.mxu2 }
 0x30b   : > { %v2906_v44 = vadd.f32 %v2905_v16, %v2863_v61  ;;  %v2865_v0 = vpop.f32.mrf.mxu1  ;;  %v11214_v61 = vld [vmem:[%s22446_s2 + $0xf8] sm:$0xf0]  ;;  %3285 = vmatpush.bf16.msrb.mxu3 %v11985_v51  ;;  %v4377_v17 = vunpack.c.h.b16 %v3630_v28 }
 0x30c   : > { %v2948_v48 = vpop.f32.mrf.mxu3  ;;  %v2822_v27 = vpop.f32.mrf.mxu0  ;;  %v11217_v12 = vor.u32 %v14471_v1, %v11214_v61 }
 0x30d   : > { %v2949_v23 = vadd.f32 %v2948_v48, %v2906_v44  ;;  %v2866_v15 = vadd.f32 %v2865_v0, %v2822_v27  ;;  %3041 = vmatmul.bf16.gmra.mxu1 %v15762_v6  ;;  %v3440_v27 = vmul.f32 %v17431_v52, %v22610_v19  ;;  %v4376_v48 = vunpack.c.l.b16 %v3630_v28  ;;  %v11470_v28 = vld [vmem:[%s22446_s2 + $0x2f8] sm:$0xf0] }
 0x30e   : > { %3156 = vmatpush.bf16.msrb.mxu0 %v11217_v12  ;;  %v14535_v12 = vld [vmem:[%s22446_s2 + $0x2dc] sm:$0xf] }
 0x30f   : > { %2998 = vmatmul.bf16.gmra.mxu0 %v15760_v5  ;;  %v3537_v40 = vadd.f32 %v3433_v58, %v2949_v23  ;;  %3084 = vmatmul.bf16.gmra.mxu2 %v15764_v7  ;;  %v11473_v51 = vor.u32 %v14535_v12, %v11470_v28 }
 0x311   : > { %3127 = vmatmul.bf16.gmra.mxu3 %v15766_v8  ;;  %v3634_v16 = vpack.c.bf16 %v3537_v40, %v3536_v31  ;;  %3199 = vmatpush.bf16.msrb.mxu1 %v11473_v51 }
 0x312   : > { %v2908_v44 = vpop.f32.mrf.mxu2 }
 0x313   : > { %v4384_v45 = vunpack.c.l.b16 %v3634_v16  ;;  %v4385_v58 = vunpack.c.h.b16 %v3634_v16  ;;  %v2909_v53 = vadd.f32 %v2908_v44, %v2866_v15  ;;  %v2867_v42 = vpop.f32.mrf.mxu1  ;;  %v3544_v15 = vadd.f32 %v3440_v27, %v17235_v14  ;;  %v11694_v14 = vld [vmem:[%s22446_s2 + $0x4b8] sm:$0xf0] }
 0x314   : > { %v2951_v1 = vpop.f32.mrf.mxu3  ;;  %v2824_v0 = vpop.f32.mrf.mxu0  ;;  %v14463_v27 = vld [vmem:[%s22446_s2 + $0x9c] sm:$0xf] }
 0x315   : > { %v17492_v61 = vpack.c.b16 %v4384_v45, %v4376_v48  ;;  %v17494_v25 = vpack.c.b16 %v4385_v58, %v4377_v17  ;;  %v2952_v57 = vadd.f32 %v2951_v1, %v2909_v53  ;;  %v2868_v23 = vadd.f32 %v2867_v42, %v2824_v0  ;;  %v22637_v48 = vld [vmem:[#allocation12_spill] sm:$0xff]  ;;  %v14591_v1 = vld [vmem:[%s22446_s2 + $0x49c] sm:$0xf] }
 0x316   : > { %v3448_v44 = vmul.f32 %v17431_v52, %v22637_v48  ;;  %v3449_v58 = vmul.f32 %v17435_v46, %v22637_v48  ;;  %v11697_v0 = vor.u32 %v14591_v1, %v11694_v14  ;;  %v11182_v42 = vld [vmem:[%s22446_s2 + $0xb8] sm:$0xf0] }
 0x317   : > { %22635 = vst [vmem:[#allocation40_spill] sm:$0xff] %v17492_v61  ;;  %v3545_v31 = vadd.f32 %v3441_v21, %v2952_v57  ;;  %v14655_v57 = vld [vmem:[%s22446_s2 + $0x69c] sm:$0xf]  ;;  %v11185_v51 = vor.u32 %v14463_v27, %v11182_v42 }
 0x318   : > { %22636 = vst [vmem:[#allocation41_spill] sm:$0xff] %v17494_v25  ;;  %3243 = vmatpush.bf16.msrb.mxu2 %v11697_v0  ;;  %v3552_v14 = vadd.f32 %v3448_v44, %v17261_v20 }
 0x319   : > { %v3638_v40 = vpack.c.bf16 %v3545_v31, %v3544_v15  ;;  %v14527_v31 = vld [vmem:[%s22446_s2 + $0x29c] sm:$0xf]  ;;  %3157 = vmatpush.bf16.msrb.mxu0 %v11185_v51 }
 0x31a   : > { %v2910_v16 = vpop.f32.mrf.mxu2 }
 0x31b   : > { %v2911_v17 = vadd.f32 %v2910_v16, %v2868_v23  ;;  %v2870_v21 = vpop.f32.mrf.mxu1  ;;  %v11950_v23 = vld [vmem:[%s22446_s2 + $0x6b8] sm:$0xf0]  ;;  %v4392_v27 = vunpack.c.l.b16 %v3638_v40  ;;  %v4393_v20 = vunpack.c.h.b16 %v3638_v40  ;;  %v3464_v40 = vmul.f32 %v17431_v52, %v16401_v47 }
 0x31c   : > { %v2953_v45 = vpop.f32.mrf.mxu3  ;;  %v2827_v53 = vpop.f32.mrf.mxu0  ;;  %v11953_v15 = vor.u32 %v14655_v57, %v11950_v23  ;;  %v11438_v16 = vld [vmem:[%s22446_s2 + $0x2b8] sm:$0xf0] }
 0x31d   : > { %v2954_v12 = vadd.f32 %v2953_v45, %v2911_v17  ;;  %v2871_v28 = vadd.f32 %v2870_v21, %v2827_v53  ;;  %v11441_v1 = vor.u32 %v14527_v31, %v11438_v16  ;;  %3046 = vmatmul.bf16.gmra.mxu1 %v15815_v33  ;;  %v22638_v45 = vld [vmem:[#allocation13_spill] sm:$0xff] }
 0x31e   : > { %3286 = vmatpush.bf16.msrb.mxu3 %v11953_v15  ;;  %v3456_v53 = vmul.f32 %v17431_v52, %v22638_v45  ;;  %v3457_v0 = vmul.f32 %v17435_v46, %v22638_v45 }
 0x31f   : > { %3003 = vmatmul.bf16.gmra.mxu0 %v15813_v32  ;;  %v3553_v25 = vadd.f32 %v3449_v58, %v2954_v12  ;;  %3089 = vmatmul.bf16.gmra.mxu2 %v15817_v34 }
 0x320   : > { %3200 = vmatpush.bf16.msrb.mxu1 %v11441_v1  ;;  %v3560_v16 = vadd.f32 %v3456_v53, %v17267_v63  ;;  %v11662_v63 = vld [vmem:[%s22446_s2 + $0x478] sm:$0xf0] }
 0x321   : > { %3132 = vmatmul.bf16.gmra.mxu3 %v15819_v35  ;;  %v3642_v17 = vpack.c.bf16 %v3553_v25, %v3552_v14  ;;  %v14455_v53 = vld [vmem:[%s22446_s2 + $0x5c] sm:$0xf] }
 0x322   : > { %v2913_v21 = vpop.f32.mrf.mxu2 }
 0x323   : > { %v4400_v44 = vunpack.c.l.b16 %v3642_v17  ;;  %v4401_v58 = vunpack.c.h.b16 %v3642_v17  ;;  %v2914_v42 = vadd.f32 %v2913_v21, %v2871_v28  ;;  %v2872_v12 = vpop.f32.mrf.mxu1  ;;  %v3465_v28 = vmul.f32 %v17435_v46, %v16401_v47 }
 0x324   : > { %v2956_v57 = vpop.f32.mrf.mxu3  ;;  %v2829_v23 = vpop.f32.mrf.mxu0 }
 0x325   : > { %v17540_v31 = vpack.c.b16 %v4400_v44, %v4392_v27  ;;  %v17542_v25 = vpack.c.b16 %v4401_v58, %v4393_v20  ;;  %v2957_v51 = vadd.f32 %v2956_v57, %v2914_v42  ;;  %v2873_v15 = vadd.f32 %v2872_v12, %v2829_v23  ;;  %v14583_v27 = vld [vmem:[%s22446_s2 + $0x45c] sm:$0xf] }
 0x326   : > { %v11665_v20 = vor.u32 %v14583_v27, %v11662_v63  ;;  %v14647_v44 = vld [vmem:[%s22446_s2 + $0x65c] sm:$0xf] }
 0x327   : > { %22639 = vst [vmem:[#allocation12_spill] sm:$0xff] %v17540_v31  ;;  %v3561_v1 = vadd.f32 %v3457_v0, %v2957_v51  ;;  %v11918_v58 = vld [vmem:[%s22446_s2 + $0x678] sm:$0xf0] }
 0x328   : > { %22640 = vst [vmem:[#allocation42_spill] sm:$0xff] %v17542_v25  ;;  %v11921_v12 = vor.u32 %v14647_v44, %v11918_v58  ;;  %v14519_v51 = vld [vmem:[%s22446_s2 + $0x25c] sm:$0xf]  ;;  %3244 = vmatpush.bf16.msrb.mxu2 %v11665_v20 }
 0x329   : > { %v3646_v14 = vpack.c.bf16 %v3561_v1, %v3560_v16  ;;  %v3568_v1 = vadd.f32 %v3464_v40, %v17293_v24 }
 0x32a   : > { %v2915_v61 = vpop.f32.mrf.mxu2  ;;  %3287 = vmatpush.bf16.msrb.mxu3 %v11921_v12 }
 0x32b   : > { %v2916_v45 = vadd.f32 %v2915_v61, %v2873_v15  ;;  %v2875_v0 = vpop.f32.mrf.mxu1  ;;  %v11150_v61 = vld [vmem:[%s22446_s2 + $0x78] sm:$0xf0]  ;;  %v4409_v24 = vunpack.c.h.b16 %v3646_v14 }
 0x32c   : > { %v2958_v17 = vpop.f32.mrf.mxu3  ;;  %v2832_v21 = vpop.f32.mrf.mxu0  ;;  %v11153_v23 = vor.u32 %v14455_v53, %v11150_v61  ;;  %v11406_v15 = vld [vmem:[%s22446_s2 + $0x278] sm:$0xf0]  ;;  %v3473_v53 = vmul.f32 %v17435_v46, %v16432_v54 }
 0x32d   : > { %v2959_v42 = vadd.f32 %v2958_v17, %v2916_v45  ;;  %v2876_v57 = vadd.f32 %v2875_v0, %v2832_v21  ;;  %v11409_v16 = vor.u32 %v14519_v51, %v11406_v15  ;;  %3051 = vmatmul.bf16.gmra.mxu1 %v15865_v3  ;;  %v3472_v17 = vmul.f32 %v17431_v52, %v16432_v54  ;;  %v14575_v51 = vld [vmem:[%s22446_s2 + $0x41c] sm:$0xf] }
 0x32e   : > { %3158 = vmatpush.bf16.msrb.mxu0 %v11153_v23  ;;  %v4408_v21 = vunpack.c.l.b16 %v3646_v14  ;;  %v11630_v14 = vld [vmem:[%s22446_s2 + $0x438] sm:$0xf0] }
 0x32f   : > { %3008 = vmatmul.bf16.gmra.mxu0 %v15863_v2  ;;  %v3569_v27 = vadd.f32 %v3465_v28, %v2959_v42  ;;  %3094 = vmatmul.bf16.gmra.mxu2 %v15867_v4  ;;  %v11633_v15 = vor.u32 %v14575_v51, %v11630_v14 }
 0x330   : > { %3201 = vmatpush.bf16.msrb.mxu1 %v11409_v16 }
 0x331   : > { %3137 = vmatmul.bf16.gmra.mxu3 %v15869_v9  ;;  %v3650_v45 = vpack.c.bf16 %v3569_v27, %v3568_v1  ;;  %3245 = vmatpush.bf16.msrb.mxu2 %v11633_v15 }
 0x332   : > { %v2918_v63 = vpop.f32.mrf.mxu2 }
 0x333   : > { %v4416_v40 = vunpack.c.l.b16 %v3650_v45  ;;  %v4417_v28 = vunpack.c.h.b16 %v3650_v45  ;;  %v2919_v0 = vadd.f32 %v2918_v63, %v2876_v57  ;;  %v2877_v44 = vpop.f32.mrf.mxu1  ;;  %v3576_v57 = vadd.f32 %v3472_v17, %v17305_v29  ;;  %v14447_v45 = vld [vmem:[%s22446_s2 + $0x1c] sm:$0xf] }
 0x334   : > { %v2961_v20 = vpop.f32.mrf.mxu3  ;;  %v2834_v61 = vpop.f32.mrf.mxu0  ;;  %v14639_v63 = vld [vmem:[%s22446_s2 + $0x61c] sm:$0xf] }
 0x335   : > { %v17582_v58 = vpack.c.b16 %v4416_v40, %v4408_v21  ;;  %v17584_v42 = vpack.c.b16 %v4417_v28, %v4409_v24  ;;  %v2962_v23 = vadd.f32 %v2961_v20, %v2919_v0  ;;  %v2878_v12 = vadd.f32 %v2877_v44, %v2834_v61  ;;  %v11118_v21 = vld [vmem:[%s22446_s2 + $0x38] sm:$0xf0] }
 0x336   : > { %v3480_v24 = vmul.f32 %v17431_v52, %v16453_v22  ;;  %v11121_v28 = vor.u32 %v14447_v45, %v11118_v21  ;;  %v11886_v0 = vld [vmem:[%s22446_s2 + $0x638] sm:$0xf0] }
 0x337   : > { %22641 = vst [vmem:[#allocation43_spill] sm:$0xff] %v17582_v58  ;;  %v3577_v16 = vadd.f32 %v3473_v53, %v2962_v23  ;;  %v3481_v53 = vmul.f32 %v17435_v46, %v16453_v22  ;;  %v14511_v20 = vld [vmem:[%s22446_s2 + $0x21c] sm:$0xf]  ;;  %v11889_v23 = vor.u32 %v14639_v63, %v11886_v0  ;;  %v3489_v63 = vmul.f32 %v17435_v46, %v16478_v49 }
 0x338   : > { %22642 = vst [vmem:[#allocation44_spill] sm:$0xff] %v17584_v42  ;;  %v11374_v61 = vld [vmem:[%s22446_s2 + $0x238] sm:$0xf0]  ;;  %3159 = vmatpush.bf16.msrb.mxu0 %v11121_v28  ;;  %v3584_v15 = vadd.f32 %v3480_v24, %v17325_v62 }
 0x339   : > { %v3654_v1 = vpack.c.bf16 %v3577_v16, %v3576_v57  ;;  %3288 = vmatpush.bf16.msrb.mxu3 %v11889_v23  ;;  %v12944_v23 = vld [vmem:[%s22448_s4 + $0x678] sm:$0xf] }
 0x33a   : > { %v2920_v27 = vpop.f32.mrf.mxu2 }
 0x33b   : > { %v2921_v29 = vadd.f32 %v2920_v27, %v2878_v12  ;;  %v2880_v44 = vpop.f32.mrf.mxu1  ;;  %v11377_v12 = vor.u32 %v14511_v20, %v11374_v61  ;;  %v3488_v27 = vmul.f32 %v17431_v52, %v16478_v49  ;;  %v4424_v45 = vunpack.c.l.b16 %v3654_v1 }
 0x33c   : > { %v2963_v17 = vpop.f32.mrf.mxu3  ;;  %v2837_v40 = vpop.f32.mrf.mxu0 }
 0x33d   : > { %v2964_v51 = vadd.f32 %v2963_v17, %v2921_v29  ;;  %v2881_v14 = vadd.f32 %v2880_v44, %v2837_v40  ;;  %3056 = vmatmul.bf16.gmra.mxu1 %v15915_v37  ;;  %v4425_v29 = vunpack.c.h.b16 %v3654_v1  ;;  %v14911_v1 = vld [vmem:[%s22448_s4 + $0x698] sm:$0xf0] }
 0x33e   : > { %3202 = vmatpush.bf16.msrb.mxu1 %v11377_v12  ;;  %v12368_v12 = vld [vmem:[%s22448_s4 + $0x1f8] sm:$0xf] }
 0x33f   : > { %3013 = vmatmul.bf16.gmra.mxu0 %v15913_v36  ;;  %v3585_v57 = vadd.f32 %v3481_v53, %v2964_v51  ;;  %3099 = vmatmul.bf16.gmra.mxu2 %v15917_v38  ;;  %v12945_v51 = vor.u32 %v14911_v1, %v12944_v23 }
 0x341   : > { %3142 = vmatmul.bf16.gmra.mxu3 %v15919_v39  ;;  %v3658_v16 = vpack.c.bf16 %v3585_v57, %v3584_v15  ;;  %v13232_v15 = vld [vmem:[%s22448_s4 + $0x8b8] sm:$0xf]  ;;  %v14983_v57 = vld [vmem:[%s22448_s4 + $0x8d8] sm:$0xf0]  ;;  %7612 = vmatpush.bf16.msra.mxu2 %v12945_v51 }
 0x342   : > { %v2923_v21 = vpop.f32.mrf.mxu2 }
 0x343   : > { %v4432_v17 = vunpack.c.l.b16 %v3658_v16  ;;  %v4433_v62 = vunpack.c.h.b16 %v3658_v16  ;;  %v2924_v24 = vadd.f32 %v2923_v21, %v2881_v14  ;;  %v2882_v28 = vpop.f32.mrf.mxu1  ;;  %v14767_v14 = vld [vmem:[%s22448_s4 + $0x218] sm:$0xf0]  ;;  %v3592_v16 = vadd.f32 %v3488_v27, %v17349_v43  ;;  %v12656_v27 = vld [vmem:[%s22448_s4 + $0x438] sm:$0xf] }
 0x344   : > { %v2966_v53 = vpop.f32.mrf.mxu3  ;;  %v2839_v40 = vpop.f32.mrf.mxu0  ;;  %v12369_v21 = vor.u32 %v14767_v14, %v12368_v12  ;;  %v14902_v12 = vld [vmem:[%s22448_s4 + $0x650] sm:$0xf0] }
 0x345   : > { %v17624_v0 = vpack.c.b16 %v4432_v17, %v4424_v45  ;;  %v17626_v20 = vpack.c.b16 %v4433_v62, %v4425_v29  ;;  %v2967_v61 = vadd.f32 %v2966_v53, %v2924_v24  ;;  %v2883_v44 = vadd.f32 %v2882_v28, %v2839_v40 }
 0x346   : > { %v13233_v29 = vor.u32 %v14983_v57, %v13232_v15  ;;  %7532 = vmatpush.bf16.msra.mxu0 %v12369_v21  ;;  %v3496_v24 = vmul.f32 %v17431_v52, %v22621_v60  ;;  %v3497_v28 = vmul.f32 %v17435_v46, %v22621_v60  ;;  %v22645_v15 = vld [vmem:[#allocation5_spill] sm:$0xff]  ;;  %v22646_v57 = vld [vmem:[#allocation6_spill] sm:$0xff]  ;;  %v12332_v21 = vld [vmem:[%s22448_s4 + $0x1b0] sm:$0xf] }
 0x347   : > { %22643 = vst [vmem:[#allocation45_spill] sm:$0xff] %v17624_v0  ;;  %v3593_v45 = vadd.f32 %v3489_v63, %v2967_v61  ;;  %v14839_v63 = vld [vmem:[%s22448_s4 + $0x458] sm:$0xf0]  ;;  %v12908_v61 = vld [vmem:[%s22448_s4 + $0x630] sm:$0xf] }
 0x348   : > { %22644 = vst [vmem:[#allocation46_spill] sm:$0xff] %v17626_v20  ;;  %7652 = vmatpush.bf16.msra.mxu3 %v13233_v29  ;;  %v3600_v51 = vadd.f32 %v3496_v24, %v17357_v26  ;;  %v14758_v29 = vld [vmem:[%s22448_s4 + $0x1d0] sm:$0xf0]  ;;  %v13196_v26 = vld [vmem:[%s22448_s4 + $0x870] sm:$0xf] }
 0x349   : > { %v3662_v17 = vpack.c.bf16 %v3593_v45, %v3592_v16  ;;  %v12909_v16 = vor.u32 %v14902_v12, %v12908_v61  ;;  %v22647_v45 = vld [vmem:[#allocation7_spill] sm:$0xff] }
 0x34a   : > { %v2925_v62 = vpop.f32.mrf.mxu2 }
 0x34b   : > { %v2926_v53 = vadd.f32 %v2925_v62, %v2883_v44  ;;  %v2885_v1 = vpop.f32.mrf.mxu1  ;;  %v12657_v44 = vor.u32 %v14839_v63, %v12656_v27  ;;  %7613 = vmatpush.bf16.msra.mxu2 %v12909_v16  ;;  %v4441_v12 = vunpack.c.h.b16 %v3662_v17 }
 0x34c   : > { %v2968_v40 = vpop.f32.mrf.mxu3  ;;  %v2842_v23 = vpop.f32.mrf.mxu0 }
 0x34d   : > { %v2969_v20 = vadd.f32 %v2968_v40, %v2926_v53  ;;  %v2886_v43 = vadd.f32 %v2885_v1, %v2842_v23  ;;  %3061 = vmatmul.bf16.gmra.mxu1 %v22645_v15  ;;  %v12333_v53 = vor.u32 %v14758_v29, %v12332_v21  ;;  %v14974_v40 = vld [vmem:[%s22448_s4 + $0x890] sm:$0xf0]  ;;  %v4440_v1 = vunpack.c.l.b16 %v3662_v17 }
 0x34e   : > { %7572 = vmatpush.bf16.msra.mxu1 %v12657_v44  ;;  %v14830_v23 = vld [vmem:[%s22448_s4 + $0x410] sm:$0xf0]  ;;  %v13197_v61 = vor.u32 %v14974_v40, %v13196_v26 }
 0x34f   : > { %3018 = vmatmul.bf16.gmra.mxu0 %v15954_v11  ;;  %v3601_v14 = vadd.f32 %v3497_v28, %v2969_v20  ;;  %3104 = vmatmul.bf16.gmra.mxu2 %v22646_v57  ;;  %v22648_v20 = vld [vmem:[#allocation21_spill] sm:$0xff]  ;;  %v12620_v28 = vld [vmem:[%s22448_s4 + $0x3f0] sm:$0xf] }
 0x350   : > { %v3504_v62 = vmul.f32 %v17431_v52, %v22648_v20  ;;  %v3505_v63 = vmul.f32 %v17435_v46, %v22648_v20  ;;  %v12621_v44 = vor.u32 %v14830_v23, %v12620_v28  ;;  %7533 = vmatpush.bf16.msra.mxu0 %v12333_v53  ;;  %7653 = vmatpush.bf16.msra.mxu3 %v13197_v61  ;;  %v22651_v28 = vld [vmem:[#allocation24_spill] sm:$0xff] }
 0x351   : > { %3147 = vmatmul.bf16.gmra.mxu3 %v22647_v45  ;;  %v3666_v24 = vpack.c.bf16 %v3601_v14, %v3600_v51  ;;  %v3513_v53 = vmul.f32 %v17435_v46, %v22651_v28 }
 0x352   : > { %v2928_v27 = vpop.f32.mrf.mxu2  ;;  %7573 = vmatpush.bf16.msra.mxu1 %v12621_v44  ;;  %v3608_v20 = vadd.f32 %v3504_v62, %v17387_v10 }
 0x353   : > { %v4448_v51 = vunpack.c.l.b16 %v3666_v24  ;;  %v4449_v14 = vunpack.c.h.b16 %v3666_v24  ;;  %v2929_v16 = vadd.f32 %v2928_v27, %v2886_v43  ;;  %v2887_v0 = vpop.f32.mrf.mxu1  ;;  %v3512_v43 = vmul.f32 %v17431_v52, %v22651_v28 }
 0x354   : > { %v2971_v21 = vpop.f32.mrf.mxu3  ;;  %v2844_v29 = vpop.f32.mrf.mxu0 }
 0x355   : > { %v17690_v42 = vpack.c.b16 %v4448_v51, %v4440_v1  ;;  %v17692_v58 = vpack.c.b16 %v4449_v14, %v4441_v12  ;;  %v2972_v25 = vadd.f32 %v2971_v21, %v2929_v16  ;;  %v2888_v31 = vadd.f32 %v2887_v0, %v2844_v29  ;;  %v14821_v51 = vld [vmem:[%s22448_s4 + $0x3c8] sm:$0xf0]  ;;  %v22652_v14 = vld [vmem:[#allocation25_spill] sm:$0xff] }
 0x356   : > { %v3616_v0 = vadd.f32 %v3512_v43, %v17389_v13  ;;  %v14965_v13 = vld [vmem:[%s22448_s4 + $0x848] sm:$0xf0]  ;;  %v3520_v16 = vmul.f32 %v17431_v52, %v22652_v14 }
 0x357   : > { %22649 = vst [vmem:[#allocation5_spill] sm:$0xff] %v17690_v42  ;;  %v3609_v26 = vadd.f32 %v3505_v63, %v2972_v25  ;;  %v14893_v25 = vld [vmem:[%s22448_s4 + $0x608] sm:$0xf0] }
 0x358   : > { %22650 = vst [vmem:[#allocation6_spill] sm:$0xff] %v17692_v58 }
 0x359   : > { %v3670_v40 = vpack.c.bf16 %v3609_v26, %v3608_v20  ;;  %v12296_v20 = vld [vmem:[%s22448_s4 + $0x168] sm:$0xf]  ;;  %v3521_v26 = vmul.f32 %v17435_v46, %v22652_v14 }
 0x35a   : > { %v2930_v17 = vpop.f32.mrf.mxu2 }
 0x35b   : > { %v2931_v24 = vadd.f32 %v2930_v17, %v2888_v31  ;;  %v2890_v1 = vpop.f32.mrf.mxu1  ;;  %v12872_v31 = vld [vmem:[%s22448_s4 + $0x5e8] sm:$0xf]  ;;  %v4456_v21 = vunpack.c.l.b16 %v3670_v40  ;;  %v4457_v43 = vunpack.c.h.b16 %v3670_v40  ;;  %v12836_v40 = vld [vmem:[%s22448_s4 + $0x5a0] sm:$0xf] }
 0x35c   : > { %v2973_v23 = vpop.f32.mrf.mxu3  ;;  %v2847_v27 = vpop.f32.mrf.mxu0 }
 0x35d   : > { %v2974_v61 = vadd.f32 %v2973_v23, %v2931_v24  ;;  %v2891_v44 = vadd.f32 %v2890_v1, %v2847_v27  ;;  %3203 = vmatmul.bf16.vlgmr.msrb.gmra.mxu1 %v15623_v55  ;;  %v14749_v55 = vld [vmem:[%s22448_s4 + $0x188] sm:$0xf0] }
 0x35e   : > { %v12297_v63 = vor.u32 %v14749_v55, %v12296_v20 }
 0x35f   : > { %3160 = vmatmul.bf16.vlgmr.msrb.gmra.mxu0 %v15616_v50  ;;  %v3617_v10 = vadd.f32 %v3513_v53, %v2974_v61  ;;  %3246 = vmatmul.bf16.vlgmr.msrb.gmra.mxu2 %v15625_v56  ;;  %v12873_v50 = vor.u32 %v14893_v25, %v12872_v31  ;;  %v13160_v56 = vld [vmem:[%s22448_s4 + $0x828] sm:$0xf]  ;;  %v3624_v31 = vadd.f32 %v3520_v16, %v17395_v18  ;;  %v22655_v18 = vld [vmem:[#allocation2_spill] sm:$0xff]  ;;  %v22657_v16 = vld [vmem:[#allocation4_spill] sm:$0xff] }
 0x360   : > { %v13161_v12 = vor.u32 %v14965_v13, %v13160_v56  ;;  %7534 = vmatpush.bf16.msra.mxu0 %v12297_v63  ;;  %v22656_v63 = vld [vmem:[#allocation3_spill] sm:$0xff] }
 0x361   : > { %3289 = vmatmul.bf16.vlgmr.msrb.gmra.mxu3 %v15633_v59  ;;  %v3674_v62 = vpack.c.bf16 %v3617_v10, %v3616_v0  ;;  %v12584_v59 = vld [vmem:[%s22448_s4 + $0x3a8] sm:$0xf]  ;;  %7614 = vmatpush.bf16.msra.mxu2 %v12873_v50 }
 0x362   : > { %v2933_v29 = vpop.f32.mrf.mxu2  ;;  %v12585_v17 = vor.u32 %v14821_v51, %v12584_v59  ;;  %7654 = vmatpush.bf16.msra.mxu3 %v13161_v12  ;;  %v12260_v12 = vld [vmem:[%s22448_s4 + $0x120] sm:$0xf]  ;;  %v14740_v59 = vld [vmem:[%s22448_s4 + $0x140] sm:$0xf0] }
 0x363   : > { %v4464_v24 = vunpack.c.l.b16 %v3674_v62  ;;  %v4465_v23 = vunpack.c.h.b16 %v3674_v62  ;;  %v2934_v53 = vadd.f32 %v2933_v29, %v2891_v44  ;;  %v2892_v61 = vpop.f32.mrf.mxu1  ;;  %v14884_v44 = vld [vmem:[%s22448_s4 + $0x5c0] sm:$0xf0]  ;;  %v13124_v51 = vld [vmem:[%s22448_s4 + $0x7e0] sm:$0xf] }
 0x364   : > { %v2976_v27 = vpop.f32.mrf.mxu3  ;;  %v2849_v1 = vpop.f32.mrf.mxu0  ;;  %7574 = vmatpush.bf16.msra.mxu1 %v12585_v17  ;;  %v12837_v25 = vor.u32 %v14884_v44, %v12836_v40  ;;  %v12548_v29 = vld [vmem:[%s22448_s4 + $0x360] sm:$0xf]  ;;  %v12224_v40 = vld [vmem:[%s22448_s4 + $0xd8] sm:$0xf] }
 0x365   : > { %v17732_v0 = vpack.c.b16 %v4464_v24, %v4456_v21  ;;  %v17734_v52 = vpack.c.b16 %v4465_v23, %v4457_v43  ;;  %v2977_v10 = vadd.f32 %v2976_v27, %v2934_v53  ;;  %v12261_v21 = vor.u32 %v14740_v59, %v12260_v12 }
 0x366   : > { %7615 = vmatpush.bf16.msra.mxu2 %v12837_v25  ;;  %v14731_v25 = vld [vmem:[%s22448_s4 + $0xf8] sm:$0xf0] }
 0x367   : > { %22653 = vst [vmem:[#allocation7_spill] sm:$0xff] %v17732_v0  ;;  %v3625_v46 = vadd.f32 %v3521_v26, %v2977_v10  ;;  %v14812_v26 = vld [vmem:[%s22448_s4 + $0x380] sm:$0xf0]  ;;  %7535 = vmatpush.bf16.msra.mxu0 %v12261_v21  ;;  %v12512_v21 = vld [vmem:[%s22448_s4 + $0x318] sm:$0xf] }
 0x368   : > { %22654 = vst [vmem:[#allocation24_spill] sm:$0xff] %v17734_v52  ;;  %v12549_v43 = vor.u32 %v14812_v26, %v12548_v29 }
 0x369   : > { %v17743_v20 = vpack.c.bf16 %v3625_v46, %v3624_v31  ;;  %v12800_v31 = vld [vmem:[%s22448_s4 + $0x558] sm:$0xf]  ;;  %v14875_v46 = vld [vmem:[%s22448_s4 + $0x578] sm:$0xf0] }
 0x36a   : > { %v2935_v50 = vpop.f32.mrf.mxu2  ;;  %7575 = vmatpush.bf16.msra.mxu1 %v12549_v43  ;;  %v12801_v44 = vor.u32 %v14875_v46, %v12800_v31  ;;  %v14938_v31 = vld [vmem:[%s22448_s4 + $0x770] sm:$0xf0] }
 0x36b   : > { %v3032_v13 = vpop.f32.mrf.mxu1  ;;  %v13088_v50 = vld [vmem:[%s22448_s4 + $0x798] sm:$0xf] }
 0x36c   : > { %v2978_v55 = vpop.f32.mrf.mxu3  ;;  %v2989_v56 = vpop.f32.mrf.mxu0  ;;  %7616 = vmatpush.bf16.msra.mxu2 %v12801_v44  ;;  %v12476_v44 = vld [vmem:[%s22448_s4 + $0x2d0] sm:$0xf] }
 0x36d   : > { %v3033_v62 = vadd.f32 %v3032_v13, %v2989_v56  ;;  %3208 = vmatmul.bf16.gmra.mxu1 %v22655_v18  ;;  %v14947_v55 = vld [vmem:[%s22448_s4 + $0x7b8] sm:$0xf0]  ;;  %v12225_v56 = vor.u32 %v14731_v25, %v12224_v40  ;;  %v14794_v25 = vld [vmem:[%s22448_s4 + $0x2f0] sm:$0xf0] }
 0x36e   : > { %v13089_v13 = vor.u32 %v14947_v55, %v13088_v50  ;;  %v12477_v55 = vor.u32 %v14794_v25, %v12476_v44 }
 0x36f   : > { %3165 = vmatmul.bf16.gmra.mxu0 %v15716_v41  ;;  %3251 = vmatmul.bf16.gmra.mxu2 %v22656_v63  ;;  %v14956_v41 = vld [vmem:[%s22448_s4 + $0x800] sm:$0xf0] }
 0x370   : > { %v13125_v17 = vor.u32 %v14956_v41, %v13124_v51  ;;  %7536 = vmatpush.bf16.msra.mxu0 %v12225_v56  ;;  %v14803_v41 = vld [vmem:[%s22448_s4 + $0x338] sm:$0xf0] }
 0x371   : > { %3294 = vmatmul.bf16.gmra.mxu3 %v22657_v16  ;;  %v12513_v29 = vor.u32 %v14803_v41, %v12512_v21 }
 0x372   : > { %v3075_v24 = vpop.f32.mrf.mxu2  ;;  %7655 = vmatpush.bf16.msra.mxu3 %v13125_v17 }
 0x373   : > { %v3076_v23 = vadd.f32 %v3075_v24, %v3033_v62  ;;  %v3034_v1 = vpop.f32.mrf.mxu1  ;;  %7576 = vmatpush.bf16.msra.mxu1 %v12513_v29 }
 0x374   : > { %v3118_v53 = vpop.f32.mrf.mxu3  ;;  %v2991_v27 = vpop.f32.mrf.mxu0 }
 0x375   : > { %v17767_v61 = vadd.f32 %v3118_v53, %v3076_v23  ;;  %v3035_v10 = vadd.f32 %v3034_v1, %v2991_v27  ;;  %v12764_v23 = vld [vmem:[%s22448_s4 + $0x510] sm:$0xf]  ;;  %v14866_v53 = vld [vmem:[%s22448_s4 + $0x530] sm:$0xf0] }
 0x376   : > { %7656 = vmatpush.bf16.msra.mxu3 %v13089_v13  ;;  %v12765_v27 = vor.u32 %v14866_v53, %v12764_v23  ;;  %v14722_v1 = vld [vmem:[%s22448_s4 + $0xb0] sm:$0xf0]  ;;  %v12440_v53 = vld [vmem:[%s22448_s4 + $0x288] sm:$0xf] }
 0x377   : > { %7577 = vmatpush.bf16.msra.mxu1 %v12477_v55  ;;  %v14848_v55 = vld [vmem:[%s22448_s4 + $0x4a0] sm:$0xf0] }
 0x378   : > { %7617 = vmatpush.bf16.msra.mxu2 %v12765_v27 }
 0x37a   : > { %v3077_v62 = vpop.f32.mrf.mxu2 }
 0x37b   : > { %v3078_v18 = vadd.f32 %v3077_v62, %v3035_v10  ;;  %v3037_v59 = vpop.f32.mrf.mxu1  ;;  %v13052_v10 = vld [vmem:[%s22448_s4 + $0x750] sm:$0xf] }
 0x37c   : > { %v3120_v63 = vpop.f32.mrf.mxu3  ;;  %v2994_v12 = vpop.f32.mrf.mxu0  ;;  %v13053_v40 = vor.u32 %v14938_v31, %v13052_v10 }
 0x37d   : > { %v17787_v51 = vadd.f32 %v3120_v63, %v3078_v18  ;;  %v3038_v16 = vadd.f32 %v3037_v59, %v2994_v12  ;;  %3213 = vmatmul.bf16.gmra.mxu1 %v15762_v6 }
 0x37e   : > { %7657 = vmatpush.bf16.msra.mxu3 %v13053_v40 }
 0x37f   : > { %3170 = vmatmul.bf16.gmra.mxu0 %v15760_v5  ;;  %3256 = vmatmul.bf16.gmra.mxu2 %v15764_v7 }
 0x381   : > { %3299 = vmatmul.bf16.gmra.mxu3 %v15766_v8  ;;  %v12188_v8 = vld [vmem:[%s22448_s4 + $0x90] sm:$0xf] }
 0x382   : > { %v3080_v26 = vpop.f32.mrf.mxu2  ;;  %v12189_v46 = vor.u32 %v14722_v1, %v12188_v8  ;;  %v14785_v8 = vld [vmem:[%s22448_s4 + $0x2a8] sm:$0xf0] }
 0x383   : > { %v3081_v17 = vadd.f32 %v3080_v26, %v3038_v16  ;;  %v3039_v24 = vpop.f32.mrf.mxu1  ;;  %v12441_v1 = vor.u32 %v14785_v8, %v12440_v53  ;;  %v14096_v53 = vld [vmem:[%s22448_s4 + $0xf78] sm:$0xf]  ;;  %v15199_v8 = vld [vmem:[%s22448_s4 + $0xf98] sm:$0xf0] }
 0x384   : > { %v3123_v43 = vpop.f32.mrf.mxu3  ;;  %v2996_v5 = vpop.f32.mrf.mxu0  ;;  %7537 = vmatpush.bf16.msra.mxu0 %v12189_v46 }
 0x385   : > { %v17799_v6 = vadd.f32 %v3123_v43, %v3081_v17  ;;  %v3040_v7 = vadd.f32 %v3039_v24, %v2996_v5  ;;  %v12728_v43 = vld [vmem:[%s22448_s4 + $0x4c8] sm:$0xf]  ;;  %v14929_v24 = vld [vmem:[%s22448_s4 + $0x728] sm:$0xf0]  ;;  %7578 = vmatpush.bf16.msra.mxu1 %v12441_v1  ;;  %v14097_v1 = vor.u32 %v15199_v8, %v14096_v53 }
 0x386   : > { %v13016_v5 = vld [vmem:[%s22448_s4 + $0x708] sm:$0xf] }
 0x387   : > { %v13017_v23 = vor.u32 %v14929_v24, %v13016_v5 }
 0x389   : > { %7658 = vmatpush.bf16.msra.mxu3 %v13017_v23 }
 0x38a   : > { %v3082_v50 = vpop.f32.mrf.mxu2 }
 0x38b   : > { %v3083_v56 = vadd.f32 %v3082_v50, %v3040_v7  ;;  %v3042_v18 = vpop.f32.mrf.mxu1  ;;  %v12692_v50 = vld [vmem:[%s22448_s4 + $0x480] sm:$0xf] }
 0x38c   : > { %v3125_v13 = vpop.f32.mrf.mxu3  ;;  %v2999_v62 = vpop.f32.mrf.mxu0 }
 0x38d   : > { %v17825_v63 = vadd.f32 %v3125_v13, %v3083_v56  ;;  %v3043_v12 = vadd.f32 %v3042_v18, %v2999_v62  ;;  %3218 = vmatmul.bf16.gmra.mxu1 %v15815_v33  ;;  %v12152_v33 = vld [vmem:[%s22448_s4 + $0x48] sm:$0xf]  ;;  %v12693_v56 = vor.u32 %v14848_v55, %v12692_v50 }
 0x38f   : > { %3175 = vmatmul.bf16.gmra.mxu0 %v15813_v32  ;;  %3261 = vmatmul.bf16.gmra.mxu2 %v15817_v34  ;;  %v14857_v32 = vld [vmem:[%s22448_s4 + $0x4e8] sm:$0xf0] }
 0x390   : > { %v12729_v34 = vor.u32 %v14857_v32, %v12728_v43 }
 0x391   : > { %3304 = vmatmul.bf16.gmra.mxu3 %v15819_v35  ;;  %v14713_v35 = vld [vmem:[%s22448_s4 + $0x68] sm:$0xf0] }
 0x392   : > { %v3085_v59 = vpop.f32.mrf.mxu2  ;;  %v12153_v7 = vor.u32 %v14713_v35, %v12152_v33  ;;  %7618 = vmatpush.bf16.msra.mxu2 %v12729_v34 }
 0x393   : > { %v3086_v16 = vadd.f32 %v3085_v59, %v3043_v12  ;;  %v3044_v29 = vpop.f32.mrf.mxu1  ;;  %v14704_v59 = vld [vmem:[%s22448_s4 + $0x20] sm:$0xf0] }
 0x394   : > { %v3128_v21 = vpop.f32.mrf.mxu3  ;;  %v3001_v41 = vpop.f32.mrf.mxu0  ;;  %7538 = vmatpush.bf16.msra.mxu0 %v12153_v7 }
 0x395   : > { %v17831_v26 = vadd.f32 %v3128_v21, %v3086_v16  ;;  %v3045_v17 = vadd.f32 %v3044_v29, %v3001_v41  ;;  %v12980_v16 = vld [vmem:[%s22448_s4 + $0x6c0] sm:$0xf]  ;;  %v14920_v41 = vld [vmem:[%s22448_s4 + $0x6e0] sm:$0xf0] }
 0x396   : > { %7619 = vmatpush.bf16.msra.mxu2 %v12693_v56  ;;  %v12404_v29 = vld [vmem:[%s22448_s4 + $0x240] sm:$0xf]  ;;  %v12981_v43 = vor.u32 %v14920_v41, %v12980_v16  ;;  %v14060_v41 = vld [vmem:[%s22448_s4 + $0xf30] sm:$0xf] }
 0x398   : > { %7659 = vmatpush.bf16.msra.mxu3 %v12981_v43  ;;  %v13484_v43 = vld [vmem:[%s22448_s4 + $0xab0] sm:$0xf] }
 0x39a   : > { %v3087_v27 = vpop.f32.mrf.mxu2  ;;  %7772 = vmatpush.bf16.msrb.mxu2 %v14097_v1 }
 0x39b   : > { %v3088_v10 = vadd.f32 %v3087_v27, %v3045_v17  ;;  %v3047_v40 = vpop.f32.mrf.mxu1  ;;  %v14776_v17 = vld [vmem:[%s22448_s4 + $0x260] sm:$0xf0]  ;;  %v13520_v27 = vld [vmem:[%s22448_s4 + $0xaf8] sm:$0xf] }
 0x39c   : > { %v3130_v31 = vpop.f32.mrf.mxu3  ;;  %v3004_v46 = vpop.f32.mrf.mxu0  ;;  %v12405_v32 = vor.u32 %v14776_v17, %v12404_v29  ;;  %v15190_v29 = vld [vmem:[%s22448_s4 + $0xf50] sm:$0xf0] }
 0x39d   : > { %v17857_v44 = vadd.f32 %v3130_v31, %v3088_v10  ;;  %v3048_v25 = vadd.f32 %v3047_v40, %v3004_v46  ;;  %3223 = vmatmul.bf16.gmra.mxu1 %v15865_v3  ;;  %v14061_v17 = vor.u32 %v15190_v29, %v14060_v41  ;;  %v15037_v29 = vld [vmem:[%s22448_s4 + $0xa88] sm:$0xf0] }
 0x39e   : > { %7579 = vmatpush.bf16.msra.mxu1 %v12405_v32  ;;  %v15046_v32 = vld [vmem:[%s22448_s4 + $0xad0] sm:$0xf0] }
 0x39f   : > { %3180 = vmatmul.bf16.gmra.mxu0 %v15863_v2  ;;  %3266 = vmatmul.bf16.gmra.mxu2 %v15867_v4 }
 0x3a0   : > { %7773 = vmatpush.bf16.msrb.mxu2 %v14061_v17  ;;  %v14312_v17 = vld [vmem:[%s22448_s4 + $0x1128] sm:$0xf] }
 0x3a1   : > { %3309 = vmatmul.bf16.gmra.mxu3 %v15869_v9  ;;  %v12116_v9 = vld [vmem:[%s22448_s4] sm:$0xf] }
 0x3a2   : > { %v3090_v13 = vpop.f32.mrf.mxu2  ;;  %v12117_v21 = vor.u32 %v14704_v59, %v12116_v9 }
 0x3a3   : > { %v3091_v62 = vadd.f32 %v3090_v13, %v3048_v25  ;;  %v3049_v2 = vpop.f32.mrf.mxu1  ;;  %v13808_v13 = vld [vmem:[%s22448_s4 + $0xd38] sm:$0xf] }
 0x3a4   : > { %v3133_v18 = vpop.f32.mrf.mxu3  ;;  %v3006_v12 = vpop.f32.mrf.mxu0  ;;  %7539 = vmatpush.bf16.msra.mxu0 %v12117_v21 }
 0x3a5   : > { %v17869_v3 = vadd.f32 %v3133_v18, %v3091_v62  ;;  %v3050_v4 = vadd.f32 %v3049_v2, %v3006_v12  ;;  %v15127_v62 = vld [vmem:[%s22448_s4 + $0xd58] sm:$0xf0] }
 0x3a6   : > { %v13809_v18 = vor.u32 %v15127_v62, %v13808_v13 }
 0x3a8   : > { %7732 = vmatpush.bf16.msrb.mxu1 %v13809_v18 }
 0x3aa   : > { %v3092_v33 = vpop.f32.mrf.mxu2 }
 0x3ab   : > { %v3093_v34 = vadd.f32 %v3092_v33, %v3050_v4  ;;  %v3052_v24 = vpop.f32.mrf.mxu1  ;;  %v13485_v33 = vor.u32 %v15046_v32, %v13484_v43  ;;  %v15253_v43 = vld [vmem:[%s22448_s4 + $0x1148] sm:$0xf0] }
 0x3ac   : > { %v3135_v35 = vpop.f32.mrf.mxu3  ;;  %v3009_v5 = vpop.f32.mrf.mxu0 }
 0x3ad   : > { %v17889_v7 = vadd.f32 %v3135_v35, %v3093_v34  ;;  %v3053_v23 = vadd.f32 %v3052_v24, %v3009_v5  ;;  %3228 = vmatmul.bf16.gmra.mxu1 %v15915_v37  ;;  %v14384_v37 = vld [vmem:[%s22448_s4 + $0x11b8] sm:$0xf] }
 0x3af   : > { %3185 = vmatmul.bf16.gmra.mxu0 %v15913_v36  ;;  %3271 = vmatmul.bf16.gmra.mxu2 %v15917_v38  ;;  %v15055_v36 = vld [vmem:[%s22448_s4 + $0xb18] sm:$0xf0] }
 0x3b0   : > { %v15271_v38 = vld [vmem:[%s22448_s4 + $0x11d8] sm:$0xf0]  ;;  %v13521_v10 = vor.u32 %v15055_v36, %v13520_v27 }
 0x3b1   : > { %3314 = vmatmul.bf16.gmra.mxu3 %v15919_v39  ;;  %v14385_v31 = vor.u32 %v15271_v38, %v14384_v37 }
 0x3b2   : > { %v3095_v39 = vpop.f32.mrf.mxu2  ;;  %7692 = vmatpush.bf16.msrb.mxu0 %v13521_v10 }
 0x3b3   : > { %v3096_v46 = vadd.f32 %v3095_v39, %v3053_v23  ;;  %v3054_v50 = vpop.f32.mrf.mxu1  ;;  %7812 = vmatpush.bf16.msrb.mxu3 %v14385_v31 }
 0x3b4   : > { %v3138_v40 = vpop.f32.mrf.mxu3  ;;  %v3011_v25 = vpop.f32.mrf.mxu0 }
 0x3b5   : > { %v17913_v55 = vadd.f32 %v3138_v40, %v3096_v46  ;;  %v3055_v56 = vadd.f32 %v3054_v50, %v3011_v25  ;;  %v22658_v40 = vld [vmem:[#allocation10_spill] sm:$0xff]  ;;  %v22659_v25 = vld [vmem:[#allocation11_spill] sm:$0xff]  ;;  %v22660_v50 = vld [vmem:[#allocation9_spill] sm:$0xff] }
 0x3b6   : > { %7693 = vmatpush.bf16.msrb.mxu0 %v13485_v33  ;;  %v13736_v33 = vld [vmem:[%s22448_s4 + $0xca8] sm:$0xf] }
 0x3ba   : > { %v3097_v12 = vpop.f32.mrf.mxu2 }
 0x3bb   : > { %v3098_v2 = vadd.f32 %v3097_v12, %v3055_v56  ;;  %v3057_v59 = vpop.f32.mrf.mxu1  ;;  %v22661_v56 = vld [vmem:[#allocation29_spill] sm:$0xff] }
 0x3bc   : > { %v3140_v4 = vpop.f32.mrf.mxu3  ;;  %v3014_v9 = vpop.f32.mrf.mxu0 }
 0x3bd   : > { %v17921_v16 = vadd.f32 %v3140_v4, %v3098_v2  ;;  %v3058_v21 = vadd.f32 %v3057_v59, %v3014_v9  ;;  %3233 = vmatmul.bf16.gmra.mxu1 %v22645_v15  ;;  %v15262_v15 = vld [vmem:[%s22448_s4 + $0x1190] sm:$0xf0]  ;;  %v14024_v9 = vld [vmem:[%s22448_s4 + $0xee8] sm:$0xf]  ;;  %v15181_v59 = vld [vmem:[%s22448_s4 + $0xf08] sm:$0xf0] }
 0x3be   : > { %v14025_v41 = vor.u32 %v15181_v59, %v14024_v9 }
 0x3bf   : > { %3190 = vmatmul.bf16.gmra.mxu0 %v15954_v11  ;;  %3276 = vmatmul.bf16.gmra.mxu2 %v22646_v57  ;;  %v14348_v11 = vld [vmem:[%s22448_s4 + $0x1170] sm:$0xf] }
 0x3c0   : > { %v13772_v57 = vld [vmem:[%s22448_s4 + $0xcf0] sm:$0xf]  ;;  %v14349_v35 = vor.u32 %v15262_v15, %v14348_v11  ;;  %v14313_v11 = vor.u32 %v15253_v43, %v14312_v17  ;;  %v15109_v15 = vld [vmem:[%s22448_s4 + $0xcc8] sm:$0xf0]  ;;  %7774 = vmatpush.bf16.msrb.mxu2 %v14025_v41  ;;  %v13412_v17 = vld [vmem:[%s22448_s4 + $0xa20] sm:$0xf] }
 0x3c1   : > { %3319 = vmatmul.bf16.gmra.mxu3 %v22647_v45  ;;  %v15118_v45 = vld [vmem:[%s22448_s4 + $0xd10] sm:$0xf0]  ;;  %v15028_v43 = vld [vmem:[%s22448_s4 + $0xa40] sm:$0xf0] }
 0x3c2   : > { %v3100_v34 = vpop.f32.mrf.mxu2  ;;  %v13773_v5 = vor.u32 %v15118_v45, %v13772_v57  ;;  %7813 = vmatpush.bf16.msrb.mxu3 %v14349_v35  ;;  %v13737_v57 = vor.u32 %v15109_v15, %v13736_v33  ;;  %v15244_v33 = vld [vmem:[%s22448_s4 + $0x1100] sm:$0xf0]  ;;  %v13700_v15 = vld [vmem:[%s22448_s4 + $0xc60] sm:$0xf] }
 0x3c3   : > { %v3101_v24 = vadd.f32 %v3100_v34, %v3058_v21  ;;  %v3059_v8 = vpop.f32.mrf.mxu1  ;;  %v13448_v21 = vld [vmem:[%s22448_s4 + $0xa68] sm:$0xf] }
 0x3c4   : > { %v3143_v23 = vpop.f32.mrf.mxu3  ;;  %v3016_v53 = vpop.f32.mrf.mxu0  ;;  %7733 = vmatpush.bf16.msrb.mxu1 %v13773_v5  ;;  %v13449_v32 = vor.u32 %v15037_v29, %v13448_v21  ;;  %v13988_v5 = vld [vmem:[%s22448_s4 + $0xea0] sm:$0xf] }
 0x3c5   : > { %v17951_v27 = vadd.f32 %v3143_v23, %v3101_v24  ;;  %v3060_v1 = vadd.f32 %v3059_v8, %v3016_v53  ;;  %v15172_v24 = vld [vmem:[%s22448_s4 + $0xec0] sm:$0xf0] }
 0x3c6   : > { %7694 = vmatpush.bf16.msrb.mxu0 %v13449_v32  ;;  %7814 = vmatpush.bf16.msrb.mxu3 %v14313_v11  ;;  %v13989_v53 = vor.u32 %v15172_v24, %v13988_v5  ;;  %v14276_v32 = vld [vmem:[%s22448_s4 + $0x10e0] sm:$0xf]  ;;  %v13413_v11 = vor.u32 %v15028_v43, %v13412_v17 }
 0x3c8   : > { %7734 = vmatpush.bf16.msrb.mxu1 %v13737_v57  ;;  %7775 = vmatpush.bf16.msrb.mxu2 %v13989_v53  ;;  %v15100_v57 = vld [vmem:[%s22448_s4 + $0xc80] sm:$0xf0] }
 0x3c9   : > { %v13701_v5 = vor.u32 %v15100_v57, %v13700_v15  ;;  %v22668_v15 = vld [vmem:[#allocation17_spill] sm:$0xff]  ;;  %v22669_v57 = vld [vmem:[#allocation32_spill] sm:$0xff] }
 0x3ca   : > { %v3102_v36 = vpop.f32.mrf.mxu2  ;;  %7695 = vmatpush.bf16.msrb.mxu0 %v13413_v11  ;;  %v22667_v11 = vld [vmem:[#allocation16_spill] sm:$0xff] }
 0x3cb   : > { %v3103_v37 = vadd.f32 %v3102_v36, %v3060_v1  ;;  %v3062_v10 = vpop.f32.mrf.mxu1  ;;  %v22662_v1 = vld [vmem:[#allocation14_spill] sm:$0xff] }
 0x3cc   : > { %v3145_v38 = vpop.f32.mrf.mxu3  ;;  %v3019_v39 = vpop.f32.mrf.mxu0  ;;  %v15322_v36 = vld [vmem:[%s22447_s3] sm:$0xff]  ;;  %7735 = vmatpush.bf16.msrb.mxu1 %v13701_v5 }
 0x3cd   : > { %v17953_v31 = vadd.f32 %v3145_v38, %v3103_v37  ;;  %v3063_v46 = vadd.f32 %v3062_v10, %v3019_v39  ;;  %7580 = vmatmul.bf16.vlgmr.msra.gmra.mxu1 %v22659_v25  ;;  %v17995_v37 = vperm.slane %v15322_v36, 6  ;;  %v22663_v38 = vld [vmem:[#allocation15_spill] sm:$0xff]  ;;  %v22664_v39 = vld [vmem:[#allocation30_spill] sm:$0xff] }
 0x3ce   : > { %v22665_v10 = vld [vmem:[#allocation31_spill] sm:$0xff] }
 0x3cf   : > { %7540 = vmatmul.bf16.vlgmr.msra.gmra.mxu0 %v22658_v40  ;;  %7620 = vmatmul.bf16.vlgmr.msra.gmra.mxu2 %v22660_v50  ;;  %v3434_v53 = vmul.f32 %v17995_v37, %v16309_v30 }
 0x3d1   : > { %7660 = vmatmul.bf16.vlgmr.msra.gmra.mxu3 %v22661_v56 }
 0x3d2   : > { %v3105_v13 = vpop.f32.mrf.mxu2 }
 0x3d3   : > { %v3106_v62 = vadd.f32 %v3105_v13, %v3063_v46  ;;  %v3064_v2 = vpop.f32.mrf.mxu1  ;;  %v18000_v46 = vperm.slane %v15322_v36, 7 }
 0x3d4   : > { %v3148_v18 = vpop.f32.mrf.mxu3  ;;  %v3021_v12 = vpop.f32.mrf.mxu0 }
 0x3d5   : > { %v17959_v4 = vadd.f32 %v3148_v18, %v3106_v62  ;;  %v22666_v62 = vld [vmem:[#allocation8_spill] sm:$0xff] }
 0x3d6   : > { %v3426_v18 = vmul.f32 %v17995_v37, %v22666_v62  ;;  %v3427_v41 = vmul.f32 %v18000_v46, %v22666_v62  ;;  %v13952_v62 = vld [vmem:[%s22448_s4 + $0xe58] sm:$0xf] }
 0x3da   : > { %v3107_v45 = vpop.f32.mrf.mxu2 }
 0x3db   : > { %v3204_v23 = vpop.f32.mrf.mxu1  ;;  %v3530_v45 = vadd.f32 %v3426_v18, %v17767_v61  ;;  %v15163_v61 = vld [vmem:[%s22448_s4 + $0xe78] sm:$0xf0]  ;;  %v13376_v18 = vld [vmem:[%s22448_s4 + $0x9d8] sm:$0xf] }
 0x3dc   : > { %v3150_v34 = vpop.f32.mrf.mxu3  ;;  %v3161_v35 = vpop.f32.mrf.mxu0 }
 0x3dd   : > { %v3205_v8 = vadd.f32 %v3204_v23, %v3161_v35  ;;  %7585 = vmatmul.bf16.gmra.mxu1 %v22663_v38  ;;  %v14277_v35 = vor.u32 %v15244_v33, %v14276_v32 }
 0x3df   : > { %7545 = vmatmul.bf16.gmra.mxu0 %v22662_v1  ;;  %7625 = vmatmul.bf16.gmra.mxu2 %v22664_v39 }
 0x3e0   : > { %7815 = vmatpush.bf16.msrb.mxu3 %v14277_v35  ;;  %v3442_v35 = vmul.f32 %v17995_v37, %v22610_v19 }
 0x3e1   : > { %7665 = vmatmul.bf16.gmra.mxu3 %v22665_v10 }
 0x3e2   : > { %v3247_v13 = vpop.f32.mrf.mxu2 }
 0x3e3   : > { %v3248_v12 = vadd.f32 %v3247_v13, %v3205_v8  ;;  %v3206_v59 = vpop.f32.mrf.mxu1 }
 0x3e4   : > { %v3290_v2 = vpop.f32.mrf.mxu3  ;;  %v3163_v9 = vpop.f32.mrf.mxu0 }
 0x3e5   : > { %v3291_v21 = vadd.f32 %v3290_v2, %v3248_v12  ;;  %v3207_v29 = vadd.f32 %v3206_v59, %v3163_v9  ;;  %v3435_v12 = vmul.f32 %v18000_v46, %v16309_v30  ;;  %v13953_v9 = vor.u32 %v15163_v61, %v13952_v62  ;;  %v15019_v59 = vld [vmem:[%s22448_s4 + $0x9f8] sm:$0xf0] }
 0x3e6   : > { %v13377_v43 = vor.u32 %v15019_v59, %v13376_v18  ;;  %v3538_v30 = vadd.f32 %v3434_v53, %v17787_v51  ;;  %v3443_v61 = vmul.f32 %v18000_v46, %v22610_v19 }
 0x3e7   : > { %v3531_v34 = vadd.f32 %v3427_v41, %v3291_v21  ;;  %v14240_v21 = vld [vmem:[%s22448_s4 + $0x1098] sm:$0xf]  ;;  %v15235_v41 = vld [vmem:[%s22448_s4 + $0x10b8] sm:$0xf0]  ;;  %7776 = vmatpush.bf16.msrb.mxu2 %v13953_v9 }
 0x3e8   : > { %v14241_v32 = vor.u32 %v15235_v41, %v14240_v21  ;;  %7696 = vmatpush.bf16.msrb.mxu0 %v13377_v43  ;;  %v13664_v21 = vld [vmem:[%s22448_s4 + $0xc18] sm:$0xf] }
 0x3e9   : > { %v3631_v24 = vpack.c.bf16 %v3531_v34, %v3530_v45  ;;  %v22670_v45 = vld [vmem:[#allocation33_spill] sm:$0xff] }
 0x3ea   : > { %v3249_v23 = vpop.f32.mrf.mxu2  ;;  %7816 = vmatpush.bf16.msrb.mxu3 %v14241_v32  ;;  %v3450_v32 = vmul.f32 %v17995_v37, %v22637_v48 }
 0x3eb   : > { %v3250_v8 = vadd.f32 %v3249_v23, %v3207_v29  ;;  %v3209_v2 = vpop.f32.mrf.mxu1  ;;  %v4378_v5 = vunpack.c.l.b16 %v3631_v24 }
 0x3ec   : > { %v3292_v36 = vpop.f32.mrf.mxu3  ;;  %v3166_v13 = vpop.f32.mrf.mxu0 }
 0x3ed   : > { %v3293_v29 = vadd.f32 %v3292_v36, %v3250_v8  ;;  %v3210_v17 = vadd.f32 %v3209_v2, %v3166_v13  ;;  %7590 = vmatmul.bf16.gmra.mxu1 %v22668_v15  ;;  %v4379_v8 = vunpack.c.h.b16 %v3631_v24  ;;  %v15091_v24 = vld [vmem:[%s22448_s4 + $0xc38] sm:$0xf0] }
 0x3ee   : > { %v13665_v41 = vor.u32 %v15091_v24, %v13664_v21  ;;  %v22673_v21 = vld [vmem:[#allocation18_spill] sm:$0xff] }
 0x3ef   : > { %7550 = vmatmul.bf16.gmra.mxu0 %v22667_v11  ;;  %v3539_v33 = vadd.f32 %v3435_v12, %v3293_v29  ;;  %7630 = vmatmul.bf16.gmra.mxu2 %v22669_v57  ;;  %v3546_v29 = vadd.f32 %v3442_v35, %v17799_v6  ;;  %v13340_v6 = vld [vmem:[%s22448_s4 + $0x990] sm:$0xf]  ;;  %v3451_v35 = vmul.f32 %v18000_v46, %v22637_v48 }
 0x3f0   : > { %7736 = vmatpush.bf16.msrb.mxu1 %v13665_v41  ;;  %v13628_v48 = vld [vmem:[%s22448_s4 + $0xbd0] sm:$0xf]  ;;  %v3554_v41 = vadd.f32 %v3450_v32, %v17825_v63 }
 0x3f1   : > { %7670 = vmatmul.bf16.gmra.mxu3 %v22670_v45  ;;  %v3635_v34 = vpack.c.bf16 %v3539_v33, %v3538_v30 }
 0x3f2   : > { %v3252_v23 = vpop.f32.mrf.mxu2 }
 0x3f3   : > { %v4386_v36 = vunpack.c.l.b16 %v3635_v34  ;;  %v4387_v13 = vunpack.c.h.b16 %v3635_v34  ;;  %v3253_v62 = vadd.f32 %v3252_v23, %v3210_v17  ;;  %v3211_v18 = vpop.f32.mrf.mxu1  ;;  %v15154_v23 = vld [vmem:[%s22448_s4 + $0xe30] sm:$0xf0] }
 0x3f4   : > { %v3295_v51 = vpop.f32.mrf.mxu3  ;;  %v3168_v53 = vpop.f32.mrf.mxu0 }
 0x3f5   : > { %v18056_v12 = vpack.c.b16 %v4386_v36, %v4378_v5  ;;  %v18058_v2 = vpack.c.b16 %v4387_v13, %v4379_v8  ;;  %v3296_v9 = vadd.f32 %v3295_v51, %v3253_v62  ;;  %v3212_v59 = vadd.f32 %v3211_v18, %v3168_v53  ;;  %v13916_v5 = vld [vmem:[%s22448_s4 + $0xe10] sm:$0xf]  ;;  %v15010_v13 = vld [vmem:[%s22448_s4 + $0x9b0] sm:$0xf0] }
 0x3f6   : > { %v13917_v36 = vor.u32 %v15154_v23, %v13916_v5  ;;  %v14204_v62 = vld [vmem:[%s22448_s4 + $0x1050] sm:$0xf]  ;;  %v15226_v51 = vld [vmem:[%s22448_s4 + $0x1070] sm:$0xf0]  ;;  %v13341_v18 = vor.u32 %v15010_v13, %v13340_v6 }
 0x3f7   : > { %22671 = vst [vmem:[#allocation25_spill] sm:$0xff] %v18056_v12  ;;  %v3547_v17 = vadd.f32 %v3443_v61, %v3296_v9  ;;  %v14205_v9 = vor.u32 %v15226_v51, %v14204_v62 }
 0x3f8   : > { %22672 = vst [vmem:[#allocation2_spill] sm:$0xff] %v18058_v2  ;;  %7777 = vmatpush.bf16.msrb.mxu2 %v13917_v36  ;;  %7697 = vmatpush.bf16.msrb.mxu0 %v13341_v18 }
 0x3f9   : > { %v3639_v19 = vpack.c.bf16 %v3547_v17, %v3546_v29  ;;  %v22674_v17 = vld [vmem:[#allocation19_spill] sm:$0xff]  ;;  %7817 = vmatpush.bf16.msrb.mxu3 %v14205_v9 }
 0x3fa   : > { %v3254_v43 = vpop.f32.mrf.mxu2 }
 0x3fb   : > { %v3255_v30 = vadd.f32 %v3254_v43, %v3212_v59  ;;  %v3214_v8 = vpop.f32.mrf.mxu1  ;;  %v15082_v59 = vld [vmem:[%s22448_s4 + $0xbf0] sm:$0xf0]  ;;  %v22675_v43 = vld [vmem:[#allocation34_spill] sm:$0xff]  ;;  %v4394_v23 = vunpack.c.l.b16 %v3639_v19 }
 0x3fc   : > { %v3297_v33 = vpop.f32.mrf.mxu3  ;;  %v3171_v34 = vpop.f32.mrf.mxu0  ;;  %v13629_v24 = vor.u32 %v15082_v59, %v13628_v48 }
 0x3fd   : > { %v3298_v53 = vadd.f32 %v3297_v33, %v3255_v30  ;;  %v3215_v61 = vadd.f32 %v3214_v8, %v3171_v34  ;;  %7595 = vmatmul.bf16.gmra.mxu1 %v22674_v17  ;;  %v22676_v30 = vld [vmem:[#allocation35_spill] sm:$0xff]  ;;  %v22677_v34 = vld [vmem:[#allocation13_spill] sm:$0xff]  ;;  %v4395_v8 = vunpack.c.h.b16 %v3639_v19 }
 0x3fe   : > { %7737 = vmatpush.bf16.msrb.mxu1 %v13629_v24  ;;  %v3458_v5 = vmul.f32 %v17995_v37, %v22677_v34  ;;  %v3459_v62 = vmul.f32 %v18000_v46, %v22677_v34  ;;  %v13880_v34 = vld [vmem:[%s22448_s4 + $0xdc8] sm:$0xf] }
 0x3ff   : > { %7555 = vmatmul.bf16.gmra.mxu0 %v22673_v21  ;;  %v3555_v29 = vadd.f32 %v3451_v35, %v3298_v53  ;;  %7635 = vmatmul.bf16.gmra.mxu2 %v22675_v43 }
 0x400   : > { %v3562_v59 = vadd.f32 %v3458_v5, %v17831_v26  ;;  %v13304_v26 = vld [vmem:[%s22448_s4 + $0x948] sm:$0xf]  ;;  %v3467_v5 = vmul.f32 %v18000_v46, %v16401_v47 }
 0x401   : > { %7675 = vmatmul.bf16.gmra.mxu3 %v22676_v30  ;;  %v3643_v33 = vpack.c.bf16 %v3555_v29, %v3554_v41 }
 0x402   : > { %v3257_v6 = vpop.f32.mrf.mxu2 }
 0x403   : > { %v4402_v36 = vunpack.c.l.b16 %v3643_v33  ;;  %v4403_v13 = vunpack.c.h.b16 %v3643_v33  ;;  %v3258_v63 = vadd.f32 %v3257_v6, %v3215_v61  ;;  %v3216_v51 = vpop.f32.mrf.mxu1  ;;  %v3466_v61 = vmul.f32 %v17995_v37, %v16401_v47  ;;  %v13592_v47 = vld [vmem:[%s22448_s4 + $0xb88] sm:$0xf] }
 0x404   : > { %v3300_v32 = vpop.f32.mrf.mxu3  ;;  %v3173_v35 = vpop.f32.mrf.mxu0 }
 0x405   : > { %v18104_v53 = vpack.c.b16 %v4402_v36, %v4394_v23  ;;  %v18106_v18 = vpack.c.b16 %v4403_v13, %v4395_v8  ;;  %v3301_v9 = vadd.f32 %v3300_v32, %v3258_v63  ;;  %v3217_v48 = vadd.f32 %v3216_v51, %v3173_v35  ;;  %v15145_v23 = vld [vmem:[%s22448_s4 + $0xde8] sm:$0xf0]  ;;  %v14168_v63 = vld [vmem:[%s22448_s4 + $0x1008] sm:$0xf] }
 0x406   : > { %v13881_v36 = vor.u32 %v15145_v23, %v13880_v34  ;;  %v15001_v13 = vld [vmem:[%s22448_s4 + $0x968] sm:$0xf0] }
 0x407   : > { %22678 = vst [vmem:[#allocation3_spill] sm:$0xff] %v18104_v53  ;;  %v3563_v24 = vadd.f32 %v3459_v62, %v3301_v9  ;;  %v15217_v32 = vld [vmem:[%s22448_s4 + $0x1028] sm:$0xf0]  ;;  %v13305_v51 = vor.u32 %v15001_v13, %v13304_v26  ;;  %v3474_v26 = vmul.f32 %v17995_v37, %v16432_v54 }
 0x408   : > { %22679 = vst [vmem:[#allocation4_spill] sm:$0xff] %v18106_v18  ;;  %v14169_v9 = vor.u32 %v15217_v32, %v14168_v63  ;;  %7778 = vmatpush.bf16.msrb.mxu2 %v13881_v36  ;;  %v22681_v23 = vld [vmem:[#allocation23_spill] sm:$0xff] }
 0x409   : > { %v3647_v41 = vpack.c.bf16 %v3563_v24, %v3562_v59  ;;  %v22680_v59 = vld [vmem:[#allocation22_spill] sm:$0xff]  ;;  %7698 = vmatpush.bf16.msrb.mxu0 %v13305_v51 }
 0x40a   : > { %v3259_v19 = vpop.f32.mrf.mxu2  ;;  %7818 = vmatpush.bf16.msrb.mxu3 %v14169_v9 }
 0x40b   : > { %v3260_v29 = vadd.f32 %v3259_v19, %v3217_v48  ;;  %v3219_v8 = vpop.f32.mrf.mxu1  ;;  %v15073_v48 = vld [vmem:[%s22448_s4 + $0xba8] sm:$0xf0]  ;;  %v3570_v19 = vadd.f32 %v3466_v61, %v17857_v44  ;;  %v4411_v36 = vunpack.c.h.b16 %v3647_v41 }
 0x40c   : > { %v3302_v33 = vpop.f32.mrf.mxu3  ;;  %v3176_v6 = vpop.f32.mrf.mxu0  ;;  %v13593_v24 = vor.u32 %v15073_v48, %v13592_v47 }
 0x40d   : > { %v3303_v35 = vadd.f32 %v3302_v33, %v3260_v29  ;;  %v3220_v62 = vadd.f32 %v3219_v8, %v3176_v6  ;;  %7600 = vmatmul.bf16.gmra.mxu1 %v22681_v23  ;;  %v22682_v29 = vld [vmem:[#allocation20_spill] sm:$0xff]  ;;  %v4410_v8 = vunpack.c.l.b16 %v3647_v41  ;;  %v15136_v41 = vld [vmem:[%s22448_s4 + $0xda0] sm:$0xf0] }
 0x40e   : > { %v22683_v33 = vld [vmem:[#allocation36_spill] sm:$0xff]  ;;  %7738 = vmatpush.bf16.msrb.mxu1 %v13593_v24 }
 0x40f   : > { %7560 = vmatmul.bf16.gmra.mxu0 %v22680_v59  ;;  %v3571_v34 = vadd.f32 %v3467_v5, %v3303_v35  ;;  %7640 = vmatmul.bf16.gmra.mxu2 %v22682_v29  ;;  %v3475_v35 = vmul.f32 %v18000_v46, %v16432_v54  ;;  %v22689_v29 = vld [vmem:[#allocation38_spill] sm:$0xff] }
 0x411   : > { %7680 = vmatmul.bf16.gmra.mxu3 %v22683_v33  ;;  %v3651_v6 = vpack.c.bf16 %v3571_v34, %v3570_v19  ;;  %v13844_v19 = vld [vmem:[%s22448_s4 + $0xd80] sm:$0xf]  ;;  %v3578_v34 = vadd.f32 %v3474_v26, %v17869_v3  ;;  %v22688_v33 = vld [vmem:[#allocation37_spill] sm:$0xff] }
 0x412   : > { %v3262_v13 = vpop.f32.mrf.mxu2 }
 0x413   : > { %v4418_v63 = vunpack.c.l.b16 %v3651_v6  ;;  %v4419_v32 = vunpack.c.h.b16 %v3651_v6  ;;  %v3263_v44 = vadd.f32 %v3262_v13, %v3220_v62  ;;  %v3221_v47 = vpop.f32.mrf.mxu1  ;;  %v13845_v62 = vor.u32 %v15136_v41, %v13844_v19  ;;  %v13268_v13 = vld [vmem:[%s22448_s4 + $0x900] sm:$0xf] }
 0x414   : > { %v3305_v61 = vpop.f32.mrf.mxu3  ;;  %v3178_v5 = vpop.f32.mrf.mxu0 }
 0x415   : > { %v18146_v48 = vpack.c.b16 %v4418_v63, %v4410_v8  ;;  %v18148_v51 = vpack.c.b16 %v4419_v32, %v4411_v36  ;;  %v3306_v9 = vadd.f32 %v3305_v61, %v3263_v44  ;;  %v3222_v24 = vadd.f32 %v3221_v47, %v3178_v5  ;;  %7779 = vmatpush.bf16.msrb.mxu2 %v13845_v62  ;;  %v14992_v36 = vld [vmem:[%s22448_s4 + $0x920] sm:$0xf0]  ;;  %v14132_v63 = vld [vmem:[%s22448_s4 + $0xfc0] sm:$0xf] }
 0x416   : > { %v3482_v32 = vmul.f32 %v17995_v37, %v16453_v22  ;;  %v13269_v61 = vor.u32 %v14992_v36, %v13268_v13  ;;  %v15208_v5 = vld [vmem:[%s22448_s4 + $0xfe0] sm:$0xf0]  ;;  %v22687_v36 = vld [vmem:[#allocation27_spill] sm:$0xff] }
 0x417   : > { %22684 = vst [vmem:[#allocation10_spill] sm:$0xff] %v18146_v48  ;;  %v3579_v6 = vadd.f32 %v3475_v35, %v3306_v9  ;;  %v13556_v35 = vld [vmem:[%s22448_s4 + $0xb40] sm:$0xf]  ;;  %v15064_v47 = vld [vmem:[%s22448_s4 + $0xb60] sm:$0xf0]  ;;  %v14133_v19 = vor.u32 %v15208_v5, %v14132_v63 }
 0x418   : > { %22685 = vst [vmem:[#allocation11_spill] sm:$0xff] %v18148_v51  ;;  %v13557_v41 = vor.u32 %v15064_v47, %v13556_v35  ;;  %7699 = vmatpush.bf16.msrb.mxu0 %v13269_v61 }
 0x419   : > { %v3655_v54 = vpack.c.bf16 %v3579_v6, %v3578_v34  ;;  %v22686_v6 = vld [vmem:[#allocation26_spill] sm:$0xff]  ;;  %7819 = vmatpush.bf16.msrb.mxu3 %v14133_v19 }
 0x41a   : > { %v3264_v8 = vpop.f32.mrf.mxu2  ;;  %7739 = vmatpush.bf16.msrb.mxu1 %v13557_v41 }
 0x41b   : > { %v3265_v3 = vadd.f32 %v3264_v8, %v3222_v24  ;;  %v3224_v9 = vpop.f32.mrf.mxu1  ;;  %v3483_v24 = vmul.f32 %v18000_v46, %v16453_v22  ;;  %v3586_v8 = vadd.f32 %v3482_v32, %v17889_v7  ;;  %v4426_v22 = vunpack.c.l.b16 %v3655_v54 }
 0x41c   : > { %v3307_v26 = vpop.f32.mrf.mxu3  ;;  %v3181_v44 = vpop.f32.mrf.mxu0  ;;  %v3491_v32 = vmul.f32 %v18000_v46, %v16478_v49 }
 0x41d   : > { %v3308_v62 = vadd.f32 %v3307_v26, %v3265_v3  ;;  %v3225_v34 = vadd.f32 %v3224_v9, %v3181_v44  ;;  %7605 = vmatmul.bf16.gmra.mxu1 %v22687_v36  ;;  %v3490_v3 = vmul.f32 %v17995_v37, %v16478_v49  ;;  %v4427_v44 = vunpack.c.h.b16 %v3655_v54  ;;  %v12946_v54 = vld [vmem:[%s22448_s4 + $0x69c] sm:$0xf0] }
 0x41e   : > { %v3498_v36 = vmul.f32 %v17995_v37, %v22621_v60 }
 0x41f   : > { %7565 = vmatmul.bf16.gmra.mxu0 %v22686_v6  ;;  %v3587_v13 = vadd.f32 %v3483_v24, %v3308_v62  ;;  %7645 = vmatmul.bf16.gmra.mxu2 %v22688_v33 }
 0x421   : > { %7685 = vmatmul.bf16.gmra.mxu3 %v22689_v29  ;;  %v3659_v63 = vpack.c.bf16 %v3587_v13, %v3586_v8  ;;  %v14907_v8 = vld [vmem:[%s22448_s4 + $0x67c] sm:$0xf]  ;;  %v12370_v13 = vld [vmem:[%s22448_s4 + $0x21c] sm:$0xf0] }
 0x422   : > { %v3267_v26 = vpop.f32.mrf.mxu2  ;;  %v12949_v49 = vor.u32 %v14907_v8, %v12946_v54 }
 0x423   : > { %v4434_v61 = vunpack.c.l.b16 %v3659_v63  ;;  %v4435_v5 = vunpack.c.h.b16 %v3659_v63  ;;  %v3268_v35 = vadd.f32 %v3267_v26, %v3225_v34  ;;  %v3226_v9 = vpop.f32.mrf.mxu1  ;;  %v14763_v34 = vld [vmem:[%s22448_s4 + $0x1fc] sm:$0xf]  ;;  %v3594_v26 = vadd.f32 %v3490_v3, %v17913_v55 }
 0x424   : > { %v3310_v47 = vpop.f32.mrf.mxu3  ;;  %v3183_v7 = vpop.f32.mrf.mxu0  ;;  %v14979_v63 = vld [vmem:[%s22448_s4 + $0x8bc] sm:$0xf]  ;;  %7934 = vmatpush.bf16.msra.mxu2 %v12949_v49 }
 0x425   : > { %v18188_v19 = vpack.c.b16 %v4434_v61, %v4426_v22  ;;  %v18190_v62 = vpack.c.b16 %v4435_v5, %v4427_v44  ;;  %v3311_v41 = vadd.f32 %v3310_v47, %v3268_v35  ;;  %v3227_v24 = vadd.f32 %v3226_v9, %v3183_v7  ;;  %v13234_v22 = vld [vmem:[%s22448_s4 + $0x8dc] sm:$0xf0]  ;;  %v22692_v35 = vld [vmem:[#allocation28_spill] sm:$0xff]  ;;  %v22693_v9 = vld [vmem:[#allocation39_spill] sm:$0xff] }
 0x426   : > { %v12373_v61 = vor.u32 %v14763_v34, %v12370_v13  ;;  %v13237_v5 = vor.u32 %v14979_v63, %v13234_v22  ;;  %v4468_v47 = vunpack.c.l.b16 %v22692_v35  ;;  %v4469_v7 = vunpack.c.h.b16 %v22692_v35 }
 0x427   : > { %22690 = vst [vmem:[#allocation9_spill] sm:$0xff] %v18188_v19  ;;  %v3595_v44 = vadd.f32 %v3491_v32, %v3311_v41  ;;  %v4470_v8 = vunpack.c.l.b16 %v22693_v9  ;;  %v4471_v29 = vunpack.c.h.b16 %v22693_v9  ;;  %v3499_v22 = vmul.f32 %v18000_v46, %v22621_v60  ;;  %v12910_v60 = vld [vmem:[%s22448_s4 + $0x654] sm:$0xf0] }
 0x428   : > { %22691 = vst [vmem:[#allocation29_spill] sm:$0xff] %v18190_v62  ;;  %7852 = vmatpush.bf16.msra.mxu0 %v12373_v61  ;;  %7975 = vmatpush.bf16.msra.mxu3 %v13237_v5  ;;  %v18217_v41 = vpack.c.b16 %v4468_v47, %v4468_v47  ;;  %v18219_v34 = vpack.c.b16 %v4469_v7, %v4469_v7  ;;  %v12334_v9 = vld [vmem:[%s22448_s4 + $0x1d4] sm:$0xf0] }
 0x429   : > { %v3663_v54 = vpack.c.bf16 %v3595_v44, %v3594_v26  ;;  %v18221_v49 = vpack.c.b16 %v4470_v8, %v4470_v8  ;;  %v14835_v44 = vld [vmem:[%s22448_s4 + $0x43c] sm:$0xf]  ;;  %v18234_v61 = vpack.c.b16 %v4471_v29, %v4471_v29  ;;  %v3602_v35 = vadd.f32 %v3498_v36, %v17921_v16  ;;  %v14754_v29 = vld [vmem:[%s22448_s4 + $0x1b4] sm:$0xf] }
 0x42a   : > { %v3269_v33 = vpop.f32.mrf.mxu2  ;;  %22694 = vst [vmem:[#allocation14_spill] sm:$0xff] %v18217_v41  ;;  %v14970_v16 = vld [vmem:[%s22448_s4 + $0x874] sm:$0xf]  ;;  %v12337_v8 = vor.u32 %v14754_v29, %v12334_v9 }
 0x42b   : > { %v3270_v55 = vadd.f32 %v3269_v33, %v3227_v24  ;;  %22695 = vst [vmem:[#allocation15_spill] sm:$0xff] %v18219_v34  ;;  %v3229_v13 = vpop.f32.mrf.mxu1  ;;  %v12658_v33 = vld [vmem:[%s22448_s4 + $0x45c] sm:$0xf0]  ;;  %v14898_v24 = vld [vmem:[%s22448_s4 + $0x634] sm:$0xf] }
 0x42c   : > { %v3312_v3 = vpop.f32.mrf.mxu3  ;;  %v3186_v32 = vpop.f32.mrf.mxu0  ;;  %22696 = vst [vmem:[#allocation30_spill] sm:$0xff] %v18221_v49  ;;  %v12661_v5 = vor.u32 %v14835_v44, %v12658_v33  ;;  %v12913_v7 = vor.u32 %v14898_v24, %v12910_v60  ;;  %7853 = vmatpush.bf16.msra.mxu0 %v12337_v8 }
 0x42d   : > { %v3313_v63 = vadd.f32 %v3312_v3, %v3270_v55  ;;  %v3230_v26 = vadd.f32 %v3229_v13, %v3186_v32  ;;  %22697 = vst [vmem:[#allocation31_spill] sm:$0xff] %v18234_v61  ;;  %7608 = vmatmul.bf16.gmra.mxu1 %v18219_v34  ;;  %v13198_v55 = vld [vmem:[%s22448_s4 + $0x894] sm:$0xf0]  ;;  %v14826_v3 = vld [vmem:[%s22448_s4 + $0x3f4] sm:$0xf] }
 0x42e   : > { %7893 = vmatpush.bf16.msra.mxu1 %v12661_v5  ;;  %7935 = vmatpush.bf16.msra.mxu2 %v12913_v7  ;;  %v12622_v32 = vld [vmem:[%s22448_s4 + $0x414] sm:$0xf0]  ;;  %v13201_v33 = vor.u32 %v14970_v16, %v13198_v55  ;;  %v4443_v5 = vunpack.c.h.b16 %v3663_v54 }
 0x42f   : > { %7568 = vmatmul.bf16.gmra.mxu0 %v18217_v41  ;;  %v3603_v47 = vadd.f32 %v3499_v22, %v3313_v63  ;;  %7648 = vmatmul.bf16.gmra.mxu2 %v18221_v49  ;;  %v22698_v13 = vld [vmem:[#allocation21_spill] sm:$0xff]  ;;  %v4442_v22 = vunpack.c.l.b16 %v3663_v54  ;;  %v12625_v24 = vor.u32 %v14826_v3, %v12622_v32 }
 0x430   : > { %v3506_v63 = vmul.f32 %v17995_v37, %v22698_v13  ;;  %v3507_v9 = vmul.f32 %v18000_v46, %v22698_v13  ;;  %7976 = vmatpush.bf16.msra.mxu3 %v13201_v33 }
 0x431   : > { %7688 = vmatmul.bf16.gmra.mxu3 %v18234_v61  ;;  %v3667_v36 = vpack.c.bf16 %v3603_v47, %v3602_v35 }
 0x432   : > { %v3272_v44 = vpop.f32.mrf.mxu2  ;;  %7894 = vmatpush.bf16.msra.mxu1 %v12625_v24  ;;  %v3610_v54 = vadd.f32 %v3506_v63, %v17951_v27  ;;  %v12874_v27 = vld [vmem:[%s22448_s4 + $0x60c] sm:$0xf0] }
 0x433   : > { %v4450_v60 = vunpack.c.l.b16 %v3667_v36  ;;  %v4451_v35 = vunpack.c.h.b16 %v3667_v36  ;;  %v3273_v47 = vadd.f32 %v3272_v44, %v3230_v26  ;;  %v3231_v61 = vpop.f32.mrf.mxu1  ;;  %v3514_v26 = vmul.f32 %v17995_v37, %v22651_v28 }
 0x434   : > { %v3315_v7 = vpop.f32.mrf.mxu3  ;;  %v3188_v29 = vpop.f32.mrf.mxu0 }
 0x435   : > { %v18266_v49 = vpack.c.b16 %v4450_v60, %v4442_v22  ;;  %v18268_v34 = vpack.c.b16 %v4451_v35, %v4443_v5  ;;  %v3316_v41 = vadd.f32 %v3315_v7, %v3273_v47  ;;  %v3232_v16 = vadd.f32 %v3231_v61, %v3188_v29  ;;  %v14889_v61 = vld [vmem:[%s22448_s4 + $0x5ec] sm:$0xf]  ;;  %v22701_v5 = vld [vmem:[#allocation40_spill] sm:$0xff]  ;;  %v22702_v29 = vld [vmem:[#allocation41_spill] sm:$0xff] }
 0x436   : > { %v3515_v22 = vmul.f32 %v18000_v46, %v22651_v28  ;;  %v3618_v63 = vadd.f32 %v3514_v26, %v17953_v31  ;;  %v12877_v60 = vor.u32 %v14889_v61, %v12874_v27  ;;  %v12298_v28 = vld [vmem:[%s22448_s4 + $0x18c] sm:$0xf0]  ;;  %v14961_v35 = vld [vmem:[%s22448_s4 + $0x82c] sm:$0xf]  ;;  %v3522_v27 = vmul.f32 %v17995_v37, %v22652_v14 }
 0x437   : > { %22699 = vst [vmem:[#allocation8_spill] sm:$0xff] %v18266_v49  ;;  %v3611_v55 = vadd.f32 %v3507_v9, %v3316_v41  ;;  %v14745_v41 = vld [vmem:[%s22448_s4 + $0x16c] sm:$0xf]  ;;  %v13162_v47 = vld [vmem:[%s22448_s4 + $0x84c] sm:$0xf0] }
 0x438   : > { %22700 = vst [vmem:[#allocation16_spill] sm:$0xff] %v18268_v34  ;;  %v12301_v31 = vor.u32 %v14745_v41, %v12298_v28  ;;  %v13165_v9 = vor.u32 %v14961_v35, %v13162_v47  ;;  %7936 = vmatpush.bf16.msra.mxu2 %v12877_v60  ;;  %v3523_v35 = vmul.f32 %v18000_v46, %v22652_v14  ;;  %v14736_v46 = vld [vmem:[%s22448_s4 + $0x124] sm:$0xf] }
 0x439   : > { %v3671_v36 = vpack.c.bf16 %v3611_v55, %v3610_v54  ;;  %v12586_v54 = vld [vmem:[%s22448_s4 + $0x3cc] sm:$0xf0]  ;;  %v3626_v37 = vadd.f32 %v3522_v27, %v17959_v4  ;;  %v14952_v4 = vld [vmem:[%s22448_s4 + $0x7e4] sm:$0xf] }
 0x43a   : > { %v3274_v8 = vpop.f32.mrf.mxu2  ;;  %7854 = vmatpush.bf16.msra.mxu0 %v12301_v31  ;;  %7977 = vmatpush.bf16.msra.mxu3 %v13165_v9 }
 0x43b   : > { %v3275_v3 = vadd.f32 %v3274_v8, %v3232_v16  ;;  %v3234_v44 = vpop.f32.mrf.mxu1  ;;  %v14817_v16 = vld [vmem:[%s22448_s4 + $0x3ac] sm:$0xf]  ;;  %v4458_v8 = vunpack.c.l.b16 %v3671_v36 }
 0x43c   : > { %v3317_v32 = vpop.f32.mrf.mxu3  ;;  %v3191_v13 = vpop.f32.mrf.mxu0  ;;  %v12589_v26 = vor.u32 %v14817_v16, %v12586_v54 }
 0x43d   : > { %v3318_v33 = vadd.f32 %v3317_v32, %v3275_v3  ;;  %v3235_v24 = vadd.f32 %v3234_v44, %v3191_v13  ;;  %7740 = vmatmul.bf16.vlgmr.msrb.gmra.mxu1 %v22702_v29  ;;  %v4459_v32 = vunpack.c.h.b16 %v3671_v36  ;;  %v14880_v36 = vld [vmem:[%s22448_s4 + $0x5a4] sm:$0xf] }
 0x43e   : > { %7895 = vmatpush.bf16.msra.mxu1 %v12589_v26  ;;  %v12262_v26 = vld [vmem:[%s22448_s4 + $0x144] sm:$0xf0] }
 0x43f   : > { %7700 = vmatmul.bf16.vlgmr.msrb.gmra.mxu0 %v22701_v5  ;;  %v3619_v7 = vadd.f32 %v3515_v22, %v3318_v33  ;;  %7780 = vmatmul.bf16.vlgmr.msrb.gmra.mxu2 %v18056_v12 }
 0x441   : > { %7820 = vmatmul.bf16.vlgmr.msrb.gmra.mxu3 %v18058_v2  ;;  %v3675_v55 = vpack.c.bf16 %v3619_v7, %v3618_v63 }
 0x442   : > { %v3277_v3 = vpop.f32.mrf.mxu2 }
 0x443   : > { %v4466_v13 = vunpack.c.l.b16 %v3675_v55  ;;  %v4467_v44 = vunpack.c.h.b16 %v3675_v55  ;;  %v3278_v33 = vadd.f32 %v3277_v3, %v3235_v24  ;;  %v3236_v41 = vpop.f32.mrf.mxu1  ;;  %v12838_v24 = vld [vmem:[%s22448_s4 + $0x5c4] sm:$0xf0]  ;;  %v12265_v3 = vor.u32 %v14736_v46, %v12262_v26 }
 0x444   : > { %v3320_v22 = vpop.f32.mrf.mxu3  ;;  %v3193_v61 = vpop.f32.mrf.mxu0  ;;  %v12841_v47 = vor.u32 %v14880_v36, %v12838_v24 }
 0x445   : > { %v18306_v60 = vpack.c.b16 %v4466_v13, %v4458_v8  ;;  %v18308_v28 = vpack.c.b16 %v4467_v44, %v4459_v32  ;;  %v3321_v63 = vadd.f32 %v3320_v22, %v3278_v33  ;;  %v22705_v8 = vld [vmem:[#allocation12_spill] sm:$0xff]  ;;  %v13126_v32 = vld [vmem:[%s22448_s4 + $0x804] sm:$0xf0]  ;;  %v14808_v13 = vld [vmem:[%s22448_s4 + $0x364] sm:$0xf]  ;;  %7855 = vmatpush.bf16.msra.mxu0 %v12265_v3 }
 0x446   : > { %7937 = vmatpush.bf16.msra.mxu2 %v12841_v47  ;;  %v12550_v44 = vld [vmem:[%s22448_s4 + $0x384] sm:$0xf0]  ;;  %v22706_v33 = vld [vmem:[#allocation42_spill] sm:$0xff]  ;;  %v13129_v22 = vor.u32 %v14952_v4, %v13126_v32 }
 0x447   : > { %22703 = vst [vmem:[#allocation17_spill] sm:$0xff] %v18306_v60  ;;  %v3627_v7 = vadd.f32 %v3523_v35, %v3321_v63  ;;  %v12553_v61 = vor.u32 %v14808_v13, %v12550_v44 }
 0x448   : > { %22704 = vst [vmem:[#allocation32_spill] sm:$0xff] %v18308_v28  ;;  %7978 = vmatpush.bf16.msra.mxu3 %v13129_v22 }
 0x449   : > { %v18319_v31 = vpack.c.bf16 %v3627_v7, %v3626_v37  ;;  %7896 = vmatpush.bf16.msra.mxu1 %v12553_v61  ;;  %v14871_v37 = vld [vmem:[%s22448_s4 + $0x55c] sm:$0xf]  ;;  %v12802_v7 = vld [vmem:[%s22448_s4 + $0x57c] sm:$0xf0] }
 0x44a   : > { %v3279_v9 = vpop.f32.mrf.mxu2 }
 0x44b   : > { %v7581_v55 = vpop.f32.mrf.mxu1  ;;  %v14727_v9 = vld [vmem:[%s22448_s4 + $0xdc] sm:$0xf] }
 0x44c   : > { %v3322_v16 = vpop.f32.mrf.mxu3  ;;  %v7541_v54 = vpop.f32.mrf.mxu0 }
 0x44d   : > { %v7582_v14 = vadd.f32 %v7581_v55, %v7541_v54  ;;  %7745 = vmatmul.bf16.gmra.mxu1 %v22706_v33  ;;  %v12805_v16 = vor.u32 %v14871_v37, %v12802_v7  ;;  %v12226_v54 = vld [vmem:[%s22448_s4 + $0xfc] sm:$0xf0]  ;;  %v14943_v55 = vld [vmem:[%s22448_s4 + $0x79c] sm:$0xf] }
 0x44e   : > { %v12229_v46 = vor.u32 %v14727_v9, %v12226_v54 }
 0x44f   : > { %7705 = vmatmul.bf16.gmra.mxu0 %v22705_v8  ;;  %7785 = vmatmul.bf16.gmra.mxu2 %v18104_v53 }
 0x450   : > { %7938 = vmatpush.bf16.msra.mxu2 %v12805_v16  ;;  %7856 = vmatpush.bf16.msra.mxu0 %v12229_v46  ;;  %v12766_v46 = vld [vmem:[%s22448_s4 + $0x534] sm:$0xf0] }
 0x451   : > { %7825 = vmatmul.bf16.gmra.mxu3 %v18106_v18 }
 0x452   : > { %v7621_v27 = vpop.f32.mrf.mxu2 }
 0x453   : > { %v7622_v41 = vadd.f32 %v7621_v27, %v7582_v14  ;;  %v7583_v36 = vpop.f32.mrf.mxu1  ;;  %v13090_v14 = vld [vmem:[%s22448_s4 + $0x7bc] sm:$0xf0]  ;;  %v14799_v27 = vld [vmem:[%s22448_s4 + $0x31c] sm:$0xf] }
 0x454   : > { %v7661_v63 = vpop.f32.mrf.mxu3  ;;  %v7543_v35 = vpop.f32.mrf.mxu0  ;;  %v13093_v26 = vor.u32 %v14943_v55, %v13090_v14  ;;  %v14862_v14 = vld [vmem:[%s22448_s4 + $0x514] sm:$0xf] }
 0x455   : > { %v18343_v24 = vadd.f32 %v7661_v63, %v7622_v41  ;;  %v7584_v47 = vadd.f32 %v7583_v36, %v7543_v35  ;;  %v12514_v41 = vld [vmem:[%s22448_s4 + $0x33c] sm:$0xf0]  ;;  %v22707_v63 = vld [vmem:[#allocation43_spill] sm:$0xff]  ;;  %v22708_v36 = vld [vmem:[#allocation44_spill] sm:$0xff] }
 0x456   : > { %7979 = vmatpush.bf16.msra.mxu3 %v13093_v26  ;;  %v12517_v35 = vor.u32 %v14799_v27, %v12514_v41  ;;  %v14718_v26 = vld [vmem:[%s22448_s4 + $0x94] sm:$0xf]  ;;  %v12478_v41 = vld [vmem:[%s22448_s4 + $0x2f4] sm:$0xf0] }
 0x457   : > { %v14790_v27 = vld [vmem:[%s22448_s4 + $0x2d4] sm:$0xf] }
 0x458   : > { %7897 = vmatpush.bf16.msra.mxu1 %v12517_v35  ;;  %v12481_v35 = vor.u32 %v14790_v27, %v12478_v41  ;;  %v14853_v41 = vld [vmem:[%s22448_s4 + $0x4cc] sm:$0xf] }
 0x45a   : > { %v7623_v4 = vpop.f32.mrf.mxu2 }
 0x45b   : > { %v7624_v3 = vadd.f32 %v7623_v4, %v7584_v47  ;;  %v7586_v44 = vpop.f32.mrf.mxu1  ;;  %v12769_v4 = vor.u32 %v14862_v14, %v12766_v46 }
 0x45c   : > { %v7663_v32 = vpop.f32.mrf.mxu3  ;;  %v7546_v13 = vpop.f32.mrf.mxu0  ;;  %7898 = vmatpush.bf16.msra.mxu1 %v12481_v35  ;;  %v12730_v35 = vld [vmem:[%s22448_s4 + $0x4ec] sm:$0xf0] }
 0x45d   : > { %v18363_v22 = vadd.f32 %v7663_v32, %v7624_v3  ;;  %v7587_v61 = vadd.f32 %v7586_v44, %v7546_v13  ;;  %7750 = vmatmul.bf16.gmra.mxu1 %v22708_v36  ;;  %v12190_v3 = vld [vmem:[%s22448_s4 + $0xb4] sm:$0xf0]  ;;  %v14934_v32 = vld [vmem:[%s22448_s4 + $0x754] sm:$0xf]  ;;  %7939 = vmatpush.bf16.msra.mxu2 %v12769_v4 }
 0x45e   : > { %v13054_v13 = vld [vmem:[%s22448_s4 + $0x774] sm:$0xf0]  ;;  %v12193_v44 = vor.u32 %v14718_v26, %v12190_v3  ;;  %v22710_v3 = vld [vmem:[#allocation46_spill] sm:$0xff] }
 0x45f   : > { %7710 = vmatmul.bf16.gmra.mxu0 %v22707_v63  ;;  %7790 = vmatmul.bf16.gmra.mxu2 %v18146_v48  ;;  %v22709_v26 = vld [vmem:[#allocation45_spill] sm:$0xff] }
 0x460   : > { %7857 = vmatpush.bf16.msra.mxu0 %v12193_v44 }
 0x461   : > { %7830 = vmatmul.bf16.gmra.mxu3 %v18148_v51 }
 0x462   : > { %v7626_v47 = vpop.f32.mrf.mxu2 }
 0x463   : > { %v7627_v37 = vadd.f32 %v7626_v47, %v7587_v61  ;;  %v7588_v16 = vpop.f32.mrf.mxu1  ;;  %v13057_v61 = vor.u32 %v14934_v32, %v13054_v13 }
 0x464   : > { %v7666_v7 = vpop.f32.mrf.mxu3  ;;  %v7548_v9 = vpop.f32.mrf.mxu0 }
 0x465   : > { %v18375_v54 = vadd.f32 %v7666_v7, %v7627_v37  ;;  %v7589_v55 = vadd.f32 %v7588_v16, %v7548_v9  ;;  %7980 = vmatpush.bf16.msra.mxu3 %v13057_v61 }
 0x46a   : > { %v7628_v47 = vpop.f32.mrf.mxu2 }
 0x46b   : > { %v7629_v37 = vadd.f32 %v7628_v47, %v7589_v55  ;;  %v7591_v16 = vpop.f32.mrf.mxu1  ;;  %v14709_v47 = vld [vmem:[%s22448_s4 + $0x4c] sm:$0xf] }
 0x46c   : > { %v7668_v7 = vpop.f32.mrf.mxu3  ;;  %v7551_v9 = vpop.f32.mrf.mxu0 }
 0x46d   : > { %v18401_v14 = vadd.f32 %v7668_v7, %v7629_v37  ;;  %v7592_v46 = vadd.f32 %v7591_v16, %v7551_v9  ;;  %7755 = vmatmul.bf16.gmra.mxu1 %v22710_v3  ;;  %v12733_v37 = vor.u32 %v14853_v41, %v12730_v35  ;;  %v12154_v7 = vld [vmem:[%s22448_s4 + $0x6c] sm:$0xf0]  ;;  %v14925_v9 = vld [vmem:[%s22448_s4 + $0x70c] sm:$0xf] }
 0x46e   : > { %v13018_v16 = vld [vmem:[%s22448_s4 + $0x72c] sm:$0xf0] }
 0x46f   : > { %7715 = vmatmul.bf16.gmra.mxu0 %v22709_v26  ;;  %7795 = vmatmul.bf16.gmra.mxu2 %v18188_v19 }
 0x470   : > { %7940 = vmatpush.bf16.msra.mxu2 %v12733_v37  ;;  %v14844_v37 = vld [vmem:[%s22448_s4 + $0x484] sm:$0xf] }
 0x471   : > { %7835 = vmatmul.bf16.gmra.mxu3 %v18190_v62 }
 0x472   : > { %v7631_v4 = vpop.f32.mrf.mxu2 }
 0x473   : > { %v7632_v32 = vadd.f32 %v7631_v4, %v7592_v46  ;;  %v7593_v61 = vpop.f32.mrf.mxu1  ;;  %v12157_v46 = vor.u32 %v14709_v47, %v12154_v7  ;;  %v13021_v4 = vor.u32 %v14925_v9, %v13018_v16 }
 0x474   : > { %v7671_v13 = vpop.f32.mrf.mxu3  ;;  %v7553_v44 = vpop.f32.mrf.mxu0 }
 0x475   : > { %v18407_v55 = vadd.f32 %v7671_v13, %v7632_v32  ;;  %v7594_v27 = vadd.f32 %v7593_v61, %v7553_v44  ;;  %v14781_v32 = vld [vmem:[%s22448_s4 + $0x28c] sm:$0xf]  ;;  %v12442_v13 = vld [vmem:[%s22448_s4 + $0x2ac] sm:$0xf0]  ;;  %7858 = vmatpush.bf16.msra.mxu0 %v12157_v46  ;;  %7981 = vmatpush.bf16.msra.mxu3 %v13021_v4  ;;  %v14700_v4 = vld [vmem:[%s22448_s4 + $0x4] sm:$0xf] }
 0x476   : > { %v12445_v44 = vor.u32 %v14781_v32, %v12442_v13  ;;  %v12118_v32 = vld [vmem:[%s22448_s4 + $0x24] sm:$0xf0]  ;;  %v14916_v13 = vld [vmem:[%s22448_s4 + $0x6c4] sm:$0xf] }
 0x478   : > { %7899 = vmatpush.bf16.msra.mxu1 %v12445_v44 }
 0x47a   : > { %v7633_v61 = vpop.f32.mrf.mxu2 }
 0x47b   : > { %v7634_v41 = vadd.f32 %v7633_v61, %v7594_v27  ;;  %v7596_v19 = vpop.f32.mrf.mxu1  ;;  %v12694_v27 = vld [vmem:[%s22448_s4 + $0x4a4] sm:$0xf0]  ;;  %v12121_v61 = vor.u32 %v14700_v4, %v12118_v32 }
 0x47c   : > { %v7673_v35 = vpop.f32.mrf.mxu3  ;;  %v7556_v62 = vpop.f32.mrf.mxu0  ;;  %v12697_v9 = vor.u32 %v14844_v37, %v12694_v27 }
 0x47d   : > { %v18433_v47 = vadd.f32 %v7673_v35, %v7634_v41  ;;  %v7597_v7 = vadd.f32 %v7596_v19, %v7556_v62  ;;  %7760 = vmatmul.bf16.gmra.mxu1 %v17692_v58  ;;  %v12982_v41 = vld [vmem:[%s22448_s4 + $0x6e4] sm:$0xf0]  ;;  %v14772_v35 = vld [vmem:[%s22448_s4 + $0x244] sm:$0xf]  ;;  %7859 = vmatpush.bf16.msra.mxu0 %v12121_v61 }
 0x47e   : > { %7941 = vmatpush.bf16.msra.mxu2 %v12697_v9  ;;  %v12985_v9 = vor.u32 %v14916_v13, %v12982_v41  ;;  %v14386_v13 = vld [vmem:[%s22448_s4 + $0x11dc] sm:$0xf0] }
 0x47f   : > { %7720 = vmatmul.bf16.gmra.mxu0 %v17690_v42  ;;  %7800 = vmatmul.bf16.gmra.mxu2 %v18266_v49 }
 0x480   : > { %7982 = vmatpush.bf16.msra.mxu3 %v12985_v9  ;;  %v15123_v9 = vld [vmem:[%s22448_s4 + $0xd3c] sm:$0xf] }
 0x481   : > { %7840 = vmatmul.bf16.gmra.mxu3 %v18268_v34 }
 0x482   : > { %v7636_v16 = vpop.f32.mrf.mxu2 }
 0x483   : > { %v7637_v46 = vadd.f32 %v7636_v16, %v7597_v7  ;;  %v7598_v44 = vpop.f32.mrf.mxu1  ;;  %v12406_v7 = vld [vmem:[%s22448_s4 + $0x264] sm:$0xf0] }
 0x484   : > { %v7676_v19 = vpop.f32.mrf.mxu3  ;;  %v7558_v62 = vpop.f32.mrf.mxu0  ;;  %v12409_v16 = vor.u32 %v14772_v35, %v12406_v7 }
 0x485   : > { %v18463_v37 = vadd.f32 %v7676_v19, %v7637_v46  ;;  %v7599_v27 = vadd.f32 %v7598_v44, %v7558_v62  ;;  %v15195_v46 = vld [vmem:[%s22448_s4 + $0xf7c] sm:$0xf]  ;;  %v14098_v19 = vld [vmem:[%s22448_s4 + $0xf9c] sm:$0xf0] }
 0x486   : > { %7900 = vmatpush.bf16.msra.mxu1 %v12409_v16  ;;  %v15267_v62 = vld [vmem:[%s22448_s4 + $0x11bc] sm:$0xf]  ;;  %v13810_v16 = vld [vmem:[%s22448_s4 + $0xd5c] sm:$0xf0] }
 0x487   : > { %v14389_v41 = vor.u32 %v15267_v62, %v14386_v13 }
 0x489   : > { %8139 = vmatpush.bf16.msrb.mxu3 %v14389_v41 }
 0x48a   : > { %v7638_v4 = vpop.f32.mrf.mxu2 }
 0x48b   : > { %v7639_v32 = vadd.f32 %v7638_v4, %v7599_v27  ;;  %v7601_v58 = vpop.f32.mrf.mxu1 }
 0x48c   : > { %v7678_v34 = vpop.f32.mrf.mxu3  ;;  %v7561_v49 = vpop.f32.mrf.mxu0 }
 0x48d   : > { %v18465_v42 = vadd.f32 %v7678_v34, %v7639_v32  ;;  %v7602_v3 = vadd.f32 %v7601_v58, %v7561_v49  ;;  %7765 = vmatmul.bf16.gmra.mxu1 %v17734_v52  ;;  %v15051_v58 = vld [vmem:[%s22448_s4 + $0xafc] sm:$0xf]  ;;  %v14101_v34 = vor.u32 %v15195_v46, %v14098_v19  ;;  %v13522_v49 = vld [vmem:[%s22448_s4 + $0xb1c] sm:$0xf0]  ;;  %v13813_v32 = vor.u32 %v15123_v9, %v13810_v16  ;;  %v15042_v9 = vld [vmem:[%s22448_s4 + $0xab4] sm:$0xf] }
 0x48e   : > { %v13525_v61 = vor.u32 %v15051_v58, %v13522_v49  ;;  %v4473_v58 = vunpack.c.h.b16 %v17743_v20  ;;  %v4475_v49 = vunpack.c.h.b16 %v18319_v31  ;;  %v13486_v16 = vld [vmem:[%s22448_s4 + $0xad4] sm:$0xf0] }
 0x48f   : > { %7725 = vmatmul.bf16.gmra.mxu0 %v17732_v0  ;;  %7805 = vmatmul.bf16.gmra.mxu2 %v18306_v60 }
 0x490   : > { %8098 = vmatpush.bf16.msrb.mxu2 %v14101_v34  ;;  %8016 = vmatpush.bf16.msrb.mxu0 %v13525_v61  ;;  %v4474_v34 = vunpack.c.l.b16 %v18319_v31  ;;  %v18503_v41 = vpack.c.b16 %v4473_v58, %v4473_v58  ;;  %v13774_v58 = vld [vmem:[%s22448_s4 + $0xd14] sm:$0xf0] }
 0x491   : > { %7845 = vmatmul.bf16.gmra.mxu3 %v18308_v28  ;;  %8057 = vmatpush.bf16.msrb.mxu1 %v13813_v32  ;;  %v13489_v32 = vor.u32 %v15042_v9, %v13486_v16  ;;  %v15177_v16 = vld [vmem:[%s22448_s4 + $0xeec] sm:$0xf] }
 0x492   : > { %v7641_v44 = vpop.f32.mrf.mxu2  ;;  %22712 = vst [vmem:[#allocation18_spill] sm:$0xff] %v18503_v41 }
 0x493   : > { %v7642_v35 = vadd.f32 %v7641_v44, %v7602_v3  ;;  %v7603_v4 = vpop.f32.mrf.mxu1  ;;  %v4472_v3 = vunpack.c.l.b16 %v17743_v20  ;;  %v15186_v20 = vld [vmem:[%s22448_s4 + $0xf34] sm:$0xf] }
 0x494   : > { %v7681_v7 = vpop.f32.mrf.mxu3  ;;  %v7563_v27 = vpop.f32.mrf.mxu0  ;;  %8017 = vmatpush.bf16.msrb.mxu0 %v13489_v32  ;;  %v15033_v32 = vld [vmem:[%s22448_s4 + $0xa6c] sm:$0xf] }
 0x495   : > { %v18495_v46 = vadd.f32 %v7681_v7, %v7642_v35  ;;  %v7604_v19 = vadd.f32 %v7603_v4, %v7563_v27  ;;  %v18501_v60 = vpack.c.b16 %v4472_v3, %v4472_v3  ;;  %v18505_v35 = vpack.c.b16 %v4474_v34, %v4474_v34  ;;  %v15258_v4 = vld [vmem:[%s22448_s4 + $0x1174] sm:$0xf] }
 0x496   : > { %v18509_v27 = vpack.c.b16 %v4475_v49, %v4475_v49  ;;  %v15114_v3 = vld [vmem:[%s22448_s4 + $0xcf4] sm:$0xf] }
 0x497   : > { %22711 = vst [vmem:[#allocation33_spill] sm:$0xff] %v18501_v60 }
 0x498   : > { %22713 = vst [vmem:[#allocation19_spill] sm:$0xff] %v18505_v35 }
 0x499   : > { %22714 = vst [vmem:[#allocation34_spill] sm:$0xff] %v18509_v27 }
 0x49a   : > { %v7643_v62 = vpop.f32.mrf.mxu2 }
 0x49b   : > { %v7644_v13 = vadd.f32 %v7643_v62, %v7604_v19  ;;  %v7606_v61 = vpop.f32.mrf.mxu1  ;;  %v14350_v19 = vld [vmem:[%s22448_s4 + $0x1194] sm:$0xf0]  ;;  %v13777_v62 = vor.u32 %v15114_v3, %v13774_v58  ;;  %v13450_v3 = vld [vmem:[%s22448_s4 + $0xa8c] sm:$0xf0]  ;;  %v15249_v58 = vld [vmem:[%s22448_s4 + $0x112c] sm:$0xf] }
 0x49c   : > { %v7683_v44 = vpop.f32.mrf.mxu3  ;;  %v7566_v28 = vpop.f32.mrf.mxu0  ;;  %v14353_v49 = vor.u32 %v15258_v4, %v14350_v19  ;;  %v14026_v4 = vld [vmem:[%s22448_s4 + $0xf0c] sm:$0xf0] }
 0x49d   : > { %v18507_v7 = vadd.f32 %v7683_v44, %v7644_v13  ;;  %v14062_v28 = vld [vmem:[%s22448_s4 + $0xf54] sm:$0xf0]  ;;  %7768 = vmatmul.bf16.gmra.mxu1 %v18503_v41  ;;  %v14029_v19 = vor.u32 %v15177_v16, %v14026_v4  ;;  %v15168_v16 = vld [vmem:[%s22448_s4 + $0xea4] sm:$0xf]  ;;  %v13990_v4 = vld [vmem:[%s22448_s4 + $0xec4] sm:$0xf0] }
 0x49e   : > { %v14065_v31 = vor.u32 %v15186_v20, %v14062_v28  ;;  %8140 = vmatpush.bf16.msrb.mxu3 %v14353_v49  ;;  %8058 = vmatpush.bf16.msrb.mxu1 %v13777_v62  ;;  %v13453_v49 = vor.u32 %v15033_v32, %v13450_v3  ;;  %v13993_v32 = vor.u32 %v15168_v16, %v13990_v4 }
 0x49f   : > { %7728 = vmatmul.bf16.gmra.mxu0 %v18501_v60  ;;  %7808 = vmatmul.bf16.gmra.mxu2 %v18505_v35 }
 0x4a0   : > { %8099 = vmatpush.bf16.msrb.mxu2 %v14065_v31  ;;  %8018 = vmatpush.bf16.msrb.mxu0 %v13453_v49 }
 0x4a1   : > { %7848 = vmatmul.bf16.gmra.mxu3 %v18509_v27 }
 0x4a2   : > { %v7646_v34 = vpop.f32.mrf.mxu2 }
 0x4a3   : > { %v7607_v61 = vpop.f32.mrf.mxu1  ;;  %v14314_v34 = vld [vmem:[%s22448_s4 + $0x114c] sm:$0xf0] }
 0x4a4   : > { %v7686_v13 = vpop.f32.mrf.mxu3  ;;  %v7567_v44 = vpop.f32.mrf.mxu0  ;;  %v14317_v62 = vor.u32 %v15249_v58, %v14314_v34  ;;  %8100 = vmatpush.bf16.msrb.mxu2 %v14029_v19 }
 0x4a5   : > { %v15105_v13 = vld [vmem:[%s22448_s4 + $0xcac] sm:$0xf]  ;;  %v13738_v44 = vld [vmem:[%s22448_s4 + $0xccc] sm:$0xf0] }
 0x4a6   : > { %8141 = vmatpush.bf16.msrb.mxu3 %v14317_v62  ;;  %v15024_v62 = vld [vmem:[%s22448_s4 + $0xa24] sm:$0xf] }
 0x4a8   : > { %8101 = vmatpush.bf16.msrb.mxu2 %v13993_v32 }
 0x4aa   : > { %v7647_v20 = vpop.f32.mrf.mxu2 }
 0x4ab   : > { %v7609_v9 = vpop.f32.mrf.mxu1  ;;  %v13741_v20 = vor.u32 %v15105_v13, %v13738_v44  ;;  %v13414_v44 = vld [vmem:[%s22448_s4 + $0xa44] sm:$0xf0] }
 0x4ac   : > { %v7687_v28 = vpop.f32.mrf.mxu3  ;;  %v7569_v31 = vpop.f32.mrf.mxu0 }
 0x4ad   : > { %7901 = vmatmul.bf16.vlgmr.msra.gmra.mxu1 %v22659_v25 }
 0x4ae   : > { %8059 = vmatpush.bf16.msrb.mxu1 %v13741_v20  ;;  %v14278_v20 = vld [vmem:[%s22448_s4 + $0x1104] sm:$0xf0] }
 0x4af   : > { %7860 = vmatmul.bf16.vlgmr.msra.gmra.mxu0 %v22658_v40  ;;  %7942 = vmatmul.bf16.vlgmr.msra.gmra.mxu2 %v22660_v50 }
 0x4b1   : > { %7983 = vmatmul.bf16.vlgmr.msra.gmra.mxu3 %v22661_v56 }
 0x4b2   : > { %v7649_v61 = vpop.f32.mrf.mxu2 }
 0x4b3   : > { %v7610_v9 = vpop.f32.mrf.mxu1  ;;  %v13417_v61 = vor.u32 %v15024_v62, %v13414_v44  ;;  %v15159_v44 = vld [vmem:[%s22448_s4 + $0xe5c] sm:$0xf] }
 0x4b4   : > { %v7689_v28 = vpop.f32.mrf.mxu3  ;;  %v7570_v31 = vpop.f32.mrf.mxu0 }
 0x4b5   : > { %v15096_v28 = vld [vmem:[%s22448_s4 + $0xc64] sm:$0xf]  ;;  %v13702_v31 = vld [vmem:[%s22448_s4 + $0xc84] sm:$0xf0]  ;;  %8019 = vmatpush.bf16.msrb.mxu0 %v13417_v61 }
 0x4b6   : > { %v13705_v16 = vor.u32 %v15096_v28, %v13702_v31  ;;  %v14242_v28 = vld [vmem:[%s22448_s4 + $0x10bc] sm:$0xf0] }
 0x4b8   : > { %8060 = vmatpush.bf16.msrb.mxu1 %v13705_v16 }
 0x4ba   : > { %v7650_v3 = vpop.f32.mrf.mxu2 }
 0x4bb   : > { %v7741_v13 = vpop.f32.mrf.mxu1 }
 0x4bc   : > { %v7690_v58 = vpop.f32.mrf.mxu3  ;;  %v7701_v19 = vpop.f32.mrf.mxu0 }
 0x4bd   : > { %v7702_v34 = vadd.f32 %v7701_v19, %v18343_v24  ;;  %7906 = vmatmul.bf16.gmra.mxu1 %v22663_v38  ;;  %v15240_v24 = vld [vmem:[%s22448_s4 + $0x10e4] sm:$0xf] }
 0x4be   : > { %v14281_v9 = vor.u32 %v15240_v24, %v14278_v20  ;;  %v13954_v24 = vld [vmem:[%s22448_s4 + $0xe7c] sm:$0xf0]  ;;  %v15231_v20 = vld [vmem:[%s22448_s4 + $0x109c] sm:$0xf] }
 0x4bf   : > { %v7742_v49 = vadd.f32 %v7741_v13, %v7702_v34  ;;  %7865 = vmatmul.bf16.gmra.mxu0 %v22662_v1  ;;  %7947 = vmatmul.bf16.gmra.mxu2 %v22664_v39  ;;  %v13957_v61 = vor.u32 %v15159_v44, %v13954_v24  ;;  %v13666_v24 = vld [vmem:[%s22448_s4 + $0xc3c] sm:$0xf0] }
 0x4c0   : > { %8142 = vmatpush.bf16.msrb.mxu3 %v14281_v9  ;;  %v14245_v9 = vor.u32 %v15231_v20, %v14242_v28 }
 0x4c1   : > { %7988 = vmatmul.bf16.gmra.mxu3 %v22665_v10  ;;  %8102 = vmatpush.bf16.msrb.mxu2 %v13957_v61 }
 0x4c2   : > { %v7781_v4 = vpop.f32.mrf.mxu2 }
 0x4c3   : > { %v7782_v32 = vadd.f32 %v7781_v4, %v7742_v49  ;;  %v7743_v34 = vpop.f32.mrf.mxu1  ;;  %v15015_v49 = vld [vmem:[%s22448_s4 + $0x9dc] sm:$0xf] }
 0x4c4   : > { %v7821_v3 = vpop.f32.mrf.mxu3  ;;  %v7703_v58 = vpop.f32.mrf.mxu0  ;;  %8143 = vmatpush.bf16.msrb.mxu3 %v14245_v9 }
 0x4c5   : > { %v7704_v19 = vadd.f32 %v7703_v58, %v18363_v22  ;;  %v18597_v13 = vadd.f32 %v7821_v3, %v7782_v32  ;;  %v13378_v22 = vld [vmem:[%s22448_s4 + $0x9fc] sm:$0xf0] }
 0x4c6   : > { %v13381_v31 = vor.u32 %v15015_v49, %v13378_v22 }
 0x4c7   : > { %v7744_v62 = vadd.f32 %v7743_v34, %v7704_v19 }
 0x4c8   : > { %8020 = vmatpush.bf16.msrb.mxu0 %v13381_v31 }
 0x4ca   : > { %v7783_v16 = vpop.f32.mrf.mxu2 }
 0x4cb   : > { %v7784_v4 = vadd.f32 %v7783_v16, %v7744_v62  ;;  %v7746_v19 = vpop.f32.mrf.mxu1  ;;  %v15087_v62 = vld [vmem:[%s22448_s4 + $0xc1c] sm:$0xf] }
 0x4cc   : > { %v7823_v32 = vpop.f32.mrf.mxu3  ;;  %v7706_v3 = vpop.f32.mrf.mxu0 }
 0x4cd   : > { %v7707_v58 = vadd.f32 %v7706_v3, %v18375_v54  ;;  %v18618_v34 = vadd.f32 %v7823_v32, %v7784_v4  ;;  %7911 = vmatmul.bf16.gmra.mxu1 %v22668_v15  ;;  %v13669_v54 = vor.u32 %v15087_v62, %v13666_v24  ;;  %v15150_v4 = vld [vmem:[%s22448_s4 + $0xe14] sm:$0xf]  ;;  %v13918_v32 = vld [vmem:[%s22448_s4 + $0xe34] sm:$0xf0] }
 0x4ce   : > { %v15006_v3 = vld [vmem:[%s22448_s4 + $0x994] sm:$0xf] }
 0x4cf   : > { %v7747_v44 = vadd.f32 %v7746_v19, %v7707_v58  ;;  %7870 = vmatmul.bf16.gmra.mxu0 %v22667_v11  ;;  %7952 = vmatmul.bf16.gmra.mxu2 %v22669_v57  ;;  %v13921_v58 = vor.u32 %v15150_v4, %v13918_v32  ;;  %v15222_v19 = vld [vmem:[%s22448_s4 + $0x1054] sm:$0xf] }
 0x4d0   : > { %8061 = vmatpush.bf16.msrb.mxu1 %v13669_v54  ;;  %v15078_v54 = vld [vmem:[%s22448_s4 + $0xbd4] sm:$0xf] }
 0x4d1   : > { %7993 = vmatmul.bf16.gmra.mxu3 %v22670_v45  ;;  %8103 = vmatpush.bf16.msrb.mxu2 %v13921_v58 }
 0x4d2   : > { %v7786_v49 = vpop.f32.mrf.mxu2 }
 0x4d3   : > { %v7787_v61 = vadd.f32 %v7786_v49, %v7747_v44  ;;  %v7748_v31 = vpop.f32.mrf.mxu1  ;;  %v14206_v44 = vld [vmem:[%s22448_s4 + $0x1074] sm:$0xf0] }
 0x4d4   : > { %v7826_v22 = vpop.f32.mrf.mxu3  ;;  %v7708_v20 = vpop.f32.mrf.mxu0  ;;  %v14209_v24 = vor.u32 %v15222_v19, %v14206_v44  ;;  %v13630_v49 = vld [vmem:[%s22448_s4 + $0xbf4] sm:$0xf0] }
 0x4d5   : > { %v7709_v28 = vadd.f32 %v7708_v20, %v18401_v14  ;;  %v18631_v9 = vadd.f32 %v7826_v22, %v7787_v61  ;;  %v13342_v14 = vld [vmem:[%s22448_s4 + $0x9b4] sm:$0xf0]  ;;  %v13633_v22 = vor.u32 %v15078_v54, %v13630_v49  ;;  %v15141_v49 = vld [vmem:[%s22448_s4 + $0xdcc] sm:$0xf] }
 0x4d6   : > { %v13345_v62 = vor.u32 %v15006_v3, %v13342_v14  ;;  %8144 = vmatpush.bf16.msrb.mxu3 %v14209_v24 }
 0x4d7   : > { %v7749_v16 = vadd.f32 %v7748_v31, %v7709_v28  ;;  %8062 = vmatpush.bf16.msrb.mxu1 %v13633_v22  ;;  %v14997_v22 = vld [vmem:[%s22448_s4 + $0x94c] sm:$0xf] }
 0x4d8   : > { %8021 = vmatpush.bf16.msrb.mxu0 %v13345_v62 }
 0x4da   : > { %v7788_v61 = vpop.f32.mrf.mxu2 }
 0x4db   : > { %v7789_v20 = vadd.f32 %v7788_v61, %v7749_v16  ;;  %v7751_v32 = vpop.f32.mrf.mxu1  ;;  %v13882_v61 = vld [vmem:[%s22448_s4 + $0xdec] sm:$0xf0] }
 0x4dc   : > { %v7828_v28 = vpop.f32.mrf.mxu3  ;;  %v7711_v31 = vpop.f32.mrf.mxu0 }
 0x4dd   : > { %v7712_v4 = vadd.f32 %v7711_v31, %v18407_v55  ;;  %v18658_v3 = vadd.f32 %v7828_v28, %v7789_v20  ;;  %7916 = vmatmul.bf16.gmra.mxu1 %v22674_v17  ;;  %v13885_v20 = vor.u32 %v15141_v49, %v13882_v61  ;;  %v15213_v28 = vld [vmem:[%s22448_s4 + $0x100c] sm:$0xf]  ;;  %v14170_v31 = vld [vmem:[%s22448_s4 + $0x102c] sm:$0xf0] }
 0x4df   : > { %v7752_v14 = vadd.f32 %v7751_v32, %v7712_v4  ;;  %7875 = vmatmul.bf16.gmra.mxu0 %v22673_v21  ;;  %7957 = vmatmul.bf16.gmra.mxu2 %v22675_v43  ;;  %v14173_v32 = vor.u32 %v15213_v28, %v14170_v31  ;;  %v22717_v28 = vld [vmem:[#allocation20_spill] sm:$0xff] }
 0x4e0   : > { %8104 = vmatpush.bf16.msrb.mxu2 %v13885_v20  ;;  %v22718_v20 = vld [vmem:[#allocation36_spill] sm:$0xff] }
 0x4e1   : > { %7998 = vmatmul.bf16.gmra.mxu3 %v22676_v30 }
 0x4e2   : > { %v7791_v16 = vpop.f32.mrf.mxu2  ;;  %8145 = vmatpush.bf16.msrb.mxu3 %v14173_v32 }
 0x4e3   : > { %v7792_v58 = vadd.f32 %v7791_v16, %v7752_v14  ;;  %v7753_v55 = vpop.f32.mrf.mxu1  ;;  %v15069_v14 = vld [vmem:[%s22448_s4 + $0xb8c] sm:$0xf]  ;;  %v13594_v16 = vld [vmem:[%s22448_s4 + $0xbac] sm:$0xf0] }
 0x4e4   : > { %v7831_v19 = vpop.f32.mrf.mxu3  ;;  %v7713_v44 = vpop.f32.mrf.mxu0 }
 0x4e5   : > { %v7714_v62 = vadd.f32 %v7713_v44, %v18433_v47  ;;  %v18665_v24 = vadd.f32 %v7831_v19, %v7792_v58  ;;  %v13306_v47 = vld [vmem:[%s22448_s4 + $0x96c] sm:$0xf0]  ;;  %v13597_v19 = vor.u32 %v15069_v14, %v13594_v16 }
 0x4e6   : > { %v13309_v4 = vor.u32 %v14997_v22, %v13306_v47 }
 0x4e7   : > { %22715 = vst [vmem:[#allocation35_spill] sm:$0xff] %v18665_v24  ;;  %v7754_v54 = vadd.f32 %v7753_v55, %v7714_v62  ;;  %8063 = vmatpush.bf16.msrb.mxu1 %v13597_v19  ;;  %v13270_v19 = vld [vmem:[%s22448_s4 + $0x924] sm:$0xf0] }
 0x4e8   : > { %8022 = vmatpush.bf16.msrb.mxu0 %v13309_v4 }
 0x4ea   : > { %v7793_v58 = vpop.f32.mrf.mxu2 }
 0x4eb   : > { %v7794_v44 = vadd.f32 %v7793_v58, %v7754_v54  ;;  %v7756_v61 = vpop.f32.mrf.mxu1  ;;  %v15132_v54 = vld [vmem:[%s22448_s4 + $0xd84] sm:$0xf] }
 0x4ec   : > { %v7833_v62 = vpop.f32.mrf.mxu3  ;;  %v7716_v55 = vpop.f32.mrf.mxu0  ;;  %v14988_v58 = vld [vmem:[%s22448_s4 + $0x904] sm:$0xf] }
 0x4ed   : > { %v7717_v49 = vadd.f32 %v7716_v55, %v18463_v37  ;;  %v18692_v22 = vadd.f32 %v7833_v62, %v7794_v44  ;;  %7921 = vmatmul.bf16.gmra.mxu1 %v22681_v23  ;;  %v13846_v37 = vld [vmem:[%s22448_s4 + $0xda4] sm:$0xf0]  ;;  %v15204_v44 = vld [vmem:[%s22448_s4 + $0xfc4] sm:$0xf] }
 0x4ee   : > { %v13849_v31 = vor.u32 %v15132_v54, %v13846_v37  ;;  %v13558_v54 = vld [vmem:[%s22448_s4 + $0xb64] sm:$0xf0] }
 0x4ef   : > { %22716 = vst [vmem:[#allocation13_spill] sm:$0xff] %v18692_v22  ;;  %v7757_v47 = vadd.f32 %v7756_v61, %v7717_v49  ;;  %7880 = vmatmul.bf16.gmra.mxu0 %v22680_v59  ;;  %7962 = vmatmul.bf16.gmra.mxu2 %v22717_v28  ;;  %v13273_v49 = vor.u32 %v14988_v58, %v13270_v19  ;;  %v14134_v61 = vld [vmem:[%s22448_s4 + $0xfe4] sm:$0xf0] }
 0x4f0   : > { %8105 = vmatpush.bf16.msrb.mxu2 %v13849_v31  ;;  %v14137_v31 = vor.u32 %v15204_v44, %v14134_v61  ;;  %v22722_v44 = vld [vmem:[#allocation38_spill] sm:$0xff] }
 0x4f1   : > { %8003 = vmatmul.bf16.gmra.mxu3 %v22718_v20  ;;  %8023 = vmatpush.bf16.msrb.mxu0 %v13273_v49  ;;  %v14984_v49 = vld [vmem:[%s22448_s4 + $0x8e0] sm:$0xf0] }
 0x4f2   : > { %v7796_v4 = vpop.f32.mrf.mxu2  ;;  %8146 = vmatpush.bf16.msrb.mxu3 %v14137_v31 }
 0x4f3   : > { %v7797_v32 = vadd.f32 %v7796_v4, %v7757_v47  ;;  %v7758_v55 = vpop.f32.mrf.mxu1  ;;  %v15060_v47 = vld [vmem:[%s22448_s4 + $0xb44] sm:$0xf] }
 0x4f4   : > { %v7836_v14 = vpop.f32.mrf.mxu3  ;;  %v7718_v16 = vpop.f32.mrf.mxu0  ;;  %v13561_v4 = vor.u32 %v15060_v47, %v13558_v54 }
 0x4f5   : > { %v7719_v62 = vadd.f32 %v7718_v16, %v18465_v42  ;;  %v18723_v37 = vadd.f32 %v7836_v14, %v7797_v32  ;;  %v22720_v32 = vld [vmem:[#allocation27_spill] sm:$0xff]  ;;  %v22721_v14 = vld [vmem:[#allocation37_spill] sm:$0xff] }
 0x4f6   : > { %8064 = vmatpush.bf16.msrb.mxu1 %v13561_v4 }
 0x4f7   : > { %v7759_v22 = vadd.f32 %v7758_v55, %v7719_v62  ;;  %v14768_v62 = vld [vmem:[%s22448_s4 + $0x220] sm:$0xf0]  ;;  %v13240_v55 = vld [vmem:[%s22448_s4 + $0x8c0] sm:$0xf] }
 0x4f8   : > { %v13241_v54 = vor.u32 %v14984_v49, %v13240_v55 }
 0x4fa   : > { %v7798_v42 = vpop.f32.mrf.mxu2  ;;  %8303 = vmatpush.bf16.msra.mxu3 %v13241_v54  ;;  %v14903_v54 = vld [vmem:[%s22448_s4 + $0x658] sm:$0xf0] }
 0x4fb   : > { %v7799_v16 = vadd.f32 %v7798_v42, %v7759_v22  ;;  %v7761_v24 = vpop.f32.mrf.mxu1  ;;  %v12952_v22 = vld [vmem:[%s22448_s4 + $0x680] sm:$0xf] }
 0x4fc   : > { %v7838_v58 = vpop.f32.mrf.mxu3  ;;  %v7721_v19 = vpop.f32.mrf.mxu0 }
 0x4fd   : > { %v7722_v20 = vadd.f32 %v7721_v19, %v18495_v46  ;;  %v18726_v28 = vadd.f32 %v7838_v58, %v7799_v16  ;;  %7926 = vmatmul.bf16.gmra.mxu1 %v22720_v32  ;;  %v14912_v46 = vld [vmem:[%s22448_s4 + $0x6a0] sm:$0xf0]  ;;  %v12664_v16 = vld [vmem:[%s22448_s4 + $0x440] sm:$0xf] }
 0x4fe   : > { %v14840_v58 = vld [vmem:[%s22448_s4 + $0x460] sm:$0xf0] }
 0x4ff   : > { %22719 = vst [vmem:[#allocation22_spill] sm:$0xff] %v18726_v28  ;;  %v7762_v23 = vadd.f32 %v7761_v24, %v7722_v20  ;;  %7885 = vmatmul.bf16.gmra.mxu0 %v22686_v6  ;;  %7967 = vmatmul.bf16.gmra.mxu2 %v22721_v14  ;;  %v12376_v24 = vld [vmem:[%s22448_s4 + $0x200] sm:$0xf]  ;;  %v12953_v20 = vor.u32 %v14912_v46, %v12952_v22 }
 0x500   : > { %v12377_v47 = vor.u32 %v14768_v62, %v12376_v24  ;;  %v12665_v46 = vor.u32 %v14840_v58, %v12664_v16  ;;  %v22726_v58 = vld [vmem:[#allocation15_spill] sm:$0xff] }
 0x501   : > { %8008 = vmatmul.bf16.gmra.mxu3 %v22722_v44  ;;  %8262 = vmatpush.bf16.msra.mxu2 %v12953_v20 }
 0x502   : > { %v7801_v61 = vpop.f32.mrf.mxu2  ;;  %8180 = vmatpush.bf16.msra.mxu0 %v12377_v47  ;;  %8221 = vmatpush.bf16.msra.mxu1 %v12665_v46  ;;  %v12916_v47 = vld [vmem:[%s22448_s4 + $0x638] sm:$0xf]  ;;  %v14759_v46 = vld [vmem:[%s22448_s4 + $0x1d8] sm:$0xf0] }
 0x503   : > { %v7802_v31 = vadd.f32 %v7801_v61, %v7762_v23  ;;  %v7763_v22 = vpop.f32.mrf.mxu1  ;;  %v18760_v23 = vld [vmem:[%s22449_s5] ss:$0 sm:$0xff] }
 0x504   : > { %v7841_v4 = vpop.f32.mrf.mxu3  ;;  %v7723_v42 = vpop.f32.mrf.mxu0 }
 0x505   : > { %v7724_v19 = vadd.f32 %v7723_v42, %v18507_v7  ;;  %v7842_v24 = vadd.f32 %v7841_v4, %v7802_v31  ;;  %v22724_v31 = vld [vmem:[#allocation14_spill] sm:$0xff]  ;;  %v12917_v4 = vor.u32 %v14903_v54, %v12916_v47 }
 0x507   : > { %v7764_v20 = vadd.f32 %v7763_v22, %v7724_v19  ;;  %v18763_v62 = vadd.f32 %v18760_v23, %v7842_v24  ;;  %v22727_v19 = vld [vmem:[#allocation30_spill] sm:$0xff]  ;;  %8263 = vmatpush.bf16.msra.mxu2 %v12917_v4  ;;  %v12340_v22 = vld [vmem:[%s22448_s4 + $0x1b8] sm:$0xf] }
 0x508   : > { %v13204_v24 = vld [vmem:[%s22448_s4 + $0x878] sm:$0xf] }
 0x509   : > { %22723 = vst [vmem:[#allocation26_spill] sm:$0xff] %v18763_v62 }
 0x50a   : > { %v7803_v55 = vpop.f32.mrf.mxu2 }
 0x50b   : > { %v7804_v49 = vadd.f32 %v7803_v55, %v7764_v20  ;;  %v7766_v7 = vpop.f32.mrf.mxu1  ;;  %v12341_v20 = vor.u32 %v14759_v46, %v12340_v22  ;;  %v14975_v55 = vld [vmem:[%s22448_s4 + $0x898] sm:$0xf0] }
 0x50c   : > { %v7843_v61 = vpop.f32.mrf.mxu3  ;;  %v7726_v28 = vpop.f32.mrf.mxu0 }
 0x50d   : > { %v7844_v42 = vadd.f32 %v7843_v61, %v7804_v49  ;;  %7930 = vmatmul.bf16.gmra.mxu1 %v22726_v58  ;;  %v22728_v28 = vld [vmem:[#allocation31_spill] sm:$0xff]  ;;  %v12628_v49 = vld [vmem:[%s22448_s4 + $0x3f8] sm:$0xf]  ;;  %v14831_v61 = vld [vmem:[%s22448_s4 + $0x418] sm:$0xf0]  ;;  %8181 = vmatpush.bf16.msra.mxu0 %v12341_v20 }
 0x50e   : > { %v12629_v47 = vor.u32 %v14831_v61, %v12628_v49  ;;  %v14966_v20 = vld [vmem:[%s22448_s4 + $0x850] sm:$0xf0] }
 0x50f   : > { %7889 = vmatmul.bf16.gmra.mxu0 %v22724_v31  ;;  %v18773_v16 = vadd.f32 %v18760_v23, %v7844_v42  ;;  %7971 = vmatmul.bf16.gmra.mxu2 %v22727_v19  ;;  %v13205_v42 = vor.u32 %v14975_v55, %v13204_v24  ;;  %v12880_v19 = vld [vmem:[%s22448_s4 + $0x5f0] sm:$0xf]  ;;  %v14822_v61 = vld [vmem:[%s22448_s4 + $0x3d0] sm:$0xf0] }
 0x510   : > { %8222 = vmatpush.bf16.msra.mxu1 %v12629_v47  ;;  %v12304_v24 = vld [vmem:[%s22448_s4 + $0x170] sm:$0xf] }
 0x511   : > { %22725 = vst [vmem:[#allocation28_spill] sm:$0xff] %v18773_v16  ;;  %8012 = vmatmul.bf16.gmra.mxu3 %v22728_v28 }
 0x512   : > { %v7806_v7 = vpop.f32.mrf.mxu2  ;;  %8304 = vmatpush.bf16.msra.mxu3 %v13205_v42 }
 0x513   : > { %v7767_v16 = vpop.f32.mrf.mxu1  ;;  %v14894_v7 = vld [vmem:[%s22448_s4 + $0x610] sm:$0xf0] }
 0x514   : > { %v7846_v54 = vpop.f32.mrf.mxu3  ;;  %v7727_v4 = vpop.f32.mrf.mxu0  ;;  %v12881_v16 = vor.u32 %v14894_v7, %v12880_v19  ;;  %v12592_v19 = vld [vmem:[%s22448_s4 + $0x3b0] sm:$0xf]  ;;  %v14885_v7 = vld [vmem:[%s22448_s4 + $0x5c8] sm:$0xf0] }
 0x515   : > { %v12593_v42 = vor.u32 %v14822_v61, %v12592_v19  ;;  %v14741_v19 = vld [vmem:[%s22448_s4 + $0x148] sm:$0xf0]  ;;  %v13132_v61 = vld [vmem:[%s22448_s4 + $0x7e8] sm:$0xf] }
 0x516   : > { %8264 = vmatpush.bf16.msra.mxu2 %v12881_v16 }
 0x517   : > { %8223 = vmatpush.bf16.msra.mxu1 %v12593_v42 }
 0x51a   : > { %v7807_v22 = vpop.f32.mrf.mxu2 }
 0x51b   : > { %v7769_v28 = vpop.f32.mrf.mxu1 }
 0x51c   : > { %v7847_v46 = vpop.f32.mrf.mxu3  ;;  %v7729_v62 = vpop.f32.mrf.mxu0  ;;  %v13168_v28 = vld [vmem:[%s22448_s4 + $0x830] sm:$0xf] }
 0x51d   : > { %v14750_v62 = vld [vmem:[%s22448_s4 + $0x190] sm:$0xf0]  ;;  %8065 = vmatmul.bf16.vlgmr.msrb.gmra.mxu1 %v22702_v29  ;;  %v13169_v49 = vor.u32 %v14966_v20, %v13168_v28  ;;  %v12844_v46 = vld [vmem:[%s22448_s4 + $0x5a8] sm:$0xf] }
 0x51e   : > { %v12305_v55 = vor.u32 %v14750_v62, %v12304_v24  ;;  %v12845_v24 = vor.u32 %v14885_v7, %v12844_v46 }
 0x51f   : > { %8024 = vmatmul.bf16.vlgmr.msrb.gmra.mxu0 %v22701_v5  ;;  %8106 = vmatmul.bf16.vlgmr.msrb.gmra.mxu2 %v18056_v12 }
 0x520   : > { %8182 = vmatpush.bf16.msra.mxu0 %v12305_v55  ;;  %8305 = vmatpush.bf16.msra.mxu3 %v13169_v49  ;;  %v12268_v49 = vld [vmem:[%s22448_s4 + $0x128] sm:$0xf] }
 0x521   : > { %8147 = vmatmul.bf16.vlgmr.msrb.gmra.mxu3 %v18058_v2  ;;  %8265 = vmatpush.bf16.msra.mxu2 %v12845_v24  ;;  %v12269_v42 = vor.u32 %v14741_v19, %v12268_v49  ;;  %v12808_v19 = vld [vmem:[%s22448_s4 + $0x560] sm:$0xf] }
 0x522   : > { %v7809_v47 = vpop.f32.mrf.mxu2 }
 0x523   : > { %v7770_v22 = vpop.f32.mrf.mxu1  ;;  %v14957_v47 = vld [vmem:[%s22448_s4 + $0x808] sm:$0xf0] }
 0x524   : > { %v7849_v54 = vpop.f32.mrf.mxu3  ;;  %v7730_v4 = vpop.f32.mrf.mxu0  ;;  %v13133_v22 = vor.u32 %v14957_v47, %v13132_v61  ;;  %8183 = vmatpush.bf16.msra.mxu0 %v12269_v42  ;;  %v14876_v61 = vld [vmem:[%s22448_s4 + $0x580] sm:$0xf0]  ;;  %v12232_v42 = vld [vmem:[%s22448_s4 + $0xe0] sm:$0xf] }
 0x525   : > { %v12556_v54 = vld [vmem:[%s22448_s4 + $0x368] sm:$0xf]  ;;  %v14813_v4 = vld [vmem:[%s22448_s4 + $0x388] sm:$0xf0]  ;;  %v12809_v47 = vor.u32 %v14876_v61, %v12808_v19 }
 0x526   : > { %v12557_v46 = vor.u32 %v14813_v4, %v12556_v54  ;;  %8306 = vmatpush.bf16.msra.mxu3 %v13133_v22  ;;  %v13096_v54 = vld [vmem:[%s22448_s4 + $0x7a0] sm:$0xf]  ;;  %v14948_v4 = vld [vmem:[%s22448_s4 + $0x7c0] sm:$0xf0] }
 0x527   : > { %8266 = vmatpush.bf16.msra.mxu2 %v12809_v47 }
 0x528   : > { %8224 = vmatpush.bf16.msra.mxu1 %v12557_v46  ;;  %v13097_v46 = vor.u32 %v14948_v4, %v13096_v54 }
 0x52a   : > { %v7810_v16 = vpop.f32.mrf.mxu2  ;;  %8307 = vmatpush.bf16.msra.mxu3 %v13097_v46 }
 0x52b   : > { %v7902_v20 = vpop.f32.mrf.mxu1 }
 0x52c   : > { %v7850_v62 = vpop.f32.mrf.mxu3  ;;  %v7861_v28 = vpop.f32.mrf.mxu0 }
 0x52d   : > { %v7903_v55 = vadd.f32 %v7902_v20, %v7861_v28  ;;  %8070 = vmatmul.bf16.gmra.mxu1 %v22706_v33  ;;  %v22737_v33 = vld [vmem:[#allocation32_spill] sm:$0xff] }
 0x52f   : > { %8029 = vmatmul.bf16.gmra.mxu0 %v22705_v8  ;;  %8111 = vmatmul.bf16.gmra.mxu2 %v18104_v53  ;;  %v22735_v53 = vld [vmem:[#allocation16_spill] sm:$0xff] }
 0x531   : > { %8152 = vmatmul.bf16.gmra.mxu3 %v18106_v18  ;;  %v12520_v18 = vld [vmem:[%s22448_s4 + $0x320] sm:$0xf] }
 0x532   : > { %v7943_v7 = vpop.f32.mrf.mxu2 }
 0x533   : > { %v7944_v24 = vadd.f32 %v7943_v7, %v7903_v55  ;;  %v7904_v28 = vpop.f32.mrf.mxu1  ;;  %v14732_v55 = vld [vmem:[%s22448_s4 + $0x100] sm:$0xf0] }
 0x534   : > { %v7984_v16 = vpop.f32.mrf.mxu3  ;;  %v7863_v62 = vpop.f32.mrf.mxu0  ;;  %v12233_v22 = vor.u32 %v14732_v55, %v12232_v42  ;;  %v14804_v42 = vld [vmem:[%s22448_s4 + $0x340] sm:$0xf0] }
 0x535   : > { %v18852_v20 = vadd.f32 %v7984_v16, %v7944_v24  ;;  %v7905_v49 = vadd.f32 %v7904_v28, %v7863_v62  ;;  %v12521_v47 = vor.u32 %v14804_v42, %v12520_v18  ;;  %v14867_v18 = vld [vmem:[%s22448_s4 + $0x538] sm:$0xf0] }
 0x536   : > { %8184 = vmatpush.bf16.msra.mxu0 %v12233_v22  ;;  %v14939_v42 = vld [vmem:[%s22448_s4 + $0x778] sm:$0xf0] }
 0x537   : > { %8225 = vmatpush.bf16.msra.mxu1 %v12521_v47 }
 0x53a   : > { %v7945_v7 = vpop.f32.mrf.mxu2 }
 0x53b   : > { %v7946_v24 = vadd.f32 %v7945_v7, %v7905_v49  ;;  %v7907_v28 = vpop.f32.mrf.mxu1 }
 0x53c   : > { %v7986_v16 = vpop.f32.mrf.mxu3  ;;  %v7866_v62 = vpop.f32.mrf.mxu0 }
 0x53d   : > { %v18872_v19 = vadd.f32 %v7986_v16, %v7946_v24  ;;  %v7908_v61 = vadd.f32 %v7907_v28, %v7866_v62  ;;  %8075 = vmatmul.bf16.gmra.mxu1 %v22708_v36  ;;  %v12772_v24 = vld [vmem:[%s22448_s4 + $0x518] sm:$0xf]  ;;  %v14723_v28 = vld [vmem:[%s22448_s4 + $0xb8] sm:$0xf0] }
 0x53e   : > { %v12196_v16 = vld [vmem:[%s22448_s4 + $0x98] sm:$0xf]  ;;  %v12773_v62 = vor.u32 %v14867_v18, %v12772_v24 }
 0x53f   : > { %8034 = vmatmul.bf16.gmra.mxu0 %v22707_v63  ;;  %8116 = vmatmul.bf16.gmra.mxu2 %v18146_v48  ;;  %v12197_v47 = vor.u32 %v14723_v28, %v12196_v16  ;;  %v22731_v36 = vld [vmem:[#allocation29_spill] sm:$0xff]  ;;  %v22734_v63 = vld [vmem:[#allocation8_spill] sm:$0xff] }
 0x540   : > { %8267 = vmatpush.bf16.msra.mxu2 %v12773_v62 }
 0x541   : > { %8157 = vmatmul.bf16.gmra.mxu3 %v18148_v51  ;;  %8185 = vmatpush.bf16.msra.mxu0 %v12197_v47 }
 0x542   : > { %v7948_v49 = vpop.f32.mrf.mxu2 }
 0x543   : > { %v7949_v55 = vadd.f32 %v7948_v49, %v7908_v61  ;;  %v7909_v22 = vpop.f32.mrf.mxu1  ;;  %v13060_v61 = vld [vmem:[%s22448_s4 + $0x758] sm:$0xf] }
 0x544   : > { %v7989_v54 = vpop.f32.mrf.mxu3  ;;  %v7868_v4 = vpop.f32.mrf.mxu0  ;;  %v13061_v49 = vor.u32 %v14939_v42, %v13060_v61  ;;  %v22729_v61 = vld [vmem:[#allocation46_spill] sm:$0xff]  ;;  %v22730_v42 = vld [vmem:[#allocation9_spill] sm:$0xff] }
 0x545   : > { %v18884_v46 = vadd.f32 %v7989_v54, %v7949_v55  ;;  %v7910_v7 = vadd.f32 %v7909_v22, %v7868_v4  ;;  %v12484_v55 = vld [vmem:[%s22448_s4 + $0x2d8] sm:$0xf]  ;;  %v14795_v54 = vld [vmem:[%s22448_s4 + $0x2f8] sm:$0xf0] }
 0x546   : > { %v12485_v4 = vor.u32 %v14795_v54, %v12484_v55  ;;  %8308 = vmatpush.bf16.msra.mxu3 %v13061_v49 }
 0x548   : > { %8226 = vmatpush.bf16.msra.mxu1 %v12485_v4 }
 0x54a   : > { %v7950_v22 = vpop.f32.mrf.mxu2 }
 0x54b   : > { %v7951_v24 = vadd.f32 %v7950_v22, %v7910_v7  ;;  %v7912_v48 = vpop.f32.mrf.mxu1  ;;  %v12160_v22 = vld [vmem:[%s22448_s4 + $0x50] sm:$0xf] }
 0x54c   : > { %v7991_v18 = vpop.f32.mrf.mxu3  ;;  %v7871_v51 = vpop.f32.mrf.mxu0 }
 0x54d   : > { %v18910_v16 = vadd.f32 %v7991_v18, %v7951_v24  ;;  %v7913_v28 = vadd.f32 %v7912_v48, %v7871_v51  ;;  %8080 = vmatmul.bf16.gmra.mxu1 %v22729_v61  ;;  %v12736_v48 = vld [vmem:[%s22448_s4 + $0x4d0] sm:$0xf]  ;;  %v14858_v51 = vld [vmem:[%s22448_s4 + $0x4f0] sm:$0xf0] }
 0x54e   : > { %v12737_v24 = vor.u32 %v14858_v51, %v12736_v48  ;;  %v14714_v18 = vld [vmem:[%s22448_s4 + $0x70] sm:$0xf0] }
 0x54f   : > { %8039 = vmatmul.bf16.gmra.mxu0 %v22709_v26  ;;  %8121 = vmatmul.bf16.gmra.mxu2 %v22730_v42 }
 0x550   : > { %8268 = vmatpush.bf16.msra.mxu2 %v12737_v24  ;;  %v12700_v24 = vld [vmem:[%s22448_s4 + $0x488] sm:$0xf] }
 0x551   : > { %8162 = vmatmul.bf16.gmra.mxu3 %v22731_v36 }
 0x552   : > { %v7953_v62 = vpop.f32.mrf.mxu2 }
 0x553   : > { %v7954_v47 = vadd.f32 %v7953_v62, %v7913_v28  ;;  %v7914_v54 = vpop.f32.mrf.mxu1  ;;  %v13024_v28 = vld [vmem:[%s22448_s4 + $0x710] sm:$0xf]  ;;  %v14930_v62 = vld [vmem:[%s22448_s4 + $0x730] sm:$0xf0] }
 0x554   : > { %v7994_v49 = vpop.f32.mrf.mxu3  ;;  %v7873_v55 = vpop.f32.mrf.mxu0 }
 0x555   : > { %v18916_v7 = vadd.f32 %v7994_v49, %v7954_v47  ;;  %v7915_v4 = vadd.f32 %v7914_v54, %v7873_v55  ;;  %v12161_v47 = vor.u32 %v14714_v18, %v12160_v22  ;;  %v13025_v49 = vor.u32 %v14930_v62, %v13024_v28  ;;  %v12448_v55 = vld [vmem:[%s22448_s4 + $0x290] sm:$0xf]  ;;  %v14786_v54 = vld [vmem:[%s22448_s4 + $0x2b0] sm:$0xf0]  ;;  %v22732_v28 = vld [vmem:[#allocation5_spill] sm:$0xff] }
 0x556   : > { %v12449_v48 = vor.u32 %v14786_v54, %v12448_v55  ;;  %v22733_v62 = vld [vmem:[#allocation6_spill] sm:$0xff] }
 0x557   : > { %8186 = vmatpush.bf16.msra.mxu0 %v12161_v47  ;;  %8309 = vmatpush.bf16.msra.mxu3 %v13025_v49 }
 0x558   : > { %8227 = vmatpush.bf16.msra.mxu1 %v12449_v48  ;;  %v12124_v48 = vld [vmem:[%s22448_s4 + $0x8] sm:$0xf] }
 0x55a   : > { %v7955_v51 = vpop.f32.mrf.mxu2 }
 0x55b   : > { %v7956_v36 = vadd.f32 %v7955_v51, %v7915_v4  ;;  %v7917_v26 = vpop.f32.mrf.mxu1  ;;  %v14849_v4 = vld [vmem:[%s22448_s4 + $0x4a8] sm:$0xf0] }
 0x55c   : > { %v7996_v42 = vpop.f32.mrf.mxu3  ;;  %v7876_v61 = vpop.f32.mrf.mxu0  ;;  %v12701_v47 = vor.u32 %v14849_v4, %v12700_v24  ;;  %v14705_v51 = vld [vmem:[%s22448_s4 + $0x28] sm:$0xf0]  ;;  %v12988_v24 = vld [vmem:[%s22448_s4 + $0x6c8] sm:$0xf] }
 0x55d   : > { %v18942_v22 = vadd.f32 %v7996_v42, %v7956_v36  ;;  %v7918_v18 = vadd.f32 %v7917_v26, %v7876_v61  ;;  %8085 = vmatmul.bf16.gmra.mxu1 %v22733_v62  ;;  %v14921_v4 = vld [vmem:[%s22448_s4 + $0x6e8] sm:$0xf0] }
 0x55e   : > { %8269 = vmatpush.bf16.msra.mxu2 %v12701_v47  ;;  %v12412_v47 = vld [vmem:[%s22448_s4 + $0x248] sm:$0xf] }
 0x55f   : > { %8044 = vmatmul.bf16.gmra.mxu0 %v22732_v28  ;;  %8126 = vmatmul.bf16.gmra.mxu2 %v22734_v63  ;;  %v22736_v28 = vld [vmem:[#allocation17_spill] sm:$0xff] }
 0x561   : > { %8167 = vmatmul.bf16.gmra.mxu3 %v22735_v53 }
 0x562   : > { %v7958_v36 = vpop.f32.mrf.mxu2 }
 0x563   : > { %v7959_v42 = vadd.f32 %v7958_v36, %v7918_v18  ;;  %v7919_v49 = vpop.f32.mrf.mxu1  ;;  %v12125_v18 = vor.u32 %v14705_v51, %v12124_v48  ;;  %v14777_v36 = vld [vmem:[%s22448_s4 + $0x268] sm:$0xf0] }
 0x564   : > { %v7999_v26 = vpop.f32.mrf.mxu3  ;;  %v7878_v61 = vpop.f32.mrf.mxu0 }
 0x565   : > { %v18954_v55 = vadd.f32 %v7999_v26, %v7959_v42  ;;  %v7920_v54 = vadd.f32 %v7919_v49, %v7878_v61  ;;  %v12989_v42 = vor.u32 %v14921_v4, %v12988_v24  ;;  %v12413_v26 = vor.u32 %v14777_v36, %v12412_v47  ;;  %8187 = vmatpush.bf16.msra.mxu0 %v12125_v18  ;;  %v14104_v24 = vld [vmem:[%s22448_s4 + $0xf80] sm:$0xf]  ;;  %v15056_v4 = vld [vmem:[%s22448_s4 + $0xb20] sm:$0xf0] }
 0x566   : > { %v14392_v47 = vld [vmem:[%s22448_s4 + $0x11c0] sm:$0xf]  ;;  %v15272_v36 = vld [vmem:[%s22448_s4 + $0x11e0] sm:$0xf0] }
 0x567   : > { %8310 = vmatpush.bf16.msra.mxu3 %v12989_v42  ;;  %8228 = vmatpush.bf16.msra.mxu1 %v12413_v26 }
 0x56a   : > { %v7960_v61 = vpop.f32.mrf.mxu2 }
 0x56b   : > { %v7961_v49 = vadd.f32 %v7960_v61, %v7920_v54  ;;  %v7922_v53 = vpop.f32.mrf.mxu1  ;;  %v15200_v54 = vld [vmem:[%s22448_s4 + $0xfa0] sm:$0xf0]  ;;  %v14393_v61 = vor.u32 %v15272_v36, %v14392_v47 }
 0x56c   : > { %v8001_v48 = vpop.f32.mrf.mxu3  ;;  %v7881_v51 = vpop.f32.mrf.mxu0  ;;  %v14105_v18 = vor.u32 %v15200_v54, %v14104_v24  ;;  %v13816_v24 = vld [vmem:[%s22448_s4 + $0xd40] sm:$0xf]  ;;  %v15128_v54 = vld [vmem:[%s22448_s4 + $0xd60] sm:$0xf0] }
 0x56d   : > { %v18974_v63 = vadd.f32 %v8001_v48, %v7961_v49  ;;  %v7923_v62 = vadd.f32 %v7922_v53, %v7881_v51  ;;  %8090 = vmatmul.bf16.gmra.mxu1 %v17734_v52  ;;  %v13528_v53 = vld [vmem:[%s22448_s4 + $0xb00] sm:$0xf]  ;;  %8467 = vmatpush.bf16.msrb.mxu3 %v14393_v61  ;;  %v15191_v61 = vld [vmem:[%s22448_s4 + $0xf58] sm:$0xf0] }
 0x56e   : > { %v13529_v26 = vor.u32 %v15056_v4, %v13528_v53  ;;  %8426 = vmatpush.bf16.msrb.mxu2 %v14105_v18 }
 0x56f   : > { %8049 = vmatmul.bf16.gmra.mxu0 %v17732_v0  ;;  %8131 = vmatmul.bf16.gmra.mxu2 %v22736_v28  ;;  %v13817_v28 = vor.u32 %v15128_v54, %v13816_v24  ;;  %v15263_v24 = vld [vmem:[%s22448_s4 + $0x1198] sm:$0xf0]  ;;  %v13780_v54 = vld [vmem:[%s22448_s4 + $0xcf8] sm:$0xf] }
 0x570   : > { %8344 = vmatpush.bf16.msrb.mxu0 %v13529_v26  ;;  %v14068_v26 = vld [vmem:[%s22448_s4 + $0xf38] sm:$0xf] }
 0x571   : > { %8172 = vmatmul.bf16.gmra.mxu3 %v22737_v33  ;;  %8385 = vmatpush.bf16.msrb.mxu1 %v13817_v28  ;;  %v13492_v28 = vld [vmem:[%s22448_s4 + $0xab8] sm:$0xf] }
 0x572   : > { %v7963_v42 = vpop.f32.mrf.mxu2 }
 0x573   : > { %v7964_v49 = vadd.f32 %v7963_v42, %v7923_v62  ;;  %v7924_v33 = vpop.f32.mrf.mxu1 }
 0x574   : > { %v8004_v48 = vpop.f32.mrf.mxu3  ;;  %v7883_v51 = vpop.f32.mrf.mxu0 }
 0x575   : > { %v19004_v52 = vadd.f32 %v8004_v48, %v7964_v49  ;;  %v7925_v53 = vadd.f32 %v7924_v33, %v7883_v51  ;;  %v14069_v33 = vor.u32 %v15191_v61, %v14068_v26  ;;  %v15047_v49 = vld [vmem:[%s22448_s4 + $0xad8] sm:$0xf0]  ;;  %v14356_v48 = vld [vmem:[%s22448_s4 + $0x1178] sm:$0xf] }
 0x576   : > { %v13493_v51 = vor.u32 %v15047_v49, %v13492_v28 }
 0x577   : > { %8427 = vmatpush.bf16.msrb.mxu2 %v14069_v33 }
 0x578   : > { %8345 = vmatpush.bf16.msrb.mxu0 %v13493_v51  ;;  %v15182_v51 = vld [vmem:[%s22448_s4 + $0xf10] sm:$0xf0] }
 0x57a   : > { %v7965_v62 = vpop.f32.mrf.mxu2 }
 0x57b   : > { %v7966_v4 = vadd.f32 %v7965_v62, %v7925_v53  ;;  %v7927_v36 = vpop.f32.mrf.mxu1  ;;  %v15119_v53 = vld [vmem:[%s22448_s4 + $0xd18] sm:$0xf0] }
 0x57c   : > { %v8006_v47 = vpop.f32.mrf.mxu3  ;;  %v7886_v18 = vpop.f32.mrf.mxu0 }
 0x57d   : > { %v19006_v42 = vadd.f32 %v8006_v47, %v7966_v4  ;;  %v7928_v0 = vadd.f32 %v7927_v36, %v7886_v18  ;;  %8094 = vmatmul.bf16.gmra.mxu1 %v18503_v41  ;;  %v14357_v4 = vor.u32 %v15263_v24, %v14356_v48  ;;  %v13781_v47 = vor.u32 %v15119_v53, %v13780_v54  ;;  %v14032_v48 = vld [vmem:[%s22448_s4 + $0xef0] sm:$0xf]  ;;  %v15038_v53 = vld [vmem:[%s22448_s4 + $0xa90] sm:$0xf0] }
 0x57e   : > { %v14033_v54 = vor.u32 %v15182_v51, %v14032_v48  ;;  %v15173_v48 = vld [vmem:[%s22448_s4 + $0xec8] sm:$0xf0] }
 0x57f   : > { %8053 = vmatmul.bf16.gmra.mxu0 %v18501_v60  ;;  %8135 = vmatmul.bf16.gmra.mxu2 %v18505_v35 }
 0x580   : > { %8468 = vmatpush.bf16.msrb.mxu3 %v14357_v4  ;;  %8386 = vmatpush.bf16.msrb.mxu1 %v13781_v47  ;;  %v15254_v4 = vld [vmem:[%s22448_s4 + $0x1150] sm:$0xf0] }
 0x581   : > { %8176 = vmatmul.bf16.gmra.mxu3 %v18509_v27  ;;  %8428 = vmatpush.bf16.msrb.mxu2 %v14033_v54 }
 0x582   : > { %v7968_v62 = vpop.f32.mrf.mxu2 }
 0x583   : > { %v7969_v18 = vadd.f32 %v7968_v62, %v7928_v0  ;;  %v7929_v61 = vpop.f32.mrf.mxu1  ;;  %v14320_v62 = vld [vmem:[%s22448_s4 + $0x1130] sm:$0xf] }
 0x584   : > { %v8009_v36 = vpop.f32.mrf.mxu3  ;;  %v7888_v26 = vpop.f32.mrf.mxu0  ;;  %v15110_v61 = vld [vmem:[%s22448_s4 + $0xcd0] sm:$0xf0] }
 0x585   : > { %v19036_v33 = vadd.f32 %v8009_v36, %v7969_v18  ;;  %v14321_v36 = vor.u32 %v15254_v4, %v14320_v62  ;;  %v13744_v26 = vld [vmem:[%s22448_s4 + $0xcb0] sm:$0xf]  ;;  %v13420_v4 = vld [vmem:[%s22448_s4 + $0xa28] sm:$0xf] }
 0x587   : > { %8469 = vmatpush.bf16.msrb.mxu3 %v14321_v36 }
 0x58a   : > { %v7970_v28 = vpop.f32.mrf.mxu2 }
 0x58b   : > { %v7931_v35 = vpop.f32.mrf.mxu1  ;;  %v13745_v28 = vor.u32 %v15110_v61, %v13744_v26 }
 0x58c   : > { %v8011_v49 = vpop.f32.mrf.mxu3  ;;  %v7890_v27 = vpop.f32.mrf.mxu0  ;;  %v13456_v35 = vld [vmem:[%s22448_s4 + $0xa70] sm:$0xf] }
 0x58d   : > { %8229 = vmatmul.bf16.vlgmr.msra.gmra.mxu1 %v22659_v25  ;;  %v13457_v18 = vor.u32 %v15038_v53, %v13456_v35 }
 0x58e   : > { %8387 = vmatpush.bf16.msrb.mxu1 %v13745_v28  ;;  %v15245_v28 = vld [vmem:[%s22448_s4 + $0x1108] sm:$0xf0] }
 0x58f   : > { %8188 = vmatmul.bf16.vlgmr.msra.gmra.mxu0 %v22658_v40  ;;  %8270 = vmatmul.bf16.vlgmr.msra.gmra.mxu2 %v22660_v50 }
 0x590   : > { %8346 = vmatpush.bf16.msrb.mxu0 %v13457_v18 }
 0x591   : > { %8311 = vmatmul.bf16.vlgmr.msra.gmra.mxu3 %v22661_v56 }
 0x592   : > { %v7972_v0 = vpop.f32.mrf.mxu2 }
 0x593   : > { %v7932_v47 = vpop.f32.mrf.mxu1  ;;  %v13996_v0 = vld [vmem:[%s22448_s4 + $0xea8] sm:$0xf] }
 0x594   : > { %v8013_v27 = vpop.f32.mrf.mxu3  ;;  %v7891_v24 = vpop.f32.mrf.mxu0  ;;  %v14284_v47 = vld [vmem:[%s22448_s4 + $0x10e8] sm:$0xf] }
 0x595   : > { %v13997_v27 = vor.u32 %v15173_v48, %v13996_v0  ;;  %v15101_v0 = vld [vmem:[%s22448_s4 + $0xc88] sm:$0xf0] }
 0x597   : > { %8429 = vmatpush.bf16.msrb.mxu2 %v13997_v27 }
 0x59a   : > { %v7973_v49 = vpop.f32.mrf.mxu2 }
 0x59b   : > { %v8066_v53 = vpop.f32.mrf.mxu1  ;;  %v13708_v49 = vld [vmem:[%s22448_s4 + $0xc68] sm:$0xf] }
 0x59c   : > { %v8014_v51 = vpop.f32.mrf.mxu3  ;;  %v8025_v35 = vpop.f32.mrf.mxu0  ;;  %v13709_v27 = vor.u32 %v15101_v0, %v13708_v49 }
 0x59d   : > { %v8026_v24 = vadd.f32 %v8025_v35, %v18852_v20  ;;  %8234 = vmatmul.bf16.gmra.mxu1 %v22663_v38  ;;  %v15029_v20 = vld [vmem:[%s22448_s4 + $0xa48] sm:$0xf0]  ;;  %v14285_v35 = vor.u32 %v15245_v28, %v14284_v47  ;;  %v15236_v28 = vld [vmem:[%s22448_s4 + $0x10c0] sm:$0xf0] }
 0x59e   : > { %v13421_v61 = vor.u32 %v15029_v20, %v13420_v4  ;;  %8388 = vmatpush.bf16.msrb.mxu1 %v13709_v27  ;;  %v15164_v4 = vld [vmem:[%s22448_s4 + $0xe80] sm:$0xf0] }
 0x59f   : > { %v8067_v54 = vadd.f32 %v8066_v53, %v8026_v24  ;;  %8193 = vmatmul.bf16.gmra.mxu0 %v22662_v1  ;;  %8275 = vmatmul.bf16.gmra.mxu2 %v22664_v39 }
 0x5a0   : > { %8347 = vmatpush.bf16.msrb.mxu0 %v13421_v61  ;;  %8470 = vmatpush.bf16.msrb.mxu3 %v14285_v35  ;;  %v14248_v61 = vld [vmem:[%s22448_s4 + $0x10a0] sm:$0xf] }
 0x5a1   : > { %8316 = vmatmul.bf16.gmra.mxu3 %v22665_v10 }
 0x5a2   : > { %v8107_v62 = vpop.f32.mrf.mxu2 }
 0x5a3   : > { %v8108_v18 = vadd.f32 %v8107_v62, %v8067_v54  ;;  %v8068_v51 = vpop.f32.mrf.mxu1  ;;  %v13960_v62 = vld [vmem:[%s22448_s4 + $0xe60] sm:$0xf] }
 0x5a4   : > { %v8148_v36 = vpop.f32.mrf.mxu3  ;;  %v8027_v26 = vpop.f32.mrf.mxu0 }
 0x5a5   : > { %v8028_v48 = vadd.f32 %v8027_v26, %v18872_v19  ;;  %v8149_v24 = vadd.f32 %v8148_v36, %v8108_v18  ;;  %v13384_v19 = vld [vmem:[%s22448_s4 + $0x9e0] sm:$0xf]  ;;  %v13961_v36 = vor.u32 %v15164_v4, %v13960_v62  ;;  %v15020_v26 = vld [vmem:[%s22448_s4 + $0xa00] sm:$0xf0]  ;;  %v10480_v62 = vadd.f32 %v18760_v23, %v18597_v13 }
 0x5a7   : > { %v8069_v53 = vadd.f32 %v8068_v51, %v8028_v48  ;;  %v13385_v48 = vor.u32 %v15020_v26, %v13384_v19  ;;  %v14249_v51 = vor.u32 %v15236_v28, %v14248_v61  ;;  %8430 = vmatpush.bf16.msrb.mxu2 %v13961_v36 }
 0x5a9   : > { %8471 = vmatpush.bf16.msrb.mxu3 %v14249_v51  ;;  %8348 = vmatpush.bf16.msrb.mxu0 %v13385_v48  ;;  %v10481_v48 = vadd.f32 %v18760_v23, %v18618_v34 }
 0x5aa   : > { %v8109_v54 = vpop.f32.mrf.mxu2 }
 0x5ab   : > { %v8110_v20 = vadd.f32 %v8109_v54, %v8069_v53  ;;  %v8071_v0 = vpop.f32.mrf.mxu1  ;;  %v10502_v53 = vrot.slane %v8149_v24, 1  ;;  %v13672_v24 = vld [vmem:[%s22448_s4 + $0xc20] sm:$0xf] }
 0x5ac   : > { %v8150_v47 = vpop.f32.mrf.mxu3  ;;  %v8030_v18 = vpop.f32.mrf.mxu0 }
 0x5ad   : > { %v8031_v49 = vadd.f32 %v8030_v18, %v18884_v46  ;;  %v8151_v35 = vadd.f32 %v8150_v47, %v8110_v20  ;;  %8239 = vmatmul.bf16.gmra.mxu1 %v22668_v15  ;;  %v15092_v20 = vld [vmem:[%s22448_s4 + $0xc40] sm:$0xf0] }
 0x5ae   : > { %v13673_v13 = vor.u32 %v15092_v20, %v13672_v24  ;;  %v14212_v20 = vld [vmem:[%s22448_s4 + $0x1058] sm:$0xf] }
 0x5af   : > { %v8072_v27 = vadd.f32 %v8071_v0, %v8031_v49  ;;  %8198 = vmatmul.bf16.gmra.mxu0 %v22667_v11  ;;  %v10503_v54 = vrot.slane %v8151_v35, 1  ;;  %8280 = vmatmul.bf16.gmra.mxu2 %v22669_v57 }
 0x5b0   : > { %8389 = vmatpush.bf16.msrb.mxu1 %v13673_v13 }
 0x5b1   : > { %8321 = vmatmul.bf16.gmra.mxu3 %v22670_v45  ;;  %v10504_v46 = vsel %vm10501_vm0, %v10502_v53, %v10503_v54 }
 0x5b2   : > { %v19122_v4 = vadd.f32 %v10504_v46, %v10480_v62  ;;  %v8112_v19 = vpop.f32.mrf.mxu2  ;;  %v13348_v62 = vld [vmem:[%s22448_s4 + $0x998] sm:$0xf] }
 0x5b3   : > { %v8113_v47 = vadd.f32 %v8112_v19, %v8072_v27  ;;  %v8073_v61 = vpop.f32.mrf.mxu1  ;;  %v13924_v27 = vld [vmem:[%s22448_s4 + $0xe18] sm:$0xf] }
 0x5b4   : > { %v8153_v18 = vpop.f32.mrf.mxu3  ;;  %v8032_v36 = vpop.f32.mrf.mxu0 }
 0x5b5   : > { %v8033_v26 = vadd.f32 %v8032_v36, %v18910_v16  ;;  %v8154_v28 = vadd.f32 %v8153_v18, %v8113_v47  ;;  %v15155_v16 = vld [vmem:[%s22448_s4 + $0xe38] sm:$0xf0] }
 0x5b6   : > { %v13925_v24 = vor.u32 %v15155_v16, %v13924_v27  ;;  %v15227_v47 = vld [vmem:[%s22448_s4 + $0x1078] sm:$0xf0] }
 0x5b7   : > { %v8074_v49 = vadd.f32 %v8073_v61, %v8033_v26  ;;  %v10505_v0 = vrot.slane %v8154_v28, 1  ;;  %v14213_v26 = vor.u32 %v15227_v47, %v14212_v20  ;;  %v13636_v61 = vld [vmem:[%s22448_s4 + $0xbd8] sm:$0xf]  ;;  %v15083_v28 = vld [vmem:[%s22448_s4 + $0xbf8] sm:$0xf0] }
 0x5b8   : > { %8431 = vmatpush.bf16.msrb.mxu2 %v13925_v24 }
 0x5b9   : > { %v10506_v51 = vsel %vm10501_vm0, %v10503_v54, %v10505_v0  ;;  %v15011_v54 = vld [vmem:[%s22448_s4 + $0x9b8] sm:$0xf0]  ;;  %8472 = vmatpush.bf16.msrb.mxu3 %v14213_v26  ;;  %v13888_v26 = vld [vmem:[%s22448_s4 + $0xdd0] sm:$0xf] }
 0x5ba   : > { %v19134_v35 = vadd.f32 %v10506_v51, %v10481_v48  ;;  %v8114_v53 = vpop.f32.mrf.mxu2  ;;  %v13349_v13 = vor.u32 %v15011_v54, %v13348_v62  ;;  %v13637_v48 = vor.u32 %v15083_v28, %v13636_v61  ;;  %v13312_v61 = vld [vmem:[%s22448_s4 + $0x950] sm:$0xf] }
 0x5bb   : > { %v8115_v46 = vadd.f32 %v8114_v53, %v8074_v49  ;;  %v8076_v36 = vpop.f32.mrf.mxu1 }
 0x5bc   : > { %v8155_v19 = vpop.f32.mrf.mxu3  ;;  %v8035_v34 = vpop.f32.mrf.mxu0  ;;  %8349 = vmatpush.bf16.msrb.mxu0 %v13349_v13  ;;  %8390 = vmatpush.bf16.msrb.mxu1 %v13637_v48 }
 0x5bd   : > { %v8036_v18 = vadd.f32 %v8035_v34, %v18916_v7  ;;  %v8156_v49 = vadd.f32 %v8155_v19, %v8115_v46  ;;  %8244 = vmatmul.bf16.gmra.mxu1 %v22674_v17  ;;  %v10482_v7 = vadd.f32 %v18760_v23, %v18631_v9  ;;  %v10483_v9 = vadd.f32 %v18760_v23, %v18658_v3 }
 0x5bf   : > { %v8077_v51 = vadd.f32 %v8076_v36, %v8036_v18  ;;  %8203 = vmatmul.bf16.gmra.mxu0 %v22673_v21  ;;  %v10507_v53 = vrot.slane %v8156_v49, 1  ;;  %8285 = vmatmul.bf16.gmra.mxu2 %v22675_v43 }
 0x5c1   : > { %8326 = vmatmul.bf16.gmra.mxu3 %v22676_v30  ;;  %v10508_v27 = vsel %vm10501_vm0, %v10505_v0, %v10507_v53 }
 0x5c2   : > { %v19168_v16 = vadd.f32 %v10508_v27, %v10482_v7  ;;  %v8117_v62 = vpop.f32.mrf.mxu2  ;;  %v15218_v7 = vld [vmem:[%s22448_s4 + $0x1030] sm:$0xf0] }
 0x5c3   : > { %v8118_v46 = vadd.f32 %v8117_v62, %v8077_v51  ;;  %v8078_v54 = vpop.f32.mrf.mxu1  ;;  %v15002_v51 = vld [vmem:[%s22448_s4 + $0x970] sm:$0xf0] }
 0x5c4   : > { %v8158_v19 = vpop.f32.mrf.mxu3  ;;  %v8037_v34 = vpop.f32.mrf.mxu0 }
 0x5c5   : > { %v8038_v24 = vadd.f32 %v8037_v34, %v18942_v22  ;;  %v8159_v20 = vadd.f32 %v8158_v19, %v8118_v46  ;;  %v15146_v22 = vld [vmem:[%s22448_s4 + $0xdf0] sm:$0xf0]  ;;  %v13313_v46 = vor.u32 %v15002_v51, %v13312_v61  ;;  %v13600_v34 = vld [vmem:[%s22448_s4 + $0xb90] sm:$0xf] }
 0x5c6   : > { %v13889_v48 = vor.u32 %v15146_v22, %v13888_v26  ;;  %v22741_v22 = vld [vmem:[#allocation36_spill] sm:$0xff] }
 0x5c7   : > { %v8079_v47 = vadd.f32 %v8078_v54, %v8038_v24  ;;  %v10509_v18 = vrot.slane %v8159_v20, 1  ;;  %v15074_v24 = vld [vmem:[%s22448_s4 + $0xbb0] sm:$0xf0]  ;;  %8350 = vmatpush.bf16.msrb.mxu0 %v13313_v46 }
 0x5c8   : > { %8432 = vmatpush.bf16.msrb.mxu2 %v13889_v48  ;;  %v13601_v20 = vor.u32 %v15074_v24, %v13600_v34  ;;  %v15137_v48 = vld [vmem:[%s22448_s4 + $0xda8] sm:$0xf0]  ;;  %v22742_v24 = vld [vmem:[#allocation13_spill] sm:$0xff] }
 0x5c9   : > { %v10510_v36 = vsel %vm10501_vm0, %v10507_v53, %v10509_v18  ;;  %v14176_v53 = vld [vmem:[%s22448_s4 + $0x1010] sm:$0xf] }
 0x5ca   : > { %v19174_v13 = vadd.f32 %v10510_v36, %v10483_v9  ;;  %v8119_v0 = vpop.f32.mrf.mxu2  ;;  %v14177_v19 = vor.u32 %v15218_v7, %v14176_v53  ;;  %v22739_v36 = vld [vmem:[#allocation20_spill] sm:$0xff]  ;;  %8391 = vmatpush.bf16.msrb.mxu1 %v13601_v20 }
 0x5cb   : > { %v8120_v28 = vadd.f32 %v8119_v0, %v8079_v47  ;;  %v8081_v62 = vpop.f32.mrf.mxu1  ;;  %v22740_v0 = vld [vmem:[#allocation35_spill] sm:$0xff] }
 0x5cc   : > { %v8160_v49 = vpop.f32.mrf.mxu3  ;;  %v8040_v3 = vpop.f32.mrf.mxu0  ;;  %8473 = vmatpush.bf16.msrb.mxu3 %v14177_v19  ;;  %v10484_v26 = vadd.f32 %v18760_v23, %v22740_v0 }
 0x5cd   : > { %v8041_v27 = vadd.f32 %v8040_v3, %v18954_v55  ;;  %v8161_v54 = vadd.f32 %v8160_v49, %v8120_v28  ;;  %v22738_v55 = vld [vmem:[#allocation23_spill] sm:$0xff] }
 0x5ce   : > { %8249 = vmatmul.bf16.gmra.mxu1 %v22738_v55  ;;  %v13852_v3 = vld [vmem:[%s22448_s4 + $0xd88] sm:$0xf] }
 0x5cf   : > { %v8082_v47 = vadd.f32 %v8081_v62, %v8041_v27  ;;  %8208 = vmatmul.bf16.gmra.mxu0 %v22680_v59  ;;  %v10511_v9 = vrot.slane %v8161_v54, 1  ;;  %8290 = vmatmul.bf16.gmra.mxu2 %v22739_v36  ;;  %v13853_v27 = vor.u32 %v15137_v48, %v13852_v3  ;;  %v10485_v54 = vadd.f32 %v18760_v23, %v22742_v24 }
 0x5d1   : > { %8331 = vmatmul.bf16.gmra.mxu3 %v22741_v22  ;;  %v10512_v61 = vsel %vm10501_vm0, %v10509_v18, %v10511_v9  ;;  %8433 = vmatpush.bf16.msrb.mxu2 %v13853_v27 }
 0x5d2   : > { %v19208_v28 = vadd.f32 %v10512_v61, %v10484_v26  ;;  %v8122_v49 = vpop.f32.mrf.mxu2  ;;  %v14140_v61 = vld [vmem:[%s22448_s4 + $0xfc8] sm:$0xf] }
 0x5d3   : > { %v8123_v51 = vadd.f32 %v8122_v49, %v8082_v47  ;;  %v8083_v46 = vpop.f32.mrf.mxu1  ;;  %v13276_v47 = vld [vmem:[%s22448_s4 + $0x908] sm:$0xf] }
 0x5d4   : > { %v8163_v53 = vpop.f32.mrf.mxu3  ;;  %v8042_v7 = vpop.f32.mrf.mxu0 }
 0x5d5   : > { %v8043_v62 = vadd.f32 %v8042_v7, %v18974_v63  ;;  %v8164_v18 = vadd.f32 %v8163_v53, %v8123_v51  ;;  %v14993_v63 = vld [vmem:[%s22448_s4 + $0x928] sm:$0xf0]  ;;  %v13564_v53 = vld [vmem:[%s22448_s4 + $0xb48] sm:$0xf] }
 0x5d6   : > { %v13277_v51 = vor.u32 %v14993_v63, %v13276_v47  ;;  %v15065_v7 = vld [vmem:[%s22448_s4 + $0xb68] sm:$0xf0]  ;;  %v14764_v47 = vld [vmem:[%s22448_s4 + $0x204] sm:$0xf] }
 0x5d7   : > { %v8084_v19 = vadd.f32 %v8083_v46, %v8043_v62  ;;  %v10513_v34 = vrot.slane %v8164_v18, 1  ;;  %v13565_v18 = vor.u32 %v15065_v7, %v13564_v53 }
 0x5d8   : > { %8351 = vmatpush.bf16.msrb.mxu0 %v13277_v51 }
 0x5d9   : > { %v10514_v20 = vsel %vm10501_vm0, %v10511_v9, %v10513_v34  ;;  %v15209_v9 = vld [vmem:[%s22448_s4 + $0xfe8] sm:$0xf0]  ;;  %8392 = vmatpush.bf16.msrb.mxu1 %v13565_v18 }
 0x5da   : > { %v19220_v0 = vadd.f32 %v10514_v20, %v10485_v54  ;;  %v8124_v26 = vpop.f32.mrf.mxu2  ;;  %v14141_v46 = vor.u32 %v15209_v9, %v14140_v61  ;;  %v10486_v20 = vadd.f32 %v18760_v23, %v18723_v37  ;;  %v12378_v37 = vld [vmem:[%s22448_s4 + $0x224] sm:$0xf0]  ;;  %v14980_v23 = vld [vmem:[%s22448_s4 + $0x8c4] sm:$0xf] }
 0x5db   : > { %v8125_v49 = vadd.f32 %v8124_v26, %v8084_v19  ;;  %v8086_v62 = vpop.f32.mrf.mxu1  ;;  %v12954_v26 = vld [vmem:[%s22448_s4 + $0x6a4] sm:$0xf0]  ;;  %v12381_v51 = vor.u32 %v14764_v47, %v12378_v37  ;;  %v22743_v47 = vld [vmem:[#allocation22_spill] sm:$0xff] }
 0x5dc   : > { %v8165_v3 = vpop.f32.mrf.mxu3  ;;  %v8045_v48 = vpop.f32.mrf.mxu0  ;;  %8474 = vmatpush.bf16.msrb.mxu3 %v14141_v46 }
 0x5dd   : > { %v8046_v27 = vadd.f32 %v8045_v48, %v19004_v52  ;;  %v8166_v19 = vadd.f32 %v8165_v3, %v8125_v49  ;;  %v14908_v52 = vld [vmem:[%s22448_s4 + $0x684] sm:$0xf]  ;;  %v13242_v49 = vld [vmem:[%s22448_s4 + $0x8e4] sm:$0xf0]  ;;  %8508 = vmatpush.bf16.msra.mxu0 %v12381_v51 }
 0x5de   : > { %8254 = vmatmul.bf16.gmra.mxu1 %v22720_v32  ;;  %v12957_v61 = vor.u32 %v14908_v52, %v12954_v26  ;;  %v13245_v9 = vor.u32 %v14980_v23, %v13242_v49  ;;  %v15323_v26 = vld [vmem:[%s22449_s5] ss:$0 sm:$0xff] }
 0x5df   : > { %v8087_v24 = vadd.f32 %v8086_v62, %v8046_v27  ;;  %8213 = vmatmul.bf16.gmra.mxu0 %v22686_v6  ;;  %v10515_v54 = vrot.slane %v8166_v19, 1  ;;  %8295 = vmatmul.bf16.gmra.mxu2 %v22721_v14  ;;  %v14836_v27 = vld [vmem:[%s22448_s4 + $0x444] sm:$0xf]  ;;  %v12666_v62 = vld [vmem:[%s22448_s4 + $0x464] sm:$0xf0] }
 0x5e0   : > { %8590 = vmatpush.bf16.msra.mxu2 %v12957_v61  ;;  %8631 = vmatpush.bf16.msra.mxu3 %v13245_v9  ;;  %v12669_v19 = vor.u32 %v14836_v27, %v12666_v62 }
 0x5e1   : > { %8336 = vmatmul.bf16.gmra.mxu3 %v22722_v44  ;;  %v10516_v63 = vsel %vm10501_vm0, %v10513_v34, %v10515_v54 }
 0x5e2   : > { %v19266_v3 = vadd.f32 %v10516_v63, %v10486_v20  ;;  %v8127_v48 = vpop.f32.mrf.mxu2  ;;  %8549 = vmatpush.bf16.msra.mxu1 %v12669_v19  ;;  %v10487_v63 = vadd.f32 %v15323_v26, %v22743_v47  ;;  %v12342_v19 = vld [vmem:[%s22448_s4 + $0x1dc] sm:$0xf0] }
 0x5e3   : > { %v8128_v53 = vadd.f32 %v8127_v48, %v8087_v24  ;;  %v8088_v18 = vpop.f32.mrf.mxu1  ;;  %v13206_v47 = vld [vmem:[%s22448_s4 + $0x89c] sm:$0xf0] }
 0x5e4   : > { %v8168_v34 = vpop.f32.mrf.mxu3  ;;  %v8047_v7 = vpop.f32.mrf.mxu0 }
 0x5e5   : > { %v8048_v46 = vadd.f32 %v8047_v7, %v19006_v42  ;;  %v8169_v20 = vadd.f32 %v8168_v34, %v8128_v53  ;;  %v14899_v34 = vld [vmem:[%s22448_s4 + $0x63c] sm:$0xf]  ;;  %v12918_v7 = vld [vmem:[%s22448_s4 + $0x65c] sm:$0xf0] }
 0x5e7   : > { %v8089_v52 = vadd.f32 %v8088_v18, %v8048_v46  ;;  %v10517_v24 = vrot.slane %v8169_v20, 1  ;;  %v22744_v46 = vld [vmem:[#allocation30_spill] sm:$0xff]  ;;  %v14755_v18 = vld [vmem:[%s22448_s4 + $0x1bc] sm:$0xf] }
 0x5e8   : > { %v14971_v20 = vld [vmem:[%s22448_s4 + $0x87c] sm:$0xf]  ;;  %v12345_v26 = vor.u32 %v14755_v18, %v12342_v19  ;;  %v22748_v19 = vld [vmem:[#allocation28_spill] sm:$0xff] }
 0x5e9   : > { %v10518_v61 = vsel %vm10501_vm0, %v10515_v54, %v10517_v24  ;;  %v12921_v54 = vor.u32 %v14899_v34, %v12918_v7 }
 0x5ea   : > { %v19280_v37 = vadd.f32 %v10518_v61, %v10487_v63  ;;  %v8129_v23 = vpop.f32.mrf.mxu2  ;;  %v14827_v63 = vld [vmem:[%s22448_s4 + $0x3fc] sm:$0xf]  ;;  %v12630_v61 = vld [vmem:[%s22448_s4 + $0x41c] sm:$0xf0]  ;;  %8509 = vmatpush.bf16.msra.mxu0 %v12345_v26  ;;  %v14746_v26 = vld [vmem:[%s22448_s4 + $0x174] sm:$0xf] }
 0x5eb   : > { %v8130_v42 = vadd.f32 %v8129_v23, %v8089_v52  ;;  %v8091_v9 = vpop.f32.mrf.mxu1  ;;  %8591 = vmatpush.bf16.msra.mxu2 %v12921_v54  ;;  %v22746_v23 = vld [vmem:[#allocation26_spill] sm:$0xff] }
 0x5ec   : > { %v8170_v49 = vpop.f32.mrf.mxu3  ;;  %v8050_v48 = vpop.f32.mrf.mxu0 }
 0x5ed   : > { %v8051_v51 = vadd.f32 %v8050_v48, %v19036_v33  ;;  %v8171_v53 = vadd.f32 %v8170_v49, %v8130_v42  ;;  %v22745_v33 = vld [vmem:[#allocation31_spill] sm:$0xff]  ;;  %v13209_v48 = vor.u32 %v14971_v20, %v13206_v47  ;;  %v12882_v20 = vld [vmem:[%s22448_s4 + $0x614] sm:$0xf0]  ;;  %v14962_v47 = vld [vmem:[%s22448_s4 + $0x834] sm:$0xf] }
 0x5ee   : > { %8258 = vmatmul.bf16.gmra.mxu1 %v22726_v58 }
 0x5ef   : > { %v8092_v27 = vadd.f32 %v8091_v9, %v8051_v51  ;;  %8217 = vmatmul.bf16.gmra.mxu0 %v22724_v31  ;;  %v10519_v62 = vrot.slane %v8171_v53, 1  ;;  %8299 = vmatmul.bf16.gmra.mxu2 %v22744_v46  ;;  %v12633_v51 = vor.u32 %v14827_v63, %v12630_v61  ;;  %v13170_v63 = vld [vmem:[%s22448_s4 + $0x854] sm:$0xf0] }
 0x5f0   : > { %8632 = vmatpush.bf16.msra.mxu3 %v13209_v48  ;;  %v12594_v48 = vld [vmem:[%s22448_s4 + $0x3d4] sm:$0xf0] }
 0x5f1   : > { %8340 = vmatmul.bf16.gmra.mxu3 %v22745_v33  ;;  %v10520_v52 = vsel %vm10501_vm0, %v10517_v24, %v10519_v62  ;;  %8550 = vmatpush.bf16.msra.mxu1 %v12633_v51 }
 0x5f2   : > { %v19313_v42 = vadd.f32 %v10520_v52, %v22746_v23  ;;  %v8132_v49 = vpop.f32.mrf.mxu2 }
 0x5f3   : > { %v8133_v24 = vadd.f32 %v8132_v49, %v8092_v27  ;;  %v8093_v34 = vpop.f32.mrf.mxu1  ;;  %v14890_v27 = vld [vmem:[%s22448_s4 + $0x5f4] sm:$0xf] }
 0x5f4   : > { %22747 = vst [vmem:[#allocation39_spill] sm:$0xff] %v19313_v42  ;;  %v8173_v9 = vpop.f32.mrf.mxu3  ;;  %v8052_v53 = vpop.f32.mrf.mxu0  ;;  %v14818_v49 = vld [vmem:[%s22448_s4 + $0x3b4] sm:$0xf] }
 0x5f5   : > { %v8174_v7 = vadd.f32 %v8173_v9, %v8133_v24  ;;  %v12597_v51 = vor.u32 %v14818_v49, %v12594_v48  ;;  %v22749_v49 = vld [vmem:[#allocation42_spill] sm:$0xff]  ;;  %v22750_v48 = vld [vmem:[#allocation3_spill] sm:$0xff] }
 0x5f7   : > { %v10521_v54 = vrot.slane %v8174_v7, 1  ;;  %8551 = vmatpush.bf16.msra.mxu1 %v12597_v51  ;;  %v14881_v7 = vld [vmem:[%s22448_s4 + $0x5ac] sm:$0xf] }
 0x5f9   : > { %v10522_v18 = vsel %vm10501_vm0, %v10519_v62, %v10521_v54  ;;  %v12885_v62 = vor.u32 %v14890_v27, %v12882_v20  ;;  %v12846_v54 = vld [vmem:[%s22448_s4 + $0x5cc] sm:$0xf0] }
 0x5fa   : > { %v19317_v33 = vadd.f32 %v10522_v18, %v22748_v19  ;;  %v8134_v46 = vpop.f32.mrf.mxu2  ;;  %v12849_v18 = vor.u32 %v14881_v7, %v12846_v54 }
 0x5fb   : > { %v8095_v42 = vpop.f32.mrf.mxu1  ;;  %v12306_v46 = vld [vmem:[%s22448_s4 + $0x194] sm:$0xf0]  ;;  %8592 = vmatpush.bf16.msra.mxu2 %v12885_v62  ;;  %v12270_v62 = vld [vmem:[%s22448_s4 + $0x14c] sm:$0xf0] }
 0x5fc   : > { %v8175_v52 = vpop.f32.mrf.mxu3  ;;  %v8054_v23 = vpop.f32.mrf.mxu0  ;;  %v12309_v61 = vor.u32 %v14746_v26, %v12306_v46  ;;  %v13173_v42 = vor.u32 %v14962_v47, %v13170_v63  ;;  %v14737_v26 = vld [vmem:[%s22448_s4 + $0x12c] sm:$0xf]  ;;  %v13134_v63 = vld [vmem:[%s22448_s4 + $0x80c] sm:$0xf0] }
 0x5fd   : > { %v14953_v46 = vld [vmem:[%s22448_s4 + $0x7ec] sm:$0xf]  ;;  %v12273_v47 = vor.u32 %v14737_v26, %v12270_v62  ;;  %v14728_v26 = vld [vmem:[%s22448_s4 + $0xe4] sm:$0xf] }
 0x5fe   : > { %8393 = vmatmul.bf16.vlgmr.msrb.gmra.mxu1 %v22702_v29  ;;  %8510 = vmatpush.bf16.msra.mxu0 %v12309_v61  ;;  %v14809_v61 = vld [vmem:[%s22448_s4 + $0x36c] sm:$0xf]  ;;  %v13137_v51 = vor.u32 %v14953_v46, %v13134_v63  ;;  %v14944_v46 = vld [vmem:[%s22448_s4 + $0x7a4] sm:$0xf]  ;;  %v22767_v29 = vld [vmem:[#allocation32_spill] sm:$0xff] }
 0x5ff   : > { %8352 = vmatmul.bf16.vlgmr.msrb.gmra.mxu0 %v22701_v5  ;;  %8434 = vmatmul.bf16.vlgmr.msrb.gmra.mxu2 %v18056_v12  ;;  %v22766_v12 = vld [vmem:[#allocation17_spill] sm:$0xff] }
 0x600   : > { %8633 = vmatpush.bf16.msra.mxu3 %v13173_v42  ;;  %8593 = vmatpush.bf16.msra.mxu2 %v12849_v18  ;;  %v12558_v42 = vld [vmem:[%s22448_s4 + $0x38c] sm:$0xf0] }
 0x601   : > { %8475 = vmatmul.bf16.vlgmr.msrb.gmra.mxu3 %v18058_v2  ;;  %v22765_v2 = vld [vmem:[#allocation24_spill] sm:$0xff] }
 0x602   : > { %v8136_v24 = vpop.f32.mrf.mxu2  ;;  %8511 = vmatpush.bf16.msra.mxu0 %v12273_v47  ;;  %v13098_v47 = vld [vmem:[%s22448_s4 + $0x7c4] sm:$0xf0] }
 0x603   : > { %v8096_v34 = vpop.f32.mrf.mxu1  ;;  %v12561_v24 = vor.u32 %v14809_v61, %v12558_v42  ;;  %v13101_v61 = vor.u32 %v14944_v46, %v13098_v47 }
 0x604   : > { %v8177_v9 = vpop.f32.mrf.mxu3  ;;  %v8055_v53 = vpop.f32.mrf.mxu0  ;;  %8634 = vmatpush.bf16.msra.mxu3 %v13137_v51 }
 0x605   : > { %v22751_v9 = vld [vmem:[#allocation4_spill] sm:$0xff]  ;;  %8552 = vmatpush.bf16.msra.mxu1 %v12561_v24 }
 0x608   : > { %8635 = vmatpush.bf16.msra.mxu3 %v13101_v61 }
 0x60a   : > { %v8137_v19 = vpop.f32.mrf.mxu2 }
 0x60b   : > { %v8230_v27 = vpop.f32.mrf.mxu1 }
 0x60c   : > { %v8178_v52 = vpop.f32.mrf.mxu3  ;;  %v8189_v23 = vpop.f32.mrf.mxu0 }
 0x60d   : > { %v8231_v20 = vadd.f32 %v8230_v27, %v8189_v23  ;;  %v14872_v23 = vld [vmem:[%s22448_s4 + $0x564] sm:$0xf]  ;;  %v12810_v27 = vld [vmem:[%s22448_s4 + $0x584] sm:$0xf0] }
 0x60e   : > { %8398 = vmatmul.bf16.gmra.mxu1 %v22749_v49  ;;  %v12813_v62 = vor.u32 %v14872_v23, %v12810_v27  ;;  %v12522_v23 = vld [vmem:[%s22448_s4 + $0x344] sm:$0xf0]  ;;  %v22762_v49 = vld [vmem:[#allocation8_spill] sm:$0xff] }
 0x60f   : > { %8357 = vmatmul.bf16.gmra.mxu0 %v22705_v8  ;;  %8439 = vmatmul.bf16.gmra.mxu2 %v22750_v48  ;;  %v22752_v27 = vld [vmem:[#allocation43_spill] sm:$0xff]  ;;  %v22759_v48 = vld [vmem:[#allocation29_spill] sm:$0xff]  ;;  %v22763_v8 = vld [vmem:[#allocation16_spill] sm:$0xff] }
 0x610   : > { %8594 = vmatpush.bf16.msra.mxu2 %v12813_v62  ;;  %v22753_v62 = vld [vmem:[#allocation44_spill] sm:$0xff] }
 0x611   : > { %8480 = vmatmul.bf16.gmra.mxu3 %v22751_v9  ;;  %v22758_v9 = vld [vmem:[#allocation9_spill] sm:$0xff] }
 0x612   : > { %v8271_v53 = vpop.f32.mrf.mxu2 }
 0x613   : > { %v8272_v34 = vadd.f32 %v8271_v53, %v8231_v20  ;;  %v8232_v18 = vpop.f32.mrf.mxu1  ;;  %v12234_v20 = vld [vmem:[%s22448_s4 + $0x104] sm:$0xf0] }
 0x614   : > { %v8312_v7 = vpop.f32.mrf.mxu3  ;;  %v8191_v54 = vpop.f32.mrf.mxu0  ;;  %v12237_v63 = vor.u32 %v14728_v26, %v12234_v20  ;;  %v22755_v20 = vld [vmem:[#allocation11_spill] sm:$0xff] }
 0x615   : > { %v19375_v19 = vadd.f32 %v8312_v7, %v8272_v34  ;;  %v8233_v52 = vadd.f32 %v8232_v18, %v8191_v54  ;;  %v14800_v18 = vld [vmem:[%s22448_s4 + $0x324] sm:$0xf] }
 0x616   : > { %8512 = vmatpush.bf16.msra.mxu0 %v12237_v63  ;;  %v12525_v26 = vor.u32 %v14800_v18, %v12522_v23  ;;  %v14719_v18 = vld [vmem:[%s22448_s4 + $0x9c] sm:$0xf] }
 0x618   : > { %8553 = vmatpush.bf16.msra.mxu1 %v12525_v26  ;;  %v14935_v26 = vld [vmem:[%s22448_s4 + $0x75c] sm:$0xf] }
 0x61a   : > { %v8273_v42 = vpop.f32.mrf.mxu2 }
 0x61b   : > { %v8274_v51 = vadd.f32 %v8273_v42, %v8233_v52  ;;  %v8235_v34 = vpop.f32.mrf.mxu1  ;;  %v22754_v52 = vld [vmem:[#allocation10_spill] sm:$0xff] }
 0x61c   : > { %v8314_v24 = vpop.f32.mrf.mxu3  ;;  %v8194_v53 = vpop.f32.mrf.mxu0 }
 0x61d   : > { %v19395_v7 = vadd.f32 %v8314_v24, %v8274_v51  ;;  %v8236_v54 = vadd.f32 %v8235_v34, %v8194_v53  ;;  %v14863_v53 = vld [vmem:[%s22448_s4 + $0x51c] sm:$0xf]  ;;  %v12774_v34 = vld [vmem:[%s22448_s4 + $0x53c] sm:$0xf0] }
 0x61e   : > { %8403 = vmatmul.bf16.gmra.mxu1 %v22753_v62  ;;  %v12777_v23 = vor.u32 %v14863_v53, %v12774_v34 }
 0x61f   : > { %8362 = vmatmul.bf16.gmra.mxu0 %v22752_v27  ;;  %8444 = vmatmul.bf16.gmra.mxu2 %v22754_v52 }
 0x620   : > { %8595 = vmatpush.bf16.msra.mxu2 %v12777_v23 }
 0x621   : > { %8485 = vmatmul.bf16.gmra.mxu3 %v22755_v20 }
 0x622   : > { %v8276_v46 = vpop.f32.mrf.mxu2 }
 0x623   : > { %v8277_v47 = vadd.f32 %v8276_v46, %v8236_v54  ;;  %v8237_v42 = vpop.f32.mrf.mxu1  ;;  %v12198_v54 = vld [vmem:[%s22448_s4 + $0xbc] sm:$0xf0] }
 0x624   : > { %v8317_v63 = vpop.f32.mrf.mxu3  ;;  %v8196_v61 = vpop.f32.mrf.mxu0  ;;  %v13062_v46 = vld [vmem:[%s22448_s4 + $0x77c] sm:$0xf0] }
 0x625   : > { %v19407_v51 = vadd.f32 %v8317_v63, %v8277_v47  ;;  %v8238_v24 = vadd.f32 %v8237_v42, %v8196_v61  ;;  %v12201_v47 = vor.u32 %v14719_v18, %v12198_v54  ;;  %v13065_v63 = vor.u32 %v14935_v26, %v13062_v46  ;;  %v14791_v61 = vld [vmem:[%s22448_s4 + $0x2dc] sm:$0xf]  ;;  %v12486_v42 = vld [vmem:[%s22448_s4 + $0x2fc] sm:$0xf0] }
 0x626   : > { %v12489_v53 = vor.u32 %v14791_v61, %v12486_v42  ;;  %v22756_v26 = vld [vmem:[#allocation45_spill] sm:$0xff]  ;;  %v22757_v46 = vld [vmem:[#allocation46_spill] sm:$0xff] }
 0x627   : > { %8513 = vmatpush.bf16.msra.mxu0 %v12201_v47  ;;  %8636 = vmatpush.bf16.msra.mxu3 %v13065_v63 }
 0x628   : > { %8554 = vmatpush.bf16.msra.mxu1 %v12489_v53 }
 0x62a   : > { %v8278_v34 = vpop.f32.mrf.mxu2 }
 0x62b   : > { %v8279_v20 = vadd.f32 %v8278_v34, %v8238_v24  ;;  %v8240_v27 = vpop.f32.mrf.mxu1  ;;  %v12162_v34 = vld [vmem:[%s22448_s4 + $0x74] sm:$0xf0] }
 0x62c   : > { %v8319_v52 = vpop.f32.mrf.mxu3  ;;  %v8199_v62 = vpop.f32.mrf.mxu0 }
 0x62d   : > { %v19433_v18 = vadd.f32 %v8319_v52, %v8279_v20  ;;  %v8241_v54 = vadd.f32 %v8240_v27, %v8199_v62  ;;  %v14854_v27 = vld [vmem:[%s22448_s4 + $0x4d4] sm:$0xf]  ;;  %v12738_v62 = vld [vmem:[%s22448_s4 + $0x4f4] sm:$0xf0] }
 0x62e   : > { %8408 = vmatmul.bf16.gmra.mxu1 %v22757_v46  ;;  %v14710_v52 = vld [vmem:[%s22448_s4 + $0x54] sm:$0xf]  ;;  %v12741_v20 = vor.u32 %v14854_v27, %v12738_v62 }
 0x62f   : > { %8367 = vmatmul.bf16.gmra.mxu0 %v22756_v26  ;;  %8449 = vmatmul.bf16.gmra.mxu2 %v22758_v9 }
 0x630   : > { %8596 = vmatpush.bf16.msra.mxu2 %v12741_v20  ;;  %v14845_v20 = vld [vmem:[%s22448_s4 + $0x48c] sm:$0xf] }
 0x631   : > { %8490 = vmatmul.bf16.gmra.mxu3 %v22759_v48 }
 0x632   : > { %v8281_v23 = vpop.f32.mrf.mxu2 }
 0x633   : > { %v8282_v47 = vadd.f32 %v8281_v23, %v8241_v54  ;;  %v8242_v42 = vpop.f32.mrf.mxu1  ;;  %v14926_v54 = vld [vmem:[%s22448_s4 + $0x714] sm:$0xf]  ;;  %v13026_v23 = vld [vmem:[%s22448_s4 + $0x734] sm:$0xf0] }
 0x634   : > { %v8322_v63 = vpop.f32.mrf.mxu3  ;;  %v8201_v61 = vpop.f32.mrf.mxu0 }
 0x635   : > { %v19439_v24 = vadd.f32 %v8322_v63, %v8282_v47  ;;  %v8243_v53 = vadd.f32 %v8242_v42, %v8201_v61  ;;  %v12165_v47 = vor.u32 %v14710_v52, %v12162_v34  ;;  %v13029_v63 = vor.u32 %v14926_v54, %v13026_v23  ;;  %v14782_v61 = vld [vmem:[%s22448_s4 + $0x294] sm:$0xf]  ;;  %v12450_v42 = vld [vmem:[%s22448_s4 + $0x2b4] sm:$0xf0]  ;;  %v22761_v23 = vld [vmem:[#allocation6_spill] sm:$0xff] }
 0x636   : > { %v12453_v27 = vor.u32 %v14782_v61, %v12450_v42  ;;  %v22760_v54 = vld [vmem:[#allocation5_spill] sm:$0xff] }
 0x637   : > { %8514 = vmatpush.bf16.msra.mxu0 %v12165_v47  ;;  %8637 = vmatpush.bf16.msra.mxu3 %v13029_v63 }
 0x638   : > { %8555 = vmatpush.bf16.msra.mxu1 %v12453_v27  ;;  %v14701_v27 = vld [vmem:[%s22448_s4 + $0xc] sm:$0xf] }
 0x63a   : > { %v8283_v62 = vpop.f32.mrf.mxu2 }
 0x63b   : > { %v8284_v48 = vadd.f32 %v8283_v62, %v8243_v53  ;;  %v8245_v26 = vpop.f32.mrf.mxu1  ;;  %v12702_v53 = vld [vmem:[%s22448_s4 + $0x4ac] sm:$0xf0] }
 0x63c   : > { %v8324_v9 = vpop.f32.mrf.mxu3  ;;  %v8204_v46 = vpop.f32.mrf.mxu0  ;;  %v12705_v47 = vor.u32 %v14845_v20, %v12702_v53  ;;  %v12126_v62 = vld [vmem:[%s22448_s4 + $0x2c] sm:$0xf0]  ;;  %v14917_v20 = vld [vmem:[%s22448_s4 + $0x6cc] sm:$0xf] }
 0x63d   : > { %v19465_v52 = vadd.f32 %v8324_v9, %v8284_v48  ;;  %v8246_v34 = vadd.f32 %v8245_v26, %v8204_v46  ;;  %v12990_v53 = vld [vmem:[%s22448_s4 + $0x6ec] sm:$0xf0] }
 0x63e   : > { %8413 = vmatmul.bf16.gmra.mxu1 %v22761_v23  ;;  %8597 = vmatpush.bf16.msra.mxu2 %v12705_v47  ;;  %v14773_v47 = vld [vmem:[%s22448_s4 + $0x24c] sm:$0xf] }
 0x63f   : > { %8372 = vmatmul.bf16.gmra.mxu0 %v22760_v54  ;;  %8454 = vmatmul.bf16.gmra.mxu2 %v22762_v49  ;;  %v22764_v54 = vld [vmem:[#allocation7_spill] sm:$0xff] }
 0x641   : > { %8495 = vmatmul.bf16.gmra.mxu3 %v22763_v8 }
 0x642   : > { %v8286_v48 = vpop.f32.mrf.mxu2 }
 0x643   : > { %v8287_v9 = vadd.f32 %v8286_v48, %v8246_v34  ;;  %v8247_v63 = vpop.f32.mrf.mxu1  ;;  %v12129_v34 = vor.u32 %v14701_v27, %v12126_v62  ;;  %v12414_v48 = vld [vmem:[%s22448_s4 + $0x26c] sm:$0xf0] }
 0x644   : > { %v8327_v26 = vpop.f32.mrf.mxu3  ;;  %v8206_v46 = vpop.f32.mrf.mxu0 }
 0x645   : > { %v19477_v61 = vadd.f32 %v8327_v26, %v8287_v9  ;;  %v8248_v42 = vadd.f32 %v8247_v63, %v8206_v46  ;;  %v12993_v9 = vor.u32 %v14917_v20, %v12990_v53  ;;  %v12417_v26 = vor.u32 %v14773_v47, %v12414_v48  ;;  %8515 = vmatpush.bf16.msra.mxu0 %v12129_v34  ;;  %v15196_v20 = vld [vmem:[%s22448_s4 + $0xf84] sm:$0xf]  ;;  %v13530_v53 = vld [vmem:[%s22448_s4 + $0xb24] sm:$0xf0] }
 0x646   : > { %v15268_v47 = vld [vmem:[%s22448_s4 + $0x11c4] sm:$0xf]  ;;  %v14394_v48 = vld [vmem:[%s22448_s4 + $0x11e4] sm:$0xf0] }
 0x647   : > { %8638 = vmatpush.bf16.msra.mxu3 %v12993_v9  ;;  %8556 = vmatpush.bf16.msra.mxu1 %v12417_v26 }
 0x64a   : > { %v8288_v46 = vpop.f32.mrf.mxu2 }
 0x64b   : > { %v8289_v63 = vadd.f32 %v8288_v46, %v8248_v42  ;;  %v8250_v8 = vpop.f32.mrf.mxu1  ;;  %v14106_v42 = vld [vmem:[%s22448_s4 + $0xfa4] sm:$0xf0]  ;;  %v14397_v46 = vor.u32 %v15268_v47, %v14394_v48 }
 0x64c   : > { %v8329_v27 = vpop.f32.mrf.mxu3  ;;  %v8209_v62 = vpop.f32.mrf.mxu0  ;;  %v14109_v34 = vor.u32 %v15196_v20, %v14106_v42  ;;  %v15124_v20 = vld [vmem:[%s22448_s4 + $0xd44] sm:$0xf]  ;;  %v13818_v42 = vld [vmem:[%s22448_s4 + $0xd64] sm:$0xf0] }
 0x64d   : > { %v19497_v49 = vadd.f32 %v8329_v27, %v8289_v63  ;;  %v8251_v23 = vadd.f32 %v8250_v8, %v8209_v62  ;;  %v15052_v8 = vld [vmem:[%s22448_s4 + $0xb04] sm:$0xf]  ;;  %8795 = vmatpush.bf16.msrb.mxu3 %v14397_v46  ;;  %v14070_v46 = vld [vmem:[%s22448_s4 + $0xf5c] sm:$0xf0] }
 0x64e   : > { %8418 = vmatmul.bf16.gmra.mxu1 %v22765_v2  ;;  %v13533_v26 = vor.u32 %v15052_v8, %v13530_v53  ;;  %8754 = vmatpush.bf16.msrb.mxu2 %v14109_v34 }
 0x64f   : > { %8377 = vmatmul.bf16.gmra.mxu0 %v22764_v54  ;;  %8459 = vmatmul.bf16.gmra.mxu2 %v22766_v12  ;;  %v13821_v12 = vor.u32 %v15124_v20, %v13818_v42  ;;  %v15259_v20 = vld [vmem:[%s22448_s4 + $0x117c] sm:$0xf] }
 0x650   : > { %8672 = vmatpush.bf16.msrb.mxu0 %v13533_v26  ;;  %v15187_v26 = vld [vmem:[%s22448_s4 + $0xf3c] sm:$0xf] }
 0x651   : > { %8500 = vmatmul.bf16.gmra.mxu3 %v22767_v29  ;;  %8713 = vmatpush.bf16.msrb.mxu1 %v13821_v12  ;;  %v22768_v12 = vld [vmem:[#allocation19_spill] sm:$0xff] }
 0x652   : > { %v8291_v9 = vpop.f32.mrf.mxu2 }
 0x653   : > { %v8292_v63 = vadd.f32 %v8291_v9, %v8251_v23  ;;  %v8252_v29 = vpop.f32.mrf.mxu1 }
 0x654   : > { %v8332_v27 = vpop.f32.mrf.mxu3  ;;  %v8211_v62 = vpop.f32.mrf.mxu0 }
 0x655   : > { %v19527_v2 = vadd.f32 %v8332_v27, %v8292_v63  ;;  %v8253_v8 = vadd.f32 %v8252_v29, %v8211_v62  ;;  %v14073_v29 = vor.u32 %v15187_v26, %v14070_v46  ;;  %v22769_v63 = vld [vmem:[#allocation34_spill] sm:$0xff]  ;;  %v15043_v27 = vld [vmem:[%s22448_s4 + $0xabc] sm:$0xf] }
 0x656   : > { %v13494_v62 = vld [vmem:[%s22448_s4 + $0xadc] sm:$0xf0] }
 0x657   : > { %8755 = vmatpush.bf16.msrb.mxu2 %v14073_v29  ;;  %v13497_v42 = vor.u32 %v15043_v27, %v13494_v62 }
 0x659   : > { %8673 = vmatpush.bf16.msrb.mxu0 %v13497_v42 }
 0x65a   : > { %v8293_v23 = vpop.f32.mrf.mxu2 }
 0x65b   : > { %v8294_v53 = vadd.f32 %v8293_v23, %v8253_v8  ;;  %v8255_v48 = vpop.f32.mrf.mxu1  ;;  %v14358_v8 = vld [vmem:[%s22448_s4 + $0x119c] sm:$0xf0]  ;;  %v15115_v23 = vld [vmem:[%s22448_s4 + $0xcfc] sm:$0xf] }
 0x65c   : > { %v8334_v47 = vpop.f32.mrf.mxu3  ;;  %v8214_v34 = vpop.f32.mrf.mxu0 }
 0x65d   : > { %v19529_v9 = vadd.f32 %v8334_v47, %v8294_v53  ;;  %v8256_v54 = vadd.f32 %v8255_v48, %v8214_v34  ;;  %v13782_v53 = vld [vmem:[%s22448_s4 + $0xd1c] sm:$0xf0]  ;;  %v14361_v34 = vor.u32 %v15259_v20, %v14358_v8  ;;  %v14034_v20 = vld [vmem:[%s22448_s4 + $0xf14] sm:$0xf0] }
 0x65e   : > { %8422 = vmatmul.bf16.gmra.mxu1 %v18503_v41  ;;  %v13785_v48 = vor.u32 %v15115_v23, %v13782_v53  ;;  %v13458_v8 = vld [vmem:[%s22448_s4 + $0xa94] sm:$0xf0]  ;;  %v15250_v23 = vld [vmem:[%s22448_s4 + $0x1134] sm:$0xf] }
 0x65f   : > { %8381 = vmatmul.bf16.gmra.mxu0 %v18501_v60  ;;  %8463 = vmatmul.bf16.gmra.mxu2 %v22768_v12  ;;  %v14322_v53 = vld [vmem:[%s22448_s4 + $0x1154] sm:$0xf0] }
 0x660   : > { %8796 = vmatpush.bf16.msrb.mxu3 %v14361_v34  ;;  %8714 = vmatpush.bf16.msrb.mxu1 %v13785_v48  ;;  %v14325_v48 = vor.u32 %v15250_v23, %v14322_v53  ;;  %v15025_v53 = vld [vmem:[%s22448_s4 + $0xa2c] sm:$0xf] }
 0x661   : > { %8504 = vmatmul.bf16.gmra.mxu3 %v22769_v63 }
 0x662   : > { %v8296_v47 = vpop.f32.mrf.mxu2 }
 0x663   : > { %v8297_v26 = vadd.f32 %v8296_v47, %v8256_v54  ;;  %v8257_v29 = vpop.f32.mrf.mxu1 }
 0x664   : > { %v8337_v46 = vpop.f32.mrf.mxu3  ;;  %v8216_v63 = vpop.f32.mrf.mxu0  ;;  %8797 = vmatpush.bf16.msrb.mxu3 %v14325_v48 }
 0x665   : > { %v19559_v27 = vadd.f32 %v8337_v46, %v8297_v26  ;;  %v15178_v63 = vld [vmem:[%s22448_s4 + $0xef4] sm:$0xf]  ;;  %v13746_v46 = vld [vmem:[%s22448_s4 + $0xcd4] sm:$0xf0] }
 0x666   : > { %v14037_v42 = vor.u32 %v15178_v63, %v14034_v20  ;;  %v15106_v26 = vld [vmem:[%s22448_s4 + $0xcb4] sm:$0xf]  ;;  %v13998_v63 = vld [vmem:[%s22448_s4 + $0xecc] sm:$0xf0] }
 0x667   : > { %v13749_v29 = vor.u32 %v15106_v26, %v13746_v46 }
 0x668   : > { %8756 = vmatpush.bf16.msrb.mxu2 %v14037_v42 }
 0x669   : > { %8715 = vmatpush.bf16.msrb.mxu1 %v13749_v29  ;;  %v14286_v29 = vld [vmem:[%s22448_s4 + $0x110c] sm:$0xf0] }
 0x66a   : > { %v8298_v62 = vpop.f32.mrf.mxu2 }
 0x66b   : > { %v8259_v60 = vpop.f32.mrf.mxu1 }
 0x66c   : > { %v8339_v12 = vpop.f32.mrf.mxu3  ;;  %v8218_v41 = vpop.f32.mrf.mxu0  ;;  %v15034_v60 = vld [vmem:[%s22448_s4 + $0xa74] sm:$0xf] }
 0x66d   : > { %v13461_v34 = vor.u32 %v15034_v60, %v13458_v8 }
 0x66e   : > { %8557 = vmatmul.bf16.vlgmr.msra.gmra.mxu1 %v22659_v25 }
 0x66f   : > { %8516 = vmatmul.bf16.vlgmr.msra.gmra.mxu0 %v22658_v40  ;;  %8598 = vmatmul.bf16.vlgmr.msra.gmra.mxu2 %v22660_v50 }
 0x670   : > { %8674 = vmatpush.bf16.msrb.mxu0 %v13461_v34 }
 0x671   : > { %8639 = vmatmul.bf16.vlgmr.msra.gmra.mxu3 %v22661_v56 }
 0x672   : > { %v8300_v54 = vpop.f32.mrf.mxu2 }
 0x673   : > { %v8260_v47 = vpop.f32.mrf.mxu1  ;;  %v15169_v54 = vld [vmem:[%s22448_s4 + $0xeac] sm:$0xf] }
 0x674   : > { %v8341_v41 = vpop.f32.mrf.mxu3  ;;  %v8219_v12 = vpop.f32.mrf.mxu0  ;;  %v15241_v47 = vld [vmem:[%s22448_s4 + $0x10ec] sm:$0xf] }
 0x675   : > { %v14001_v41 = vor.u32 %v15169_v54, %v13998_v63  ;;  %v13710_v54 = vld [vmem:[%s22448_s4 + $0xc8c] sm:$0xf0] }
 0x677   : > { %8757 = vmatpush.bf16.msrb.mxu2 %v14001_v41 }
 0x67a   : > { %v8301_v62 = vpop.f32.mrf.mxu2 }
 0x67b   : > { %v8394_v8 = vpop.f32.mrf.mxu1  ;;  %v15097_v62 = vld [vmem:[%s22448_s4 + $0xc6c] sm:$0xf] }
 0x67c   : > { %v8342_v20 = vpop.f32.mrf.mxu3  ;;  %v8353_v60 = vpop.f32.mrf.mxu0  ;;  %v13713_v41 = vor.u32 %v15097_v62, %v13710_v54 }
 0x67d   : > { %v8354_v12 = vadd.f32 %v8353_v60, %v19375_v19  ;;  %v13422_v19 = vld [vmem:[%s22448_s4 + $0xa4c] sm:$0xf0]  ;;  %v14289_v60 = vor.u32 %v15241_v47, %v14286_v29  ;;  %v14250_v29 = vld [vmem:[%s22448_s4 + $0x10c4] sm:$0xf0] }
 0x67e   : > { %8561 = vmatmul.bf16.gmra.mxu1 %v22663_v38  ;;  %v13425_v46 = vor.u32 %v15025_v53, %v13422_v19  ;;  %v13962_v53 = vld [vmem:[%s22448_s4 + $0xe84] sm:$0xf0] }
 0x67f   : > { %v8395_v42 = vadd.f32 %v8394_v8, %v8354_v12  ;;  %8520 = vmatmul.bf16.gmra.mxu0 %v22662_v1  ;;  %8602 = vmatmul.bf16.gmra.mxu2 %v22664_v39 }
 0x680   : > { %8675 = vmatpush.bf16.msrb.mxu0 %v13425_v46  ;;  %8798 = vmatpush.bf16.msrb.mxu3 %v14289_v60  ;;  %v15232_v46 = vld [vmem:[%s22448_s4 + $0x10a4] sm:$0xf] }
 0x681   : > { %8643 = vmatmul.bf16.gmra.mxu3 %v22665_v10  ;;  %8716 = vmatpush.bf16.msrb.mxu1 %v13713_v41 }
 0x682   : > { %v8435_v23 = vpop.f32.mrf.mxu2 }
 0x683   : > { %v8436_v34 = vadd.f32 %v8435_v23, %v8395_v42  ;;  %v8396_v20 = vpop.f32.mrf.mxu1  ;;  %v15160_v23 = vld [vmem:[%s22448_s4 + $0xe64] sm:$0xf] }
 0x684   : > { %v8476_v48 = vpop.f32.mrf.mxu3  ;;  %v8355_v26 = vpop.f32.mrf.mxu0 }
 0x685   : > { %v8356_v63 = vadd.f32 %v8355_v26, %v19395_v7  ;;  %v8477_v12 = vadd.f32 %v8476_v48, %v8436_v34  ;;  %v15016_v7 = vld [vmem:[%s22448_s4 + $0x9e4] sm:$0xf]  ;;  %v13965_v48 = vor.u32 %v15160_v23, %v13962_v53  ;;  %v13386_v26 = vld [vmem:[%s22448_s4 + $0xa04] sm:$0xf0] }
 0x687   : > { %v8397_v8 = vadd.f32 %v8396_v20, %v8356_v63  ;;  %v13389_v63 = vor.u32 %v15016_v7, %v13386_v26  ;;  %v14253_v20 = vor.u32 %v15232_v46, %v14250_v29  ;;  %8758 = vmatpush.bf16.msrb.mxu2 %v13965_v48  ;;  %v15088_v7 = vld [vmem:[%s22448_s4 + $0xc24] sm:$0xf] }
 0x689   : > { %8799 = vmatpush.bf16.msrb.mxu3 %v14253_v20  ;;  %8676 = vmatpush.bf16.msrb.mxu0 %v13389_v63 }
 0x68a   : > { %v8437_v42 = vpop.f32.mrf.mxu2 }
 0x68b   : > { %v8438_v19 = vadd.f32 %v8437_v42, %v8397_v8  ;;  %v8399_v54 = vpop.f32.mrf.mxu1  ;;  %v10555_v8 = vrot.slane %v8477_v12, 2  ;;  %v13674_v12 = vld [vmem:[%s22448_s4 + $0xc44] sm:$0xf0] }
 0x68c   : > { %v8478_v47 = vpop.f32.mrf.mxu3  ;;  %v8358_v34 = vpop.f32.mrf.mxu0  ;;  %v13677_v48 = vor.u32 %v15088_v7, %v13674_v12  ;;  %v15223_v7 = vld [vmem:[%s22448_s4 + $0x105c] sm:$0xf]  ;;  %v14214_v12 = vld [vmem:[%s22448_s4 + $0x107c] sm:$0xf0] }
 0x68d   : > { %v8359_v62 = vadd.f32 %v8358_v34, %v19407_v51  ;;  %v8479_v60 = vadd.f32 %v8478_v47, %v8438_v19 }
 0x68e   : > { %8566 = vmatmul.bf16.gmra.mxu1 %v22668_v15 }
 0x68f   : > { %v8400_v41 = vadd.f32 %v8399_v54, %v8359_v62  ;;  %8525 = vmatmul.bf16.gmra.mxu0 %v22667_v11  ;;  %v10556_v42 = vrot.slane %v8479_v60, 2  ;;  %8607 = vmatmul.bf16.gmra.mxu2 %v22669_v57  ;;  %v15151_v60 = vld [vmem:[%s22448_s4 + $0xe1c] sm:$0xf] }
 0x690   : > { %8717 = vmatpush.bf16.msrb.mxu1 %v13677_v48  ;;  %v14217_v48 = vor.u32 %v15223_v7, %v14214_v12 }
 0x691   : > { %8648 = vmatmul.bf16.gmra.mxu3 %v22670_v45  ;;  %v10557_v51 = vsel %vm10554_vm1, %v10555_v8, %v10556_v42 }
 0x692   : > { %v19644_v23 = vadd.f32 %v10557_v51, %v19122_v4  ;;  %v8440_v53 = vpop.f32.mrf.mxu2  ;;  %8800 = vmatpush.bf16.msrb.mxu3 %v14217_v48 }
 0x693   : > { %v8441_v19 = vadd.f32 %v8440_v53, %v8400_v41  ;;  %v8401_v46 = vpop.f32.mrf.mxu1  ;;  %v13926_v41 = vld [vmem:[%s22448_s4 + $0xe3c] sm:$0xf0] }
 0x694   : > { %v8481_v47 = vpop.f32.mrf.mxu3  ;;  %v8360_v34 = vpop.f32.mrf.mxu0 }
 0x695   : > { %v8361_v26 = vadd.f32 %v8360_v34, %v19433_v18  ;;  %v8482_v29 = vadd.f32 %v8481_v47, %v8441_v19  ;;  %v15007_v18 = vld [vmem:[%s22448_s4 + $0x99c] sm:$0xf] }
 0x697   : > { %v8402_v4 = vadd.f32 %v8401_v46, %v8361_v26  ;;  %v10558_v62 = vrot.slane %v8482_v29, 2  ;;  %v15079_v26 = vld [vmem:[%s22448_s4 + $0xbdc] sm:$0xf]  ;;  %v13638_v46 = vld [vmem:[%s22448_s4 + $0xbfc] sm:$0xf0] }
 0x699   : > { %v10559_v54 = vsel %vm10554_vm1, %v10556_v42, %v10558_v62  ;;  %v13929_v42 = vor.u32 %v15151_v60, %v13926_v41 }
 0x69a   : > { %v19655_v63 = vadd.f32 %v10559_v54, %v19134_v35  ;;  %v8442_v20 = vpop.f32.mrf.mxu2  ;;  %v13350_v35 = vld [vmem:[%s22448_s4 + $0x9bc] sm:$0xf0] }
 0x69b   : > { %v8443_v8 = vadd.f32 %v8442_v20, %v8402_v4  ;;  %v8404_v47 = vpop.f32.mrf.mxu1  ;;  %v13353_v34 = vor.u32 %v15007_v18, %v13350_v35  ;;  %8759 = vmatpush.bf16.msrb.mxu2 %v13929_v42  ;;  %v13641_v4 = vor.u32 %v15079_v26, %v13638_v46 }
 0x69c   : > { %v8483_v51 = vpop.f32.mrf.mxu3  ;;  %v8363_v53 = vpop.f32.mrf.mxu0 }
 0x69d   : > { %v8364_v19 = vadd.f32 %v8363_v53, %v19439_v24  ;;  %v8484_v29 = vadd.f32 %v8483_v51, %v8443_v8  ;;  %8677 = vmatpush.bf16.msrb.mxu0 %v13353_v34  ;;  %8718 = vmatpush.bf16.msrb.mxu1 %v13641_v4  ;;  %v13890_v34 = vld [vmem:[%s22448_s4 + $0xdf4] sm:$0xf0]  ;;  %v15214_v4 = vld [vmem:[%s22448_s4 + $0x1014] sm:$0xf] }
 0x69e   : > { %8571 = vmatmul.bf16.gmra.mxu1 %v22674_v17 }
 0x69f   : > { %v8405_v54 = vadd.f32 %v8404_v47, %v8364_v19  ;;  %8530 = vmatmul.bf16.gmra.mxu0 %v22673_v21  ;;  %v10560_v20 = vrot.slane %v8484_v29, 2  ;;  %8612 = vmatmul.bf16.gmra.mxu2 %v22675_v43 }
 0x6a1   : > { %8653 = vmatmul.bf16.gmra.mxu3 %v22676_v30  ;;  %v10561_v24 = vsel %vm10554_vm1, %v10558_v62, %v10560_v20 }
 0x6a2   : > { %v19688_v60 = vadd.f32 %v10561_v24, %v19168_v16  ;;  %v8445_v41 = vpop.f32.mrf.mxu2  ;;  %v15142_v16 = vld [vmem:[%s22448_s4 + $0xdd4] sm:$0xf] }
 0x6a3   : > { %v8446_v18 = vadd.f32 %v8445_v41, %v8405_v54  ;;  %v8406_v42 = vpop.f32.mrf.mxu1  ;;  %v13893_v29 = vor.u32 %v15142_v16, %v13890_v34  ;;  %v14178_v54 = vld [vmem:[%s22448_s4 + $0x1034] sm:$0xf0]  ;;  %v15133_v16 = vld [vmem:[%s22448_s4 + $0xd8c] sm:$0xf]  ;;  %v13854_v34 = vld [vmem:[%s22448_s4 + $0xdac] sm:$0xf0] }
 0x6a4   : > { %v8486_v8 = vpop.f32.mrf.mxu3  ;;  %v8365_v51 = vpop.f32.mrf.mxu0 }
 0x6a5   : > { %v8366_v53 = vadd.f32 %v8365_v51, %v19465_v52  ;;  %v8487_v35 = vadd.f32 %v8486_v8, %v8446_v18  ;;  %v14998_v52 = vld [vmem:[%s22448_s4 + $0x954] sm:$0xf]  ;;  %v14181_v18 = vor.u32 %v15214_v4, %v14178_v54  ;;  %v13602_v51 = vld [vmem:[%s22448_s4 + $0xbb4] sm:$0xf0]  ;;  %8760 = vmatpush.bf16.msrb.mxu2 %v13893_v29 }
 0x6a6   : > { %v15070_v8 = vld [vmem:[%s22448_s4 + $0xb94] sm:$0xf] }
 0x6a7   : > { %v8407_v7 = vadd.f32 %v8406_v42, %v8366_v53  ;;  %v10562_v12 = vrot.slane %v8487_v35, 2  ;;  %v13605_v42 = vor.u32 %v15070_v8, %v13602_v51  ;;  %8801 = vmatpush.bf16.msrb.mxu3 %v14181_v18  ;;  %v13278_v18 = vld [vmem:[%s22448_s4 + $0x92c] sm:$0xf0] }
 0x6a9   : > { %v10563_v19 = vsel %vm10554_vm1, %v10560_v20, %v10562_v12  ;;  %8719 = vmatpush.bf16.msrb.mxu1 %v13605_v42 }
 0x6aa   : > { %v19693_v47 = vadd.f32 %v10563_v19, %v19174_v13  ;;  %v8447_v62 = vpop.f32.mrf.mxu2  ;;  %v13314_v13 = vld [vmem:[%s22448_s4 + $0x974] sm:$0xf0] }
 0x6ab   : > { %v8448_v48 = vadd.f32 %v8447_v62, %v8407_v7  ;;  %v8409_v24 = vpop.f32.mrf.mxu1  ;;  %v13317_v41 = vor.u32 %v14998_v52, %v13314_v13 }
 0x6ac   : > { %v8488_v26 = vpop.f32.mrf.mxu3  ;;  %v8368_v46 = vpop.f32.mrf.mxu0 }
 0x6ad   : > { %v8369_v20 = vadd.f32 %v8368_v46, %v19477_v61  ;;  %v8489_v53 = vadd.f32 %v8488_v26, %v8448_v48  ;;  %8678 = vmatpush.bf16.msrb.mxu0 %v13317_v41  ;;  %v13857_v46 = vor.u32 %v15133_v16, %v13854_v34  ;;  %v14989_v41 = vld [vmem:[%s22448_s4 + $0x90c] sm:$0xf] }
 0x6ae   : > { %8576 = vmatmul.bf16.gmra.mxu1 %v22738_v55  ;;  %v13281_v42 = vor.u32 %v14989_v41, %v13278_v18 }
 0x6af   : > { %v8410_v35 = vadd.f32 %v8409_v24, %v8369_v20  ;;  %8535 = vmatmul.bf16.gmra.mxu0 %v22680_v59  ;;  %v10564_v7 = vrot.slane %v8489_v53, 2  ;;  %8617 = vmatmul.bf16.gmra.mxu2 %v22739_v36 }
 0x6b0   : > { %8761 = vmatpush.bf16.msrb.mxu2 %v13857_v46  ;;  %v14913_v46 = vld [vmem:[%s22448_s4 + $0x6a8] sm:$0xf0] }
 0x6b1   : > { %8658 = vmatmul.bf16.gmra.mxu3 %v22741_v22  ;;  %v10565_v61 = vsel %vm10554_vm1, %v10562_v12, %v10564_v7  ;;  %8679 = vmatpush.bf16.msrb.mxu0 %v13281_v42  ;;  %v12672_v42 = vld [vmem:[%s22448_s4 + $0x448] sm:$0xf] }
 0x6b2   : > { %v19726_v19 = vadd.f32 %v10565_v61, %v19208_v28  ;;  %v8450_v62 = vpop.f32.mrf.mxu2 }
 0x6b3   : > { %v8451_v52 = vadd.f32 %v8450_v62, %v8410_v35  ;;  %v8411_v12 = vpop.f32.mrf.mxu1  ;;  %v15061_v35 = vld [vmem:[%s22448_s4 + $0xb4c] sm:$0xf] }
 0x6b4   : > { %v8491_v48 = vpop.f32.mrf.mxu3  ;;  %v8370_v26 = vpop.f32.mrf.mxu0 }
 0x6b5   : > { %v8371_v29 = vadd.f32 %v8370_v26, %v19497_v49  ;;  %v8492_v13 = vadd.f32 %v8491_v48, %v8451_v52  ;;  %v15205_v49 = vld [vmem:[%s22448_s4 + $0xfcc] sm:$0xf] }
 0x6b7   : > { %v8412_v28 = vadd.f32 %v8411_v12, %v8371_v29  ;;  %v10566_v4 = vrot.slane %v8492_v13, 2  ;;  %v12384_v29 = vld [vmem:[%s22448_s4 + $0x208] sm:$0xf] }
 0x6b9   : > { %v10567_v54 = vsel %vm10554_vm1, %v10564_v7, %v10566_v4  ;;  %v13566_v7 = vld [vmem:[%s22448_s4 + $0xb6c] sm:$0xf0] }
 0x6ba   : > { %v19737_v20 = vadd.f32 %v10567_v54, %v19220_v0  ;;  %v8452_v24 = vpop.f32.mrf.mxu2  ;;  %v14142_v0 = vld [vmem:[%s22448_s4 + $0xfec] sm:$0xf0]  ;;  %v13569_v34 = vor.u32 %v15061_v35, %v13566_v7  ;;  %v13248_v54 = vld [vmem:[%s22448_s4 + $0x8c8] sm:$0xf] }
 0x6bb   : > { %v8453_v8 = vadd.f32 %v8452_v24, %v8412_v28  ;;  %v8414_v62 = vpop.f32.mrf.mxu1  ;;  %v14145_v16 = vor.u32 %v15205_v49, %v14142_v0  ;;  %v14769_v28 = vld [vmem:[%s22448_s4 + $0x228] sm:$0xf0] }
 0x6bc   : > { %v8493_v51 = vpop.f32.mrf.mxu3  ;;  %v8373_v53 = vpop.f32.mrf.mxu0  ;;  %8720 = vmatpush.bf16.msrb.mxu1 %v13569_v34  ;;  %v14985_v24 = vld [vmem:[%s22448_s4 + $0x8e8] sm:$0xf0]  ;;  %v12385_v49 = vor.u32 %v14769_v28, %v12384_v29  ;;  %v14904_v28 = vld [vmem:[%s22448_s4 + $0x660] sm:$0xf0] }
 0x6bd   : > { %v8374_v61 = vadd.f32 %v8373_v53, %v19527_v2  ;;  %v8494_v52 = vadd.f32 %v8493_v51, %v8453_v8  ;;  %8802 = vmatpush.bf16.msrb.mxu3 %v14145_v16  ;;  %v12960_v2 = vld [vmem:[%s22448_s4 + $0x688] sm:$0xf]  ;;  %v13249_v8 = vor.u32 %v14985_v24, %v13248_v54  ;;  %v14841_v0 = vld [vmem:[%s22448_s4 + $0x468] sm:$0xf0] }
 0x6be   : > { %8581 = vmatmul.bf16.gmra.mxu1 %v22720_v32  ;;  %v12961_v13 = vor.u32 %v14913_v46, %v12960_v2  ;;  %8836 = vmatpush.bf16.msra.mxu0 %v12385_v49  ;;  %v12348_v49 = vld [vmem:[%s22448_s4 + $0x1c0] sm:$0xf] }
 0x6bf   : > { %v8415_v48 = vadd.f32 %v8414_v62, %v8374_v61  ;;  %8540 = vmatmul.bf16.gmra.mxu0 %v22686_v6  ;;  %v10568_v26 = vrot.slane %v8494_v52, 2  ;;  %8622 = vmatmul.bf16.gmra.mxu2 %v22721_v14 }
 0x6c0   : > { %8918 = vmatpush.bf16.msra.mxu2 %v12961_v13  ;;  %v12924_v13 = vld [vmem:[%s22448_s4 + $0x640] sm:$0xf] }
 0x6c1   : > { %8663 = vmatmul.bf16.gmra.mxu3 %v22722_v44  ;;  %v10569_v12 = vsel %vm10554_vm1, %v10566_v4, %v10568_v26 }
 0x6c2   : > { %v19782_v41 = vadd.f32 %v10569_v12, %v19266_v3  ;;  %v8455_v18 = vpop.f32.mrf.mxu2  ;;  %8959 = vmatpush.bf16.msra.mxu3 %v13249_v8  ;;  %v12673_v3 = vor.u32 %v14841_v0, %v12672_v42  ;;  %v14760_v8 = vld [vmem:[%s22448_s4 + $0x1e0] sm:$0xf0]  ;;  %v12636_v0 = vld [vmem:[%s22448_s4 + $0x400] sm:$0xf] }
 0x6c3   : > { %v8456_v4 = vadd.f32 %v8455_v18, %v8415_v48  ;;  %v8416_v7 = vpop.f32.mrf.mxu1  ;;  %v22771_v18 = vld [vmem:[#allocation30_spill] sm:$0xff] }
 0x6c4   : > { %v8496_v51 = vpop.f32.mrf.mxu3  ;;  %v8375_v53 = vpop.f32.mrf.mxu0  ;;  %8877 = vmatpush.bf16.msra.mxu1 %v12673_v3  ;;  %v14976_v42 = vld [vmem:[%s22448_s4 + $0x8a0] sm:$0xf0] }
 0x6c5   : > { %v8376_v35 = vadd.f32 %v8375_v53, %v19529_v9  ;;  %v8497_v61 = vadd.f32 %v8496_v51, %v8456_v4  ;;  %v13212_v4 = vld [vmem:[%s22448_s4 + $0x880] sm:$0xf]  ;;  %v12349_v53 = vor.u32 %v14760_v8, %v12348_v49  ;;  %v14895_v8 = vld [vmem:[%s22448_s4 + $0x618] sm:$0xf0] }
 0x6c7   : > { %v8417_v62 = vadd.f32 %v8416_v7, %v8376_v35  ;;  %v10570_v16 = vrot.slane %v8497_v61, 2  ;;  %v14832_v35 = vld [vmem:[%s22448_s4 + $0x420] sm:$0xf0]  ;;  %v22773_v7 = vld [vmem:[#allocation39_spill] sm:$0xff]  ;;  %8837 = vmatpush.bf16.msra.mxu0 %v12349_v53  ;;  %v14967_v53 = vld [vmem:[%s22448_s4 + $0x858] sm:$0xf0] }
 0x6c9   : > { %v10571_v34 = vsel %vm10554_vm1, %v10568_v26, %v10570_v16  ;;  %v12925_v26 = vor.u32 %v14904_v28, %v12924_v13 }
 0x6ca   : > { %v19793_v52 = vadd.f32 %v10571_v34, %v19280_v37  ;;  %v8457_v48 = vpop.f32.mrf.mxu2  ;;  %v12637_v34 = vor.u32 %v14832_v35, %v12636_v0  ;;  %v22777_v0 = vld [vmem:[#allocation25_spill] sm:$0xff] }
 0x6cb   : > { %v8458_v2 = vadd.f32 %v8457_v48, %v8417_v62  ;;  %v8419_v9 = vpop.f32.mrf.mxu1  ;;  %8919 = vmatpush.bf16.msra.mxu2 %v12925_v26  ;;  %v13213_v62 = vor.u32 %v14976_v42, %v13212_v4  ;;  %v12312_v4 = vld [vmem:[%s22448_s4 + $0x178] sm:$0xf] }
 0x6cc   : > { %22770 = vst [vmem:[#allocation21_spill] sm:$0xff] %v19793_v52  ;;  %v8498_v46 = vpop.f32.mrf.mxu3  ;;  %v8378_v29 = vpop.f32.mrf.mxu0  ;;  %8878 = vmatpush.bf16.msra.mxu1 %v12637_v34  ;;  %v22776_v42 = vld [vmem:[#allocation41_spill] sm:$0xff] }
 0x6cd   : > { %v8379_v12 = vadd.f32 %v8378_v29, %v19559_v27  ;;  %v8499_v54 = vadd.f32 %v8498_v46, %v8458_v2  ;;  %v22772_v27 = vld [vmem:[#allocation31_spill] sm:$0xff]  ;;  %8960 = vmatpush.bf16.msra.mxu3 %v13213_v62  ;;  %v12600_v62 = vld [vmem:[%s22448_s4 + $0x3b8] sm:$0xf]  ;;  %v14823_v34 = vld [vmem:[%s22448_s4 + $0x3d8] sm:$0xf0] }
 0x6ce   : > { %8586 = vmatmul.bf16.gmra.mxu1 %v22726_v58 }
 0x6cf   : > { %v8420_v24 = vadd.f32 %v8419_v9, %v8379_v12  ;;  %8545 = vmatmul.bf16.gmra.mxu0 %v22724_v31  ;;  %v10572_v37 = vrot.slane %v8499_v54, 2  ;;  %8627 = vmatmul.bf16.gmra.mxu2 %v22771_v18 }
 0x6d1   : > { %8668 = vmatmul.bf16.gmra.mxu3 %v22772_v27  ;;  %v10573_v51 = vsel %vm10554_vm1, %v10570_v16, %v10572_v37 }
 0x6d2   : > { %v19826_v3 = vadd.f32 %v10573_v51, %v22773_v7  ;;  %v8460_v61 = vpop.f32.mrf.mxu2  ;;  %v13176_v51 = vld [vmem:[%s22448_s4 + $0x838] sm:$0xf] }
 0x6d3   : > { %v8461_v16 = vadd.f32 %v8460_v61, %v8420_v24  ;;  %v8421_v46 = vpop.f32.mrf.mxu1  ;;  %v12888_v24 = vld [vmem:[%s22448_s4 + $0x5f8] sm:$0xf]  ;;  %v13177_v7 = vor.u32 %v14967_v53, %v13176_v51  ;;  %v22778_v61 = vld [vmem:[#allocation2_spill] sm:$0xff]  ;;  %v14958_v53 = vld [vmem:[%s22448_s4 + $0x810] sm:$0xf0] }
 0x6d4   : > { %22774 = vst [vmem:[#allocation27_spill] sm:$0xff] %v19826_v3  ;;  %v8501_v48 = vpop.f32.mrf.mxu3  ;;  %v8380_v2 = vpop.f32.mrf.mxu0 }
 0x6d5   : > { %v8502_v29 = vadd.f32 %v8501_v48, %v8461_v16  ;;  %8961 = vmatpush.bf16.msra.mxu3 %v13177_v7  ;;  %v12601_v16 = vor.u32 %v14823_v34, %v12600_v62  ;;  %v14814_v7 = vld [vmem:[%s22448_s4 + $0x390] sm:$0xf0]  ;;  %v22780_v62 = vld [vmem:[#allocation42_spill] sm:$0xff]  ;;  %v22781_v34 = vld [vmem:[#allocation3_spill] sm:$0xff] }
 0x6d7   : > { %v10574_v12 = vrot.slane %v8502_v29, 2  ;;  %8879 = vmatpush.bf16.msra.mxu1 %v12601_v16 }
 0x6d9   : > { %v10575_v9 = vsel %vm10554_vm1, %v10572_v37, %v10574_v12  ;;  %v14751_v37 = vld [vmem:[%s22448_s4 + $0x198] sm:$0xf0]  ;;  %v12852_v12 = vld [vmem:[%s22448_s4 + $0x5b0] sm:$0xf] }
 0x6da   : > { %v19830_v13 = vadd.f32 %v10575_v9, %v19317_v33  ;;  %v8462_v28 = vpop.f32.mrf.mxu2  ;;  %v12889_v33 = vor.u32 %v14895_v8, %v12888_v24  ;;  %v12313_v35 = vor.u32 %v14751_v37, %v12312_v4  ;;  %v14886_v9 = vld [vmem:[%s22448_s4 + $0x5d0] sm:$0xf0]  ;;  %v12276_v8 = vld [vmem:[%s22448_s4 + $0x130] sm:$0xf] }
 0x6db   : > { %v8423_v49 = vpop.f32.mrf.mxu1  ;;  %v12853_v28 = vor.u32 %v14886_v9, %v12852_v12  ;;  %v14742_v4 = vld [vmem:[%s22448_s4 + $0x150] sm:$0xf0] }
 0x6dc   : > { %22775 = vst [vmem:[#allocation37_spill] sm:$0xff] %v19830_v13  ;;  %v8503_v54 = vpop.f32.mrf.mxu3  ;;  %v8382_v26 = vpop.f32.mrf.mxu0  ;;  %8920 = vmatpush.bf16.msra.mxu2 %v12889_v33  ;;  %8838 = vmatpush.bf16.msra.mxu0 %v12313_v35  ;;  %v13140_v33 = vld [vmem:[%s22448_s4 + $0x7f0] sm:$0xf]  ;;  %v12277_v51 = vor.u32 %v14742_v4, %v12276_v8  ;;  %v14733_v8 = vld [vmem:[%s22448_s4 + $0x108] sm:$0xf0] }
 0x6dd   : > { %v22779_v37 = vld [vmem:[#allocation12_spill] sm:$0xff]  ;;  %v13141_v16 = vor.u32 %v14958_v53, %v13140_v33  ;;  %v13104_v4 = vld [vmem:[%s22448_s4 + $0x7a8] sm:$0xf]  ;;  %v14949_v33 = vld [vmem:[%s22448_s4 + $0x7c8] sm:$0xf0] }
 0x6de   : > { %8721 = vmatmul.bf16.vlgmr.msrb.gmra.mxu1 %v22776_v42  ;;  %v12564_v35 = vld [vmem:[%s22448_s4 + $0x370] sm:$0xf]  ;;  %v13105_v53 = vor.u32 %v14949_v33, %v13104_v4 }
 0x6df   : > { %8680 = vmatmul.bf16.vlgmr.msrb.gmra.mxu0 %v22701_v5  ;;  %8762 = vmatmul.bf16.vlgmr.msrb.gmra.mxu2 %v22777_v0  ;;  %v22796_v13 = vld [vmem:[#allocation24_spill] sm:$0xff] }
 0x6e0   : > { %8921 = vmatpush.bf16.msra.mxu2 %v12853_v28  ;;  %8839 = vmatpush.bf16.msra.mxu0 %v12277_v51  ;;  %v22798_v0 = vld [vmem:[#allocation32_spill] sm:$0xff] }
 0x6e1   : > { %8803 = vmatmul.bf16.vlgmr.msrb.gmra.mxu3 %v22778_v61  ;;  %v22797_v61 = vld [vmem:[#allocation17_spill] sm:$0xff] }
 0x6e2   : > { %v8464_v48 = vpop.f32.mrf.mxu2  ;;  %8962 = vmatpush.bf16.msra.mxu3 %v13141_v16 }
 0x6e3   : > { %v8424_v29 = vpop.f32.mrf.mxu1  ;;  %v12565_v48 = vor.u32 %v14814_v7, %v12564_v35 }
 0x6e4   : > { %v8505_v2 = vpop.f32.mrf.mxu3  ;;  %v8383_v46 = vpop.f32.mrf.mxu0 }
 0x6e5   : > { %v22782_v2 = vld [vmem:[#allocation4_spill] sm:$0xff]  ;;  %8880 = vmatpush.bf16.msra.mxu1 %v12565_v48 }
 0x6e6   : > { %8963 = vmatpush.bf16.msra.mxu3 %v13105_v53 }
 0x6ea   : > { %v8465_v54 = vpop.f32.mrf.mxu2 }
 0x6eb   : > { %v8558_v24 = vpop.f32.mrf.mxu1  ;;  %v12816_v54 = vld [vmem:[%s22448_s4 + $0x568] sm:$0xf] }
 0x6ec   : > { %v8506_v26 = vpop.f32.mrf.mxu3  ;;  %v8517_v49 = vpop.f32.mrf.mxu0 }
 0x6ed   : > { %v14877_v26 = vld [vmem:[%s22448_s4 + $0x588] sm:$0xf0]  ;;  %v12240_v49 = vld [vmem:[%s22448_s4 + $0xe8] sm:$0xf] }
 0x6ee   : > { %8725 = vmatmul.bf16.gmra.mxu1 %v22780_v62  ;;  %v12817_v24 = vor.u32 %v14877_v26, %v12816_v54  ;;  %v12241_v51 = vor.u32 %v14733_v8, %v12240_v49  ;;  %v14805_v54 = vld [vmem:[%s22448_s4 + $0x348] sm:$0xf0]  ;;  %v22793_v62 = vld [vmem:[#allocation8_spill] sm:$0xff] }
 0x6ef   : > { %8684 = vmatmul.bf16.gmra.mxu0 %v22779_v37  ;;  %8766 = vmatmul.bf16.gmra.mxu2 %v22781_v34  ;;  %v22783_v26 = vld [vmem:[#allocation43_spill] sm:$0xff]  ;;  %v22790_v34 = vld [vmem:[#allocation29_spill] sm:$0xff]  ;;  %v22794_v37 = vld [vmem:[#allocation16_spill] sm:$0xff] }
 0x6f0   : > { %8922 = vmatpush.bf16.msra.mxu2 %v12817_v24  ;;  %8840 = vmatpush.bf16.msra.mxu0 %v12241_v51  ;;  %v22784_v24 = vld [vmem:[#allocation44_spill] sm:$0xff]  ;;  %v22786_v8 = vld [vmem:[#allocation11_spill] sm:$0xff] }
 0x6f1   : > { %8807 = vmatmul.bf16.gmra.mxu3 %v22782_v2  ;;  %v22789_v2 = vld [vmem:[#allocation9_spill] sm:$0xff] }
 0x6f2   : > { %v8599_v46 = vpop.f32.mrf.mxu2 }
 0x6f3   : > { %v8559_v9 = vpop.f32.mrf.mxu1 }
 0x6f4   : > { %v8640_v29 = vpop.f32.mrf.mxu3  ;;  %v8518_v12 = vpop.f32.mrf.mxu0 }
 0x6f5   : > { %v8560_v28 = vadd.f32 %v8559_v9, %v8518_v12  ;;  %v12528_v9 = vld [vmem:[%s22448_s4 + $0x328] sm:$0xf] }
 0x6f6   : > { %v12529_v49 = vor.u32 %v14805_v54, %v12528_v9  ;;  %v12204_v9 = vld [vmem:[%s22448_s4 + $0xa0] sm:$0xf] }
 0x6f8   : > { %8881 = vmatpush.bf16.msra.mxu1 %v12529_v49  ;;  %v13068_v49 = vld [vmem:[%s22448_s4 + $0x760] sm:$0xf] }
 0x6fa   : > { %v8600_v35 = vpop.f32.mrf.mxu2 }
 0x6fb   : > { %v8601_v7 = vadd.f32 %v8600_v35, %v8560_v28  ;;  %v8562_v46 = vpop.f32.mrf.mxu1  ;;  %v22785_v28 = vld [vmem:[#allocation10_spill] sm:$0xff] }
 0x6fc   : > { %v8641_v16 = vpop.f32.mrf.mxu3  ;;  %v8521_v48 = vpop.f32.mrf.mxu0 }
 0x6fd   : > { %v19906_v29 = vadd.f32 %v8641_v16, %v8601_v7  ;;  %v8563_v12 = vadd.f32 %v8562_v46, %v8521_v48  ;;  %v12780_v48 = vld [vmem:[%s22448_s4 + $0x520] sm:$0xf]  ;;  %v14868_v46 = vld [vmem:[%s22448_s4 + $0x540] sm:$0xf0] }
 0x6fe   : > { %8730 = vmatmul.bf16.gmra.mxu1 %v22784_v24  ;;  %v12781_v54 = vor.u32 %v14868_v46, %v12780_v48 }
 0x6ff   : > { %8689 = vmatmul.bf16.gmra.mxu0 %v22783_v26  ;;  %8771 = vmatmul.bf16.gmra.mxu2 %v22785_v28 }
 0x700   : > { %8923 = vmatpush.bf16.msra.mxu2 %v12781_v54 }
 0x701   : > { %8812 = vmatmul.bf16.gmra.mxu3 %v22786_v8 }
 0x702   : > { %v8603_v4 = vpop.f32.mrf.mxu2 }
 0x703   : > { %v8604_v33 = vadd.f32 %v8603_v4, %v8563_v12  ;;  %v8564_v35 = vpop.f32.mrf.mxu1  ;;  %v14724_v12 = vld [vmem:[%s22448_s4 + $0xc0] sm:$0xf0] }
 0x704   : > { %v8644_v51 = vpop.f32.mrf.mxu3  ;;  %v8523_v53 = vpop.f32.mrf.mxu0  ;;  %v14940_v4 = vld [vmem:[%s22448_s4 + $0x780] sm:$0xf0] }
 0x705   : > { %v19918_v7 = vadd.f32 %v8644_v51, %v8604_v33  ;;  %v8565_v16 = vadd.f32 %v8564_v35, %v8523_v53  ;;  %v12205_v33 = vor.u32 %v14724_v12, %v12204_v9  ;;  %v13069_v51 = vor.u32 %v14940_v4, %v13068_v49  ;;  %v12492_v53 = vld [vmem:[%s22448_s4 + $0x2e0] sm:$0xf]  ;;  %v14796_v35 = vld [vmem:[%s22448_s4 + $0x300] sm:$0xf0]  ;;  %v22787_v49 = vld [vmem:[#allocation45_spill] sm:$0xff] }
 0x706   : > { %v12493_v48 = vor.u32 %v14796_v35, %v12492_v53  ;;  %v22788_v4 = vld [vmem:[#allocation46_spill] sm:$0xff] }
 0x707   : > { %8841 = vmatpush.bf16.msra.mxu0 %v12205_v33  ;;  %8964 = vmatpush.bf16.msra.mxu3 %v13069_v51 }
 0x708   : > { %8882 = vmatpush.bf16.msra.mxu1 %v12493_v48 }
 0x70a   : > { %v8605_v46 = vpop.f32.mrf.mxu2 }
 0x70b   : > { %v8606_v8 = vadd.f32 %v8605_v46, %v8565_v16  ;;  %v8567_v26 = vpop.f32.mrf.mxu1  ;;  %v14715_v46 = vld [vmem:[%s22448_s4 + $0x78] sm:$0xf0] }
 0x70c   : > { %v8646_v28 = vpop.f32.mrf.mxu3  ;;  %v8526_v24 = vpop.f32.mrf.mxu0 }
 0x70d   : > { %v19944_v9 = vadd.f32 %v8646_v28, %v8606_v8  ;;  %v8568_v12 = vadd.f32 %v8567_v26, %v8526_v24  ;;  %v12744_v26 = vld [vmem:[%s22448_s4 + $0x4d8] sm:$0xf]  ;;  %v14859_v24 = vld [vmem:[%s22448_s4 + $0x4f8] sm:$0xf0] }
 0x70e   : > { %8735 = vmatmul.bf16.gmra.mxu1 %v22788_v4  ;;  %v12168_v28 = vld [vmem:[%s22448_s4 + $0x58] sm:$0xf]  ;;  %v12745_v8 = vor.u32 %v14859_v24, %v12744_v26 }
 0x70f   : > { %8694 = vmatmul.bf16.gmra.mxu0 %v22787_v49  ;;  %8776 = vmatmul.bf16.gmra.mxu2 %v22789_v2 }
 0x710   : > { %8924 = vmatpush.bf16.msra.mxu2 %v12745_v8  ;;  %v12708_v8 = vld [vmem:[%s22448_s4 + $0x490] sm:$0xf] }
 0x711   : > { %8817 = vmatmul.bf16.gmra.mxu3 %v22790_v34 }
 0x712   : > { %v8608_v54 = vpop.f32.mrf.mxu2 }
 0x713   : > { %v8609_v33 = vadd.f32 %v8608_v54, %v8568_v12  ;;  %v8569_v35 = vpop.f32.mrf.mxu1  ;;  %v13032_v12 = vld [vmem:[%s22448_s4 + $0x718] sm:$0xf]  ;;  %v14931_v54 = vld [vmem:[%s22448_s4 + $0x738] sm:$0xf0] }
 0x714   : > { %v8649_v51 = vpop.f32.mrf.mxu3  ;;  %v8528_v53 = vpop.f32.mrf.mxu0 }
 0x715   : > { %v19950_v16 = vadd.f32 %v8649_v51, %v8609_v33  ;;  %v8570_v48 = vadd.f32 %v8569_v35, %v8528_v53  ;;  %v12169_v33 = vor.u32 %v14715_v46, %v12168_v28  ;;  %v13033_v51 = vor.u32 %v14931_v54, %v13032_v12  ;;  %v12456_v53 = vld [vmem:[%s22448_s4 + $0x298] sm:$0xf]  ;;  %v14787_v35 = vld [vmem:[%s22448_s4 + $0x2b8] sm:$0xf0]  ;;  %v22792_v54 = vld [vmem:[#allocation6_spill] sm:$0xff] }
 0x716   : > { %v12457_v26 = vor.u32 %v14787_v35, %v12456_v53  ;;  %v22791_v12 = vld [vmem:[#allocation5_spill] sm:$0xff] }
 0x717   : > { %8842 = vmatpush.bf16.msra.mxu0 %v12169_v33  ;;  %8965 = vmatpush.bf16.msra.mxu3 %v13033_v51 }
 0x718   : > { %8883 = vmatpush.bf16.msra.mxu1 %v12457_v26  ;;  %v12132_v26 = vld [vmem:[%s22448_s4 + $0x10] sm:$0xf] }
 0x71a   : > { %v8610_v24 = vpop.f32.mrf.mxu2 }
 0x71b   : > { %v8611_v34 = vadd.f32 %v8610_v24, %v8570_v48  ;;  %v8572_v49 = vpop.f32.mrf.mxu1  ;;  %v14850_v48 = vld [vmem:[%s22448_s4 + $0x4b0] sm:$0xf0] }
 0x71c   : > { %v8651_v2 = vpop.f32.mrf.mxu3  ;;  %v8531_v4 = vpop.f32.mrf.mxu0  ;;  %v12709_v33 = vor.u32 %v14850_v48, %v12708_v8  ;;  %v14706_v24 = vld [vmem:[%s22448_s4 + $0x30] sm:$0xf0]  ;;  %v12996_v8 = vld [vmem:[%s22448_s4 + $0x6d0] sm:$0xf] }
 0x71d   : > { %v19976_v28 = vadd.f32 %v8651_v2, %v8611_v34  ;;  %v8573_v46 = vadd.f32 %v8572_v49, %v8531_v4  ;;  %v14922_v48 = vld [vmem:[%s22448_s4 + $0x6f0] sm:$0xf0] }
 0x71e   : > { %8740 = vmatmul.bf16.gmra.mxu1 %v22792_v54  ;;  %8925 = vmatpush.bf16.msra.mxu2 %v12709_v33  ;;  %v12420_v33 = vld [vmem:[%s22448_s4 + $0x250] sm:$0xf] }
 0x71f   : > { %8699 = vmatmul.bf16.gmra.mxu0 %v22791_v12  ;;  %8781 = vmatmul.bf16.gmra.mxu2 %v22793_v62  ;;  %v22795_v12 = vld [vmem:[#allocation7_spill] sm:$0xff] }
 0x721   : > { %8822 = vmatmul.bf16.gmra.mxu3 %v22794_v37 }
 0x722   : > { %v8613_v34 = vpop.f32.mrf.mxu2 }
 0x723   : > { %v8614_v2 = vadd.f32 %v8613_v34, %v8573_v46  ;;  %v8574_v51 = vpop.f32.mrf.mxu1  ;;  %v12133_v46 = vor.u32 %v14706_v24, %v12132_v26  ;;  %v14778_v34 = vld [vmem:[%s22448_s4 + $0x270] sm:$0xf0] }
 0x724   : > { %v8654_v49 = vpop.f32.mrf.mxu3  ;;  %v8533_v4 = vpop.f32.mrf.mxu0 }
 0x725   : > { %v19988_v53 = vadd.f32 %v8654_v49, %v8614_v2  ;;  %v8575_v35 = vadd.f32 %v8574_v51, %v8533_v4  ;;  %v12997_v2 = vor.u32 %v14922_v48, %v12996_v8  ;;  %v12421_v49 = vor.u32 %v14778_v34, %v12420_v33  ;;  %8843 = vmatpush.bf16.msra.mxu0 %v12133_v46  ;;  %v14112_v8 = vld [vmem:[%s22448_s4 + $0xf88] sm:$0xf]  ;;  %v15057_v48 = vld [vmem:[%s22448_s4 + $0xb28] sm:$0xf0] }
 0x726   : > { %v14400_v33 = vld [vmem:[%s22448_s4 + $0x11c8] sm:$0xf]  ;;  %v15273_v34 = vld [vmem:[%s22448_s4 + $0x11e8] sm:$0xf0] }
 0x727   : > { %8966 = vmatpush.bf16.msra.mxu3 %v12997_v2  ;;  %8884 = vmatpush.bf16.msra.mxu1 %v12421_v49 }
 0x72a   : > { %v8615_v4 = vpop.f32.mrf.mxu2 }
 0x72b   : > { %v8616_v51 = vadd.f32 %v8615_v4, %v8575_v35  ;;  %v8577_v37 = vpop.f32.mrf.mxu1  ;;  %v15201_v35 = vld [vmem:[%s22448_s4 + $0xfa8] sm:$0xf0]  ;;  %v14401_v4 = vor.u32 %v15273_v34, %v14400_v33 }
 0x72c   : > { %v8656_v26 = vpop.f32.mrf.mxu3  ;;  %v8536_v24 = vpop.f32.mrf.mxu0  ;;  %v14113_v46 = vor.u32 %v15201_v35, %v14112_v8  ;;  %v13824_v8 = vld [vmem:[%s22448_s4 + $0xd48] sm:$0xf]  ;;  %v15129_v35 = vld [vmem:[%s22448_s4 + $0xd68] sm:$0xf0] }
 0x72d   : > { %v20008_v62 = vadd.f32 %v8656_v26, %v8616_v51  ;;  %v8578_v54 = vadd.f32 %v8577_v37, %v8536_v24  ;;  %v13536_v37 = vld [vmem:[%s22448_s4 + $0xb08] sm:$0xf]  ;;  %9123 = vmatpush.bf16.msrb.mxu3 %v14401_v4 }
 0x72e   : > { %8745 = vmatmul.bf16.gmra.mxu1 %v22796_v13  ;;  %v13537_v49 = vor.u32 %v15057_v48, %v13536_v37  ;;  %9082 = vmatpush.bf16.msrb.mxu2 %v14113_v46 }
 0x72f   : > { %8704 = vmatmul.bf16.gmra.mxu0 %v22795_v12  ;;  %8786 = vmatmul.bf16.gmra.mxu2 %v22797_v61  ;;  %v13825_v61 = vor.u32 %v15129_v35, %v13824_v8  ;;  %v15192_v12 = vld [vmem:[%s22448_s4 + $0xf60] sm:$0xf0]  ;;  %v13500_v8 = vld [vmem:[%s22448_s4 + $0xac0] sm:$0xf] }
 0x730   : > { %9000 = vmatpush.bf16.msrb.mxu0 %v13537_v49  ;;  %v15048_v35 = vld [vmem:[%s22448_s4 + $0xae0] sm:$0xf0] }
 0x731   : > { %8827 = vmatmul.bf16.gmra.mxu3 %v22798_v0  ;;  %9041 = vmatpush.bf16.msrb.mxu1 %v13825_v61  ;;  %v22801_v61 = vld [vmem:[#allocation19_spill] sm:$0xff] }
 0x732   : > { %v8618_v2 = vpop.f32.mrf.mxu2 }
 0x733   : > { %v8619_v51 = vadd.f32 %v8618_v2, %v8578_v54  ;;  %v8579_v0 = vpop.f32.mrf.mxu1  ;;  %v14076_v2 = vld [vmem:[%s22448_s4 + $0xf40] sm:$0xf] }
 0x734   : > { %v8659_v26 = vpop.f32.mrf.mxu3  ;;  %v8538_v24 = vpop.f32.mrf.mxu0 }
 0x735   : > { %v20038_v13 = vadd.f32 %v8659_v26, %v8619_v51  ;;  %v8580_v37 = vadd.f32 %v8579_v0, %v8538_v24  ;;  %v14077_v51 = vor.u32 %v15192_v12, %v14076_v2  ;;  %v22799_v26 = vld [vmem:[#allocation33_spill] sm:$0xff]  ;;  %v22800_v0 = vld [vmem:[#allocation18_spill] sm:$0xff] }
 0x736   : > { %v22802_v24 = vld [vmem:[#allocation34_spill] sm:$0xff] }
 0x737   : > { %9083 = vmatpush.bf16.msrb.mxu2 %v14077_v51  ;;  %v14364_v12 = vld [vmem:[%s22448_s4 + $0x1180] sm:$0xf] }
 0x73a   : > { %v8620_v54 = vpop.f32.mrf.mxu2 }
 0x73b   : > { %v8621_v48 = vadd.f32 %v8620_v54, %v8580_v37  ;;  %v8582_v34 = vpop.f32.mrf.mxu1  ;;  %v13501_v37 = vor.u32 %v15048_v35, %v13500_v8  ;;  %v15264_v54 = vld [vmem:[%s22448_s4 + $0x11a0] sm:$0xf0] }
 0x73c   : > { %v8661_v33 = vpop.f32.mrf.mxu3  ;;  %v8541_v46 = vpop.f32.mrf.mxu0 }
 0x73d   : > { %v20046_v49 = vadd.f32 %v8661_v33, %v8621_v48  ;;  %v8583_v4 = vadd.f32 %v8582_v34, %v8541_v46  ;;  %v13788_v48 = vld [vmem:[%s22448_s4 + $0xd00] sm:$0xf]  ;;  %v15120_v33 = vld [vmem:[%s22448_s4 + $0xd20] sm:$0xf0]  ;;  %v14365_v34 = vor.u32 %v15264_v54, %v14364_v12  ;;  %9001 = vmatpush.bf16.msrb.mxu0 %v13501_v37  ;;  %v13752_v12 = vld [vmem:[%s22448_s4 + $0xcb8] sm:$0xf] }
 0x73e   : > { %8750 = vmatmul.bf16.gmra.mxu1 %v22800_v0  ;;  %v13789_v2 = vor.u32 %v15120_v33, %v13788_v48  ;;  %v15111_v37 = vld [vmem:[%s22448_s4 + $0xcd8] sm:$0xf0] }
 0x73f   : > { %8709 = vmatmul.bf16.gmra.mxu0 %v22799_v26  ;;  %8791 = vmatmul.bf16.gmra.mxu2 %v22801_v61  ;;  %v13753_v48 = vor.u32 %v15111_v37, %v13752_v12 }
 0x740   : > { %9124 = vmatpush.bf16.msrb.mxu3 %v14365_v34  ;;  %9042 = vmatpush.bf16.msrb.mxu1 %v13789_v2 }
 0x741   : > { %8832 = vmatmul.bf16.gmra.mxu3 %v22802_v24 }
 0x742   : > { %v8623_v46 = vpop.f32.mrf.mxu2 }
 0x743   : > { %v8624_v51 = vadd.f32 %v8623_v46, %v8583_v4  ;;  %v8584_v8 = vpop.f32.mrf.mxu1  ;;  %v14040_v4 = vld [vmem:[%s22448_s4 + $0xef8] sm:$0xf] }
 0x744   : > { %v8664_v24 = vpop.f32.mrf.mxu3  ;;  %v8543_v61 = vpop.f32.mrf.mxu0  ;;  %9043 = vmatpush.bf16.msrb.mxu1 %v13753_v48  ;;  %v13716_v48 = vld [vmem:[%s22448_s4 + $0xc70] sm:$0xf] }
 0x745   : > { %v20070_v35 = vadd.f32 %v8664_v24, %v8624_v51  ;;  %v8585_v0 = vadd.f32 %v8584_v8, %v8543_v61  ;;  %v15183_v61 = vld [vmem:[%s22448_s4 + $0xf18] sm:$0xf0]  ;;  %v14004_v51 = vld [vmem:[%s22448_s4 + $0xeb0] sm:$0xf]  ;;  %v15174_v8 = vld [vmem:[%s22448_s4 + $0xed0] sm:$0xf0] }
 0x74a   : > { %v8625_v26 = vpop.f32.mrf.mxu2 }
 0x74b   : > { %v8626_v42 = vadd.f32 %v8625_v26, %v8585_v0  ;;  %v8587_v52 = vpop.f32.mrf.mxu1  ;;  %v15255_v26 = vld [vmem:[%s22448_s4 + $0x1158] sm:$0xf0] }
 0x74c   : > { %v8666_v5 = vpop.f32.mrf.mxu3  ;;  %v8546_v3 = vpop.f32.mrf.mxu0  ;;  %v13464_v52 = vld [vmem:[%s22448_s4 + $0xa78] sm:$0xf] }
 0x74d   : > { %v20072_v27 = vadd.f32 %v8666_v5, %v8626_v42  ;;  %v14041_v5 = vor.u32 %v15183_v61, %v14040_v4  ;;  %v15039_v3 = vld [vmem:[%s22448_s4 + $0xa98] sm:$0xf0]  ;;  %v14328_v42 = vld [vmem:[%s22448_s4 + $0x1138] sm:$0xf] }
 0x74e   : > { %8885 = vmatmul.bf16.vlgmr.msra.gmra.mxu1 %v22659_v25  ;;  %v13465_v0 = vor.u32 %v15039_v3, %v13464_v52  ;;  %v14329_v24 = vor.u32 %v15255_v26, %v14328_v42  ;;  %v14005_v52 = vor.u32 %v15174_v8, %v14004_v51  ;;  %v13428_v42 = vld [vmem:[%s22448_s4 + $0xa30] sm:$0xf]  ;;  %v15030_v26 = vld [vmem:[%s22448_s4 + $0xa50] sm:$0xf0] }
 0x74f   : > { %8844 = vmatmul.bf16.vlgmr.msra.gmra.mxu0 %v22658_v40  ;;  %8926 = vmatmul.bf16.vlgmr.msra.gmra.mxu2 %v22660_v50  ;;  %v13429_v37 = vor.u32 %v15030_v26, %v13428_v42 }
 0x750   : > { %9084 = vmatpush.bf16.msrb.mxu2 %v14041_v5  ;;  %9002 = vmatpush.bf16.msrb.mxu0 %v13465_v0  ;;  %v14292_v0 = vld [vmem:[%s22448_s4 + $0x10f0] sm:$0xf] }
 0x751   : > { %8967 = vmatmul.bf16.vlgmr.msra.gmra.mxu3 %v22661_v56 }
 0x752   : > { %v8628_v54 = vpop.f32.mrf.mxu2  ;;  %9125 = vmatpush.bf16.msrb.mxu3 %v14329_v24 }
 0x753   : > { %v8588_v34 = vpop.f32.mrf.mxu1  ;;  %v15246_v54 = vld [vmem:[%s22448_s4 + $0x1110] sm:$0xf0] }
 0x754   : > { %v8669_v33 = vpop.f32.mrf.mxu3  ;;  %v8547_v46 = vpop.f32.mrf.mxu0  ;;  %9085 = vmatpush.bf16.msrb.mxu2 %v14005_v52  ;;  %9003 = vmatpush.bf16.msrb.mxu0 %v13429_v37  ;;  %v15165_v52 = vld [vmem:[%s22448_s4 + $0xe88] sm:$0xf0] }
 0x755   : > { %v15102_v33 = vld [vmem:[%s22448_s4 + $0xc90] sm:$0xf0] }
 0x756   : > { %v13717_v51 = vor.u32 %v15102_v33, %v13716_v48 }
 0x758   : > { %9044 = vmatpush.bf16.msrb.mxu1 %v13717_v51  ;;  %v15093_v51 = vld [vmem:[%s22448_s4 + $0xc48] sm:$0xf0] }
 0x75a   : > { %v8629_v2 = vpop.f32.mrf.mxu2 }
 0x75b   : > { %v8722_v5 = vpop.f32.mrf.mxu1  ;;  %v14293_v2 = vor.u32 %v15246_v54, %v14292_v0  ;;  %v15021_v0 = vld [vmem:[%s22448_s4 + $0xa08] sm:$0xf0] }
 0x75c   : > { %v8670_v4 = vpop.f32.mrf.mxu3  ;;  %v8681_v61 = vpop.f32.mrf.mxu0 }
 0x75d   : > { %9126 = vmatpush.bf16.msrb.mxu3 %v14293_v2  ;;  %v13968_v61 = vld [vmem:[%s22448_s4 + $0xe68] sm:$0xf] }
 0x75e   : > { %8889 = vmatmul.bf16.gmra.mxu1 %v22663_v38  ;;  %v13969_v26 = vor.u32 %v15165_v52, %v13968_v61 }
 0x75f   : > { %8848 = vmatmul.bf16.gmra.mxu0 %v22662_v1  ;;  %8930 = vmatmul.bf16.gmra.mxu2 %v22664_v39 }
 0x760   : > { %9086 = vmatpush.bf16.msrb.mxu2 %v13969_v26 }
 0x761   : > { %8971 = vmatmul.bf16.gmra.mxu3 %v22665_v10 }
 0x762   : > { %v8763_v3 = vpop.f32.mrf.mxu2 }
 0x763   : > { %v8723_v34 = vpop.f32.mrf.mxu1 }
 0x764   : > { %v8804_v24 = vpop.f32.mrf.mxu3  ;;  %v8682_v12 = vpop.f32.mrf.mxu0 }
 0x765   : > { %v8683_v46 = vadd.f32 %v8682_v12, %v19906_v29  ;;  %v13392_v29 = vld [vmem:[%s22448_s4 + $0x9e8] sm:$0xf]  ;;  %v15237_v12 = vld [vmem:[%s22448_s4 + $0x10c8] sm:$0xf0] }
 0x766   : > { %v14256_v24 = vld [vmem:[%s22448_s4 + $0x10a8] sm:$0xf]  ;;  %v13393_v48 = vor.u32 %v15021_v0, %v13392_v29 }
 0x767   : > { %v8724_v8 = vadd.f32 %v8723_v34, %v8683_v46  ;;  %v14257_v33 = vor.u32 %v15237_v12, %v14256_v24 }
 0x768   : > { %9004 = vmatpush.bf16.msrb.mxu0 %v13393_v48  ;;  %v13356_v48 = vld [vmem:[%s22448_s4 + $0x9a0] sm:$0xf] }
 0x769   : > { %9127 = vmatpush.bf16.msrb.mxu3 %v14257_v33 }
 0x76a   : > { %v8764_v4 = vpop.f32.mrf.mxu2 }
 0x76b   : > { %v8765_v5 = vadd.f32 %v8764_v4, %v8724_v8  ;;  %v8726_v54 = vpop.f32.mrf.mxu1 }
 0x76c   : > { %v8805_v3 = vpop.f32.mrf.mxu3  ;;  %v8685_v42 = vpop.f32.mrf.mxu0 }
 0x76d   : > { %v8686_v37 = vadd.f32 %v8685_v42, %v19918_v7  ;;  %v8806_v46 = vadd.f32 %v8805_v3, %v8765_v5  ;;  %v13680_v7 = vld [vmem:[%s22448_s4 + $0xc28] sm:$0xf] }
 0x76e   : > { %8894 = vmatmul.bf16.gmra.mxu1 %v22668_v15  ;;  %v13681_v52 = vor.u32 %v15093_v51, %v13680_v7  ;;  %v14220_v7 = vld [vmem:[%s22448_s4 + $0x1060] sm:$0xf]  ;;  %v15228_v51 = vld [vmem:[%s22448_s4 + $0x1080] sm:$0xf0] }
 0x76f   : > { %v8727_v34 = vadd.f32 %v8726_v54, %v8686_v37  ;;  %8853 = vmatmul.bf16.gmra.mxu0 %v22667_v11  ;;  %8935 = vmatmul.bf16.gmra.mxu2 %v22669_v57  ;;  %v10607_v26 = vrot.slane %v8806_v46, 2  ;;  %v13932_v54 = vld [vmem:[%s22448_s4 + $0xe20] sm:$0xf] }
 0x770   : > { %9045 = vmatpush.bf16.msrb.mxu1 %v13681_v52  ;;  %v14221_v52 = vor.u32 %v15228_v51, %v14220_v7 }
 0x771   : > { %8976 = vmatmul.bf16.gmra.mxu3 %v22670_v45 }
 0x772   : > { %v8767_v2 = vpop.f32.mrf.mxu2  ;;  %9128 = vmatpush.bf16.msrb.mxu3 %v14221_v52 }
 0x773   : > { %v8768_v8 = vadd.f32 %v8767_v2, %v8727_v34  ;;  %v8728_v5 = vpop.f32.mrf.mxu1 }
 0x774   : > { %v8808_v4 = vpop.f32.mrf.mxu3  ;;  %v8687_v61 = vpop.f32.mrf.mxu0 }
 0x775   : > { %v8688_v29 = vadd.f32 %v8687_v61, %v19944_v9  ;;  %v8809_v3 = vadd.f32 %v8808_v4, %v8768_v8  ;;  %v15156_v9 = vld [vmem:[%s22448_s4 + $0xe40] sm:$0xf0] }
 0x776   : > { %v13933_v2 = vor.u32 %v15156_v9, %v13932_v54 }
 0x777   : > { %v8729_v42 = vadd.f32 %v8728_v5, %v8688_v29  ;;  %v10608_v0 = vrot.slane %v8809_v3, 2  ;;  %v13644_v29 = vld [vmem:[%s22448_s4 + $0xbe0] sm:$0xf]  ;;  %v15084_v5 = vld [vmem:[%s22448_s4 + $0xc00] sm:$0xf0] }
 0x778   : > { %9087 = vmatpush.bf16.msrb.mxu2 %v13933_v2 }
 0x779   : > { %v10609_v24 = vsel %vm10554_vm1, %v10607_v26, %v10608_v0 }
 0x77a   : > { %v20163_v12 = vadd.f32 %v10609_v24, %v19644_v23  ;;  %v8769_v37 = vpop.f32.mrf.mxu2  ;;  %v15012_v23 = vld [vmem:[%s22448_s4 + $0x9c0] sm:$0xf0] }
 0x77b   : > { %v8770_v33 = vadd.f32 %v8769_v37, %v8729_v42  ;;  %v8731_v4 = vpop.f32.mrf.mxu1  ;;  %v13357_v61 = vor.u32 %v15012_v23, %v13356_v48  ;;  %v13645_v42 = vor.u32 %v15084_v5, %v13644_v29 }
 0x77c   : > { %v8810_v46 = vpop.f32.mrf.mxu3  ;;  %v8690_v34 = vpop.f32.mrf.mxu0 }
 0x77d   : > { %v8691_v8 = vadd.f32 %v8690_v34, %v19950_v16  ;;  %v8811_v3 = vadd.f32 %v8810_v46, %v8770_v33  ;;  %9005 = vmatpush.bf16.msrb.mxu0 %v13357_v61  ;;  %9046 = vmatpush.bf16.msrb.mxu1 %v13645_v42  ;;  %v15219_v42 = vld [vmem:[%s22448_s4 + $0x1038] sm:$0xf0] }
 0x77e   : > { %8899 = vmatmul.bf16.gmra.mxu1 %v22674_v17 }
 0x77f   : > { %v8732_v26 = vadd.f32 %v8731_v4, %v8691_v8  ;;  %8858 = vmatmul.bf16.gmra.mxu0 %v22673_v21  ;;  %v10610_v24 = vrot.slane %v8811_v3, 2  ;;  %8940 = vmatmul.bf16.gmra.mxu2 %v22675_v43  ;;  %v15147_v4 = vld [vmem:[%s22448_s4 + $0xdf8] sm:$0xf0]  ;;  %v14184_v3 = vld [vmem:[%s22448_s4 + $0x1018] sm:$0xf] }
 0x781   : > { %8981 = vmatmul.bf16.gmra.mxu3 %v22676_v30  ;;  %v10611_v16 = vsel %vm10554_vm1, %v10608_v0, %v10610_v24 }
 0x782   : > { %v20196_v37 = vadd.f32 %v10611_v16, %v19655_v63  ;;  %v8772_v54 = vpop.f32.mrf.mxu2  ;;  %v13896_v63 = vld [vmem:[%s22448_s4 + $0xdd8] sm:$0xf] }
 0x783   : > { %v8773_v9 = vadd.f32 %v8772_v54, %v8732_v26  ;;  %v8733_v34 = vpop.f32.mrf.mxu1  ;;  %v13897_v5 = vor.u32 %v15147_v4, %v13896_v63  ;;  %v14185_v54 = vor.u32 %v15219_v42, %v14184_v3  ;;  %v15138_v63 = vld [vmem:[%s22448_s4 + $0xdb0] sm:$0xf0] }
 0x784   : > { %v8813_v48 = vpop.f32.mrf.mxu3  ;;  %v8692_v33 = vpop.f32.mrf.mxu0 }
 0x785   : > { %v8693_v46 = vadd.f32 %v8692_v33, %v19976_v28  ;;  %v8814_v2 = vadd.f32 %v8813_v48, %v8773_v9  ;;  %v13320_v28 = vld [vmem:[%s22448_s4 + $0x958] sm:$0xf]  ;;  %v15075_v48 = vld [vmem:[%s22448_s4 + $0xbb8] sm:$0xf0]  ;;  %9088 = vmatpush.bf16.msrb.mxu2 %v13897_v5  ;;  %9129 = vmatpush.bf16.msrb.mxu3 %v14185_v54 }
 0x786   : > { %v13608_v9 = vld [vmem:[%s22448_s4 + $0xb98] sm:$0xf] }
 0x787   : > { %v8734_v23 = vadd.f32 %v8733_v34, %v8693_v46  ;;  %v10612_v7 = vrot.slane %v8814_v2, 2  ;;  %v13609_v46 = vor.u32 %v15075_v48, %v13608_v9 }
 0x789   : > { %v10613_v51 = vsel %vm10554_vm1, %v10610_v24, %v10612_v7  ;;  %9047 = vmatpush.bf16.msrb.mxu1 %v13609_v46  ;;  %v13572_v46 = vld [vmem:[%s22448_s4 + $0xb50] sm:$0xf] }
 0x78a   : > { %v20201_v8 = vadd.f32 %v10613_v51, %v19688_v60  ;;  %v8774_v0 = vpop.f32.mrf.mxu2  ;;  %v15003_v60 = vld [vmem:[%s22448_s4 + $0x978] sm:$0xf0] }
 0x78b   : > { %v8775_v61 = vadd.f32 %v8774_v0, %v8734_v23  ;;  %v8736_v24 = vpop.f32.mrf.mxu1  ;;  %v13321_v16 = vor.u32 %v15003_v60, %v13320_v28  ;;  %v13860_v0 = vld [vmem:[%s22448_s4 + $0xd90] sm:$0xf] }
 0x78c   : > { %v8815_v52 = vpop.f32.mrf.mxu3  ;;  %v8695_v29 = vpop.f32.mrf.mxu0 }
 0x78d   : > { %v8696_v26 = vadd.f32 %v8695_v29, %v19988_v53  ;;  %v8816_v33 = vadd.f32 %v8815_v52, %v8775_v61  ;;  %9006 = vmatpush.bf16.msrb.mxu0 %v13321_v16  ;;  %v13861_v52 = vor.u32 %v15138_v63, %v13860_v0  ;;  %v14994_v16 = vld [vmem:[%s22448_s4 + $0x930] sm:$0xf0] }
 0x78e   : > { %8904 = vmatmul.bf16.gmra.mxu1 %v22738_v55 }
 0x78f   : > { %v8737_v34 = vadd.f32 %v8736_v24, %v8696_v26  ;;  %8863 = vmatmul.bf16.gmra.mxu0 %v22680_v59  ;;  %v10614_v2 = vrot.slane %v8816_v33, 2  ;;  %8945 = vmatmul.bf16.gmra.mxu2 %v22739_v36  ;;  %v13284_v24 = vld [vmem:[%s22448_s4 + $0x910] sm:$0xf] }
 0x790   : > { %9089 = vmatpush.bf16.msrb.mxu2 %v13861_v52  ;;  %v13285_v33 = vor.u32 %v14994_v16, %v13284_v24  ;;  %v14981_v24 = vld [vmem:[%s22448_s4 + $0x8cc] sm:$0xf]  ;;  %v13250_v16 = vld [vmem:[%s22448_s4 + $0x8ec] sm:$0xf0] }
 0x791   : > { %8986 = vmatmul.bf16.gmra.mxu3 %v22741_v22  ;;  %v10615_v53 = vsel %vm10554_vm1, %v10612_v7, %v10614_v2 }
 0x792   : > { %v20234_v23 = vadd.f32 %v10615_v53, %v19693_v47  ;;  %v8777_v51 = vpop.f32.mrf.mxu2  ;;  %9007 = vmatpush.bf16.msrb.mxu0 %v13285_v33  ;;  %v14837_v33 = vld [vmem:[%s22448_s4 + $0x44c] sm:$0xf] }
 0x793   : > { %v8778_v4 = vadd.f32 %v8777_v51, %v8737_v34  ;;  %v8738_v7 = vpop.f32.mrf.mxu1  ;;  %v15066_v34 = vld [vmem:[%s22448_s4 + $0xb70] sm:$0xf0] }
 0x794   : > { %v8818_v28 = vpop.f32.mrf.mxu3  ;;  %v8697_v61 = vpop.f32.mrf.mxu0  ;;  %v13573_v0 = vor.u32 %v15066_v34, %v13572_v46 }
 0x795   : > { %v8698_v29 = vadd.f32 %v8697_v61, %v20008_v62  ;;  %v8819_v5 = vadd.f32 %v8818_v28, %v8778_v4  ;;  %v14148_v62 = vld [vmem:[%s22448_s4 + $0xfd0] sm:$0xf] }
 0x796   : > { %9048 = vmatpush.bf16.msrb.mxu1 %v13573_v0 }
 0x797   : > { %v8739_v47 = vadd.f32 %v8738_v7, %v8698_v29  ;;  %v10616_v60 = vrot.slane %v8819_v5, 2  ;;  %v14909_v29 = vld [vmem:[%s22448_s4 + $0x68c] sm:$0xf]  ;;  %v12962_v7 = vld [vmem:[%s22448_s4 + $0x6ac] sm:$0xf0] }
 0x798   : > { %v14765_v5 = vld [vmem:[%s22448_s4 + $0x20c] sm:$0xf] }
 0x799   : > { %v10617_v3 = vsel %vm10554_vm1, %v10614_v2, %v10616_v60 }
 0x79a   : > { %v20245_v42 = vadd.f32 %v10617_v3, %v19726_v19  ;;  %v8779_v26 = vpop.f32.mrf.mxu2  ;;  %v15210_v19 = vld [vmem:[%s22448_s4 + $0xff0] sm:$0xf0] }
 0x79b   : > { %v8780_v54 = vadd.f32 %v8779_v26, %v8739_v47  ;;  %v8741_v53 = vpop.f32.mrf.mxu1  ;;  %v14149_v51 = vor.u32 %v15210_v19, %v14148_v62  ;;  %v12674_v19 = vld [vmem:[%s22448_s4 + $0x46c] sm:$0xf0] }
 0x79c   : > { %v8820_v9 = vpop.f32.mrf.mxu3  ;;  %v8700_v48 = vpop.f32.mrf.mxu0  ;;  %v12677_v34 = vor.u32 %v14837_v33, %v12674_v19 }
 0x79d   : > { %v8701_v2 = vadd.f32 %v8700_v48, %v20038_v13  ;;  %v8821_v63 = vadd.f32 %v8820_v9, %v8780_v54  ;;  %9130 = vmatpush.bf16.msrb.mxu3 %v14149_v51  ;;  %v13253_v48 = vor.u32 %v14981_v24, %v13250_v16 }
 0x79e   : > { %8909 = vmatmul.bf16.gmra.mxu1 %v22720_v32 }
 0x79f   : > { %v8742_v4 = vadd.f32 %v8741_v53, %v8701_v2  ;;  %8868 = vmatmul.bf16.gmra.mxu0 %v22686_v6  ;;  %v10618_v28 = vrot.slane %v8821_v63, 2  ;;  %8950 = vmatmul.bf16.gmra.mxu2 %v22721_v14 }
 0x7a0   : > { %9205 = vmatpush.bf16.msra.mxu1 %v12677_v34 }
 0x7a1   : > { %8991 = vmatmul.bf16.gmra.mxu3 %v22722_v44  ;;  %v10619_v61 = vsel %vm10554_vm1, %v10616_v60, %v10618_v28  ;;  %v12965_v60 = vor.u32 %v14909_v29, %v12962_v7  ;;  %v14900_v7 = vld [vmem:[%s22448_s4 + $0x644] sm:$0xf] }
 0x7a2   : > { %v20272_v13 = vadd.f32 %v10619_v61, %v19737_v20  ;;  %v8782_v52 = vpop.f32.mrf.mxu2  ;;  %v12386_v20 = vld [vmem:[%s22448_s4 + $0x22c] sm:$0xf0]  ;;  %9287 = vmatpush.bf16.msra.mxu3 %v13253_v48  ;;  %v22804_v48 = vld [vmem:[#allocation21_spill] sm:$0xff] }
 0x7a3   : > { %v8783_v47 = vadd.f32 %v8782_v52, %v8742_v4  ;;  %v8743_v54 = vpop.f32.mrf.mxu1  ;;  %v12389_v9 = vor.u32 %v14765_v5, %v12386_v20  ;;  %9246 = vmatpush.bf16.msra.mxu2 %v12965_v60  ;;  %v12926_v5 = vld [vmem:[%s22448_s4 + $0x664] sm:$0xf0]  ;;  %v14972_v20 = vld [vmem:[%s22448_s4 + $0x884] sm:$0xf] }
 0x7a4   : > { %v8823_v3 = vpop.f32.mrf.mxu3  ;;  %v8702_v26 = vpop.f32.mrf.mxu0  ;;  %v12350_v60 = vld [vmem:[%s22448_s4 + $0x1e4] sm:$0xf0] }
 0x7a5   : > { %v8703_v62 = vadd.f32 %v8702_v26, %v20046_v49  ;;  %v8824_v46 = vadd.f32 %v8823_v3, %v8783_v47  ;;  %9164 = vmatpush.bf16.msra.mxu0 %v12389_v9  ;;  %v14756_v26 = vld [vmem:[%s22448_s4 + $0x1c4] sm:$0xf]  ;;  %v12638_v9 = vld [vmem:[%s22448_s4 + $0x424] sm:$0xf0] }
 0x7a6   : > { %v12353_v16 = vor.u32 %v14756_v26, %v12350_v60 }
 0x7a7   : > { %v8744_v2 = vadd.f32 %v8743_v54, %v8703_v62  ;;  %v10620_v53 = vrot.slane %v8824_v46, 2  ;;  %v13214_v62 = vld [vmem:[%s22448_s4 + $0x8a4] sm:$0xf0]  ;;  %v14828_v54 = vld [vmem:[%s22448_s4 + $0x404] sm:$0xf] }
 0x7a8   : > { %v13217_v46 = vor.u32 %v14972_v20, %v13214_v62  ;;  %v12641_v34 = vor.u32 %v14828_v54, %v12638_v9  ;;  %v12314_v54 = vld [vmem:[%s22448_s4 + $0x19c] sm:$0xf0]  ;;  %v14963_v9 = vld [vmem:[%s22448_s4 + $0x83c] sm:$0xf] }
 0x7a9   : > { %v10621_v49 = vsel %vm10554_vm1, %v10618_v28, %v10620_v53  ;;  %v12929_v28 = vor.u32 %v14900_v7, %v12926_v5  ;;  %9165 = vmatpush.bf16.msra.mxu0 %v12353_v16  ;;  %v22806_v7 = vld [vmem:[#allocation27_spill] sm:$0xff]  ;;  %v22808_v16 = vld [vmem:[#allocation40_spill] sm:$0xff] }
 0x7aa   : > { %v20301_v51 = vadd.f32 %v10621_v49, %v19782_v41  ;;  %v8784_v0 = vpop.f32.mrf.mxu2  ;;  %9288 = vmatpush.bf16.msra.mxu3 %v13217_v46  ;;  %9206 = vmatpush.bf16.msra.mxu1 %v12641_v34  ;;  %v22809_v46 = vld [vmem:[#allocation41_spill] sm:$0xff] }
 0x7ab   : > { %v8785_v63 = vadd.f32 %v8784_v0, %v8744_v2  ;;  %v8746_v29 = vpop.f32.mrf.mxu1  ;;  %9247 = vmatpush.bf16.msra.mxu2 %v12929_v28  ;;  %v22810_v34 = vld [vmem:[#allocation25_spill] sm:$0xff] }
 0x7ac   : > { %v8825_v4 = vpop.f32.mrf.mxu3  ;;  %v8705_v61 = vpop.f32.mrf.mxu0 }
 0x7ad   : > { %v8706_v52 = vadd.f32 %v8705_v61, %v20070_v35  ;;  %v8826_v47 = vadd.f32 %v8825_v4, %v8785_v63  ;;  %v22803_v35 = vld [vmem:[#allocation31_spill] sm:$0xff] }
 0x7ae   : > { %8914 = vmatmul.bf16.gmra.mxu1 %v22726_v58 }
 0x7af   : > { %v8747_v3 = vadd.f32 %v8746_v29, %v8706_v52  ;;  %8873 = vmatmul.bf16.gmra.mxu0 %v22724_v31  ;;  %v10622_v41 = vrot.slane %v8826_v47, 2  ;;  %8955 = vmatmul.bf16.gmra.mxu2 %v22771_v18 }
 0x7b1   : > { %8996 = vmatmul.bf16.gmra.mxu3 %v22803_v35  ;;  %v10623_v24 = vsel %vm10554_vm1, %v10620_v53, %v10622_v41 }
 0x7b2   : > { %v20334_v33 = vadd.f32 %v10623_v24, %v22804_v48  ;;  %v8787_v19 = vpop.f32.mrf.mxu2  ;;  %v12890_v24 = vld [vmem:[%s22448_s4 + $0x61c] sm:$0xf0] }
 0x7b3   : > { %v8788_v2 = vadd.f32 %v8787_v19, %v8747_v3  ;;  %v8748_v63 = vpop.f32.mrf.mxu1  ;;  %v13178_v48 = vld [vmem:[%s22448_s4 + $0x85c] sm:$0xf0] }
 0x7b4   : > { %22805 = vst [vmem:[#allocation38_spill] sm:$0xff] %v20334_v33  ;;  %v8828_v53 = vpop.f32.mrf.mxu3  ;;  %v8707_v49 = vpop.f32.mrf.mxu0 }
 0x7b5   : > { %v8708_v0 = vadd.f32 %v8707_v49, %v20072_v27  ;;  %v8829_v4 = vadd.f32 %v8828_v53, %v8788_v2  ;;  %v14891_v27 = vld [vmem:[%s22448_s4 + $0x5fc] sm:$0xf]  ;;  %v13181_v53 = vor.u32 %v14963_v9, %v13178_v48  ;;  %v22811_v49 = vld [vmem:[#allocation2_spill] sm:$0xff]  ;;  %v12278_v9 = vld [vmem:[%s22448_s4 + $0x154] sm:$0xf0] }
 0x7b6   : > { %v12893_v62 = vor.u32 %v14891_v27, %v12890_v24  ;;  %v14954_v48 = vld [vmem:[%s22448_s4 + $0x7f4] sm:$0xf] }
 0x7b7   : > { %v8749_v61 = vadd.f32 %v8748_v63, %v8708_v0  ;;  %v10624_v52 = vrot.slane %v8829_v4, 2  ;;  %v14819_v0 = vld [vmem:[%s22448_s4 + $0x3bc] sm:$0xf]  ;;  %v12602_v63 = vld [vmem:[%s22448_s4 + $0x3dc] sm:$0xf0]  ;;  %9289 = vmatpush.bf16.msra.mxu3 %v13181_v53 }
 0x7b8   : > { %9248 = vmatpush.bf16.msra.mxu2 %v12893_v62  ;;  %v13142_v53 = vld [vmem:[%s22448_s4 + $0x814] sm:$0xf0] }
 0x7b9   : > { %v10625_v29 = vsel %vm10554_vm1, %v10622_v41, %v10624_v52  ;;  %v14747_v41 = vld [vmem:[%s22448_s4 + $0x17c] sm:$0xf] }
 0x7ba   : > { %v20339_v5 = vadd.f32 %v10625_v29, %v22806_v7  ;;  %v8789_v47 = vpop.f32.mrf.mxu2  ;;  %v12317_v2 = vor.u32 %v14747_v41, %v12314_v54  ;;  %v22812_v29 = vld [vmem:[#allocation37_spill] sm:$0xff]  ;;  %v14738_v54 = vld [vmem:[%s22448_s4 + $0x134] sm:$0xf] }
 0x7bb   : > { %v8790_v28 = vadd.f32 %v8789_v47, %v8749_v61  ;;  %v8751_v60 = vpop.f32.mrf.mxu1  ;;  %v12605_v61 = vor.u32 %v14819_v0, %v12602_v63  ;;  %v14810_v0 = vld [vmem:[%s22448_s4 + $0x374] sm:$0xf]  ;;  %v12566_v63 = vld [vmem:[%s22448_s4 + $0x394] sm:$0xf0] }
 0x7bc   : > { %22807 = vst [vmem:[#allocation14_spill] sm:$0xff] %v20339_v5  ;;  %v8830_v26 = vpop.f32.mrf.mxu3  ;;  %v8710_v3 = vpop.f32.mrf.mxu0  ;;  %9166 = vmatpush.bf16.msra.mxu0 %v12317_v2  ;;  %v14882_v60 = vld [vmem:[%s22448_s4 + $0x5b4] sm:$0xf]  ;;  %v12281_v2 = vor.u32 %v14738_v54, %v12278_v9  ;;  %v12242_v54 = vld [vmem:[%s22448_s4 + $0x10c] sm:$0xf0] }
 0x7bd   : > { %v8831_v20 = vadd.f32 %v8830_v26, %v8790_v28  ;;  %9207 = vmatpush.bf16.msra.mxu1 %v12605_v61  ;;  %v22816_v61 = vld [vmem:[#allocation3_spill] sm:$0xff] }
 0x7be   : > { %9049 = vmatmul.bf16.vlgmr.msrb.gmra.mxu1 %v22809_v46  ;;  %v14945_v9 = vld [vmem:[%s22448_s4 + $0x7ac] sm:$0xf] }
 0x7bf   : > { %9008 = vmatmul.bf16.vlgmr.msrb.gmra.mxu0 %v22808_v16  ;;  %v10626_v19 = vrot.slane %v8831_v20, 2  ;;  %9090 = vmatmul.bf16.vlgmr.msrb.gmra.mxu2 %v22810_v34  ;;  %v12854_v20 = vld [vmem:[%s22448_s4 + $0x5d4] sm:$0xf0]  ;;  %v22833_v34 = vld [vmem:[#allocation32_spill] sm:$0xff] }
 0x7c0   : > { %9167 = vmatpush.bf16.msra.mxu0 %v12281_v2 }
 0x7c1   : > { %9131 = vmatmul.bf16.vlgmr.msrb.gmra.mxu3 %v22811_v49  ;;  %v10627_v4 = vsel %vm10554_vm1, %v10624_v52, %v10626_v19  ;;  %v12857_v52 = vor.u32 %v14882_v60, %v12854_v20  ;;  %v22814_v19 = vld [vmem:[#allocation12_spill] sm:$0xff]  ;;  %v22832_v49 = vld [vmem:[#allocation17_spill] sm:$0xff] }
 0x7c2   : > { %v20371_v7 = vadd.f32 %v10627_v4, %v22812_v29  ;;  %v8792_v47 = vpop.f32.mrf.mxu2  ;;  %v22815_v4 = vld [vmem:[#allocation42_spill] sm:$0xff]  ;;  %v13145_v29 = vor.u32 %v14954_v48, %v13142_v53  ;;  %v13106_v48 = vld [vmem:[%s22448_s4 + $0x7cc] sm:$0xf0] }
 0x7c3   : > { %v8752_v3 = vpop.f32.mrf.mxu1  ;;  %9249 = vmatpush.bf16.msra.mxu2 %v12857_v52  ;;  %v12569_v47 = vor.u32 %v14810_v0, %v12566_v63  ;;  %v13109_v53 = vor.u32 %v14945_v9, %v13106_v48 }
 0x7c4   : > { %22813 = vst [vmem:[#allocation15_spill] sm:$0xff] %v20371_v7  ;;  %v8833_v28 = vpop.f32.mrf.mxu3  ;;  %v8711_v26 = vpop.f32.mrf.mxu0  ;;  %9290 = vmatpush.bf16.msra.mxu3 %v13145_v29  ;;  %v22831_v7 = vld [vmem:[#allocation24_spill] sm:$0xff] }
 0x7c5   : > { %v22817_v28 = vld [vmem:[#allocation4_spill] sm:$0xff]  ;;  %9208 = vmatpush.bf16.msra.mxu1 %v12569_v47 }
 0x7c8   : > { %9291 = vmatpush.bf16.msra.mxu3 %v13109_v53 }
 0x7ca   : > { %v8793_v27 = vpop.f32.mrf.mxu2 }
 0x7cb   : > { %v8886_v62 = vpop.f32.mrf.mxu1  ;;  %v14873_v27 = vld [vmem:[%s22448_s4 + $0x56c] sm:$0xf] }
 0x7cc   : > { %v8834_v24 = vpop.f32.mrf.mxu3  ;;  %v8845_v41 = vpop.f32.mrf.mxu0 }
 0x7cd   : > { %v12818_v24 = vld [vmem:[%s22448_s4 + $0x58c] sm:$0xf0]  ;;  %v14729_v41 = vld [vmem:[%s22448_s4 + $0xec] sm:$0xf] }
 0x7ce   : > { %9053 = vmatmul.bf16.gmra.mxu1 %v22815_v4  ;;  %v12821_v62 = vor.u32 %v14873_v27, %v12818_v24  ;;  %v12245_v2 = vor.u32 %v14729_v41, %v12242_v54  ;;  %v12530_v27 = vld [vmem:[%s22448_s4 + $0x34c] sm:$0xf0]  ;;  %v22818_v24 = vld [vmem:[#allocation43_spill] sm:$0xff] }
 0x7cf   : > { %9012 = vmatmul.bf16.gmra.mxu0 %v22814_v19  ;;  %9094 = vmatmul.bf16.gmra.mxu2 %v22816_v61  ;;  %v22821_v54 = vld [vmem:[#allocation11_spill] sm:$0xff]  ;;  %v22825_v61 = vld [vmem:[#allocation29_spill] sm:$0xff]  ;;  %v22828_v4 = vld [vmem:[#allocation8_spill] sm:$0xff] }
 0x7d0   : > { %9250 = vmatpush.bf16.msra.mxu2 %v12821_v62  ;;  %9168 = vmatpush.bf16.msra.mxu0 %v12245_v2  ;;  %v22819_v62 = vld [vmem:[#allocation44_spill] sm:$0xff] }
 0x7d1   : > { %9135 = vmatmul.bf16.gmra.mxu3 %v22817_v28  ;;  %v22824_v28 = vld [vmem:[#allocation9_spill] sm:$0xff]  ;;  %v22829_v19 = vld [vmem:[#allocation16_spill] sm:$0xff] }
 0x7d2   : > { %v8927_v26 = vpop.f32.mrf.mxu2 }
 0x7d3   : > { %v8887_v20 = vpop.f32.mrf.mxu1 }
 0x7d4   : > { %v8968_v3 = vpop.f32.mrf.mxu3  ;;  %v8846_v60 = vpop.f32.mrf.mxu0 }
 0x7d5   : > { %v8888_v52 = vadd.f32 %v8887_v20, %v8846_v60  ;;  %v14801_v20 = vld [vmem:[%s22448_s4 + $0x32c] sm:$0xf] }
 0x7d6   : > { %v12533_v41 = vor.u32 %v14801_v20, %v12530_v27  ;;  %v14720_v20 = vld [vmem:[%s22448_s4 + $0xa4] sm:$0xf] }
 0x7d8   : > { %9209 = vmatpush.bf16.msra.mxu1 %v12533_v41  ;;  %v14936_v41 = vld [vmem:[%s22448_s4 + $0x764] sm:$0xf] }
 0x7da   : > { %v8928_v0 = vpop.f32.mrf.mxu2 }
 0x7db   : > { %v8929_v63 = vadd.f32 %v8928_v0, %v8888_v52  ;;  %v8890_v26 = vpop.f32.mrf.mxu1  ;;  %v22820_v52 = vld [vmem:[#allocation10_spill] sm:$0xff] }
 0x7dc   : > { %v8969_v29 = vpop.f32.mrf.mxu3  ;;  %v8849_v47 = vpop.f32.mrf.mxu0 }
 0x7dd   : > { %v20419_v3 = vadd.f32 %v8969_v29, %v8929_v63  ;;  %v8891_v60 = vadd.f32 %v8890_v26, %v8849_v47  ;;  %v14864_v47 = vld [vmem:[%s22448_s4 + $0x524] sm:$0xf]  ;;  %v12782_v26 = vld [vmem:[%s22448_s4 + $0x544] sm:$0xf0] }
 0x7de   : > { %9058 = vmatmul.bf16.gmra.mxu1 %v22819_v62  ;;  %v12785_v27 = vor.u32 %v14864_v47, %v12782_v26 }
 0x7df   : > { %9017 = vmatmul.bf16.gmra.mxu0 %v22818_v24  ;;  %9099 = vmatmul.bf16.gmra.mxu2 %v22820_v52 }
 0x7e0   : > { %9251 = vmatpush.bf16.msra.mxu2 %v12785_v27 }
 0x7e1   : > { %9140 = vmatmul.bf16.gmra.mxu3 %v22821_v54 }
 0x7e2   : > { %v8931_v9 = vpop.f32.mrf.mxu2 }
 0x7e3   : > { %v8932_v48 = vadd.f32 %v8931_v9, %v8891_v60  ;;  %v8892_v0 = vpop.f32.mrf.mxu1  ;;  %v12206_v60 = vld [vmem:[%s22448_s4 + $0xc4] sm:$0xf0] }
 0x7e4   : > { %v8972_v2 = vpop.f32.mrf.mxu3  ;;  %v8851_v53 = vpop.f32.mrf.mxu0  ;;  %v13070_v9 = vld [vmem:[%s22448_s4 + $0x784] sm:$0xf0] }
 0x7e5   : > { %v20431_v63 = vadd.f32 %v8972_v2, %v8932_v48  ;;  %v8893_v29 = vadd.f32 %v8892_v0, %v8851_v53  ;;  %v12209_v48 = vor.u32 %v14720_v20, %v12206_v60  ;;  %v13073_v2 = vor.u32 %v14936_v41, %v13070_v9  ;;  %v14792_v53 = vld [vmem:[%s22448_s4 + $0x2e4] sm:$0xf]  ;;  %v12494_v0 = vld [vmem:[%s22448_s4 + $0x304] sm:$0xf0]  ;;  %v22822_v41 = vld [vmem:[#allocation45_spill] sm:$0xff] }
 0x7e6   : > { %v12497_v47 = vor.u32 %v14792_v53, %v12494_v0  ;;  %v22823_v9 = vld [vmem:[#allocation46_spill] sm:$0xff] }
 0x7e7   : > { %9169 = vmatpush.bf16.msra.mxu0 %v12209_v48  ;;  %9292 = vmatpush.bf16.msra.mxu3 %v13073_v2 }
 0x7e8   : > { %9210 = vmatpush.bf16.msra.mxu1 %v12497_v47 }
 0x7ea   : > { %v8933_v26 = vpop.f32.mrf.mxu2 }
 0x7eb   : > { %v8934_v54 = vadd.f32 %v8933_v26, %v8893_v29  ;;  %v8895_v24 = vpop.f32.mrf.mxu1  ;;  %v12170_v26 = vld [vmem:[%s22448_s4 + $0x7c] sm:$0xf0] }
 0x7ec   : > { %v8974_v52 = vpop.f32.mrf.mxu3  ;;  %v8854_v62 = vpop.f32.mrf.mxu0 }
 0x7ed   : > { %v20457_v20 = vadd.f32 %v8974_v52, %v8934_v54  ;;  %v8896_v60 = vadd.f32 %v8895_v24, %v8854_v62  ;;  %v14855_v24 = vld [vmem:[%s22448_s4 + $0x4dc] sm:$0xf]  ;;  %v12746_v62 = vld [vmem:[%s22448_s4 + $0x4fc] sm:$0xf0] }
 0x7ee   : > { %9063 = vmatmul.bf16.gmra.mxu1 %v22823_v9  ;;  %v14711_v52 = vld [vmem:[%s22448_s4 + $0x5c] sm:$0xf]  ;;  %v12749_v54 = vor.u32 %v14855_v24, %v12746_v62 }
 0x7ef   : > { %9022 = vmatmul.bf16.gmra.mxu0 %v22822_v41  ;;  %9104 = vmatmul.bf16.gmra.mxu2 %v22824_v28 }
 0x7f0   : > { %9252 = vmatpush.bf16.msra.mxu2 %v12749_v54  ;;  %v14846_v54 = vld [vmem:[%s22448_s4 + $0x494] sm:$0xf] }
 0x7f1   : > { %9145 = vmatmul.bf16.gmra.mxu3 %v22825_v61 }
 0x7f2   : > { %v8936_v27 = vpop.f32.mrf.mxu2 }
 0x7f3   : > { %v8937_v48 = vadd.f32 %v8936_v27, %v8896_v60  ;;  %v8897_v0 = vpop.f32.mrf.mxu1  ;;  %v14927_v60 = vld [vmem:[%s22448_s4 + $0x71c] sm:$0xf]  ;;  %v13034_v27 = vld [vmem:[%s22448_s4 + $0x73c] sm:$0xf0] }
 0x7f4   : > { %v8977_v2 = vpop.f32.mrf.mxu3  ;;  %v8856_v53 = vpop.f32.mrf.mxu0 }
 0x7f5   : > { %v20463_v29 = vadd.f32 %v8977_v2, %v8937_v48  ;;  %v8898_v47 = vadd.f32 %v8897_v0, %v8856_v53  ;;  %v12173_v48 = vor.u32 %v14711_v52, %v12170_v26  ;;  %v13037_v2 = vor.u32 %v14927_v60, %v13034_v27  ;;  %v14783_v53 = vld [vmem:[%s22448_s4 + $0x29c] sm:$0xf]  ;;  %v12458_v0 = vld [vmem:[%s22448_s4 + $0x2bc] sm:$0xf0] }
 0x7f6   : > { %v12461_v24 = vor.u32 %v14783_v53, %v12458_v0  ;;  %v22826_v60 = vld [vmem:[#allocation5_spill] sm:$0xff]  ;;  %v22827_v27 = vld [vmem:[#allocation6_spill] sm:$0xff] }
 0x7f7   : > { %9170 = vmatpush.bf16.msra.mxu0 %v12173_v48  ;;  %9293 = vmatpush.bf16.msra.mxu3 %v13037_v2 }
 0x7f8   : > { %9211 = vmatpush.bf16.msra.mxu1 %v12461_v24  ;;  %v14702_v24 = vld [vmem:[%s22448_s4 + $0x14] sm:$0xf] }
 0x7fa   : > { %v8938_v62 = vpop.f32.mrf.mxu2 }
 0x7fb   : > { %v8939_v61 = vadd.f32 %v8938_v62, %v8898_v47  ;;  %v8900_v41 = vpop.f32.mrf.mxu1  ;;  %v12710_v47 = vld [vmem:[%s22448_s4 + $0x4b4] sm:$0xf0] }
 0x7fc   : > { %v8979_v28 = vpop.f32.mrf.mxu3  ;;  %v8859_v9 = vpop.f32.mrf.mxu0  ;;  %v12713_v48 = vor.u32 %v14846_v54, %v12710_v47  ;;  %v12134_v62 = vld [vmem:[%s22448_s4 + $0x34] sm:$0xf0]  ;;  %v14918_v54 = vld [vmem:[%s22448_s4 + $0x6d4] sm:$0xf] }
 0x7fd   : > { %v20489_v52 = vadd.f32 %v8979_v28, %v8939_v61  ;;  %v8901_v26 = vadd.f32 %v8900_v41, %v8859_v9  ;;  %v12998_v47 = vld [vmem:[%s22448_s4 + $0x6f4] sm:$0xf0] }
 0x7fe   : > { %9068 = vmatmul.bf16.gmra.mxu1 %v22827_v27  ;;  %9253 = vmatpush.bf16.msra.mxu2 %v12713_v48  ;;  %v14774_v48 = vld [vmem:[%s22448_s4 + $0x254] sm:$0xf] }
 0x7ff   : > { %9027 = vmatmul.bf16.gmra.mxu0 %v22826_v60  ;;  %9109 = vmatmul.bf16.gmra.mxu2 %v22828_v4  ;;  %v22830_v60 = vld [vmem:[#allocation7_spill] sm:$0xff] }
 0x801   : > { %9150 = vmatmul.bf16.gmra.mxu3 %v22829_v19 }
 0x802   : > { %v8941_v61 = vpop.f32.mrf.mxu2 }
 0x803   : > { %v8942_v28 = vadd.f32 %v8941_v61, %v8901_v26  ;;  %v8902_v2 = vpop.f32.mrf.mxu1  ;;  %v12137_v26 = vor.u32 %v14702_v24, %v12134_v62  ;;  %v12422_v61 = vld [vmem:[%s22448_s4 + $0x274] sm:$0xf0] }
 0x804   : > { %v8982_v41 = vpop.f32.mrf.mxu3  ;;  %v8861_v9 = vpop.f32.mrf.mxu0 }
 0x805   : > { %v20501_v53 = vadd.f32 %v8982_v41, %v8942_v28  ;;  %v8903_v0 = vadd.f32 %v8902_v2, %v8861_v9  ;;  %v13001_v28 = vor.u32 %v14918_v54, %v12998_v47  ;;  %v12425_v41 = vor.u32 %v14774_v48, %v12422_v61  ;;  %9171 = vmatpush.bf16.msra.mxu0 %v12137_v26  ;;  %v15197_v54 = vld [vmem:[%s22448_s4 + $0xf8c] sm:$0xf]  ;;  %v13538_v47 = vld [vmem:[%s22448_s4 + $0xb2c] sm:$0xf0] }
 0x806   : > { %v15269_v48 = vld [vmem:[%s22448_s4 + $0x11cc] sm:$0xf]  ;;  %v14402_v61 = vld [vmem:[%s22448_s4 + $0x11ec] sm:$0xf0] }
 0x807   : > { %9294 = vmatpush.bf16.msra.mxu3 %v13001_v28  ;;  %9212 = vmatpush.bf16.msra.mxu1 %v12425_v41 }
 0x80a   : > { %v8943_v9 = vpop.f32.mrf.mxu2 }
 0x80b   : > { %v8944_v2 = vadd.f32 %v8943_v9, %v8903_v0  ;;  %v8905_v19 = vpop.f32.mrf.mxu1  ;;  %v14114_v0 = vld [vmem:[%s22448_s4 + $0xfac] sm:$0xf0]  ;;  %v14405_v9 = vor.u32 %v15269_v48, %v14402_v61 }
 0x80c   : > { %v8984_v24 = vpop.f32.mrf.mxu3  ;;  %v8864_v62 = vpop.f32.mrf.mxu0  ;;  %v14117_v26 = vor.u32 %v15197_v54, %v14114_v0  ;;  %v15125_v54 = vld [vmem:[%s22448_s4 + $0xd4c] sm:$0xf]  ;;  %v13826_v0 = vld [vmem:[%s22448_s4 + $0xd6c] sm:$0xf0] }
 0x80d   : > { %v20521_v4 = vadd.f32 %v8984_v24, %v8944_v2  ;;  %v8906_v27 = vadd.f32 %v8905_v19, %v8864_v62  ;;  %v15053_v19 = vld [vmem:[%s22448_s4 + $0xb0c] sm:$0xf]  ;;  %9451 = vmatpush.bf16.msrb.mxu3 %v14405_v9 }
 0x80e   : > { %9073 = vmatmul.bf16.gmra.mxu1 %v22831_v7  ;;  %v13541_v41 = vor.u32 %v15053_v19, %v13538_v47  ;;  %9410 = vmatpush.bf16.msrb.mxu2 %v14117_v26 }
 0x80f   : > { %9032 = vmatmul.bf16.gmra.mxu0 %v22830_v60  ;;  %9114 = vmatmul.bf16.gmra.mxu2 %v22832_v49  ;;  %v13829_v49 = vor.u32 %v15125_v54, %v13826_v0  ;;  %v14078_v60 = vld [vmem:[%s22448_s4 + $0xf64] sm:$0xf0]  ;;  %v15044_v54 = vld [vmem:[%s22448_s4 + $0xac4] sm:$0xf] }
 0x810   : > { %9328 = vmatpush.bf16.msrb.mxu0 %v13541_v41  ;;  %v13502_v0 = vld [vmem:[%s22448_s4 + $0xae4] sm:$0xf0] }
 0x811   : > { %9155 = vmatmul.bf16.gmra.mxu3 %v22833_v34  ;;  %9369 = vmatpush.bf16.msrb.mxu1 %v13829_v49  ;;  %v22836_v49 = vld [vmem:[#allocation19_spill] sm:$0xff] }
 0x812   : > { %v8946_v28 = vpop.f32.mrf.mxu2 }
 0x813   : > { %v8947_v2 = vadd.f32 %v8946_v28, %v8906_v27  ;;  %v8907_v34 = vpop.f32.mrf.mxu1  ;;  %v15188_v28 = vld [vmem:[%s22448_s4 + $0xf44] sm:$0xf] }
 0x814   : > { %v8987_v24 = vpop.f32.mrf.mxu3  ;;  %v8866_v62 = vpop.f32.mrf.mxu0 }
 0x815   : > { %v20551_v7 = vadd.f32 %v8987_v24, %v8947_v2  ;;  %v8908_v19 = vadd.f32 %v8907_v34, %v8866_v62  ;;  %v14081_v2 = vor.u32 %v15188_v28, %v14078_v60  ;;  %v22834_v24 = vld [vmem:[#allocation33_spill] sm:$0xff]  ;;  %v22835_v34 = vld [vmem:[#allocation18_spill] sm:$0xff] }
 0x816   : > { %v22837_v62 = vld [vmem:[#allocation34_spill] sm:$0xff] }
 0x817   : > { %9411 = vmatpush.bf16.msrb.mxu2 %v14081_v2  ;;  %v15260_v60 = vld [vmem:[%s22448_s4 + $0x1184] sm:$0xf] }
 0x81a   : > { %v8948_v27 = vpop.f32.mrf.mxu2 }
 0x81b   : > { %v8949_v47 = vadd.f32 %v8948_v27, %v8908_v19  ;;  %v8910_v61 = vpop.f32.mrf.mxu1  ;;  %v13505_v19 = vor.u32 %v15044_v54, %v13502_v0  ;;  %v14366_v27 = vld [vmem:[%s22448_s4 + $0x11a4] sm:$0xf0] }
 0x81c   : > { %v8989_v48 = vpop.f32.mrf.mxu3  ;;  %v8869_v26 = vpop.f32.mrf.mxu0 }
 0x81d   : > { %v20559_v41 = vadd.f32 %v8989_v48, %v8949_v47  ;;  %v8911_v9 = vadd.f32 %v8910_v61, %v8869_v26  ;;  %v15116_v47 = vld [vmem:[%s22448_s4 + $0xd04] sm:$0xf]  ;;  %v13790_v48 = vld [vmem:[%s22448_s4 + $0xd24] sm:$0xf0]  ;;  %v14369_v61 = vor.u32 %v15260_v60, %v14366_v27  ;;  %9329 = vmatpush.bf16.msrb.mxu0 %v13505_v19  ;;  %v15107_v60 = vld [vmem:[%s22448_s4 + $0xcbc] sm:$0xf] }
 0x81e   : > { %9078 = vmatmul.bf16.gmra.mxu1 %v22835_v34  ;;  %v13793_v28 = vor.u32 %v15116_v47, %v13790_v48  ;;  %v13754_v19 = vld [vmem:[%s22448_s4 + $0xcdc] sm:$0xf0] }
 0x81f   : > { %9037 = vmatmul.bf16.gmra.mxu0 %v22834_v24  ;;  %9119 = vmatmul.bf16.gmra.mxu2 %v22836_v49  ;;  %v13757_v47 = vor.u32 %v15107_v60, %v13754_v19 }
 0x820   : > { %9452 = vmatpush.bf16.msrb.mxu3 %v14369_v61  ;;  %9370 = vmatpush.bf16.msrb.mxu1 %v13793_v28 }
 0x821   : > { %9160 = vmatmul.bf16.gmra.mxu3 %v22837_v62 }
 0x822   : > { %v8951_v26 = vpop.f32.mrf.mxu2 }
 0x823   : > { %v8952_v2 = vadd.f32 %v8951_v26, %v8911_v9  ;;  %v8912_v54 = vpop.f32.mrf.mxu1  ;;  %v15179_v9 = vld [vmem:[%s22448_s4 + $0xefc] sm:$0xf] }
 0x824   : > { %v8992_v62 = vpop.f32.mrf.mxu3  ;;  %v8871_v49 = vpop.f32.mrf.mxu0  ;;  %9371 = vmatpush.bf16.msrb.mxu1 %v13757_v47  ;;  %v15098_v47 = vld [vmem:[%s22448_s4 + $0xc74] sm:$0xf] }
 0x825   : > { %v20583_v0 = vadd.f32 %v8992_v62, %v8952_v2  ;;  %v8913_v34 = vadd.f32 %v8912_v54, %v8871_v49  ;;  %v14042_v49 = vld [vmem:[%s22448_s4 + $0xf1c] sm:$0xf0]  ;;  %v15170_v2 = vld [vmem:[%s22448_s4 + $0xeb4] sm:$0xf]  ;;  %v14006_v54 = vld [vmem:[%s22448_s4 + $0xed4] sm:$0xf0] }
 0x82a   : > { %v8953_v24 = vpop.f32.mrf.mxu2 }
 0x82b   : > { %v8954_v46 = vadd.f32 %v8953_v24, %v8913_v34  ;;  %v8915_v33 = vpop.f32.mrf.mxu1  ;;  %v14330_v24 = vld [vmem:[%s22448_s4 + $0x115c] sm:$0xf0] }
 0x82c   : > { %v8994_v16 = vpop.f32.mrf.mxu3  ;;  %v8874_v5 = vpop.f32.mrf.mxu0  ;;  %v15035_v33 = vld [vmem:[%s22448_s4 + $0xa7c] sm:$0xf] }
 0x82d   : > { %v20585_v35 = vadd.f32 %v8994_v16, %v8954_v46  ;;  %v14045_v5 = vor.u32 %v15179_v9, %v14042_v49  ;;  %v13466_v16 = vld [vmem:[%s22448_s4 + $0xa9c] sm:$0xf0]  ;;  %v15251_v46 = vld [vmem:[%s22448_s4 + $0x113c] sm:$0xf] }
 0x82e   : > { %9213 = vmatmul.bf16.vlgmr.msra.gmra.mxu1 %v22659_v25  ;;  %v13469_v34 = vor.u32 %v15035_v33, %v13466_v16  ;;  %v14333_v62 = vor.u32 %v15251_v46, %v14330_v24  ;;  %v14009_v33 = vor.u32 %v15170_v2, %v14006_v54  ;;  %v15026_v46 = vld [vmem:[%s22448_s4 + $0xa34] sm:$0xf]  ;;  %v13430_v24 = vld [vmem:[%s22448_s4 + $0xa54] sm:$0xf0] }
 0x82f   : > { %9172 = vmatmul.bf16.vlgmr.msra.gmra.mxu0 %v22658_v40  ;;  %9254 = vmatmul.bf16.vlgmr.msra.gmra.mxu2 %v22660_v50  ;;  %v13433_v19 = vor.u32 %v15026_v46, %v13430_v24 }
 0x830   : > { %9412 = vmatpush.bf16.msrb.mxu2 %v14045_v5  ;;  %9330 = vmatpush.bf16.msrb.mxu0 %v13469_v34  ;;  %v15242_v34 = vld [vmem:[%s22448_s4 + $0x10f4] sm:$0xf] }
 0x831   : > { %9295 = vmatmul.bf16.vlgmr.msra.gmra.mxu3 %v22661_v56 }
 0x832   : > { %v8956_v27 = vpop.f32.mrf.mxu2  ;;  %9453 = vmatpush.bf16.msrb.mxu3 %v14333_v62 }
 0x833   : > { %v8916_v61 = vpop.f32.mrf.mxu1  ;;  %v14294_v27 = vld [vmem:[%s22448_s4 + $0x1114] sm:$0xf0] }
 0x834   : > { %v8997_v48 = vpop.f32.mrf.mxu3  ;;  %v8875_v26 = vpop.f32.mrf.mxu0  ;;  %9413 = vmatpush.bf16.msrb.mxu2 %v14009_v33  ;;  %9331 = vmatpush.bf16.msrb.mxu0 %v13433_v19  ;;  %v13970_v33 = vld [vmem:[%s22448_s4 + $0xe8c] sm:$0xf0] }
 0x835   : > { %v13718_v48 = vld [vmem:[%s22448_s4 + $0xc94] sm:$0xf0] }
 0x836   : > { %v13721_v2 = vor.u32 %v15098_v47, %v13718_v48 }
 0x838   : > { %9372 = vmatpush.bf16.msrb.mxu1 %v13721_v2  ;;  %v13682_v2 = vld [vmem:[%s22448_s4 + $0xc4c] sm:$0xf0] }
 0x83a   : > { %v8957_v28 = vpop.f32.mrf.mxu2 }
 0x83b   : > { %v9050_v5 = vpop.f32.mrf.mxu1  ;;  %v14297_v28 = vor.u32 %v15242_v34, %v14294_v27  ;;  %v13394_v34 = vld [vmem:[%s22448_s4 + $0xa0c] sm:$0xf0] }
 0x83c   : > { %v8998_v9 = vpop.f32.mrf.mxu3  ;;  %v9009_v49 = vpop.f32.mrf.mxu0 }
 0x83d   : > { %9454 = vmatpush.bf16.msrb.mxu3 %v14297_v28  ;;  %v15161_v49 = vld [vmem:[%s22448_s4 + $0xe6c] sm:$0xf] }
 0x83e   : > { %9217 = vmatmul.bf16.gmra.mxu1 %v22663_v38  ;;  %v13973_v24 = vor.u32 %v15161_v49, %v13970_v33 }
 0x83f   : > { %9176 = vmatmul.bf16.gmra.mxu0 %v22662_v1  ;;  %9258 = vmatmul.bf16.gmra.mxu2 %v22664_v39 }
 0x840   : > { %9414 = vmatpush.bf16.msrb.mxu2 %v13973_v24 }
 0x841   : > { %9299 = vmatmul.bf16.gmra.mxu3 %v22665_v10 }
 0x842   : > { %v9091_v16 = vpop.f32.mrf.mxu2 }
 0x843   : > { %v9051_v61 = vpop.f32.mrf.mxu1 }
 0x844   : > { %v9132_v62 = vpop.f32.mrf.mxu3  ;;  %v9010_v60 = vpop.f32.mrf.mxu0 }
 0x845   : > { %v9011_v26 = vadd.f32 %v9010_v60, %v20419_v3  ;;  %v15017_v3 = vld [vmem:[%s22448_s4 + $0x9ec] sm:$0xf]  ;;  %v14258_v60 = vld [vmem:[%s22448_s4 + $0x10cc] sm:$0xf0] }
 0x846   : > { %v15233_v62 = vld [vmem:[%s22448_s4 + $0x10ac] sm:$0xf]  ;;  %v13397_v47 = vor.u32 %v15017_v3, %v13394_v34 }
 0x847   : > { %v9052_v54 = vadd.f32 %v9051_v61, %v9011_v26  ;;  %v14261_v48 = vor.u32 %v15233_v62, %v14258_v60 }
 0x848   : > { %9332 = vmatpush.bf16.msrb.mxu0 %v13397_v47  ;;  %v15008_v47 = vld [vmem:[%s22448_s4 + $0x9a4] sm:$0xf] }
 0x849   : > { %9455 = vmatpush.bf16.msrb.mxu3 %v14261_v48 }
 0x84a   : > { %v9092_v9 = vpop.f32.mrf.mxu2 }
 0x84b   : > { %v9093_v5 = vadd.f32 %v9092_v9, %v9052_v54  ;;  %v9054_v27 = vpop.f32.mrf.mxu1 }
 0x84c   : > { %v9133_v16 = vpop.f32.mrf.mxu3  ;;  %v9013_v46 = vpop.f32.mrf.mxu0 }
 0x84d   : > { %v9014_v19 = vadd.f32 %v9013_v46, %v20431_v63  ;;  %v9134_v26 = vadd.f32 %v9133_v16, %v9093_v5  ;;  %v15089_v63 = vld [vmem:[%s22448_s4 + $0xc2c] sm:$0xf] }
 0x84e   : > { %9222 = vmatmul.bf16.gmra.mxu1 %v22668_v15  ;;  %v13685_v33 = vor.u32 %v15089_v63, %v13682_v2  ;;  %v15224_v63 = vld [vmem:[%s22448_s4 + $0x1064] sm:$0xf]  ;;  %v14222_v2 = vld [vmem:[%s22448_s4 + $0x1084] sm:$0xf0] }
 0x84f   : > { %v9055_v61 = vadd.f32 %v9054_v27, %v9014_v19  ;;  %9181 = vmatmul.bf16.gmra.mxu0 %v22667_v11  ;;  %9263 = vmatmul.bf16.gmra.mxu2 %v22669_v57  ;;  %v10660_v24 = vrot.slane %v9134_v26, 3  ;;  %v15152_v27 = vld [vmem:[%s22448_s4 + $0xe24] sm:$0xf] }
 0x850   : > { %9373 = vmatpush.bf16.msrb.mxu1 %v13685_v33  ;;  %v14225_v33 = vor.u32 %v15224_v63, %v14222_v2 }
 0x851   : > { %9304 = vmatmul.bf16.gmra.mxu3 %v22670_v45 }
 0x852   : > { %v9095_v28 = vpop.f32.mrf.mxu2  ;;  %9456 = vmatpush.bf16.msrb.mxu3 %v14225_v33 }
 0x853   : > { %v9096_v54 = vadd.f32 %v9095_v28, %v9055_v61  ;;  %v9056_v5 = vpop.f32.mrf.mxu1 }
 0x854   : > { %v9136_v9 = vpop.f32.mrf.mxu3  ;;  %v9015_v49 = vpop.f32.mrf.mxu0 }
 0x855   : > { %v9016_v3 = vadd.f32 %v9015_v49, %v20457_v20  ;;  %v9137_v16 = vadd.f32 %v9136_v9, %v9096_v54  ;;  %v13934_v20 = vld [vmem:[%s22448_s4 + $0xe44] sm:$0xf0] }
 0x856   : > { %v13937_v28 = vor.u32 %v15152_v27, %v13934_v20 }
 0x857   : > { %v9057_v46 = vadd.f32 %v9056_v5, %v9016_v3  ;;  %v10661_v34 = vrot.slane %v9137_v16, 3  ;;  %v15080_v3 = vld [vmem:[%s22448_s4 + $0xbe4] sm:$0xf]  ;;  %v13646_v5 = vld [vmem:[%s22448_s4 + $0xc04] sm:$0xf0] }
 0x858   : > { %9415 = vmatpush.bf16.msrb.mxu2 %v13937_v28 }
 0x859   : > { %v10662_v62 = vsel %vm10659_vm2, %v10660_v24, %v10661_v34 }
 0x85a   : > { %v20676_v60 = vadd.f32 %v10662_v62, %v20163_v12  ;;  %v9097_v19 = vpop.f32.mrf.mxu2  ;;  %v13358_v12 = vld [vmem:[%s22448_s4 + $0x9c4] sm:$0xf0] }
 0x85b   : > { %v9098_v48 = vadd.f32 %v9097_v19, %v9057_v46  ;;  %v9059_v9 = vpop.f32.mrf.mxu1  ;;  %v13361_v49 = vor.u32 %v15008_v47, %v13358_v12  ;;  %v13649_v46 = vor.u32 %v15080_v3, %v13646_v5 }
 0x85c   : > { %v9138_v26 = vpop.f32.mrf.mxu3  ;;  %v9018_v61 = vpop.f32.mrf.mxu0 }
 0x85d   : > { %v9019_v54 = vadd.f32 %v9018_v61, %v20463_v29  ;;  %v9139_v16 = vadd.f32 %v9138_v26, %v9098_v48  ;;  %9333 = vmatpush.bf16.msrb.mxu0 %v13361_v49  ;;  %9374 = vmatpush.bf16.msrb.mxu1 %v13649_v46  ;;  %v14186_v46 = vld [vmem:[%s22448_s4 + $0x103c] sm:$0xf0] }
 0x85e   : > { %9227 = vmatmul.bf16.gmra.mxu1 %v22674_v17 }
 0x85f   : > { %v9060_v24 = vadd.f32 %v9059_v9, %v9019_v54  ;;  %9186 = vmatmul.bf16.gmra.mxu0 %v22673_v21  ;;  %v10663_v62 = vrot.slane %v9139_v16, 3  ;;  %9268 = vmatmul.bf16.gmra.mxu2 %v22675_v43  ;;  %v13898_v9 = vld [vmem:[%s22448_s4 + $0xdfc] sm:$0xf0]  ;;  %v15215_v16 = vld [vmem:[%s22448_s4 + $0x101c] sm:$0xf] }
 0x861   : > { %9309 = vmatmul.bf16.gmra.mxu3 %v22676_v30  ;;  %v10664_v29 = vsel %vm10659_vm2, %v10661_v34, %v10663_v62 }
 0x862   : > { %v20709_v19 = vadd.f32 %v10664_v29, %v20196_v37  ;;  %v9100_v27 = vpop.f32.mrf.mxu2  ;;  %v15143_v37 = vld [vmem:[%s22448_s4 + $0xddc] sm:$0xf] }
 0x863   : > { %v9101_v20 = vadd.f32 %v9100_v27, %v9060_v24  ;;  %v9061_v61 = vpop.f32.mrf.mxu1  ;;  %v13901_v5 = vor.u32 %v15143_v37, %v13898_v9  ;;  %v14189_v27 = vor.u32 %v15215_v16, %v14186_v46  ;;  %v13862_v37 = vld [vmem:[%s22448_s4 + $0xdb4] sm:$0xf0] }
 0x864   : > { %v9141_v47 = vpop.f32.mrf.mxu3  ;;  %v9020_v48 = vpop.f32.mrf.mxu0 }
 0x865   : > { %v9021_v26 = vadd.f32 %v9020_v48, %v20489_v52  ;;  %v9142_v28 = vadd.f32 %v9141_v47, %v9101_v20  ;;  %v14999_v52 = vld [vmem:[%s22448_s4 + $0x95c] sm:$0xf]  ;;  %v13610_v47 = vld [vmem:[%s22448_s4 + $0xbbc] sm:$0xf0]  ;;  %9416 = vmatpush.bf16.msrb.mxu2 %v13901_v5  ;;  %9457 = vmatpush.bf16.msrb.mxu3 %v14189_v27 }
 0x866   : > { %v15071_v20 = vld [vmem:[%s22448_s4 + $0xb9c] sm:$0xf] }
 0x867   : > { %v9062_v12 = vadd.f32 %v9061_v61, %v9021_v26  ;;  %v10665_v63 = vrot.slane %v9142_v28, 3  ;;  %v13613_v26 = vor.u32 %v15071_v20, %v13610_v47 }
 0x869   : > { %v10666_v2 = vsel %vm10659_vm2, %v10663_v62, %v10665_v63  ;;  %9375 = vmatpush.bf16.msrb.mxu1 %v13613_v26  ;;  %v15062_v26 = vld [vmem:[%s22448_s4 + $0xb54] sm:$0xf] }
 0x86a   : > { %v20714_v54 = vadd.f32 %v10666_v2, %v20201_v8  ;;  %v9102_v34 = vpop.f32.mrf.mxu2  ;;  %v13322_v8 = vld [vmem:[%s22448_s4 + $0x97c] sm:$0xf0] }
 0x86b   : > { %v9103_v49 = vadd.f32 %v9102_v34, %v9062_v12  ;;  %v9064_v62 = vpop.f32.mrf.mxu1  ;;  %v13325_v29 = vor.u32 %v14999_v52, %v13322_v8  ;;  %v15134_v34 = vld [vmem:[%s22448_s4 + $0xd94] sm:$0xf] }
 0x86c   : > { %v9143_v33 = vpop.f32.mrf.mxu3  ;;  %v9023_v3 = vpop.f32.mrf.mxu0 }
 0x86d   : > { %v9024_v24 = vadd.f32 %v9023_v3, %v20501_v53  ;;  %v9144_v48 = vadd.f32 %v9143_v33, %v9103_v49  ;;  %9334 = vmatpush.bf16.msrb.mxu0 %v13325_v29  ;;  %v13865_v33 = vor.u32 %v15134_v34, %v13862_v37  ;;  %v13286_v29 = vld [vmem:[%s22448_s4 + $0x934] sm:$0xf0] }
 0x86e   : > { %9232 = vmatmul.bf16.gmra.mxu1 %v22738_v55 }
 0x86f   : > { %v9065_v61 = vadd.f32 %v9064_v62, %v9024_v24  ;;  %9191 = vmatmul.bf16.gmra.mxu0 %v22680_v59  ;;  %v10667_v28 = vrot.slane %v9144_v48, 3  ;;  %9273 = vmatmul.bf16.gmra.mxu2 %v22739_v36  ;;  %v14990_v62 = vld [vmem:[%s22448_s4 + $0x914] sm:$0xf] }
 0x870   : > { %9417 = vmatpush.bf16.msrb.mxu2 %v13865_v33  ;;  %v13289_v48 = vor.u32 %v14990_v62, %v13286_v29  ;;  %v13256_v62 = vld [vmem:[%s22448_s4 + $0x8d0] sm:$0xf]  ;;  %v14986_v29 = vld [vmem:[%s22448_s4 + $0x8f0] sm:$0xf0] }
 0x871   : > { %9314 = vmatmul.bf16.gmra.mxu3 %v22741_v22  ;;  %v10668_v53 = vsel %vm10659_vm2, %v10665_v63, %v10667_v28 }
 0x872   : > { %v20747_v12 = vadd.f32 %v10668_v53, %v20234_v23  ;;  %v9105_v2 = vpop.f32.mrf.mxu2  ;;  %9335 = vmatpush.bf16.msrb.mxu0 %v13289_v48  ;;  %v12680_v48 = vld [vmem:[%s22448_s4 + $0x450] sm:$0xf] }
 0x873   : > { %v9106_v9 = vadd.f32 %v9105_v2, %v9065_v61  ;;  %v9066_v63 = vpop.f32.mrf.mxu1  ;;  %v13574_v61 = vld [vmem:[%s22448_s4 + $0xb74] sm:$0xf0] }
 0x874   : > { %v9146_v52 = vpop.f32.mrf.mxu3  ;;  %v9025_v49 = vpop.f32.mrf.mxu0  ;;  %v13577_v34 = vor.u32 %v15062_v26, %v13574_v61 }
 0x875   : > { %v9026_v3 = vadd.f32 %v9025_v49, %v20521_v4  ;;  %v9147_v5 = vadd.f32 %v9146_v52, %v9106_v9  ;;  %v15206_v4 = vld [vmem:[%s22448_s4 + $0xfd4] sm:$0xf] }
 0x876   : > { %9376 = vmatpush.bf16.msrb.mxu1 %v13577_v34 }
 0x877   : > { %v9067_v23 = vadd.f32 %v9066_v63, %v9026_v3  ;;  %v10669_v8 = vrot.slane %v9147_v5, 3  ;;  %v12968_v3 = vld [vmem:[%s22448_s4 + $0x690] sm:$0xf]  ;;  %v14914_v63 = vld [vmem:[%s22448_s4 + $0x6b0] sm:$0xf0] }
 0x878   : > { %v12392_v5 = vld [vmem:[%s22448_s4 + $0x210] sm:$0xf] }
 0x879   : > { %v10670_v16 = vsel %vm10659_vm2, %v10667_v28, %v10669_v8 }
 0x87a   : > { %v20758_v46 = vadd.f32 %v10670_v16, %v20245_v42  ;;  %v9107_v24 = vpop.f32.mrf.mxu2  ;;  %v14150_v42 = vld [vmem:[%s22448_s4 + $0xff4] sm:$0xf0] }
 0x87b   : > { %v9108_v27 = vadd.f32 %v9107_v24, %v9067_v23  ;;  %v9069_v53 = vpop.f32.mrf.mxu1  ;;  %v14153_v2 = vor.u32 %v15206_v4, %v14150_v42  ;;  %v14842_v42 = vld [vmem:[%s22448_s4 + $0x470] sm:$0xf0] }
 0x87c   : > { %v9148_v20 = vpop.f32.mrf.mxu3  ;;  %v9028_v47 = vpop.f32.mrf.mxu0  ;;  %v12681_v61 = vor.u32 %v14842_v42, %v12680_v48 }
 0x87d   : > { %v9029_v28 = vadd.f32 %v9028_v47, %v20551_v7  ;;  %v9149_v37 = vadd.f32 %v9148_v20, %v9108_v27  ;;  %9458 = vmatpush.bf16.msrb.mxu3 %v14153_v2  ;;  %v13257_v47 = vor.u32 %v14986_v29, %v13256_v62 }
 0x87e   : > { %9237 = vmatmul.bf16.gmra.mxu1 %v22720_v32 }
 0x87f   : > { %v9070_v9 = vadd.f32 %v9069_v53, %v9029_v28  ;;  %9196 = vmatmul.bf16.gmra.mxu0 %v22686_v6  ;;  %v10671_v52 = vrot.slane %v9149_v37, 3  ;;  %9278 = vmatmul.bf16.gmra.mxu2 %v22721_v14 }
 0x880   : > { %9533 = vmatpush.bf16.msra.mxu1 %v12681_v61 }
 0x881   : > { %9319 = vmatmul.bf16.gmra.mxu3 %v22722_v44  ;;  %v10672_v49 = vsel %vm10659_vm2, %v10669_v8, %v10671_v52  ;;  %v12969_v8 = vor.u32 %v14914_v63, %v12968_v3  ;;  %v12932_v63 = vld [vmem:[%s22448_s4 + $0x648] sm:$0xf] }
 0x882   : > { %v20785_v7 = vadd.f32 %v10672_v49, %v20272_v13  ;;  %v9110_v33 = vpop.f32.mrf.mxu2  ;;  %v14770_v13 = vld [vmem:[%s22448_s4 + $0x230] sm:$0xf0]  ;;  %9615 = vmatpush.bf16.msra.mxu3 %v13257_v47  ;;  %v22839_v47 = vld [vmem:[#allocation38_spill] sm:$0xff] }
 0x883   : > { %v9111_v23 = vadd.f32 %v9110_v33, %v9070_v9  ;;  %v9071_v27 = vpop.f32.mrf.mxu1  ;;  %v12393_v20 = vor.u32 %v14770_v13, %v12392_v5  ;;  %9574 = vmatpush.bf16.msra.mxu2 %v12969_v8  ;;  %v14905_v5 = vld [vmem:[%s22448_s4 + $0x668] sm:$0xf0]  ;;  %v13220_v13 = vld [vmem:[%s22448_s4 + $0x888] sm:$0xf] }
 0x884   : > { %v9151_v16 = vpop.f32.mrf.mxu3  ;;  %v9030_v24 = vpop.f32.mrf.mxu0  ;;  %v14761_v8 = vld [vmem:[%s22448_s4 + $0x1e8] sm:$0xf0] }
 0x885   : > { %v9031_v4 = vadd.f32 %v9030_v24, %v20559_v41  ;;  %v9152_v26 = vadd.f32 %v9151_v16, %v9111_v23  ;;  %9492 = vmatpush.bf16.msra.mxu0 %v12393_v20  ;;  %v12356_v24 = vld [vmem:[%s22448_s4 + $0x1c8] sm:$0xf]  ;;  %v14833_v20 = vld [vmem:[%s22448_s4 + $0x428] sm:$0xf0] }
 0x886   : > { %v12357_v29 = vor.u32 %v14761_v8, %v12356_v24 }
 0x887   : > { %v9072_v28 = vadd.f32 %v9071_v27, %v9031_v4  ;;  %v10673_v53 = vrot.slane %v9152_v26, 3  ;;  %v14977_v4 = vld [vmem:[%s22448_s4 + $0x8a8] sm:$0xf0]  ;;  %v12644_v27 = vld [vmem:[%s22448_s4 + $0x408] sm:$0xf] }
 0x888   : > { %v13221_v26 = vor.u32 %v14977_v4, %v13220_v13  ;;  %v12645_v61 = vor.u32 %v14833_v20, %v12644_v27  ;;  %v14752_v27 = vld [vmem:[%s22448_s4 + $0x1a0] sm:$0xf0]  ;;  %v13184_v20 = vld [vmem:[%s22448_s4 + $0x840] sm:$0xf] }
 0x889   : > { %v10674_v41 = vsel %vm10659_vm2, %v10671_v52, %v10673_v53  ;;  %v12933_v52 = vor.u32 %v14905_v5, %v12932_v63  ;;  %9493 = vmatpush.bf16.msra.mxu0 %v12357_v29  ;;  %v22841_v63 = vld [vmem:[#allocation14_spill] sm:$0xff]  ;;  %v22843_v29 = vld [vmem:[#allocation40_spill] sm:$0xff] }
 0x88a   : > { %v20814_v2 = vadd.f32 %v10674_v41, %v20301_v51  ;;  %v9112_v34 = vpop.f32.mrf.mxu2  ;;  %9616 = vmatpush.bf16.msra.mxu3 %v13221_v26  ;;  %9534 = vmatpush.bf16.msra.mxu1 %v12645_v61  ;;  %v22844_v26 = vld [vmem:[#allocation41_spill] sm:$0xff] }
 0x88b   : > { %v9113_v37 = vadd.f32 %v9112_v34, %v9072_v28  ;;  %v9074_v3 = vpop.f32.mrf.mxu1  ;;  %9575 = vmatpush.bf16.msra.mxu2 %v12933_v52  ;;  %v22845_v61 = vld [vmem:[#allocation25_spill] sm:$0xff] }
 0x88c   : > { %v9153_v9 = vpop.f32.mrf.mxu3  ;;  %v9033_v49 = vpop.f32.mrf.mxu0 }
 0x88d   : > { %v9034_v33 = vadd.f32 %v9033_v49, %v20583_v0  ;;  %v9154_v23 = vadd.f32 %v9153_v9, %v9113_v37  ;;  %v22838_v0 = vld [vmem:[#allocation31_spill] sm:$0xff] }
 0x88e   : > { %9242 = vmatmul.bf16.gmra.mxu1 %v22726_v58 }
 0x88f   : > { %v9075_v16 = vadd.f32 %v9074_v3, %v9034_v33  ;;  %9201 = vmatmul.bf16.gmra.mxu0 %v22724_v31  ;;  %v10675_v51 = vrot.slane %v9154_v23, 3  ;;  %9283 = vmatmul.bf16.gmra.mxu2 %v22771_v18 }
 0x891   : > { %9324 = vmatmul.bf16.gmra.mxu3 %v22838_v0  ;;  %v10676_v62 = vsel %vm10659_vm2, %v10673_v53, %v10675_v51 }
 0x892   : > { %v20847_v48 = vadd.f32 %v10676_v62, %v22839_v47  ;;  %v9115_v42 = vpop.f32.mrf.mxu2  ;;  %v14896_v62 = vld [vmem:[%s22448_s4 + $0x620] sm:$0xf0] }
 0x893   : > { %v9116_v28 = vadd.f32 %v9115_v42, %v9075_v16  ;;  %v9076_v37 = vpop.f32.mrf.mxu1  ;;  %v14968_v47 = vld [vmem:[%s22448_s4 + $0x860] sm:$0xf0] }
 0x894   : > { %22840 = vst [vmem:[#allocation23_spill] sm:$0xff] %v20847_v48  ;;  %v9156_v53 = vpop.f32.mrf.mxu3  ;;  %v9035_v41 = vpop.f32.mrf.mxu0 }
 0x895   : > { %v9036_v34 = vadd.f32 %v9035_v41, %v20585_v35  ;;  %v9157_v9 = vadd.f32 %v9156_v53, %v9116_v28  ;;  %v12896_v35 = vld [vmem:[%s22448_s4 + $0x600] sm:$0xf]  ;;  %v13185_v53 = vor.u32 %v14968_v47, %v13184_v20  ;;  %v14743_v20 = vld [vmem:[%s22448_s4 + $0x158] sm:$0xf0]  ;;  %v13148_v47 = vld [vmem:[%s22448_s4 + $0x7f8] sm:$0xf] }
 0x896   : > { %v12897_v4 = vor.u32 %v14896_v62, %v12896_v35  ;;  %v22846_v41 = vld [vmem:[#allocation2_spill] sm:$0xff] }
 0x897   : > { %v9077_v49 = vadd.f32 %v9076_v37, %v9036_v34  ;;  %v10677_v33 = vrot.slane %v9157_v9, 3  ;;  %v12608_v34 = vld [vmem:[%s22448_s4 + $0x3c0] sm:$0xf]  ;;  %v14824_v37 = vld [vmem:[%s22448_s4 + $0x3e0] sm:$0xf0]  ;;  %9617 = vmatpush.bf16.msra.mxu3 %v13185_v53 }
 0x898   : > { %9576 = vmatpush.bf16.msra.mxu2 %v12897_v4  ;;  %v14959_v53 = vld [vmem:[%s22448_s4 + $0x818] sm:$0xf0] }
 0x899   : > { %v10678_v3 = vsel %vm10659_vm2, %v10675_v51, %v10677_v33  ;;  %v12320_v51 = vld [vmem:[%s22448_s4 + $0x180] sm:$0xf] }
 0x89a   : > { %v20852_v5 = vadd.f32 %v10678_v3, %v22841_v63  ;;  %v9117_v23 = vpop.f32.mrf.mxu2  ;;  %v12321_v28 = vor.u32 %v14752_v27, %v12320_v51  ;;  %v22847_v3 = vld [vmem:[#allocation15_spill] sm:$0xff]  ;;  %v12284_v27 = vld [vmem:[%s22448_s4 + $0x138] sm:$0xf] }
 0x89b   : > { %v9118_v52 = vadd.f32 %v9117_v23, %v9077_v49  ;;  %v9079_v8 = vpop.f32.mrf.mxu1  ;;  %v12609_v49 = vor.u32 %v14824_v37, %v12608_v34  ;;  %v12572_v34 = vld [vmem:[%s22448_s4 + $0x378] sm:$0xf]  ;;  %v14815_v37 = vld [vmem:[%s22448_s4 + $0x398] sm:$0xf0] }
 0x89c   : > { %22842 = vst [vmem:[#allocation20_spill] sm:$0xff] %v20852_v5  ;;  %v9158_v24 = vpop.f32.mrf.mxu3  ;;  %v9038_v16 = vpop.f32.mrf.mxu0  ;;  %9494 = vmatpush.bf16.msra.mxu0 %v12321_v28  ;;  %v12860_v8 = vld [vmem:[%s22448_s4 + $0x5b8] sm:$0xf]  ;;  %v12285_v28 = vor.u32 %v14743_v20, %v12284_v27  ;;  %v14734_v27 = vld [vmem:[%s22448_s4 + $0x110] sm:$0xf0] }
 0x89d   : > { %v9159_v13 = vadd.f32 %v9158_v24, %v9118_v52  ;;  %9535 = vmatpush.bf16.msra.mxu1 %v12609_v49  ;;  %v22851_v49 = vld [vmem:[#allocation3_spill] sm:$0xff]  ;;  %v13112_v20 = vld [vmem:[%s22448_s4 + $0x7b0] sm:$0xf] }
 0x89e   : > { %9377 = vmatmul.bf16.vlgmr.msrb.gmra.mxu1 %v22844_v26 }
 0x89f   : > { %9336 = vmatmul.bf16.vlgmr.msrb.gmra.mxu0 %v22843_v29  ;;  %v10679_v42 = vrot.slane %v9159_v13, 3  ;;  %9418 = vmatmul.bf16.vlgmr.msrb.gmra.mxu2 %v22845_v61  ;;  %v14887_v13 = vld [vmem:[%s22448_s4 + $0x5d8] sm:$0xf0]  ;;  %v22868_v61 = vld [vmem:[#allocation32_spill] sm:$0xff] }
 0x8a0   : > { %9495 = vmatpush.bf16.msra.mxu0 %v12285_v28 }
 0x8a1   : > { %9459 = vmatmul.bf16.vlgmr.msrb.gmra.mxu3 %v22846_v41  ;;  %v10680_v9 = vsel %vm10659_vm2, %v10677_v33, %v10679_v42  ;;  %v12861_v33 = vor.u32 %v14887_v13, %v12860_v8  ;;  %v22849_v42 = vld [vmem:[#allocation12_spill] sm:$0xff]  ;;  %v22867_v41 = vld [vmem:[#allocation17_spill] sm:$0xff] }
 0x8a2   : > { %v20884_v63 = vadd.f32 %v10680_v9, %v22847_v3  ;;  %v9120_v23 = vpop.f32.mrf.mxu2  ;;  %v22850_v9 = vld [vmem:[#allocation42_spill] sm:$0xff]  ;;  %v13149_v3 = vor.u32 %v14959_v53, %v13148_v47  ;;  %v14950_v47 = vld [vmem:[%s22448_s4 + $0x7d0] sm:$0xf0] }
 0x8a3   : > { %v9080_v16 = vpop.f32.mrf.mxu1  ;;  %9577 = vmatpush.bf16.msra.mxu2 %v12861_v33  ;;  %v12573_v23 = vor.u32 %v14815_v37, %v12572_v34  ;;  %v13113_v53 = vor.u32 %v14950_v47, %v13112_v20 }
 0x8a4   : > { %22848 = vst [vmem:[#allocation35_spill] sm:$0xff] %v20884_v63  ;;  %v9161_v52 = vpop.f32.mrf.mxu3  ;;  %v9039_v24 = vpop.f32.mrf.mxu0  ;;  %9618 = vmatpush.bf16.msra.mxu3 %v13149_v3  ;;  %v22866_v63 = vld [vmem:[#allocation24_spill] sm:$0xff] }
 0x8a5   : > { %v22852_v52 = vld [vmem:[#allocation4_spill] sm:$0xff]  ;;  %9536 = vmatpush.bf16.msra.mxu1 %v12573_v23 }
 0x8a8   : > { %9619 = vmatpush.bf16.msra.mxu3 %v13113_v53 }
 0x8aa   : > { %v9121_v35 = vpop.f32.mrf.mxu2 }
 0x8ab   : > { %v9214_v4 = vpop.f32.mrf.mxu1  ;;  %v12824_v35 = vld [vmem:[%s22448_s4 + $0x570] sm:$0xf] }
 0x8ac   : > { %v9162_v62 = vpop.f32.mrf.mxu3  ;;  %v9173_v51 = vpop.f32.mrf.mxu0 }
 0x8ad   : > { %v14878_v62 = vld [vmem:[%s22448_s4 + $0x590] sm:$0xf0]  ;;  %v12248_v51 = vld [vmem:[%s22448_s4 + $0xf0] sm:$0xf] }
 0x8ae   : > { %9381 = vmatmul.bf16.gmra.mxu1 %v22850_v9  ;;  %v12825_v4 = vor.u32 %v14878_v62, %v12824_v35  ;;  %v12249_v28 = vor.u32 %v14734_v27, %v12248_v51  ;;  %v14806_v35 = vld [vmem:[%s22448_s4 + $0x350] sm:$0xf0]  ;;  %v22853_v62 = vld [vmem:[#allocation43_spill] sm:$0xff] }
 0x8af   : > { %9340 = vmatmul.bf16.gmra.mxu0 %v22849_v42  ;;  %9422 = vmatmul.bf16.gmra.mxu2 %v22851_v49  ;;  %v22856_v27 = vld [vmem:[#allocation11_spill] sm:$0xff]  ;;  %v22860_v49 = vld [vmem:[#allocation29_spill] sm:$0xff]  ;;  %v22863_v9 = vld [vmem:[#allocation8_spill] sm:$0xff] }
 0x8b0   : > { %9578 = vmatpush.bf16.msra.mxu2 %v12825_v4  ;;  %9496 = vmatpush.bf16.msra.mxu0 %v12249_v28  ;;  %v22854_v4 = vld [vmem:[#allocation44_spill] sm:$0xff] }
 0x8b1   : > { %9463 = vmatmul.bf16.gmra.mxu3 %v22852_v52  ;;  %v22859_v52 = vld [vmem:[#allocation9_spill] sm:$0xff]  ;;  %v22864_v42 = vld [vmem:[#allocation16_spill] sm:$0xff] }
 0x8b2   : > { %v9255_v24 = vpop.f32.mrf.mxu2 }
 0x8b3   : > { %v9215_v13 = vpop.f32.mrf.mxu1 }
 0x8b4   : > { %v9296_v16 = vpop.f32.mrf.mxu3  ;;  %v9174_v8 = vpop.f32.mrf.mxu0 }
 0x8b5   : > { %v9216_v33 = vadd.f32 %v9215_v13, %v9174_v8  ;;  %v12536_v13 = vld [vmem:[%s22448_s4 + $0x330] sm:$0xf] }
 0x8b6   : > { %v12537_v51 = vor.u32 %v14806_v35, %v12536_v13  ;;  %v12212_v13 = vld [vmem:[%s22448_s4 + $0xa8] sm:$0xf] }
 0x8b8   : > { %9537 = vmatpush.bf16.msra.mxu1 %v12537_v51  ;;  %v13076_v51 = vld [vmem:[%s22448_s4 + $0x768] sm:$0xf] }
 0x8ba   : > { %v9256_v34 = vpop.f32.mrf.mxu2 }
 0x8bb   : > { %v9257_v37 = vadd.f32 %v9256_v34, %v9216_v33  ;;  %v9218_v24 = vpop.f32.mrf.mxu1  ;;  %v22855_v33 = vld [vmem:[#allocation10_spill] sm:$0xff] }
 0x8bc   : > { %v9297_v3 = vpop.f32.mrf.mxu3  ;;  %v9177_v23 = vpop.f32.mrf.mxu0 }
 0x8bd   : > { %v20932_v16 = vadd.f32 %v9297_v3, %v9257_v37  ;;  %v9219_v8 = vadd.f32 %v9218_v24, %v9177_v23  ;;  %v12788_v23 = vld [vmem:[%s22448_s4 + $0x528] sm:$0xf]  ;;  %v14869_v24 = vld [vmem:[%s22448_s4 + $0x548] sm:$0xf0] }
 0x8be   : > { %9386 = vmatmul.bf16.gmra.mxu1 %v22854_v4  ;;  %v12789_v35 = vor.u32 %v14869_v24, %v12788_v23 }
 0x8bf   : > { %9345 = vmatmul.bf16.gmra.mxu0 %v22853_v62  ;;  %9427 = vmatmul.bf16.gmra.mxu2 %v22855_v33 }
 0x8c0   : > { %9579 = vmatpush.bf16.msra.mxu2 %v12789_v35 }
 0x8c1   : > { %9468 = vmatmul.bf16.gmra.mxu3 %v22856_v27 }
 0x8c2   : > { %v9259_v20 = vpop.f32.mrf.mxu2 }
 0x8c3   : > { %v9260_v47 = vadd.f32 %v9259_v20, %v9219_v8  ;;  %v9220_v34 = vpop.f32.mrf.mxu1  ;;  %v14725_v8 = vld [vmem:[%s22448_s4 + $0xc8] sm:$0xf0] }
 0x8c4   : > { %v9300_v28 = vpop.f32.mrf.mxu3  ;;  %v9179_v53 = vpop.f32.mrf.mxu0  ;;  %v14941_v20 = vld [vmem:[%s22448_s4 + $0x788] sm:$0xf0] }
 0x8c5   : > { %v20944_v37 = vadd.f32 %v9300_v28, %v9260_v47  ;;  %v9221_v3 = vadd.f32 %v9220_v34, %v9179_v53  ;;  %v12213_v47 = vor.u32 %v14725_v8, %v12212_v13  ;;  %v13077_v28 = vor.u32 %v14941_v20, %v13076_v51  ;;  %v12500_v53 = vld [vmem:[%s22448_s4 + $0x2e8] sm:$0xf]  ;;  %v14797_v34 = vld [vmem:[%s22448_s4 + $0x308] sm:$0xf0]  ;;  %v22857_v51 = vld [vmem:[#allocation45_spill] sm:$0xff] }
 0x8c6   : > { %v12501_v23 = vor.u32 %v14797_v34, %v12500_v53  ;;  %v22858_v20 = vld [vmem:[#allocation46_spill] sm:$0xff] }
 0x8c7   : > { %9497 = vmatpush.bf16.msra.mxu0 %v12213_v47  ;;  %9620 = vmatpush.bf16.msra.mxu3 %v13077_v28 }
 0x8c8   : > { %9538 = vmatpush.bf16.msra.mxu1 %v12501_v23 }
 0x8ca   : > { %v9261_v24 = vpop.f32.mrf.mxu2 }
 0x8cb   : > { %v9262_v27 = vadd.f32 %v9261_v24, %v9221_v3  ;;  %v9223_v62 = vpop.f32.mrf.mxu1  ;;  %v14716_v24 = vld [vmem:[%s22448_s4 + $0x80] sm:$0xf0] }
 0x8cc   : > { %v9302_v33 = vpop.f32.mrf.mxu3  ;;  %v9182_v4 = vpop.f32.mrf.mxu0 }
 0x8cd   : > { %v20970_v13 = vadd.f32 %v9302_v33, %v9262_v27  ;;  %v9224_v8 = vadd.f32 %v9223_v62, %v9182_v4  ;;  %v12752_v62 = vld [vmem:[%s22448_s4 + $0x4e0] sm:$0xf]  ;;  %v14860_v4 = vld [vmem:[%s22448_s4 + $0x500] sm:$0xf0] }
 0x8ce   : > { %9391 = vmatmul.bf16.gmra.mxu1 %v22858_v20  ;;  %v12176_v33 = vld [vmem:[%s22448_s4 + $0x60] sm:$0xf]  ;;  %v12753_v27 = vor.u32 %v14860_v4, %v12752_v62 }
 0x8cf   : > { %9350 = vmatmul.bf16.gmra.mxu0 %v22857_v51  ;;  %9432 = vmatmul.bf16.gmra.mxu2 %v22859_v52 }
 0x8d0   : > { %9580 = vmatpush.bf16.msra.mxu2 %v12753_v27  ;;  %v12716_v27 = vld [vmem:[%s22448_s4 + $0x498] sm:$0xf] }
 0x8d1   : > { %9473 = vmatmul.bf16.gmra.mxu3 %v22860_v49 }
 0x8d2   : > { %v9264_v35 = vpop.f32.mrf.mxu2 }
 0x8d3   : > { %v9265_v47 = vadd.f32 %v9264_v35, %v9224_v8  ;;  %v9225_v34 = vpop.f32.mrf.mxu1  ;;  %v13040_v8 = vld [vmem:[%s22448_s4 + $0x720] sm:$0xf]  ;;  %v14932_v35 = vld [vmem:[%s22448_s4 + $0x740] sm:$0xf0] }
 0x8d4   : > { %v9305_v28 = vpop.f32.mrf.mxu3  ;;  %v9184_v53 = vpop.f32.mrf.mxu0 }
 0x8d5   : > { %v20976_v3 = vadd.f32 %v9305_v28, %v9265_v47  ;;  %v9226_v23 = vadd.f32 %v9225_v34, %v9184_v53  ;;  %v12177_v47 = vor.u32 %v14716_v24, %v12176_v33  ;;  %v13041_v28 = vor.u32 %v14932_v35, %v13040_v8  ;;  %v12464_v53 = vld [vmem:[%s22448_s4 + $0x2a0] sm:$0xf]  ;;  %v14788_v34 = vld [vmem:[%s22448_s4 + $0x2c0] sm:$0xf0]  ;;  %v22861_v8 = vld [vmem:[#allocation5_spill] sm:$0xff] }
 0x8d6   : > { %v12465_v62 = vor.u32 %v14788_v34, %v12464_v53  ;;  %v22862_v35 = vld [vmem:[#allocation6_spill] sm:$0xff] }
 0x8d7   : > { %9498 = vmatpush.bf16.msra.mxu0 %v12177_v47  ;;  %9621 = vmatpush.bf16.msra.mxu3 %v13041_v28 }
 0x8d8   : > { %9539 = vmatpush.bf16.msra.mxu1 %v12465_v62  ;;  %v12140_v62 = vld [vmem:[%s22448_s4 + $0x18] sm:$0xf] }
 0x8da   : > { %v9266_v4 = vpop.f32.mrf.mxu2 }
 0x8db   : > { %v9267_v49 = vadd.f32 %v9266_v4, %v9226_v23  ;;  %v9228_v51 = vpop.f32.mrf.mxu1  ;;  %v14851_v23 = vld [vmem:[%s22448_s4 + $0x4b8] sm:$0xf0] }
 0x8dc   : > { %v9307_v52 = vpop.f32.mrf.mxu3  ;;  %v9187_v20 = vpop.f32.mrf.mxu0  ;;  %v12717_v47 = vor.u32 %v14851_v23, %v12716_v27  ;;  %v14707_v4 = vld [vmem:[%s22448_s4 + $0x38] sm:$0xf0]  ;;  %v13004_v27 = vld [vmem:[%s22448_s4 + $0x6d8] sm:$0xf] }
 0x8dd   : > { %v21002_v33 = vadd.f32 %v9307_v52, %v9267_v49  ;;  %v9229_v24 = vadd.f32 %v9228_v51, %v9187_v20  ;;  %v14923_v23 = vld [vmem:[%s22448_s4 + $0x6f8] sm:$0xf0] }
 0x8de   : > { %9396 = vmatmul.bf16.gmra.mxu1 %v22862_v35  ;;  %9581 = vmatpush.bf16.msra.mxu2 %v12717_v47  ;;  %v12428_v47 = vld [vmem:[%s22448_s4 + $0x258] sm:$0xf] }
 0x8df   : > { %9355 = vmatmul.bf16.gmra.mxu0 %v22861_v8  ;;  %9437 = vmatmul.bf16.gmra.mxu2 %v22863_v9  ;;  %v22865_v8 = vld [vmem:[#allocation7_spill] sm:$0xff] }
 0x8e1   : > { %9478 = vmatmul.bf16.gmra.mxu3 %v22864_v42 }
 0x8e2   : > { %v9269_v49 = vpop.f32.mrf.mxu2 }
 0x8e3   : > { %v9270_v52 = vadd.f32 %v9269_v49, %v9229_v24  ;;  %v9230_v28 = vpop.f32.mrf.mxu1  ;;  %v12141_v24 = vor.u32 %v14707_v4, %v12140_v62  ;;  %v14779_v49 = vld [vmem:[%s22448_s4 + $0x278] sm:$0xf0] }
 0x8e4   : > { %v9310_v51 = vpop.f32.mrf.mxu3  ;;  %v9189_v20 = vpop.f32.mrf.mxu0 }
 0x8e5   : > { %v21014_v53 = vadd.f32 %v9310_v51, %v9270_v52  ;;  %v9231_v34 = vadd.f32 %v9230_v28, %v9189_v20  ;;  %v13005_v52 = vor.u32 %v14923_v23, %v13004_v27  ;;  %v12429_v51 = vor.u32 %v14779_v49, %v12428_v47  ;;  %9499 = vmatpush.bf16.msra.mxu0 %v12141_v24  ;;  %v14120_v27 = vld [vmem:[%s22448_s4 + $0xf90] sm:$0xf]  ;;  %v15058_v23 = vld [vmem:[%s22448_s4 + $0xb30] sm:$0xf0] }
 0x8e6   : > { %v14408_v47 = vld [vmem:[%s22448_s4 + $0x11d0] sm:$0xf]  ;;  %v15274_v49 = vld [vmem:[%s22448_s4 + $0x11f0] sm:$0xf0] }
 0x8e7   : > { %9622 = vmatpush.bf16.msra.mxu3 %v13005_v52  ;;  %9540 = vmatpush.bf16.msra.mxu1 %v12429_v51 }
 0x8ea   : > { %v9271_v20 = vpop.f32.mrf.mxu2 }
 0x8eb   : > { %v9272_v28 = vadd.f32 %v9271_v20, %v9231_v34  ;;  %v9233_v42 = vpop.f32.mrf.mxu1  ;;  %v15202_v34 = vld [vmem:[%s22448_s4 + $0xfb0] sm:$0xf0]  ;;  %v14409_v20 = vor.u32 %v15274_v49, %v14408_v47 }
 0x8ec   : > { %v9312_v62 = vpop.f32.mrf.mxu3  ;;  %v9192_v4 = vpop.f32.mrf.mxu0  ;;  %v14121_v24 = vor.u32 %v15202_v34, %v14120_v27  ;;  %v13832_v27 = vld [vmem:[%s22448_s4 + $0xd50] sm:$0xf]  ;;  %v15130_v34 = vld [vmem:[%s22448_s4 + $0xd70] sm:$0xf0] }
 0x8ed   : > { %v21034_v9 = vadd.f32 %v9312_v62, %v9272_v28  ;;  %v9234_v35 = vadd.f32 %v9233_v42, %v9192_v4  ;;  %v13544_v42 = vld [vmem:[%s22448_s4 + $0xb10] sm:$0xf]  ;;  %9779 = vmatpush.bf16.msrb.mxu3 %v14409_v20 }
 0x8ee   : > { %9401 = vmatmul.bf16.gmra.mxu1 %v22866_v63  ;;  %v13545_v51 = vor.u32 %v15058_v23, %v13544_v42  ;;  %9738 = vmatpush.bf16.msrb.mxu2 %v14121_v24 }
 0x8ef   : > { %9360 = vmatmul.bf16.gmra.mxu0 %v22865_v8  ;;  %9442 = vmatmul.bf16.gmra.mxu2 %v22867_v41  ;;  %v13833_v41 = vor.u32 %v15130_v34, %v13832_v27  ;;  %v15193_v8 = vld [vmem:[%s22448_s4 + $0xf68] sm:$0xf0]  ;;  %v13508_v27 = vld [vmem:[%s22448_s4 + $0xac8] sm:$0xf] }
 0x8f0   : > { %9656 = vmatpush.bf16.msrb.mxu0 %v13545_v51  ;;  %v15049_v34 = vld [vmem:[%s22448_s4 + $0xae8] sm:$0xf0] }
 0x8f1   : > { %9483 = vmatmul.bf16.gmra.mxu3 %v22868_v61  ;;  %9697 = vmatpush.bf16.msrb.mxu1 %v13833_v41  ;;  %v22871_v41 = vld [vmem:[#allocation19_spill] sm:$0xff] }
 0x8f2   : > { %v9274_v52 = vpop.f32.mrf.mxu2 }
 0x8f3   : > { %v9275_v28 = vadd.f32 %v9274_v52, %v9234_v35  ;;  %v9235_v61 = vpop.f32.mrf.mxu1  ;;  %v14084_v52 = vld [vmem:[%s22448_s4 + $0xf48] sm:$0xf] }
 0x8f4   : > { %v9315_v62 = vpop.f32.mrf.mxu3  ;;  %v9194_v4 = vpop.f32.mrf.mxu0 }
 0x8f5   : > { %v21064_v63 = vadd.f32 %v9315_v62, %v9275_v28  ;;  %v9236_v42 = vadd.f32 %v9235_v61, %v9194_v4  ;;  %v14085_v28 = vor.u32 %v15193_v8, %v14084_v52  ;;  %v22869_v62 = vld [vmem:[#allocation33_spill] sm:$0xff]  ;;  %v22870_v61 = vld [vmem:[#allocation18_spill] sm:$0xff]  ;;  %v14372_v8 = vld [vmem:[%s22448_s4 + $0x1188] sm:$0xf] }
 0x8f6   : > { %v22872_v4 = vld [vmem:[#allocation34_spill] sm:$0xff] }
 0x8f7   : > { %9739 = vmatpush.bf16.msrb.mxu2 %v14085_v28 }
 0x8fa   : > { %v9276_v35 = vpop.f32.mrf.mxu2 }
 0x8fb   : > { %v9277_v23 = vadd.f32 %v9276_v35, %v9236_v42  ;;  %v9238_v49 = vpop.f32.mrf.mxu1  ;;  %v13509_v42 = vor.u32 %v15049_v34, %v13508_v27  ;;  %v15265_v35 = vld [vmem:[%s22448_s4 + $0x11a8] sm:$0xf0] }
 0x8fc   : > { %v9317_v47 = vpop.f32.mrf.mxu3  ;;  %v9197_v24 = vpop.f32.mrf.mxu0 }
 0x8fd   : > { %v21072_v51 = vadd.f32 %v9317_v47, %v9277_v23  ;;  %v9239_v20 = vadd.f32 %v9238_v49, %v9197_v24  ;;  %v13796_v23 = vld [vmem:[%s22448_s4 + $0xd08] sm:$0xf]  ;;  %v15121_v47 = vld [vmem:[%s22448_s4 + $0xd28] sm:$0xf0]  ;;  %v14373_v49 = vor.u32 %v15265_v35, %v14372_v8  ;;  %9657 = vmatpush.bf16.msrb.mxu0 %v13509_v42  ;;  %v13760_v8 = vld [vmem:[%s22448_s4 + $0xcc0] sm:$0xf] }
 0x8fe   : > { %9406 = vmatmul.bf16.gmra.mxu1 %v22870_v61  ;;  %v13797_v52 = vor.u32 %v15121_v47, %v13796_v23  ;;  %v15112_v42 = vld [vmem:[%s22448_s4 + $0xce0] sm:$0xf0] }
 0x8ff   : > { %9365 = vmatmul.bf16.gmra.mxu0 %v22869_v62  ;;  %9447 = vmatmul.bf16.gmra.mxu2 %v22871_v41  ;;  %v13761_v23 = vor.u32 %v15112_v42, %v13760_v8 }
 0x900   : > { %9780 = vmatpush.bf16.msrb.mxu3 %v14373_v49  ;;  %9698 = vmatpush.bf16.msrb.mxu1 %v13797_v52 }
 0x901   : > { %9488 = vmatmul.bf16.gmra.mxu3 %v22872_v4 }
 0x902   : > { %v9279_v24 = vpop.f32.mrf.mxu2 }
 0x903   : > { %v9280_v28 = vadd.f32 %v9279_v24, %v9239_v20  ;;  %v9240_v27 = vpop.f32.mrf.mxu1  ;;  %v14048_v20 = vld [vmem:[%s22448_s4 + $0xf00] sm:$0xf] }
 0x904   : > { %v9320_v4 = vpop.f32.mrf.mxu3  ;;  %v9199_v41 = vpop.f32.mrf.mxu0  ;;  %9699 = vmatpush.bf16.msrb.mxu1 %v13761_v23  ;;  %v13724_v23 = vld [vmem:[%s22448_s4 + $0xc78] sm:$0xf] }
 0x905   : > { %v21096_v34 = vadd.f32 %v9320_v4, %v9280_v28  ;;  %v9241_v61 = vadd.f32 %v9240_v27, %v9199_v41  ;;  %v15184_v41 = vld [vmem:[%s22448_s4 + $0xf20] sm:$0xf0]  ;;  %v14012_v28 = vld [vmem:[%s22448_s4 + $0xeb8] sm:$0xf]  ;;  %v15175_v27 = vld [vmem:[%s22448_s4 + $0xed8] sm:$0xf0] }
 0x90a   : > { %v9281_v62 = vpop.f32.mrf.mxu2 }
 0x90b   : > { %v9282_v26 = vadd.f32 %v9281_v62, %v9241_v61  ;;  %v9243_v48 = vpop.f32.mrf.mxu1  ;;  %v15256_v62 = vld [vmem:[%s22448_s4 + $0x1160] sm:$0xf0] }
 0x90c   : > { %v9322_v29 = vpop.f32.mrf.mxu3  ;;  %v9202_v5 = vpop.f32.mrf.mxu0  ;;  %v13472_v48 = vld [vmem:[%s22448_s4 + $0xa80] sm:$0xf] }
 0x90d   : > { %v21098_v0 = vadd.f32 %v9322_v29, %v9282_v26  ;;  %v14049_v5 = vor.u32 %v15184_v41, %v14048_v20  ;;  %v15040_v29 = vld [vmem:[%s22448_s4 + $0xaa0] sm:$0xf0]  ;;  %v14336_v26 = vld [vmem:[%s22448_s4 + $0x1140] sm:$0xf] }
 0x90e   : > { %9541 = vmatmul.bf16.vlgmr.msra.gmra.mxu1 %v22659_v25  ;;  %v13473_v61 = vor.u32 %v15040_v29, %v13472_v48  ;;  %v14337_v4 = vor.u32 %v15256_v62, %v14336_v26  ;;  %v14013_v48 = vor.u32 %v15175_v27, %v14012_v28  ;;  %v13436_v26 = vld [vmem:[%s22448_s4 + $0xa38] sm:$0xf]  ;;  %v15031_v62 = vld [vmem:[%s22448_s4 + $0xa58] sm:$0xf0] }
 0x90f   : > { %9500 = vmatmul.bf16.vlgmr.msra.gmra.mxu0 %v22658_v40  ;;  %9582 = vmatmul.bf16.vlgmr.msra.gmra.mxu2 %v22660_v50  ;;  %v13437_v42 = vor.u32 %v15031_v62, %v13436_v26 }
 0x910   : > { %9740 = vmatpush.bf16.msrb.mxu2 %v14049_v5  ;;  %9658 = vmatpush.bf16.msrb.mxu0 %v13473_v61  ;;  %v14300_v61 = vld [vmem:[%s22448_s4 + $0x10f8] sm:$0xf] }
 0x911   : > { %9623 = vmatmul.bf16.vlgmr.msra.gmra.mxu3 %v22661_v56 }
 0x912   : > { %v9284_v35 = vpop.f32.mrf.mxu2  ;;  %9781 = vmatpush.bf16.msrb.mxu3 %v14337_v4 }
 0x913   : > { %v9244_v49 = vpop.f32.mrf.mxu1  ;;  %v15247_v35 = vld [vmem:[%s22448_s4 + $0x1118] sm:$0xf0] }
 0x914   : > { %v9325_v47 = vpop.f32.mrf.mxu3  ;;  %v9203_v24 = vpop.f32.mrf.mxu0  ;;  %9741 = vmatpush.bf16.msrb.mxu2 %v14013_v48  ;;  %9659 = vmatpush.bf16.msrb.mxu0 %v13437_v42  ;;  %v15166_v48 = vld [vmem:[%s22448_s4 + $0xe90] sm:$0xf0] }
 0x915   : > { %v15103_v47 = vld [vmem:[%s22448_s4 + $0xc98] sm:$0xf0] }
 0x916   : > { %v13725_v28 = vor.u32 %v15103_v47, %v13724_v23 }
 0x918   : > { %9700 = vmatpush.bf16.msrb.mxu1 %v13725_v28  ;;  %v15094_v28 = vld [vmem:[%s22448_s4 + $0xc50] sm:$0xf0] }
 0x91a   : > { %v9285_v52 = vpop.f32.mrf.mxu2 }
 0x91b   : > { %v9378_v5 = vpop.f32.mrf.mxu1  ;;  %v14301_v52 = vor.u32 %v15247_v35, %v14300_v61  ;;  %v15022_v61 = vld [vmem:[%s22448_s4 + $0xa10] sm:$0xf0] }
 0x91c   : > { %v9326_v20 = vpop.f32.mrf.mxu3  ;;  %v9337_v41 = vpop.f32.mrf.mxu0 }
 0x91d   : > { %9782 = vmatpush.bf16.msrb.mxu3 %v14301_v52  ;;  %v13976_v41 = vld [vmem:[%s22448_s4 + $0xe70] sm:$0xf] }
 0x91e   : > { %9544 = vmatmul.bf16.gmra.mxu1 %v22663_v38  ;;  %v13977_v62 = vor.u32 %v15166_v48, %v13976_v41 }
 0x91f   : > { %9503 = vmatmul.bf16.gmra.mxu0 %v22662_v1  ;;  %9585 = vmatmul.bf16.gmra.mxu2 %v22664_v39 }
 0x920   : > { %9742 = vmatpush.bf16.msrb.mxu2 %v13977_v62 }
 0x921   : > { %9626 = vmatmul.bf16.gmra.mxu3 %v22665_v10 }
 0x922   : > { %v9419_v29 = vpop.f32.mrf.mxu2 }
 0x923   : > { %v9379_v49 = vpop.f32.mrf.mxu1 }
 0x924   : > { %v9460_v4 = vpop.f32.mrf.mxu3  ;;  %v9338_v8 = vpop.f32.mrf.mxu0 }
 0x925   : > { %v9339_v24 = vadd.f32 %v9338_v8, %v20932_v16  ;;  %v13400_v16 = vld [vmem:[%s22448_s4 + $0x9f0] sm:$0xf]  ;;  %v15238_v8 = vld [vmem:[%s22448_s4 + $0x10d0] sm:$0xf0] }
 0x926   : > { %v14264_v4 = vld [vmem:[%s22448_s4 + $0x10b0] sm:$0xf]  ;;  %v13401_v23 = vor.u32 %v15022_v61, %v13400_v16 }
 0x927   : > { %v9380_v27 = vadd.f32 %v9379_v49, %v9339_v24  ;;  %v14265_v47 = vor.u32 %v15238_v8, %v14264_v4 }
 0x928   : > { %9660 = vmatpush.bf16.msrb.mxu0 %v13401_v23  ;;  %v13364_v23 = vld [vmem:[%s22448_s4 + $0x9a8] sm:$0xf] }
 0x929   : > { %9783 = vmatpush.bf16.msrb.mxu3 %v14265_v47 }
 0x92a   : > { %v9420_v20 = vpop.f32.mrf.mxu2 }
 0x92b   : > { %v9421_v5 = vadd.f32 %v9420_v20, %v9380_v27  ;;  %v9382_v35 = vpop.f32.mrf.mxu1 }
 0x92c   : > { %v9461_v29 = vpop.f32.mrf.mxu3  ;;  %v9341_v26 = vpop.f32.mrf.mxu0 }
 0x92d   : > { %v9342_v42 = vadd.f32 %v9341_v26, %v20944_v37  ;;  %v9462_v24 = vadd.f32 %v9461_v29, %v9421_v5  ;;  %v13688_v37 = vld [vmem:[%s22448_s4 + $0xc30] sm:$0xf] }
 0x92e   : > { %9549 = vmatmul.bf16.gmra.mxu1 %v22668_v15  ;;  %v13689_v48 = vor.u32 %v15094_v28, %v13688_v37  ;;  %v14228_v37 = vld [vmem:[%s22448_s4 + $0x1068] sm:$0xf]  ;;  %v15229_v28 = vld [vmem:[%s22448_s4 + $0x1088] sm:$0xf0] }
 0x92f   : > { %v9383_v49 = vadd.f32 %v9382_v35, %v9342_v42  ;;  %9508 = vmatmul.bf16.gmra.mxu0 %v22667_v11  ;;  %9590 = vmatmul.bf16.gmra.mxu2 %v22669_v57  ;;  %v10713_v62 = vrot.slane %v9462_v24, 4  ;;  %v13940_v35 = vld [vmem:[%s22448_s4 + $0xe28] sm:$0xf] }
 0x930   : > { %9701 = vmatpush.bf16.msrb.mxu1 %v13689_v48  ;;  %v14229_v48 = vor.u32 %v15229_v28, %v14228_v37 }
 0x931   : > { %9631 = vmatmul.bf16.gmra.mxu3 %v22670_v45 }
 0x932   : > { %v9423_v52 = vpop.f32.mrf.mxu2  ;;  %9784 = vmatpush.bf16.msrb.mxu3 %v14229_v48 }
 0x933   : > { %v9424_v27 = vadd.f32 %v9423_v52, %v9383_v49  ;;  %v9384_v5 = vpop.f32.mrf.mxu1 }
 0x934   : > { %v9464_v20 = vpop.f32.mrf.mxu3  ;;  %v9343_v41 = vpop.f32.mrf.mxu0 }
 0x935   : > { %v9344_v16 = vadd.f32 %v9343_v41, %v20970_v13  ;;  %v9465_v29 = vadd.f32 %v9464_v20, %v9424_v27  ;;  %v15157_v13 = vld [vmem:[%s22448_s4 + $0xe48] sm:$0xf0] }
 0x936   : > { %v13941_v52 = vor.u32 %v15157_v13, %v13940_v35 }
 0x937   : > { %v9385_v26 = vadd.f32 %v9384_v5, %v9344_v16  ;;  %v10714_v61 = vrot.slane %v9465_v29, 4  ;;  %v13652_v16 = vld [vmem:[%s22448_s4 + $0xbe8] sm:$0xf]  ;;  %v15085_v5 = vld [vmem:[%s22448_s4 + $0xc08] sm:$0xf0] }
 0x938   : > { %9743 = vmatpush.bf16.msrb.mxu2 %v13941_v52 }
 0x939   : > { %v10715_v4 = vsel %vm10712_vm3, %v10713_v62, %v10714_v61 }
 0x93a   : > { %v21189_v8 = vadd.f32 %v10715_v4, %v20676_v60  ;;  %v9425_v42 = vpop.f32.mrf.mxu2  ;;  %v15013_v60 = vld [vmem:[%s22448_s4 + $0x9c8] sm:$0xf0] }
 0x93b   : > { %v9426_v47 = vadd.f32 %v9425_v42, %v9385_v26  ;;  %v9387_v20 = vpop.f32.mrf.mxu1  ;;  %v13365_v41 = vor.u32 %v15013_v60, %v13364_v23  ;;  %v13653_v26 = vor.u32 %v15085_v5, %v13652_v16 }
 0x93c   : > { %v9466_v24 = vpop.f32.mrf.mxu3  ;;  %v9346_v49 = vpop.f32.mrf.mxu0 }
 0x93d   : > { %v9347_v27 = vadd.f32 %v9346_v49, %v20976_v3  ;;  %v9467_v29 = vadd.f32 %v9466_v24, %v9426_v47  ;;  %9661 = vmatpush.bf16.msrb.mxu0 %v13365_v41  ;;  %9702 = vmatpush.bf16.msrb.mxu1 %v13653_v26  ;;  %v15220_v26 = vld [vmem:[%s22448_s4 + $0x1040] sm:$0xf0] }
 0x93e   : > { %9554 = vmatmul.bf16.gmra.mxu1 %v22674_v17 }
 0x93f   : > { %v9388_v62 = vadd.f32 %v9387_v20, %v9347_v27  ;;  %9513 = vmatmul.bf16.gmra.mxu0 %v22673_v21  ;;  %v10716_v4 = vrot.slane %v9467_v29, 4  ;;  %9595 = vmatmul.bf16.gmra.mxu2 %v22675_v43  ;;  %v15148_v20 = vld [vmem:[%s22448_s4 + $0xe00] sm:$0xf0]  ;;  %v14192_v29 = vld [vmem:[%s22448_s4 + $0x1020] sm:$0xf] }
 0x941   : > { %9636 = vmatmul.bf16.gmra.mxu3 %v22676_v30  ;;  %v10717_v3 = vsel %vm10712_vm3, %v10714_v61, %v10716_v4 }
 0x942   : > { %v21222_v42 = vadd.f32 %v10717_v3, %v20709_v19  ;;  %v9428_v35 = vpop.f32.mrf.mxu2  ;;  %v13904_v19 = vld [vmem:[%s22448_s4 + $0xde0] sm:$0xf] }
 0x943   : > { %v9429_v13 = vadd.f32 %v9428_v35, %v9388_v62  ;;  %v9389_v49 = vpop.f32.mrf.mxu1  ;;  %v13905_v5 = vor.u32 %v15148_v20, %v13904_v19  ;;  %v14193_v35 = vor.u32 %v15220_v26, %v14192_v29  ;;  %v15139_v19 = vld [vmem:[%s22448_s4 + $0xdb8] sm:$0xf0] }
 0x944   : > { %v9469_v23 = vpop.f32.mrf.mxu3  ;;  %v9348_v47 = vpop.f32.mrf.mxu0 }
 0x945   : > { %v9349_v24 = vadd.f32 %v9348_v47, %v21002_v33  ;;  %v9470_v52 = vadd.f32 %v9469_v23, %v9429_v13  ;;  %v13328_v33 = vld [vmem:[%s22448_s4 + $0x960] sm:$0xf]  ;;  %v15076_v23 = vld [vmem:[%s22448_s4 + $0xbc0] sm:$0xf0]  ;;  %9744 = vmatpush.bf16.msrb.mxu2 %v13905_v5  ;;  %9785 = vmatpush.bf16.msrb.mxu3 %v14193_v35 }
 0x946   : > { %v13616_v13 = vld [vmem:[%s22448_s4 + $0xba0] sm:$0xf] }
 0x947   : > { %v9390_v60 = vadd.f32 %v9389_v49, %v9349_v24  ;;  %v10718_v37 = vrot.slane %v9470_v52, 4  ;;  %v13617_v24 = vor.u32 %v15076_v23, %v13616_v13 }
 0x949   : > { %v10719_v28 = vsel %vm10712_vm3, %v10716_v4, %v10718_v37  ;;  %9703 = vmatpush.bf16.msrb.mxu1 %v13617_v24  ;;  %v13580_v24 = vld [vmem:[%s22448_s4 + $0xb58] sm:$0xf] }
 0x94a   : > { %v21227_v27 = vadd.f32 %v10719_v28, %v20714_v54  ;;  %v9430_v61 = vpop.f32.mrf.mxu2  ;;  %v15004_v54 = vld [vmem:[%s22448_s4 + $0x980] sm:$0xf0] }
 0x94b   : > { %v9431_v41 = vadd.f32 %v9430_v61, %v9390_v60  ;;  %v9392_v4 = vpop.f32.mrf.mxu1  ;;  %v13329_v3 = vor.u32 %v15004_v54, %v13328_v33  ;;  %v13868_v61 = vld [vmem:[%s22448_s4 + $0xd98] sm:$0xf] }
 0x94c   : > { %v9471_v48 = vpop.f32.mrf.mxu3  ;;  %v9351_v16 = vpop.f32.mrf.mxu0 }
 0x94d   : > { %v9352_v62 = vadd.f32 %v9351_v16, %v21014_v53  ;;  %v9472_v47 = vadd.f32 %v9471_v48, %v9431_v41  ;;  %9662 = vmatpush.bf16.msrb.mxu0 %v13329_v3  ;;  %v13869_v48 = vor.u32 %v15139_v19, %v13868_v61  ;;  %v14995_v3 = vld [vmem:[%s22448_s4 + $0x938] sm:$0xf0] }
 0x94e   : > { %9559 = vmatmul.bf16.gmra.mxu1 %v22738_v55 }
 0x94f   : > { %v9393_v49 = vadd.f32 %v9392_v4, %v9352_v62  ;;  %9518 = vmatmul.bf16.gmra.mxu0 %v22680_v59  ;;  %v10720_v52 = vrot.slane %v9472_v47, 4  ;;  %9600 = vmatmul.bf16.gmra.mxu2 %v22739_v36  ;;  %v13292_v4 = vld [vmem:[%s22448_s4 + $0x918] sm:$0xf] }
 0x950   : > { %9745 = vmatpush.bf16.msrb.mxu2 %v13869_v48  ;;  %v13293_v47 = vor.u32 %v14995_v3, %v13292_v4  ;;  %v14982_v4 = vld [vmem:[%s22448_s4 + $0x8d4] sm:$0xf]  ;;  %v13258_v3 = vld [vmem:[%s22448_s4 + $0x8f4] sm:$0xf0] }
 0x951   : > { %9641 = vmatmul.bf16.gmra.mxu3 %v22741_v22  ;;  %v10721_v53 = vsel %vm10712_vm3, %v10718_v37, %v10720_v52 }
 0x952   : > { %v21260_v60 = vadd.f32 %v10721_v53, %v20747_v12  ;;  %v9433_v28 = vpop.f32.mrf.mxu2  ;;  %9663 = vmatpush.bf16.msrb.mxu0 %v13293_v47  ;;  %v14838_v47 = vld [vmem:[%s22448_s4 + $0x454] sm:$0xf] }
 0x953   : > { %v9434_v20 = vadd.f32 %v9433_v28, %v9393_v49  ;;  %v9394_v37 = vpop.f32.mrf.mxu1  ;;  %v15067_v49 = vld [vmem:[%s22448_s4 + $0xb78] sm:$0xf0] }
 0x954   : > { %v9474_v33 = vpop.f32.mrf.mxu3  ;;  %v9353_v41 = vpop.f32.mrf.mxu0  ;;  %v13581_v61 = vor.u32 %v15067_v49, %v13580_v24 }
 0x955   : > { %v9354_v16 = vadd.f32 %v9353_v41, %v21034_v9  ;;  %v9475_v5 = vadd.f32 %v9474_v33, %v9434_v20  ;;  %v14156_v9 = vld [vmem:[%s22448_s4 + $0xfd8] sm:$0xf] }
 0x956   : > { %9704 = vmatpush.bf16.msrb.mxu1 %v13581_v61 }
 0x957   : > { %v9395_v12 = vadd.f32 %v9394_v37, %v9354_v16  ;;  %v10722_v54 = vrot.slane %v9475_v5, 4  ;;  %v14910_v16 = vld [vmem:[%s22448_s4 + $0x694] sm:$0xf]  ;;  %v12970_v37 = vld [vmem:[%s22448_s4 + $0x6b4] sm:$0xf0] }
 0x958   : > { %v14766_v5 = vld [vmem:[%s22448_s4 + $0x214] sm:$0xf] }
 0x959   : > { %v10723_v29 = vsel %vm10712_vm3, %v10720_v52, %v10722_v54 }
 0x95a   : > { %v21271_v26 = vadd.f32 %v10723_v29, %v20758_v46  ;;  %v9435_v62 = vpop.f32.mrf.mxu2  ;;  %v15211_v46 = vld [vmem:[%s22448_s4 + $0xff8] sm:$0xf0] }
 0x95b   : > { %v9436_v35 = vadd.f32 %v9435_v62, %v9395_v12  ;;  %v9397_v53 = vpop.f32.mrf.mxu1  ;;  %v14157_v28 = vor.u32 %v15211_v46, %v14156_v9  ;;  %v12682_v46 = vld [vmem:[%s22448_s4 + $0x474] sm:$0xf0] }
 0x95c   : > { %v9476_v13 = vpop.f32.mrf.mxu3  ;;  %v9356_v23 = vpop.f32.mrf.mxu0  ;;  %v12685_v49 = vor.u32 %v14838_v47, %v12682_v46 }
 0x95d   : > { %v9357_v52 = vadd.f32 %v9356_v23, %v21064_v63  ;;  %v9477_v19 = vadd.f32 %v9476_v13, %v9436_v35  ;;  %9786 = vmatpush.bf16.msrb.mxu3 %v14157_v28  ;;  %v13261_v23 = vor.u32 %v14982_v4, %v13258_v3 }
 0x95e   : > { %9564 = vmatmul.bf16.gmra.mxu1 %v22720_v32 }
 0x95f   : > { %v9398_v20 = vadd.f32 %v9397_v53, %v9357_v52  ;;  %9523 = vmatmul.bf16.gmra.mxu0 %v22686_v6  ;;  %v10724_v33 = vrot.slane %v9477_v19, 4  ;;  %9605 = vmatmul.bf16.gmra.mxu2 %v22721_v14 }
 0x960   : > { %9861 = vmatpush.bf16.msra.mxu1 %v12685_v49 }
 0x961   : > { %9646 = vmatmul.bf16.gmra.mxu3 %v22722_v44  ;;  %v10725_v41 = vsel %vm10712_vm3, %v10722_v54, %v10724_v33  ;;  %v12973_v54 = vor.u32 %v14910_v16, %v12970_v37  ;;  %v14901_v37 = vld [vmem:[%s22448_s4 + $0x64c] sm:$0xf] }
 0x962   : > { %v21298_v63 = vadd.f32 %v10725_v41, %v20785_v7  ;;  %v9438_v48 = vpop.f32.mrf.mxu2  ;;  %v12394_v7 = vld [vmem:[%s22448_s4 + $0x234] sm:$0xf0]  ;;  %9943 = vmatpush.bf16.msra.mxu3 %v13261_v23  ;;  %v22874_v23 = vld [vmem:[#allocation23_spill] sm:$0xff] }
 0x963   : > { %v9439_v12 = vadd.f32 %v9438_v48, %v9398_v20  ;;  %v9399_v35 = vpop.f32.mrf.mxu1  ;;  %v12397_v13 = vor.u32 %v14766_v5, %v12394_v7  ;;  %9902 = vmatpush.bf16.msra.mxu2 %v12973_v54  ;;  %v12934_v5 = vld [vmem:[%s22448_s4 + $0x66c] sm:$0xf0]  ;;  %v14973_v7 = vld [vmem:[%s22448_s4 + $0x88c] sm:$0xf] }
 0x964   : > { %v9479_v29 = vpop.f32.mrf.mxu3  ;;  %v9358_v62 = vpop.f32.mrf.mxu0  ;;  %v12358_v54 = vld [vmem:[%s22448_s4 + $0x1ec] sm:$0xf0] }
 0x965   : > { %v9359_v9 = vadd.f32 %v9358_v62, %v21072_v51  ;;  %v9480_v24 = vadd.f32 %v9479_v29, %v9439_v12  ;;  %9820 = vmatpush.bf16.msra.mxu0 %v12397_v13  ;;  %v14757_v62 = vld [vmem:[%s22448_s4 + $0x1cc] sm:$0xf]  ;;  %v12646_v13 = vld [vmem:[%s22448_s4 + $0x42c] sm:$0xf0] }
 0x966   : > { %v12361_v3 = vor.u32 %v14757_v62, %v12358_v54  ;;  %v14892_v54 = vld [vmem:[%s22448_s4 + $0x604] sm:$0xf] }
 0x967   : > { %v9400_v52 = vadd.f32 %v9399_v35, %v9359_v9  ;;  %v10726_v53 = vrot.slane %v9480_v24, 4  ;;  %v13222_v9 = vld [vmem:[%s22448_s4 + $0x8ac] sm:$0xf0]  ;;  %v14829_v35 = vld [vmem:[%s22448_s4 + $0x40c] sm:$0xf] }
 0x968   : > { %v13225_v24 = vor.u32 %v14973_v7, %v13222_v9  ;;  %v12649_v49 = vor.u32 %v14829_v35, %v12646_v13  ;;  %v12322_v9 = vld [vmem:[%s22448_s4 + $0x1a4] sm:$0xf0]  ;;  %v14964_v35 = vld [vmem:[%s22448_s4 + $0x844] sm:$0xf]  ;;  %v22877_v13 = vld [vmem:[#allocation40_spill] sm:$0xff] }
 0x969   : > { %v10727_v51 = vsel %vm10712_vm3, %v10724_v33, %v10726_v53  ;;  %v12937_v33 = vor.u32 %v14901_v37, %v12934_v5  ;;  %9821 = vmatpush.bf16.msra.mxu0 %v12361_v3  ;;  %v22875_v37 = vld [vmem:[#allocation20_spill] sm:$0xff] }
 0x96a   : > { %v21327_v28 = vadd.f32 %v10727_v51, %v20814_v2  ;;  %v9440_v61 = vpop.f32.mrf.mxu2  ;;  %9944 = vmatpush.bf16.msra.mxu3 %v13225_v24  ;;  %9862 = vmatpush.bf16.msra.mxu1 %v12649_v49  ;;  %v22878_v49 = vld [vmem:[#allocation41_spill] sm:$0xff] }
 0x96b   : > { %v9441_v19 = vadd.f32 %v9440_v61, %v9400_v52  ;;  %v9402_v16 = vpop.f32.mrf.mxu1  ;;  %9903 = vmatpush.bf16.msra.mxu2 %v12937_v33 }
 0x96c   : > { %v9481_v20 = vpop.f32.mrf.mxu3  ;;  %v9361_v41 = vpop.f32.mrf.mxu0 }
 0x96d   : > { %v9362_v48 = vadd.f32 %v9361_v41, %v21096_v34  ;;  %v9482_v12 = vadd.f32 %v9481_v20, %v9441_v19  ;;  %v22873_v34 = vld [vmem:[#allocation31_spill] sm:$0xff] }
 0x96e   : > { %9569 = vmatmul.bf16.gmra.mxu1 %v22726_v58 }
 0x96f   : > { %v9403_v29 = vadd.f32 %v9402_v16, %v9362_v48  ;;  %9528 = vmatmul.bf16.gmra.mxu0 %v22724_v31  ;;  %v10728_v2 = vrot.slane %v9482_v12, 4  ;;  %9610 = vmatmul.bf16.gmra.mxu2 %v22771_v18 }
 0x971   : > { %9651 = vmatmul.bf16.gmra.mxu3 %v22873_v34  ;;  %v10729_v4 = vsel %vm10712_vm3, %v10726_v53, %v10728_v2 }
 0x972   : > { %v21360_v47 = vadd.f32 %v10729_v4, %v22874_v23  ;;  %v9443_v46 = vpop.f32.mrf.mxu2 }
 0x973   : > { %v9444_v52 = vadd.f32 %v9443_v46, %v9403_v29  ;;  %v9404_v19 = vpop.f32.mrf.mxu1  ;;  %v13186_v46 = vld [vmem:[%s22448_s4 + $0x864] sm:$0xf0] }
 0x974   : > { %v9484_v53 = vpop.f32.mrf.mxu3  ;;  %v9363_v51 = vpop.f32.mrf.mxu0 }
 0x975   : > { %v9364_v61 = vadd.f32 %v9363_v51, %v21098_v0  ;;  %v9485_v20 = vadd.f32 %v9484_v53, %v9444_v52  ;;  %v12898_v0 = vld [vmem:[%s22448_s4 + $0x624] sm:$0xf0]  ;;  %v22879_v52 = vld [vmem:[#allocation25_spill] sm:$0xff]  ;;  %v13189_v53 = vor.u32 %v14964_v35, %v13186_v46  ;;  %v22880_v51 = vld [vmem:[#allocation2_spill] sm:$0xff] }
 0x976   : > { %v12901_v4 = vor.u32 %v14892_v54, %v12898_v0  ;;  %v14883_v54 = vld [vmem:[%s22448_s4 + $0x5bc] sm:$0xf]  ;;  %v12862_v0 = vld [vmem:[%s22448_s4 + $0x5dc] sm:$0xf0]  ;;  %v22883_v46 = vld [vmem:[#allocation12_spill] sm:$0xff] }
 0x977   : > { %v9405_v41 = vadd.f32 %v9404_v19, %v9364_v61  ;;  %v10730_v48 = vrot.slane %v9485_v20, 4  ;;  %v14820_v61 = vld [vmem:[%s22448_s4 + $0x3c4] sm:$0xf]  ;;  %v12610_v19 = vld [vmem:[%s22448_s4 + $0x3e4] sm:$0xf0]  ;;  %9945 = vmatpush.bf16.msra.mxu3 %v13189_v53 }
 0x978   : > { %9904 = vmatpush.bf16.msra.mxu2 %v12901_v4  ;;  %v12286_v35 = vld [vmem:[%s22448_s4 + $0x15c] sm:$0xf0] }
 0x979   : > { %v10731_v16 = vsel %vm10712_vm3, %v10728_v2, %v10730_v48  ;;  %v14748_v2 = vld [vmem:[%s22448_s4 + $0x184] sm:$0xf]  ;;  %v13150_v53 = vld [vmem:[%s22448_s4 + $0x81c] sm:$0xf0] }
 0x97a   : > { %v21365_v5 = vadd.f32 %v10731_v16, %v22875_v37  ;;  %v9445_v12 = vpop.f32.mrf.mxu2  ;;  %v12325_v23 = vor.u32 %v14748_v2, %v12322_v9  ;;  %v22881_v16 = vld [vmem:[#allocation35_spill] sm:$0xff]  ;;  %v14739_v9 = vld [vmem:[%s22448_s4 + $0x13c] sm:$0xf] }
 0x97b   : > { %v9446_v33 = vadd.f32 %v9445_v12, %v9405_v41  ;;  %v9407_v7 = vpop.f32.mrf.mxu1  ;;  %v12613_v41 = vor.u32 %v14820_v61, %v12610_v19  ;;  %v14811_v61 = vld [vmem:[%s22448_s4 + $0x37c] sm:$0xf]  ;;  %v12574_v19 = vld [vmem:[%s22448_s4 + $0x39c] sm:$0xf0] }
 0x97c   : > { %22876 = vst [vmem:[#allocation36_spill] sm:$0xff] %v21365_v5  ;;  %v9486_v62 = vpop.f32.mrf.mxu3  ;;  %v9366_v29 = vpop.f32.mrf.mxu0  ;;  %9822 = vmatpush.bf16.msra.mxu0 %v12325_v23  ;;  %v12865_v7 = vor.u32 %v14883_v54, %v12862_v0  ;;  %v14955_v23 = vld [vmem:[%s22448_s4 + $0x7fc] sm:$0xf]  ;;  %v22902_v5 = vld [vmem:[#allocation32_spill] sm:$0xff] }
 0x97d   : > { %v9487_v3 = vadd.f32 %v9486_v62, %v9446_v33  ;;  %9863 = vmatpush.bf16.msra.mxu1 %v12613_v41  ;;  %v22885_v41 = vld [vmem:[#allocation3_spill] sm:$0xff] }
 0x97e   : > { %9705 = vmatmul.bf16.vlgmr.msrb.gmra.mxu1 %v22878_v49  ;;  %9905 = vmatpush.bf16.msra.mxu2 %v12865_v7  ;;  %v14874_v7 = vld [vmem:[%s22448_s4 + $0x574] sm:$0xf] }
 0x97f   : > { %9664 = vmatmul.bf16.vlgmr.msrb.gmra.mxu0 %v22877_v13  ;;  %v10732_v24 = vrot.slane %v9487_v3, 4  ;;  %9746 = vmatmul.bf16.vlgmr.msrb.gmra.mxu2 %v22879_v52  ;;  %v15180_v13 = vld [vmem:[%s22448_s4 + $0xf04] sm:$0xf] }
 0x981   : > { %9787 = vmatmul.bf16.vlgmr.msrb.gmra.mxu3 %v22880_v51  ;;  %v10733_v20 = vsel %vm10712_vm3, %v10730_v48, %v10732_v24  ;;  %v12289_v24 = vor.u32 %v14739_v9, %v12286_v35  ;;  %v14946_v9 = vld [vmem:[%s22448_s4 + $0x7b4] sm:$0xf]  ;;  %v13114_v35 = vld [vmem:[%s22448_s4 + $0x7d4] sm:$0xf0] }
 0x982   : > { %v21397_v37 = vadd.f32 %v10733_v20, %v22881_v16  ;;  %v9448_v12 = vpop.f32.mrf.mxu2  ;;  %v22884_v20 = vld [vmem:[#allocation42_spill] sm:$0xff]  ;;  %v13153_v16 = vor.u32 %v14955_v23, %v13150_v53 }
 0x983   : > { %v9408_v29 = vpop.f32.mrf.mxu1  ;;  %v12577_v12 = vor.u32 %v14811_v61, %v12574_v19  ;;  %9823 = vmatpush.bf16.msra.mxu0 %v12289_v24  ;;  %v13117_v24 = vor.u32 %v14946_v9, %v13114_v35 }
 0x984   : > { %22882 = vst [vmem:[#allocation13_spill] sm:$0xff] %v21397_v37  ;;  %v9489_v33 = vpop.f32.mrf.mxu3  ;;  %v9367_v62 = vpop.f32.mrf.mxu0  ;;  %9946 = vmatpush.bf16.msra.mxu3 %v13153_v16  ;;  %v22901_v37 = vld [vmem:[#allocation17_spill] sm:$0xff] }
 0x985   : > { %v22886_v33 = vld [vmem:[#allocation4_spill] sm:$0xff]  ;;  %9864 = vmatpush.bf16.msra.mxu1 %v12577_v12 }
 0x988   : > { %9947 = vmatpush.bf16.msra.mxu3 %v13117_v24 }
 0x98a   : > { %v9449_v48 = vpop.f32.mrf.mxu2 }
 0x98b   : > { %v9542_v2 = vpop.f32.mrf.mxu1  ;;  %v12826_v48 = vld [vmem:[%s22448_s4 + $0x594] sm:$0xf0] }
 0x98c   : > { %v9490_v4 = vpop.f32.mrf.mxu3  ;;  %v9501_v3 = vpop.f32.mrf.mxu0  ;;  %v12250_v2 = vld [vmem:[%s22448_s4 + $0x114] sm:$0xf0] }
 0x98d   : > { %v14730_v4 = vld [vmem:[%s22448_s4 + $0xf4] sm:$0xf]  ;;  %v12829_v3 = vor.u32 %v14874_v7, %v12826_v48  ;;  %v22889_v48 = vld [vmem:[#allocation10_spill] sm:$0xff] }
 0x98e   : > { %9708 = vmatmul.bf16.gmra.mxu1 %v22884_v20  ;;  %v12253_v23 = vor.u32 %v14730_v4, %v12250_v2  ;;  %v22888_v7 = vld [vmem:[#allocation44_spill] sm:$0xff]  ;;  %v22890_v4 = vld [vmem:[#allocation11_spill] sm:$0xff] }
 0x98f   : > { %9667 = vmatmul.bf16.gmra.mxu0 %v22883_v46  ;;  %9749 = vmatmul.bf16.gmra.mxu2 %v22885_v41  ;;  %v22897_v41 = vld [vmem:[#allocation8_spill] sm:$0xff] }
 0x990   : > { %9906 = vmatpush.bf16.msra.mxu2 %v12829_v3  ;;  %9824 = vmatpush.bf16.msra.mxu0 %v12253_v23  ;;  %v22898_v20 = vld [vmem:[#allocation16_spill] sm:$0xff] }
 0x991   : > { %9790 = vmatmul.bf16.gmra.mxu3 %v22886_v33  ;;  %v22894_v33 = vld [vmem:[#allocation29_spill] sm:$0xff]  ;;  %v22900_v46 = vld [vmem:[#allocation24_spill] sm:$0xff] }
 0x992   : > { %v9583_v62 = vpop.f32.mrf.mxu2 }
 0x993   : > { %v9543_v0 = vpop.f32.mrf.mxu1  ;;  %v14802_v62 = vld [vmem:[%s22448_s4 + $0x334] sm:$0xf] }
 0x994   : > { %v9624_v29 = vpop.f32.mrf.mxu3  ;;  %v9502_v54 = vpop.f32.mrf.mxu0 }
 0x995   : > { %v12538_v29 = vld [vmem:[%s22448_s4 + $0x354] sm:$0xf0]  ;;  %v22887_v54 = vld [vmem:[#allocation43_spill] sm:$0xff] }
 0x996   : > { %v12541_v0 = vor.u32 %v14802_v62, %v12538_v29  ;;  %v14937_v29 = vld [vmem:[%s22448_s4 + $0x76c] sm:$0xf] }
 0x998   : > { %9865 = vmatpush.bf16.msra.mxu1 %v12541_v0  ;;  %v13078_v0 = vld [vmem:[%s22448_s4 + $0x78c] sm:$0xf0] }
 0x99a   : > { %v9584_v53 = vpop.f32.mrf.mxu2 }
 0x99b   : > { %v9545_v16 = vpop.f32.mrf.mxu1 }
 0x99c   : > { %v9625_v61 = vpop.f32.mrf.mxu3  ;;  %v9504_v19 = vpop.f32.mrf.mxu0 }
 0x99d   : > { %v9546_v12 = vadd.f32 %v9545_v16, %v9504_v19  ;;  %v14865_v61 = vld [vmem:[%s22448_s4 + $0x52c] sm:$0xf]  ;;  %v12790_v19 = vld [vmem:[%s22448_s4 + $0x54c] sm:$0xf0] }
 0x99e   : > { %9713 = vmatmul.bf16.gmra.mxu1 %v22888_v7  ;;  %v14721_v16 = vld [vmem:[%s22448_s4 + $0xac] sm:$0xf]  ;;  %v12793_v62 = vor.u32 %v14865_v61, %v12790_v19 }
 0x99f   : > { %9672 = vmatmul.bf16.gmra.mxu0 %v22887_v54  ;;  %9754 = vmatmul.bf16.gmra.mxu2 %v22889_v48  ;;  %v22893_v54 = vld [vmem:[#allocation9_spill] sm:$0xff] }
 0x9a0   : > { %9907 = vmatpush.bf16.msra.mxu2 %v12793_v62 }
 0x9a1   : > { %9795 = vmatmul.bf16.gmra.mxu3 %v22890_v4 }
 0x9a2   : > { %v9586_v3 = vpop.f32.mrf.mxu2 }
 0x9a3   : > { %v9587_v2 = vadd.f32 %v9586_v3, %v9546_v12  ;;  %v9547_v23 = vpop.f32.mrf.mxu1  ;;  %v12214_v12 = vld [vmem:[%s22448_s4 + $0xcc] sm:$0xf0] }
 0x9a4   : > { %v9627_v9 = vpop.f32.mrf.mxu3  ;;  %v9506_v35 = vpop.f32.mrf.mxu0  ;;  %v12217_v3 = vor.u32 %v14721_v16, %v12214_v12 }
 0x9a5   : > { %v21455_v24 = vadd.f32 %v9627_v9, %v9587_v2  ;;  %v9548_v53 = vadd.f32 %v9547_v23, %v9506_v35  ;;  %v13081_v2 = vor.u32 %v14937_v29, %v13078_v0  ;;  %v14793_v9 = vld [vmem:[%s22448_s4 + $0x2ec] sm:$0xf]  ;;  %v12502_v35 = vld [vmem:[%s22448_s4 + $0x30c] sm:$0xf0]  ;;  %v22891_v29 = vld [vmem:[#allocation45_spill] sm:$0xff] }
 0x9a6   : > { %v12505_v23 = vor.u32 %v14793_v9, %v12502_v35  ;;  %9825 = vmatpush.bf16.msra.mxu0 %v12217_v3  ;;  %v22892_v0 = vld [vmem:[#allocation46_spill] sm:$0xff] }
 0x9a7   : > { %9948 = vmatpush.bf16.msra.mxu3 %v13081_v2 }
 0x9a8   : > { %9866 = vmatpush.bf16.msra.mxu1 %v12505_v23 }
 0x9aa   : > { %v9588_v61 = vpop.f32.mrf.mxu2 }
 0x9ab   : > { %v9589_v19 = vadd.f32 %v9588_v61, %v9548_v53  ;;  %v9550_v7 = vpop.f32.mrf.mxu1 }
 0x9ac   : > { %v9629_v4 = vpop.f32.mrf.mxu3  ;;  %v9509_v48 = vpop.f32.mrf.mxu0 }
 0x9ad   : > { %v21481_v16 = vadd.f32 %v9629_v4, %v9589_v19  ;;  %v9551_v12 = vadd.f32 %v9550_v7, %v9509_v48  ;;  %v14856_v7 = vld [vmem:[%s22448_s4 + $0x4e4] sm:$0xf]  ;;  %v12754_v48 = vld [vmem:[%s22448_s4 + $0x504] sm:$0xf0] }
 0x9ae   : > { %9718 = vmatmul.bf16.gmra.mxu1 %v22892_v0  ;;  %v14712_v4 = vld [vmem:[%s22448_s4 + $0x64] sm:$0xf]  ;;  %v12757_v61 = vor.u32 %v14856_v7, %v12754_v48  ;;  %v12178_v19 = vld [vmem:[%s22448_s4 + $0x84] sm:$0xf0] }
 0x9af   : > { %9677 = vmatmul.bf16.gmra.mxu0 %v22891_v29  ;;  %9759 = vmatmul.bf16.gmra.mxu2 %v22893_v54 }
 0x9b0   : > { %9908 = vmatpush.bf16.msra.mxu2 %v12757_v61  ;;  %v14847_v61 = vld [vmem:[%s22448_s4 + $0x49c] sm:$0xf] }
 0x9b1   : > { %9800 = vmatmul.bf16.gmra.mxu3 %v22894_v33 }
 0x9b2   : > { %v9591_v62 = vpop.f32.mrf.mxu2 }
 0x9b3   : > { %v9592_v3 = vadd.f32 %v9591_v62, %v9551_v12  ;;  %v9552_v35 = vpop.f32.mrf.mxu1  ;;  %v14928_v12 = vld [vmem:[%s22448_s4 + $0x724] sm:$0xf]  ;;  %v13042_v62 = vld [vmem:[%s22448_s4 + $0x744] sm:$0xf0] }
 0x9b4   : > { %v9632_v2 = vpop.f32.mrf.mxu3  ;;  %v9511_v9 = vpop.f32.mrf.mxu0 }
 0x9b5   : > { %v21487_v53 = vadd.f32 %v9632_v2, %v9592_v3  ;;  %v9553_v23 = vadd.f32 %v9552_v35, %v9511_v9  ;;  %v12181_v3 = vor.u32 %v14712_v4, %v12178_v19  ;;  %v13045_v2 = vor.u32 %v14928_v12, %v13042_v62  ;;  %v14784_v9 = vld [vmem:[%s22448_s4 + $0x2a4] sm:$0xf]  ;;  %v12466_v35 = vld [vmem:[%s22448_s4 + $0x2c4] sm:$0xf0]  ;;  %v22895_v12 = vld [vmem:[#allocation5_spill] sm:$0xff] }
 0x9b6   : > { %v12469_v7 = vor.u32 %v14784_v9, %v12466_v35  ;;  %v22896_v62 = vld [vmem:[#allocation6_spill] sm:$0xff] }
 0x9b7   : > { %9826 = vmatpush.bf16.msra.mxu0 %v12181_v3  ;;  %9949 = vmatpush.bf16.msra.mxu3 %v13045_v2 }
 0x9b8   : > { %9867 = vmatpush.bf16.msra.mxu1 %v12469_v7  ;;  %v14703_v7 = vld [vmem:[%s22448_s4 + $0x1c] sm:$0xf] }
 0x9ba   : > { %v9593_v48 = vpop.f32.mrf.mxu2 }
 0x9bb   : > { %v9594_v33 = vadd.f32 %v9593_v48, %v9553_v23  ;;  %v9555_v29 = vpop.f32.mrf.mxu1  ;;  %v12718_v23 = vld [vmem:[%s22448_s4 + $0x4bc] sm:$0xf0] }
 0x9bc   : > { %v9634_v54 = vpop.f32.mrf.mxu3  ;;  %v9514_v0 = vpop.f32.mrf.mxu0  ;;  %v12721_v3 = vor.u32 %v14847_v61, %v12718_v23  ;;  %v12142_v48 = vld [vmem:[%s22448_s4 + $0x3c] sm:$0xf0]  ;;  %v14919_v61 = vld [vmem:[%s22448_s4 + $0x6dc] sm:$0xf] }
 0x9bd   : > { %v21513_v4 = vadd.f32 %v9634_v54, %v9594_v33  ;;  %v9556_v19 = vadd.f32 %v9555_v29, %v9514_v0  ;;  %v13006_v23 = vld [vmem:[%s22448_s4 + $0x6fc] sm:$0xf0] }
 0x9be   : > { %9723 = vmatmul.bf16.gmra.mxu1 %v22896_v62  ;;  %9909 = vmatpush.bf16.msra.mxu2 %v12721_v3  ;;  %v14775_v3 = vld [vmem:[%s22448_s4 + $0x25c] sm:$0xf] }
 0x9bf   : > { %9682 = vmatmul.bf16.gmra.mxu0 %v22895_v12  ;;  %9764 = vmatmul.bf16.gmra.mxu2 %v22897_v41  ;;  %v22899_v12 = vld [vmem:[#allocation7_spill] sm:$0xff] }
 0x9c1   : > { %9805 = vmatmul.bf16.gmra.mxu3 %v22898_v20 }
 0x9c2   : > { %v9596_v33 = vpop.f32.mrf.mxu2 }
 0x9c3   : > { %v9597_v54 = vadd.f32 %v9596_v33, %v9556_v19  ;;  %v9557_v2 = vpop.f32.mrf.mxu1  ;;  %v12145_v19 = vor.u32 %v14703_v7, %v12142_v48  ;;  %v12430_v33 = vld [vmem:[%s22448_s4 + $0x27c] sm:$0xf0] }
 0x9c4   : > { %v9637_v29 = vpop.f32.mrf.mxu3  ;;  %v9516_v0 = vpop.f32.mrf.mxu0 }
 0x9c5   : > { %v21525_v9 = vadd.f32 %v9637_v29, %v9597_v54  ;;  %v9558_v35 = vadd.f32 %v9557_v2, %v9516_v0  ;;  %v13009_v54 = vor.u32 %v14919_v61, %v13006_v23  ;;  %v12433_v29 = vor.u32 %v14775_v3, %v12430_v33  ;;  %9827 = vmatpush.bf16.msra.mxu0 %v12145_v19  ;;  %v15198_v61 = vld [vmem:[%s22448_s4 + $0xf94] sm:$0xf]  ;;  %v13546_v23 = vld [vmem:[%s22448_s4 + $0xb34] sm:$0xf0] }
 0x9c6   : > { %v15270_v3 = vld [vmem:[%s22448_s4 + $0x11d4] sm:$0xf]  ;;  %v14410_v33 = vld [vmem:[%s22448_s4 + $0x11f4] sm:$0xf0] }
 0x9c7   : > { %9950 = vmatpush.bf16.msra.mxu3 %v13009_v54  ;;  %9868 = vmatpush.bf16.msra.mxu1 %v12433_v29 }
 0x9ca   : > { %v9598_v0 = vpop.f32.mrf.mxu2 }
 0x9cb   : > { %v9599_v2 = vadd.f32 %v9598_v0, %v9558_v35  ;;  %v9560_v20 = vpop.f32.mrf.mxu1  ;;  %v14122_v35 = vld [vmem:[%s22448_s4 + $0xfb4] sm:$0xf0]  ;;  %v14413_v0 = vor.u32 %v15270_v3, %v14410_v33 }
 0x9cc   : > { %v9639_v7 = vpop.f32.mrf.mxu3  ;;  %v9519_v48 = vpop.f32.mrf.mxu0  ;;  %v14125_v19 = vor.u32 %v15198_v61, %v14122_v35 }
 0x9cd   : > { %v21545_v41 = vadd.f32 %v9639_v7, %v9599_v2  ;;  %v9561_v62 = vadd.f32 %v9560_v20, %v9519_v48  ;;  %v15054_v20 = vld [vmem:[%s22448_s4 + $0xb14] sm:$0xf]  ;;  %10107 = vmatpush.bf16.msrb.mxu3 %v14413_v0 }
 0x9ce   : > { %9728 = vmatmul.bf16.gmra.mxu1 %v22900_v46  ;;  %v13549_v29 = vor.u32 %v15054_v20, %v13546_v23  ;;  %10066 = vmatpush.bf16.msrb.mxu2 %v14125_v19  ;;  %v13834_v46 = vld [vmem:[%s22448_s4 + $0xd74] sm:$0xf0] }
 0x9cf   : > { %9687 = vmatmul.bf16.gmra.mxu0 %v22899_v12  ;;  %9769 = vmatmul.bf16.gmra.mxu2 %v22901_v37  ;;  %v15126_v37 = vld [vmem:[%s22448_s4 + $0xd54] sm:$0xf] }
 0x9d0   : > { %9984 = vmatpush.bf16.msrb.mxu0 %v13549_v29  ;;  %v13837_v20 = vor.u32 %v15126_v37, %v13834_v46  ;;  %v14086_v29 = vld [vmem:[%s22448_s4 + $0xf6c] sm:$0xf0]  ;;  %v22904_v37 = vld [vmem:[#allocation18_spill] sm:$0xff] }
 0x9d1   : > { %9810 = vmatmul.bf16.gmra.mxu3 %v22902_v5  ;;  %v22906_v46 = vld [vmem:[#allocation34_spill] sm:$0xff] }
 0x9d2   : > { %v9601_v54 = vpop.f32.mrf.mxu2  ;;  %10025 = vmatpush.bf16.msrb.mxu1 %v13837_v20  ;;  %v13510_v20 = vld [vmem:[%s22448_s4 + $0xaec] sm:$0xf0] }
 0x9d3   : > { %v9602_v2 = vadd.f32 %v9601_v54, %v9561_v62  ;;  %v9562_v61 = vpop.f32.mrf.mxu1  ;;  %v15189_v54 = vld [vmem:[%s22448_s4 + $0xf4c] sm:$0xf] }
 0x9d4   : > { %v9642_v7 = vpop.f32.mrf.mxu3  ;;  %v9521_v48 = vpop.f32.mrf.mxu0 }
 0x9d5   : > { %v21569_v35 = vadd.f32 %v9642_v7, %v9602_v2  ;;  %v9563_v5 = vadd.f32 %v9562_v61, %v9521_v48  ;;  %v14089_v7 = vor.u32 %v15189_v54, %v14086_v29  ;;  %v22903_v48 = vld [vmem:[#allocation33_spill] sm:$0xff]  ;;  %v15045_v61 = vld [vmem:[%s22448_s4 + $0xacc] sm:$0xf] }
 0x9d7   : > { %10067 = vmatpush.bf16.msrb.mxu2 %v14089_v7 }
 0x9da   : > { %v9603_v62 = vpop.f32.mrf.mxu2 }
 0x9db   : > { %v9604_v23 = vadd.f32 %v9603_v62, %v9563_v5  ;;  %v9565_v33 = vpop.f32.mrf.mxu1  ;;  %v22905_v5 = vld [vmem:[#allocation19_spill] sm:$0xff] }
 0x9dc   : > { %v9644_v3 = vpop.f32.mrf.mxu3  ;;  %v9524_v19 = vpop.f32.mrf.mxu0  ;;  %v15261_v62 = vld [vmem:[%s22448_s4 + $0x118c] sm:$0xf] }
 0x9dd   : > { %v21583_v0 = vadd.f32 %v9644_v3, %v9604_v23  ;;  %v9566_v2 = vadd.f32 %v9565_v33, %v9524_v19  ;;  %v13513_v23 = vor.u32 %v15045_v61, %v13510_v20  ;;  %v14374_v3 = vld [vmem:[%s22448_s4 + $0x11ac] sm:$0xf0]  ;;  %v15117_v19 = vld [vmem:[%s22448_s4 + $0xd0c] sm:$0xf] }
 0x9de   : > { %9733 = vmatmul.bf16.gmra.mxu1 %v22904_v37  ;;  %v13798_v33 = vld [vmem:[%s22448_s4 + $0xd2c] sm:$0xf0]  ;;  %v14377_v29 = vor.u32 %v15261_v62, %v14374_v3 }
 0x9df   : > { %9692 = vmatmul.bf16.gmra.mxu0 %v22903_v48  ;;  %9774 = vmatmul.bf16.gmra.mxu2 %v22905_v5  ;;  %v13801_v7 = vor.u32 %v15117_v19, %v13798_v33 }
 0x9e0   : > { %9985 = vmatpush.bf16.msrb.mxu0 %v13513_v23  ;;  %10108 = vmatpush.bf16.msrb.mxu3 %v14377_v29 }
 0x9e1   : > { %9815 = vmatmul.bf16.gmra.mxu3 %v22906_v46  ;;  %10026 = vmatpush.bf16.msrb.mxu1 %v13801_v7 }
 0x9e2   : > { %v9606_v54 = vpop.f32.mrf.mxu2 }
 0x9e3   : > { %v9607_v46 = vadd.f32 %v9606_v54, %v9566_v2  ;;  %v9567_v61 = vpop.f32.mrf.mxu1  ;;  %v14050_v2 = vld [vmem:[%s22448_s4 + $0xf24] sm:$0xf0] }
 0x9e4   : > { %v9647_v5 = vpop.f32.mrf.mxu3  ;;  %v9526_v37 = vpop.f32.mrf.mxu0  ;;  %v14053_v23 = vor.u32 %v15180_v13, %v14050_v2 }
 0x9e5   : > { %v21607_v20 = vadd.f32 %v9647_v5, %v9607_v46  ;;  %v9568_v48 = vadd.f32 %v9567_v61, %v9526_v37  ;;  %v15252_v37 = vld [vmem:[%s22448_s4 + $0x1144] sm:$0xf]  ;;  %v13762_v5 = vld [vmem:[%s22448_s4 + $0xce4] sm:$0xf0] }
 0x9e6   : > { %10068 = vmatpush.bf16.msrb.mxu2 %v14053_v23  ;;  %v14014_v23 = vld [vmem:[%s22448_s4 + $0xedc] sm:$0xf0] }
 0x9ea   : > { %v9608_v12 = vpop.f32.mrf.mxu2 }
 0x9eb   : > { %v9609_v51 = vadd.f32 %v9608_v12, %v9568_v48  ;;  %v9570_v62 = vpop.f32.mrf.mxu1  ;;  %v15036_v12 = vld [vmem:[%s22448_s4 + $0xa84] sm:$0xf]  ;;  %v13474_v48 = vld [vmem:[%s22448_s4 + $0xaa4] sm:$0xf0] }
 0x9ec   : > { %v9649_v52 = vpop.f32.mrf.mxu3  ;;  %v9529_v49 = vpop.f32.mrf.mxu0  ;;  %v13477_v13 = vor.u32 %v15036_v12, %v13474_v48 }
 0x9ed   : > { %v21615_v3 = vadd.f32 %v9649_v52, %v9609_v51  ;;  %v9571_v19 = vadd.f32 %v9570_v62, %v9529_v49  ;;  %v14338_v49 = vld [vmem:[%s22448_s4 + $0x1164] sm:$0xf0]  ;;  %v15108_v51 = vld [vmem:[%s22448_s4 + $0xcc4] sm:$0xf]  ;;  %v15171_v62 = vld [vmem:[%s22448_s4 + $0xebc] sm:$0xf] }
 0x9ee   : > { %9869 = vmatmul.bf16.vlgmr.msra.gmra.mxu1 %v22659_v25  ;;  %v14341_v52 = vor.u32 %v15252_v37, %v14338_v49  ;;  %9986 = vmatpush.bf16.msrb.mxu0 %v13477_v13  ;;  %v13765_v46 = vor.u32 %v15108_v51, %v13762_v5  ;;  %v14017_v12 = vor.u32 %v15171_v62, %v14014_v23  ;;  %v13438_v51 = vld [vmem:[%s22448_s4 + $0xa5c] sm:$0xf0]  ;;  %v15243_v5 = vld [vmem:[%s22448_s4 + $0x10fc] sm:$0xf] }
 0x9ef   : > { %9828 = vmatmul.bf16.vlgmr.msra.gmra.mxu0 %v22658_v40  ;;  %9910 = vmatmul.bf16.vlgmr.msra.gmra.mxu2 %v22660_v50 }
 0x9f0   : > { %10109 = vmatpush.bf16.msrb.mxu3 %v14341_v52  ;;  %10027 = vmatpush.bf16.msrb.mxu1 %v13765_v46  ;;  %v15027_v52 = vld [vmem:[%s22448_s4 + $0xa3c] sm:$0xf] }
 0x9f1   : > { %9951 = vmatmul.bf16.vlgmr.msra.gmra.mxu3 %v22661_v56  ;;  %10069 = vmatpush.bf16.msrb.mxu2 %v14017_v12 }
 0x9f2   : > { %v9611_v33 = vpop.f32.mrf.mxu2 }
 0x9f3   : > { %v9612_v54 = vadd.f32 %v9611_v33, %v9571_v19  ;;  %v9572_v61 = vpop.f32.mrf.mxu1 }
 0x9f4   : > { %v9652_v29 = vpop.f32.mrf.mxu3  ;;  %v9531_v7 = vpop.f32.mrf.mxu0  ;;  %v13726_v61 = vld [vmem:[%s22448_s4 + $0xc9c] sm:$0xf0] }
 0x9f5   : > { %v21639_v2 = vadd.f32 %v9652_v29, %v9612_v54  ;;  %v13441_v54 = vor.u32 %v15027_v52, %v13438_v51  ;;  %v14302_v29 = vld [vmem:[%s22448_s4 + $0x111c] sm:$0xf0]  ;;  %v15099_v7 = vld [vmem:[%s22448_s4 + $0xc7c] sm:$0xf] }
 0x9f6   : > { %v14305_v23 = vor.u32 %v15243_v5, %v14302_v29  ;;  %v13729_v12 = vor.u32 %v15099_v7, %v13726_v61  ;;  %v13402_v5 = vld [vmem:[%s22448_s4 + $0xa14] sm:$0xf0] }
 0x9f7   : > { %9987 = vmatpush.bf16.msrb.mxu0 %v13441_v54 }
 0x9f8   : > { %10110 = vmatpush.bf16.msrb.mxu3 %v14305_v23  ;;  %10028 = vmatpush.bf16.msrb.mxu1 %v13729_v12  ;;  %v13690_v12 = vld [vmem:[%s22448_s4 + $0xc54] sm:$0xf0] }
 0x9fa   : > { %v9613_v48 = vpop.f32.mrf.mxu2 }
 0x9fb   : > { %v9706_v19 = vpop.f32.mrf.mxu1 }
 0x9fc   : > { %v9654_v37 = vpop.f32.mrf.mxu3  ;;  %v9665_v13 = vpop.f32.mrf.mxu0  ;;  %v15018_v19 = vld [vmem:[%s22448_s4 + $0x9f4] sm:$0xf] }
 0x9fd   : > { %v15162_v37 = vld [vmem:[%s22448_s4 + $0xe74] sm:$0xf]  ;;  %v13978_v13 = vld [vmem:[%s22448_s4 + $0xe94] sm:$0xf0]  ;;  %v13405_v7 = vor.u32 %v15018_v19, %v13402_v5 }
 0x9fe   : > { %9872 = vmatmul.bf16.gmra.mxu1 %v22663_v38  ;;  %v13981_v51 = vor.u32 %v15162_v37, %v13978_v13 }
 0x9ff   : > { %9831 = vmatmul.bf16.gmra.mxu0 %v22662_v1  ;;  %9913 = vmatmul.bf16.gmra.mxu2 %v22664_v39 }
 0xa00   : > { %10070 = vmatpush.bf16.msrb.mxu2 %v13981_v51  ;;  %9988 = vmatpush.bf16.msrb.mxu0 %v13405_v7 }
 0xa01   : > { %9954 = vmatmul.bf16.gmra.mxu3 %v22665_v10 }
 0xa02   : > { %v9747_v49 = vpop.f32.mrf.mxu2 }
 0xa03   : > { %v9707_v62 = vpop.f32.mrf.mxu1 }
 0xa04   : > { %v9788_v46 = vpop.f32.mrf.mxu3  ;;  %v9666_v33 = vpop.f32.mrf.mxu0 }
 0xa05   : > { %v15234_v46 = vld [vmem:[%s22448_s4 + $0x10b4] sm:$0xf]  ;;  %v14266_v33 = vld [vmem:[%s22448_s4 + $0x10d4] sm:$0xf0] }
 0xa06   : > { %v14269_v61 = vor.u32 %v15234_v46, %v14266_v33  ;;  %v15153_v33 = vld [vmem:[%s22448_s4 + $0xe2c] sm:$0xf] }
 0xa08   : > { %10111 = vmatpush.bf16.msrb.mxu3 %v14269_v61 }
 0xa0a   : > { %v9748_v48 = vpop.f32.mrf.mxu2 }
 0xa0b   : > { %v9709_v29 = vpop.f32.mrf.mxu1 }
 0xa0c   : > { %v9789_v49 = vpop.f32.mrf.mxu3  ;;  %v9668_v52 = vpop.f32.mrf.mxu0 }
 0xa0d   : > { %v9669_v54 = vadd.f32 %v9668_v52, %v21455_v24  ;;  %v15090_v24 = vld [vmem:[%s22448_s4 + $0xc34] sm:$0xf] }
 0xa0e   : > { %9877 = vmatmul.bf16.gmra.mxu1 %v22668_v15  ;;  %v13693_v19 = vor.u32 %v15090_v24, %v13690_v12  ;;  %v15225_v24 = vld [vmem:[%s22448_s4 + $0x106c] sm:$0xf]  ;;  %v14230_v12 = vld [vmem:[%s22448_s4 + $0x108c] sm:$0xf0] }
 0xa0f   : > { %v9710_v62 = vadd.f32 %v9709_v29, %v9669_v54  ;;  %9836 = vmatmul.bf16.gmra.mxu0 %v22667_v11  ;;  %9918 = vmatmul.bf16.gmra.mxu2 %v22669_v57  ;;  %v13942_v54 = vld [vmem:[%s22448_s4 + $0xe4c] sm:$0xf0]  ;;  %v15009_v29 = vld [vmem:[%s22448_s4 + $0x9ac] sm:$0xf] }
 0xa10   : > { %10029 = vmatpush.bf16.msrb.mxu1 %v13693_v19  ;;  %v14233_v19 = vor.u32 %v15225_v24, %v14230_v12 }
 0xa11   : > { %9959 = vmatmul.bf16.gmra.mxu3 %v22670_v45 }
 0xa12   : > { %v9750_v23 = vpop.f32.mrf.mxu2  ;;  %10112 = vmatpush.bf16.msrb.mxu3 %v14233_v19 }
 0xa13   : > { %v9751_v48 = vadd.f32 %v9750_v23, %v9710_v62  ;;  %v9711_v52 = vpop.f32.mrf.mxu1  ;;  %v13945_v62 = vor.u32 %v15153_v33, %v13942_v54  ;;  %v13366_v23 = vld [vmem:[%s22448_s4 + $0x9cc] sm:$0xf0] }
 0xa14   : > { %v9791_v37 = vpop.f32.mrf.mxu3  ;;  %v9670_v13 = vpop.f32.mrf.mxu0 }
 0xa15   : > { %v9671_v49 = vadd.f32 %v9670_v13, %v21481_v16  ;;  %v9792_v51 = vadd.f32 %v9791_v37, %v9751_v48  ;;  %v13369_v13 = vor.u32 %v15009_v29, %v13366_v23  ;;  %10071 = vmatpush.bf16.msrb.mxu2 %v13945_v62 }
 0xa17   : > { %v9712_v5 = vadd.f32 %v9711_v52, %v9671_v49  ;;  %v15081_v49 = vld [vmem:[%s22448_s4 + $0xbec] sm:$0xf]  ;;  %v13654_v52 = vld [vmem:[%s22448_s4 + $0xc0c] sm:$0xf0]  ;;  %v10765_v54 = vrot.slane %v9792_v51, 4  ;;  %9989 = vmatpush.bf16.msrb.mxu0 %v13369_v13 }
 0xa1a   : > { %v9752_v46 = vpop.f32.mrf.mxu2 }
 0xa1b   : > { %v9753_v7 = vadd.f32 %v9752_v46, %v9712_v5  ;;  %v9714_v37 = vpop.f32.mrf.mxu1  ;;  %v13657_v46 = vor.u32 %v15081_v49, %v13654_v52  ;;  %v13906_v52 = vld [vmem:[%s22448_s4 + $0xe04] sm:$0xf0] }
 0xa1c   : > { %v9793_v61 = vpop.f32.mrf.mxu3  ;;  %v9673_v16 = vpop.f32.mrf.mxu0 }
 0xa1d   : > { %v9674_v48 = vadd.f32 %v9673_v16, %v21487_v53  ;;  %v9794_v5 = vadd.f32 %v9793_v61, %v9753_v7  ;;  %10030 = vmatpush.bf16.msrb.mxu1 %v13657_v46 }
 0xa1e   : > { %9882 = vmatmul.bf16.gmra.mxu1 %v22674_v17 }
 0xa1f   : > { %v9715_v33 = vadd.f32 %v9714_v37, %v9674_v48  ;;  %9841 = vmatmul.bf16.gmra.mxu0 %v22673_v21  ;;  %v10766_v53 = vrot.slane %v9794_v5, 4  ;;  %9923 = vmatmul.bf16.gmra.mxu2 %v22675_v43 }
 0xa21   : > { %9964 = vmatmul.bf16.gmra.mxu3 %v22676_v30  ;;  %v10767_v29 = vsel %vm10712_vm3, %v10765_v54, %v10766_v53 }
 0xa22   : > { %v21730_v7 = vadd.f32 %v10767_v29, %v21189_v8  ;;  %v9755_v61 = vpop.f32.mrf.mxu2  ;;  %v15144_v8 = vld [vmem:[%s22448_s4 + $0xde4] sm:$0xf]  ;;  %v14194_v29 = vld [vmem:[%s22448_s4 + $0x1044] sm:$0xf0] }
 0xa23   : > { %v9756_v16 = vadd.f32 %v9755_v61, %v9715_v33  ;;  %v9716_v24 = vpop.f32.mrf.mxu1  ;;  %v13909_v54 = vor.u32 %v15144_v8, %v13906_v52 }
 0xa24   : > { %v9796_v62 = vpop.f32.mrf.mxu3  ;;  %v9675_v23 = vpop.f32.mrf.mxu0 }
 0xa25   : > { %v9676_v51 = vadd.f32 %v9675_v23, %v21513_v4  ;;  %v9797_v12 = vadd.f32 %v9796_v62, %v9756_v16  ;;  %v15000_v4 = vld [vmem:[%s22448_s4 + $0x964] sm:$0xf]  ;;  %10072 = vmatpush.bf16.msrb.mxu2 %v13909_v54 }
 0xa27   : > { %v9717_v48 = vadd.f32 %v9716_v24, %v9676_v51  ;;  %v10768_v37 = vrot.slane %v9797_v12, 4  ;;  %v15072_v51 = vld [vmem:[%s22448_s4 + $0xba4] sm:$0xf]  ;;  %v13618_v24 = vld [vmem:[%s22448_s4 + $0xbc4] sm:$0xf0] }
 0xa29   : > { %v10769_v19 = vsel %vm10712_vm3, %v10766_v53, %v10768_v37  ;;  %v15216_v53 = vld [vmem:[%s22448_s4 + $0x1024] sm:$0xf] }
 0xa2a   : > { %v21735_v13 = vadd.f32 %v10769_v19, %v21222_v42  ;;  %v9757_v49 = vpop.f32.mrf.mxu2  ;;  %v13330_v42 = vld [vmem:[%s22448_s4 + $0x984] sm:$0xf0]  ;;  %v14197_v23 = vor.u32 %v15216_v53, %v14194_v29 }
 0xa2b   : > { %v9758_v5 = vadd.f32 %v9757_v49, %v9717_v48  ;;  %v9719_v16 = vpop.f32.mrf.mxu1  ;;  %v13333_v62 = vor.u32 %v15000_v4, %v13330_v42  ;;  %v13621_v48 = vor.u32 %v15072_v51, %v13618_v24  ;;  %v15135_v4 = vld [vmem:[%s22448_s4 + $0xd9c] sm:$0xf]  ;;  %v13294_v24 = vld [vmem:[%s22448_s4 + $0x93c] sm:$0xf0] }
 0xa2c   : > { %v9798_v46 = vpop.f32.mrf.mxu3  ;;  %v9678_v33 = vpop.f32.mrf.mxu0  ;;  %10113 = vmatpush.bf16.msrb.mxu3 %v14197_v23  ;;  %v14991_v51 = vld [vmem:[%s22448_s4 + $0x91c] sm:$0xf] }
 0xa2d   : > { %v9679_v61 = vadd.f32 %v9678_v33, %v21525_v9  ;;  %v9799_v12 = vadd.f32 %v9798_v46, %v9758_v5  ;;  %9990 = vmatpush.bf16.msrb.mxu0 %v13333_v62  ;;  %10031 = vmatpush.bf16.msrb.mxu1 %v13621_v48  ;;  %v13870_v5 = vld [vmem:[%s22448_s4 + $0xdbc] sm:$0xf0] }
 0xa2e   : > { %9887 = vmatmul.bf16.gmra.mxu1 %v22738_v55  ;;  %v13873_v42 = vor.u32 %v15135_v4, %v13870_v5 }
 0xa2f   : > { %v9720_v19 = vadd.f32 %v9719_v16, %v9679_v61  ;;  %9846 = vmatmul.bf16.gmra.mxu0 %v22680_v59  ;;  %v10770_v49 = vrot.slane %v9799_v12, 4  ;;  %9928 = vmatmul.bf16.gmra.mxu2 %v22739_v36 }
 0xa30   : > { %10073 = vmatpush.bf16.msrb.mxu2 %v13873_v42 }
 0xa31   : > { %9969 = vmatmul.bf16.gmra.mxu3 %v22741_v22  ;;  %v10771_v9 = vsel %vm10712_vm3, %v10768_v37, %v10770_v49 }
 0xa32   : > { %v21768_v8 = vadd.f32 %v10771_v9, %v21227_v27  ;;  %v9760_v52 = vpop.f32.mrf.mxu2  ;;  %v15063_v9 = vld [vmem:[%s22448_s4 + $0xb5c] sm:$0xf] }
 0xa33   : > { %v9761_v46 = vadd.f32 %v9760_v52, %v9720_v19  ;;  %v9721_v37 = vpop.f32.mrf.mxu1  ;;  %v13582_v52 = vld [vmem:[%s22448_s4 + $0xb7c] sm:$0xf0] }
 0xa34   : > { %v9801_v33 = vpop.f32.mrf.mxu3  ;;  %v9680_v54 = vpop.f32.mrf.mxu0 }
 0xa35   : > { %v9681_v53 = vadd.f32 %v9680_v54, %v21545_v41  ;;  %v9802_v29 = vadd.f32 %v9801_v33, %v9761_v46  ;;  %v15207_v41 = vld [vmem:[%s22448_s4 + $0xfdc] sm:$0xf]  ;;  %v13585_v33 = vor.u32 %v15063_v9, %v13582_v52 }
 0xa37   : > { %v9722_v27 = vadd.f32 %v9721_v37, %v9681_v53  ;;  %v10772_v61 = vrot.slane %v9802_v29, 4  ;;  %10032 = vmatpush.bf16.msrb.mxu1 %v13585_v33 }
 0xa39   : > { %v10773_v16 = vsel %vm10712_vm3, %v10770_v49, %v10772_v61  ;;  %v13297_v49 = vor.u32 %v14991_v51, %v13294_v24 }
 0xa3a   : > { %v21779_v62 = vadd.f32 %v10773_v16, %v21260_v60  ;;  %v9762_v23 = vpop.f32.mrf.mxu2  ;;  %v14158_v60 = vld [vmem:[%s22448_s4 + $0xffc] sm:$0xf0]  ;;  %v14915_v16 = vld [vmem:[%s22448_s4 + $0x6b8] sm:$0xf0] }
 0xa3b   : > { %v9763_v12 = vadd.f32 %v9762_v23, %v9722_v27  ;;  %v9724_v5 = vpop.f32.mrf.mxu1  ;;  %v14161_v46 = vor.u32 %v15207_v41, %v14158_v60  ;;  %9991 = vmatpush.bf16.msrb.mxu0 %v13297_v49  ;;  %v12976_v27 = vld [vmem:[%s22448_s4 + $0x698] sm:$0xf] }
 0xa3c   : > { %v9803_v48 = vpop.f32.mrf.mxu3  ;;  %v9683_v19 = vpop.f32.mrf.mxu0  ;;  %v12400_v23 = vld [vmem:[%s22448_s4 + $0x218] sm:$0xf] }
 0xa3d   : > { %v9684_v4 = vadd.f32 %v9683_v19, %v21569_v35  ;;  %v9804_v54 = vadd.f32 %v9803_v48, %v9763_v12  ;;  %10114 = vmatpush.bf16.msrb.mxu3 %v14161_v46  ;;  %v13264_v12 = vld [vmem:[%s22448_s4 + $0x8d8] sm:$0xf]  ;;  %v14987_v48 = vld [vmem:[%s22448_s4 + $0x8f8] sm:$0xf0] }
 0xa3e   : > { %9892 = vmatmul.bf16.gmra.mxu1 %v22720_v32  ;;  %v13265_v9 = vor.u32 %v14987_v48, %v13264_v12  ;;  %v14762_v12 = vld [vmem:[%s22448_s4 + $0x1f0] sm:$0xf0]  ;;  %v13228_v48 = vld [vmem:[%s22448_s4 + $0x890] sm:$0xf] }
 0xa3f   : > { %v9725_v42 = vadd.f32 %v9724_v5, %v9684_v4  ;;  %9851 = vmatmul.bf16.gmra.mxu0 %v22686_v6  ;;  %v10774_v53 = vrot.slane %v9804_v54, 4  ;;  %9933 = vmatmul.bf16.gmra.mxu2 %v22721_v14 }
 0xa41   : > { %9974 = vmatmul.bf16.gmra.mxu3 %v22722_v44  ;;  %v10775_v37 = vsel %vm10712_vm3, %v10772_v61, %v10774_v53  ;;  %v12977_v61 = vor.u32 %v14915_v16, %v12976_v27 }
 0xa42   : > { %v21806_v35 = vadd.f32 %v10775_v37, %v21271_v26  ;;  %v9765_v29 = vpop.f32.mrf.mxu2  ;;  %v14771_v26 = vld [vmem:[%s22448_s4 + $0x238] sm:$0xf0]  ;;  %10271 = vmatpush.bf16.msra.mxu3 %v13265_v9  ;;  %v12652_v9 = vld [vmem:[%s22448_s4 + $0x410] sm:$0xf] }
 0xa43   : > { %v9766_v51 = vadd.f32 %v9765_v29, %v9725_v42  ;;  %v9726_v49 = vpop.f32.mrf.mxu1  ;;  %v12401_v60 = vor.u32 %v14771_v26, %v12400_v23  ;;  %10230 = vmatpush.bf16.msra.mxu2 %v12977_v61  ;;  %v12688_v42 = vld [vmem:[%s22448_s4 + $0x458] sm:$0xf] }
 0xa44   : > { %v9806_v24 = vpop.f32.mrf.mxu3  ;;  %v9685_v41 = vpop.f32.mrf.mxu0 }
 0xa45   : > { %v9686_v19 = vadd.f32 %v9685_v41, %v21583_v0  ;;  %v9807_v52 = vadd.f32 %v9806_v24, %v9766_v51  ;;  %10148 = vmatpush.bf16.msra.mxu0 %v12401_v60  ;;  %v14843_v0 = vld [vmem:[%s22448_s4 + $0x478] sm:$0xf0]  ;;  %v14978_v60 = vld [vmem:[%s22448_s4 + $0x8b0] sm:$0xf0] }
 0xa46   : > { %v12689_v16 = vor.u32 %v14843_v0, %v12688_v42 }
 0xa47   : > { %v9727_v4 = vadd.f32 %v9726_v49, %v9686_v19  ;;  %v10776_v5 = vrot.slane %v9807_v52, 4  ;;  %v14834_v52 = vld [vmem:[%s22448_s4 + $0x430] sm:$0xf0] }
 0xa48   : > { %10189 = vmatpush.bf16.msra.mxu1 %v12689_v16  ;;  %v12653_v42 = vor.u32 %v14834_v52, %v12652_v9  ;;  %v22907_v52 = vld [vmem:[#allocation40_spill] sm:$0xff] }
 0xa49   : > { %v10777_v46 = vsel %vm10712_vm3, %v10774_v53, %v10776_v5  ;;  %v14906_v53 = vld [vmem:[%s22448_s4 + $0x670] sm:$0xf0] }
 0xa4a   : > { %v21829_v33 = vadd.f32 %v10777_v46, %v21298_v63  ;;  %v9767_v54 = vpop.f32.mrf.mxu2  ;;  %v12940_v63 = vld [vmem:[%s22448_s4 + $0x650] sm:$0xf] }
 0xa4b   : > { %v9768_v37 = vadd.f32 %v9767_v54, %v9727_v4  ;;  %v9729_v51 = vpop.f32.mrf.mxu1  ;;  %v12941_v41 = vor.u32 %v14906_v53, %v12940_v63  ;;  %v13229_v54 = vor.u32 %v14978_v60, %v13228_v48  ;;  %v13192_v60 = vld [vmem:[%s22448_s4 + $0x848] sm:$0xf] }
 0xa4c   : > { %v9808_v29 = vpop.f32.mrf.mxu3  ;;  %v9688_v27 = vpop.f32.mrf.mxu0  ;;  %10190 = vmatpush.bf16.msra.mxu1 %v12653_v42  ;;  %v22908_v42 = vld [vmem:[#allocation41_spill] sm:$0xff] }
 0xa4d   : > { %v9689_v23 = vadd.f32 %v9688_v27, %v21607_v20  ;;  %v9809_v24 = vadd.f32 %v9808_v29, %v9768_v37  ;;  %10231 = vmatpush.bf16.msra.mxu2 %v12941_v41  ;;  %v12364_v20 = vld [vmem:[%s22448_s4 + $0x1d0] sm:$0xf]  ;;  %10272 = vmatpush.bf16.msra.mxu3 %v13229_v54 }
 0xa4e   : > { %9897 = vmatmul.bf16.gmra.mxu1 %v22726_v58  ;;  %v12365_v49 = vor.u32 %v14762_v12, %v12364_v20  ;;  %v12904_v20 = vld [vmem:[%s22448_s4 + $0x608] sm:$0xf] }
 0xa4f   : > { %v9730_v61 = vadd.f32 %v9729_v51, %v9689_v23  ;;  %9856 = vmatmul.bf16.gmra.mxu0 %v22724_v31  ;;  %v10778_v26 = vrot.slane %v9809_v24, 4  ;;  %9938 = vmatmul.bf16.gmra.mxu2 %v22771_v18 }
 0xa50   : > { %10149 = vmatpush.bf16.msra.mxu0 %v12365_v49  ;;  %v14753_v49 = vld [vmem:[%s22448_s4 + $0x1a8] sm:$0xf0] }
 0xa51   : > { %9979 = vmatmul.bf16.gmra.mxu3 %v22873_v34  ;;  %v10779_v19 = vsel %vm10712_vm3, %v10776_v5, %v10778_v26 }
 0xa52   : > { %v21868_v4 = vadd.f32 %v10779_v19, %v21327_v28  ;;  %v9770_v46 = vpop.f32.mrf.mxu2 }
 0xa53   : > { %v9771_v5 = vadd.f32 %v9770_v46, %v9730_v61  ;;  %v9731_v27 = vpop.f32.mrf.mxu1  ;;  %v14969_v46 = vld [vmem:[%s22448_s4 + $0x868] sm:$0xf0] }
 0xa54   : > { %v9811_v0 = vpop.f32.mrf.mxu3  ;;  %v9690_v37 = vpop.f32.mrf.mxu0 }
 0xa55   : > { %v9691_v29 = vadd.f32 %v9690_v37, %v21615_v3  ;;  %v9812_v16 = vadd.f32 %v9811_v0, %v9771_v5  ;;  %v14897_v3 = vld [vmem:[%s22448_s4 + $0x628] sm:$0xf0]  ;;  %v22909_v5 = vld [vmem:[#allocation25_spill] sm:$0xff]  ;;  %v13193_v0 = vor.u32 %v14969_v46, %v13192_v60  ;;  %v22910_v37 = vld [vmem:[#allocation2_spill] sm:$0xff] }
 0xa56   : > { %v12905_v19 = vor.u32 %v14897_v3, %v12904_v20 }
 0xa57   : > { %v9732_v23 = vadd.f32 %v9731_v27, %v9691_v29  ;;  %v10780_v51 = vrot.slane %v9812_v16, 4  ;;  %v12616_v29 = vld [vmem:[%s22448_s4 + $0x3c8] sm:$0xf]  ;;  %v14825_v27 = vld [vmem:[%s22448_s4 + $0x3e8] sm:$0xf0]  ;;  %10273 = vmatpush.bf16.msra.mxu3 %v13193_v0 }
 0xa58   : > { %10232 = vmatpush.bf16.msra.mxu2 %v12905_v19 }
 0xa59   : > { %v10781_v63 = vsel %vm10712_vm3, %v10778_v26, %v10780_v51 }
 0xa5a   : > { %v21873_v28 = vadd.f32 %v10781_v63, %v21360_v47  ;;  %v9772_v53 = vpop.f32.mrf.mxu2  ;;  %v12328_v47 = vld [vmem:[%s22448_s4 + $0x188] sm:$0xf]  ;;  %v22911_v63 = vld [vmem:[#allocation36_spill] sm:$0xff] }
 0xa5b   : > { %v9773_v24 = vadd.f32 %v9772_v53, %v9732_v23  ;;  %v9734_v48 = vpop.f32.mrf.mxu1  ;;  %v12617_v23 = vor.u32 %v14825_v27, %v12616_v29  ;;  %v12292_v29 = vld [vmem:[%s22448_s4 + $0x140] sm:$0xf]  ;;  %v14744_v27 = vld [vmem:[%s22448_s4 + $0x160] sm:$0xf0] }
 0xa5c   : > { %v9813_v41 = vpop.f32.mrf.mxu3  ;;  %v9693_v61 = vpop.f32.mrf.mxu0 }
 0xa5d   : > { %v9694_v12 = vadd.f32 %v9693_v61, %v21639_v2  ;;  %v9814_v26 = vadd.f32 %v9813_v41, %v9773_v24  ;;  %v12329_v2 = vor.u32 %v14753_v49, %v12328_v47  ;;  %10191 = vmatpush.bf16.msra.mxu1 %v12617_v23  ;;  %v22913_v49 = vld [vmem:[#allocation13_spill] sm:$0xff]  ;;  %v12293_v23 = vor.u32 %v14744_v27, %v12292_v29 }
 0xa5e   : > { %10033 = vmatmul.bf16.vlgmr.msrb.gmra.mxu1 %v22908_v42  ;;  %v13120_v29 = vld [vmem:[%s22448_s4 + $0x7b8] sm:$0xf]  ;;  %v14951_v27 = vld [vmem:[%s22448_s4 + $0x7d8] sm:$0xf0] }
 0xa5f   : > { %v9735_v9 = vadd.f32 %v9734_v48, %v9694_v12  ;;  %9992 = vmatmul.bf16.vlgmr.msrb.gmra.mxu0 %v22907_v52  ;;  %v10782_v54 = vrot.slane %v9814_v26, 4  ;;  %10074 = vmatmul.bf16.vlgmr.msrb.gmra.mxu2 %v22909_v5  ;;  %v12868_v48 = vld [vmem:[%s22448_s4 + $0x5c0] sm:$0xf]  ;;  %v14056_v52 = vld [vmem:[%s22448_s4 + $0xf08] sm:$0xf] }
 0xa60   : > { %10150 = vmatpush.bf16.msra.mxu0 %v12329_v2 }
 0xa61   : > { %10115 = vmatmul.bf16.vlgmr.msrb.gmra.mxu3 %v22910_v37  ;;  %v10783_v16 = vsel %vm10712_vm3, %v10780_v51, %v10782_v54  ;;  %v14888_v51 = vld [vmem:[%s22448_s4 + $0x5e0] sm:$0xf0] }
 0xa62   : > { %v21906_v53 = vadd.f32 %v10783_v16, %v22911_v63  ;;  %v9775_v24 = vpop.f32.mrf.mxu2  ;;  %v12869_v19 = vor.u32 %v14888_v51, %v12868_v48  ;;  %v13156_v16 = vld [vmem:[%s22448_s4 + $0x800] sm:$0xf]  ;;  %v14960_v63 = vld [vmem:[%s22448_s4 + $0x820] sm:$0xf0]  ;;  %v22918_v48 = vld [vmem:[#allocation4_spill] sm:$0xff] }
 0xa63   : > { %v9776_v41 = vadd.f32 %v9775_v24, %v9735_v9  ;;  %v9736_v3 = vpop.f32.mrf.mxu1  ;;  %v12580_v24 = vld [vmem:[%s22448_s4 + $0x380] sm:$0xf] }
 0xa64   : > { %22912 = vst [vmem:[#allocation22_spill] sm:$0xff] %v21906_v53  ;;  %v9816_v61 = vpop.f32.mrf.mxu3  ;;  %v9695_v20 = vpop.f32.mrf.mxu0  ;;  %10233 = vmatpush.bf16.msra.mxu2 %v12869_v19  ;;  %v13157_v3 = vor.u32 %v14960_v63, %v13156_v16  ;;  %10151 = vmatpush.bf16.msra.mxu0 %v12293_v23  ;;  %v13121_v23 = vor.u32 %v14951_v27, %v13120_v29  ;;  %v22934_v53 = vld [vmem:[#allocation32_spill] sm:$0xff] }
 0xa65   : > { %v9817_v12 = vadd.f32 %v9816_v61, %v9776_v41  ;;  %v14816_v41 = vld [vmem:[%s22448_s4 + $0x3a0] sm:$0xf0]  ;;  %v22917_v20 = vld [vmem:[#allocation3_spill] sm:$0xff] }
 0xa66   : > { %v22916_v61 = vld [vmem:[#allocation42_spill] sm:$0xff]  ;;  %10274 = vmatpush.bf16.msra.mxu3 %v13157_v3 }
 0xa67   : > { %v10784_v26 = vrot.slane %v9817_v12, 4  ;;  %v12581_v12 = vor.u32 %v14816_v41, %v12580_v24 }
 0xa69   : > { %v10785_v47 = vsel %vm10712_vm3, %v10782_v54, %v10784_v26  ;;  %v22915_v54 = vld [vmem:[#allocation12_spill] sm:$0xff]  ;;  %10192 = vmatpush.bf16.msra.mxu1 %v12581_v12 }
 0xa6a   : > { %v21916_v60 = vadd.f32 %v10785_v47, %v22913_v49  ;;  %v9777_v9 = vpop.f32.mrf.mxu2  ;;  %v12832_v49 = vld [vmem:[%s22448_s4 + $0x578] sm:$0xf]  ;;  %10275 = vmatpush.bf16.msra.mxu3 %v13121_v23 }
 0xa6b   : > { %v9870_v0 = vpop.f32.mrf.mxu1  ;;  %v14879_v9 = vld [vmem:[%s22448_s4 + $0x598] sm:$0xf0] }
 0xa6c   : > { %22914 = vst [vmem:[#allocation26_spill] sm:$0xff] %v21916_v60  ;;  %v9818_v2 = vpop.f32.mrf.mxu3  ;;  %v9829_v46 = vpop.f32.mrf.mxu0  ;;  %v14735_v0 = vld [vmem:[%s22448_s4 + $0x118] sm:$0xf0] }
 0xa6d   : > { %v12256_v2 = vld [vmem:[%s22448_s4 + $0xf8] sm:$0xf]  ;;  %v12833_v46 = vor.u32 %v14879_v9, %v12832_v49  ;;  %v22920_v49 = vld [vmem:[#allocation44_spill] sm:$0xff]  ;;  %v22921_v9 = vld [vmem:[#allocation10_spill] sm:$0xff] }
 0xa6e   : > { %10036 = vmatmul.bf16.gmra.mxu1 %v22916_v61  ;;  %v12257_v16 = vor.u32 %v14735_v0, %v12256_v2  ;;  %v22922_v2 = vld [vmem:[#allocation11_spill] sm:$0xff]  ;;  %v22930_v61 = vld [vmem:[#allocation16_spill] sm:$0xff]  ;;  %v22933_v60 = vld [vmem:[#allocation17_spill] sm:$0xff] }
 0xa6f   : > { %9995 = vmatmul.bf16.gmra.mxu0 %v22915_v54  ;;  %10077 = vmatmul.bf16.gmra.mxu2 %v22917_v20  ;;  %v22929_v20 = vld [vmem:[#allocation8_spill] sm:$0xff] }
 0xa70   : > { %10234 = vmatpush.bf16.msra.mxu2 %v12833_v46  ;;  %10152 = vmatpush.bf16.msra.mxu0 %v12257_v16  ;;  %v22932_v54 = vld [vmem:[#allocation24_spill] sm:$0xff] }
 0xa71   : > { %10118 = vmatmul.bf16.gmra.mxu3 %v22918_v48  ;;  %v22926_v48 = vld [vmem:[#allocation29_spill] sm:$0xff] }
 0xa72   : > { %v9911_v51 = vpop.f32.mrf.mxu2 }
 0xa73   : > { %v9871_v47 = vpop.f32.mrf.mxu1  ;;  %v12544_v51 = vld [vmem:[%s22448_s4 + $0x338] sm:$0xf] }
 0xa74   : > { %v9952_v19 = vpop.f32.mrf.mxu3  ;;  %v9830_v26 = vpop.f32.mrf.mxu0 }
 0xa75   : > { %v14807_v19 = vld [vmem:[%s22448_s4 + $0x358] sm:$0xf0]  ;;  %v22919_v26 = vld [vmem:[#allocation43_spill] sm:$0xff] }
 0xa76   : > { %v12545_v47 = vor.u32 %v14807_v19, %v12544_v51  ;;  %v13084_v19 = vld [vmem:[%s22448_s4 + $0x770] sm:$0xf] }
 0xa78   : > { %10193 = vmatpush.bf16.msra.mxu1 %v12545_v47  ;;  %v14942_v47 = vld [vmem:[%s22448_s4 + $0x790] sm:$0xf0] }
 0xa7a   : > { %v9912_v63 = vpop.f32.mrf.mxu2 }
 0xa7b   : > { %v9873_v3 = vpop.f32.mrf.mxu1 }
 0xa7c   : > { %v9953_v24 = vpop.f32.mrf.mxu3  ;;  %v9832_v41 = vpop.f32.mrf.mxu0 }
 0xa7d   : > { %v9874_v12 = vadd.f32 %v9873_v3, %v9832_v41  ;;  %v12796_v24 = vld [vmem:[%s22448_s4 + $0x530] sm:$0xf]  ;;  %v14870_v41 = vld [vmem:[%s22448_s4 + $0x550] sm:$0xf0] }
 0xa7e   : > { %10041 = vmatmul.bf16.gmra.mxu1 %v22920_v49  ;;  %v12220_v3 = vld [vmem:[%s22448_s4 + $0xb0] sm:$0xf]  ;;  %v12797_v51 = vor.u32 %v14870_v41, %v12796_v24 }
 0xa7f   : > { %10000 = vmatmul.bf16.gmra.mxu0 %v22919_v26  ;;  %10082 = vmatmul.bf16.gmra.mxu2 %v22921_v9  ;;  %v22925_v26 = vld [vmem:[#allocation9_spill] sm:$0xff] }
 0xa80   : > { %10235 = vmatpush.bf16.msra.mxu2 %v12797_v51 }
 0xa81   : > { %10123 = vmatmul.bf16.gmra.mxu3 %v22922_v2 }
 0xa82   : > { %v9914_v46 = vpop.f32.mrf.mxu2 }
 0xa83   : > { %v9915_v0 = vadd.f32 %v9914_v46, %v9874_v12  ;;  %v9875_v16 = vpop.f32.mrf.mxu1  ;;  %v14726_v12 = vld [vmem:[%s22448_s4 + $0xd0] sm:$0xf0] }
 0xa84   : > { %v9955_v29 = vpop.f32.mrf.mxu3  ;;  %v9834_v27 = vpop.f32.mrf.mxu0  ;;  %v12221_v46 = vor.u32 %v14726_v12, %v12220_v3 }
 0xa85   : > { %v21968_v23 = vadd.f32 %v9955_v29, %v9915_v0  ;;  %v9876_v63 = vadd.f32 %v9875_v16, %v9834_v27  ;;  %v13085_v0 = vor.u32 %v14942_v47, %v13084_v19  ;;  %v12508_v29 = vld [vmem:[%s22448_s4 + $0x2f0] sm:$0xf]  ;;  %v14798_v27 = vld [vmem:[%s22448_s4 + $0x310] sm:$0xf0]  ;;  %v22923_v19 = vld [vmem:[#allocation45_spill] sm:$0xff] }
 0xa86   : > { %v12509_v16 = vor.u32 %v14798_v27, %v12508_v29  ;;  %10153 = vmatpush.bf16.msra.mxu0 %v12221_v46  ;;  %v22924_v47 = vld [vmem:[#allocation46_spill] sm:$0xff] }
 0xa87   : > { %10276 = vmatpush.bf16.msra.mxu3 %v13085_v0 }
 0xa88   : > { %10194 = vmatpush.bf16.msra.mxu1 %v12509_v16 }
 0xa8a   : > { %v9916_v24 = vpop.f32.mrf.mxu2 }
 0xa8b   : > { %v9917_v41 = vadd.f32 %v9916_v24, %v9876_v63  ;;  %v9878_v49 = vpop.f32.mrf.mxu1 }
 0xa8c   : > { %v9957_v2 = vpop.f32.mrf.mxu3  ;;  %v9837_v9 = vpop.f32.mrf.mxu0 }
 0xa8d   : > { %v21994_v3 = vadd.f32 %v9957_v2, %v9917_v41  ;;  %v9879_v12 = vadd.f32 %v9878_v49, %v9837_v9  ;;  %v12760_v49 = vld [vmem:[%s22448_s4 + $0x4e8] sm:$0xf]  ;;  %v14861_v9 = vld [vmem:[%s22448_s4 + $0x508] sm:$0xf0] }
 0xa8e   : > { %10046 = vmatmul.bf16.gmra.mxu1 %v22924_v47  ;;  %v12184_v2 = vld [vmem:[%s22448_s4 + $0x68] sm:$0xf]  ;;  %v12761_v24 = vor.u32 %v14861_v9, %v12760_v49  ;;  %v14717_v41 = vld [vmem:[%s22448_s4 + $0x88] sm:$0xf0] }
 0xa8f   : > { %10005 = vmatmul.bf16.gmra.mxu0 %v22923_v19  ;;  %10087 = vmatmul.bf16.gmra.mxu2 %v22925_v26 }
 0xa90   : > { %10236 = vmatpush.bf16.msra.mxu2 %v12761_v24  ;;  %v12724_v24 = vld [vmem:[%s22448_s4 + $0x4a0] sm:$0xf] }
 0xa91   : > { %10128 = vmatmul.bf16.gmra.mxu3 %v22926_v48 }
 0xa92   : > { %v9919_v51 = vpop.f32.mrf.mxu2 }
 0xa93   : > { %v9920_v46 = vadd.f32 %v9919_v51, %v9879_v12  ;;  %v9880_v27 = vpop.f32.mrf.mxu1  ;;  %v13048_v12 = vld [vmem:[%s22448_s4 + $0x728] sm:$0xf]  ;;  %v14933_v51 = vld [vmem:[%s22448_s4 + $0x748] sm:$0xf0] }
 0xa94   : > { %v9960_v0 = vpop.f32.mrf.mxu3  ;;  %v9839_v29 = vpop.f32.mrf.mxu0 }
 0xa95   : > { %v22000_v63 = vadd.f32 %v9960_v0, %v9920_v46  ;;  %v9881_v16 = vadd.f32 %v9880_v27, %v9839_v29  ;;  %v12185_v46 = vor.u32 %v14717_v41, %v12184_v2  ;;  %v13049_v0 = vor.u32 %v14933_v51, %v13048_v12  ;;  %v12472_v29 = vld [vmem:[%s22448_s4 + $0x2a8] sm:$0xf]  ;;  %v14789_v27 = vld [vmem:[%s22448_s4 + $0x2c8] sm:$0xf0]  ;;  %v22927_v12 = vld [vmem:[#allocation5_spill] sm:$0xff] }
 0xa96   : > { %v12473_v49 = vor.u32 %v14789_v27, %v12472_v29  ;;  %v22928_v51 = vld [vmem:[#allocation6_spill] sm:$0xff] }
 0xa97   : > { %10154 = vmatpush.bf16.msra.mxu0 %v12185_v46  ;;  %10277 = vmatpush.bf16.msra.mxu3 %v13049_v0 }
 0xa98   : > { %10195 = vmatpush.bf16.msra.mxu1 %v12473_v49  ;;  %v12148_v49 = vld [vmem:[%s22448_s4 + $0x20] sm:$0xf] }
 0xa9a   : > { %v9921_v9 = vpop.f32.mrf.mxu2 }
 0xa9b   : > { %v9922_v48 = vadd.f32 %v9921_v9, %v9881_v16  ;;  %v9883_v19 = vpop.f32.mrf.mxu1  ;;  %v14852_v16 = vld [vmem:[%s22448_s4 + $0x4c0] sm:$0xf0] }
 0xa9c   : > { %v9962_v26 = vpop.f32.mrf.mxu3  ;;  %v9842_v47 = vpop.f32.mrf.mxu0  ;;  %v12725_v46 = vor.u32 %v14852_v16, %v12724_v24  ;;  %v14708_v9 = vld [vmem:[%s22448_s4 + $0x40] sm:$0xf0]  ;;  %v13012_v24 = vld [vmem:[%s22448_s4 + $0x6e0] sm:$0xf] }
 0xa9d   : > { %v22026_v2 = vadd.f32 %v9962_v26, %v9922_v48  ;;  %v9884_v41 = vadd.f32 %v9883_v19, %v9842_v47  ;;  %v14924_v16 = vld [vmem:[%s22448_s4 + $0x700] sm:$0xf0] }
 0xa9e   : > { %10051 = vmatmul.bf16.gmra.mxu1 %v22928_v51  ;;  %10237 = vmatpush.bf16.msra.mxu2 %v12725_v46  ;;  %v12436_v46 = vld [vmem:[%s22448_s4 + $0x260] sm:$0xf] }
 0xa9f   : > { %10010 = vmatmul.bf16.gmra.mxu0 %v22927_v12  ;;  %10092 = vmatmul.bf16.gmra.mxu2 %v22929_v20  ;;  %v22931_v12 = vld [vmem:[#allocation7_spill] sm:$0xff] }
 0xaa1   : > { %10133 = vmatmul.bf16.gmra.mxu3 %v22930_v61 }
 0xaa2   : > { %v9924_v48 = vpop.f32.mrf.mxu2 }
 0xaa3   : > { %v9925_v26 = vadd.f32 %v9924_v48, %v9884_v41  ;;  %v9885_v0 = vpop.f32.mrf.mxu1  ;;  %v12149_v41 = vor.u32 %v14708_v9, %v12148_v49  ;;  %v14780_v48 = vld [vmem:[%s22448_s4 + $0x280] sm:$0xf0] }
 0xaa4   : > { %v9965_v19 = vpop.f32.mrf.mxu3  ;;  %v9844_v47 = vpop.f32.mrf.mxu0 }
 0xaa5   : > { %v22038_v29 = vadd.f32 %v9965_v19, %v9925_v26  ;;  %v9886_v27 = vadd.f32 %v9885_v0, %v9844_v47  ;;  %v13013_v26 = vor.u32 %v14924_v16, %v13012_v24  ;;  %v12437_v19 = vor.u32 %v14780_v48, %v12436_v46  ;;  %10155 = vmatpush.bf16.msra.mxu0 %v12149_v41  ;;  %v14128_v24 = vld [vmem:[%s22448_s4 + $0xf98] sm:$0xf]  ;;  %v15059_v16 = vld [vmem:[%s22448_s4 + $0xb38] sm:$0xf0] }
 0xaa6   : > { %v14416_v46 = vld [vmem:[%s22448_s4 + $0x11d8] sm:$0xf]  ;;  %v15275_v48 = vld [vmem:[%s22448_s4 + $0x11f8] sm:$0xf0] }
 0xaa7   : > { %10278 = vmatpush.bf16.msra.mxu3 %v13013_v26  ;;  %10196 = vmatpush.bf16.msra.mxu1 %v12437_v19 }
 0xaaa   : > { %v9926_v47 = vpop.f32.mrf.mxu2 }
 0xaab   : > { %v9927_v0 = vadd.f32 %v9926_v47, %v9886_v27  ;;  %v9888_v61 = vpop.f32.mrf.mxu1  ;;  %v15203_v27 = vld [vmem:[%s22448_s4 + $0xfb8] sm:$0xf0]  ;;  %v14417_v47 = vor.u32 %v15275_v48, %v14416_v46 }
 0xaac   : > { %v9967_v49 = vpop.f32.mrf.mxu3  ;;  %v9847_v9 = vpop.f32.mrf.mxu0  ;;  %v14129_v41 = vor.u32 %v15203_v27, %v14128_v24 }
 0xaad   : > { %v22058_v20 = vadd.f32 %v9967_v49, %v9927_v0  ;;  %v9889_v51 = vadd.f32 %v9888_v61, %v9847_v9  ;;  %v13552_v61 = vld [vmem:[%s22448_s4 + $0xb18] sm:$0xf]  ;;  %10435 = vmatpush.bf16.msrb.mxu3 %v14417_v47 }
 0xaae   : > { %10056 = vmatmul.bf16.gmra.mxu1 %v22932_v54  ;;  %v13553_v19 = vor.u32 %v15059_v16, %v13552_v61  ;;  %10394 = vmatpush.bf16.msrb.mxu2 %v14129_v41  ;;  %v15131_v54 = vld [vmem:[%s22448_s4 + $0xd78] sm:$0xf0] }
 0xaaf   : > { %10015 = vmatmul.bf16.gmra.mxu0 %v22931_v12  ;;  %10097 = vmatmul.bf16.gmra.mxu2 %v22933_v60  ;;  %v13840_v60 = vld [vmem:[%s22448_s4 + $0xd58] sm:$0xf] }
 0xab0   : > { %10312 = vmatpush.bf16.msrb.mxu0 %v13553_v19  ;;  %v13841_v61 = vor.u32 %v15131_v54, %v13840_v60  ;;  %v15194_v19 = vld [vmem:[%s22448_s4 + $0xf70] sm:$0xf0]  ;;  %v22936_v60 = vld [vmem:[#allocation18_spill] sm:$0xff] }
 0xab1   : > { %10138 = vmatmul.bf16.gmra.mxu3 %v22934_v53  ;;  %v22938_v54 = vld [vmem:[#allocation34_spill] sm:$0xff] }
 0xab2   : > { %v9929_v26 = vpop.f32.mrf.mxu2  ;;  %10353 = vmatpush.bf16.msrb.mxu1 %v13841_v61  ;;  %v15050_v61 = vld [vmem:[%s22448_s4 + $0xaf0] sm:$0xf0] }
 0xab3   : > { %v9930_v0 = vadd.f32 %v9929_v26, %v9889_v51  ;;  %v9890_v24 = vpop.f32.mrf.mxu1  ;;  %v14092_v26 = vld [vmem:[%s22448_s4 + $0xf50] sm:$0xf] }
 0xab4   : > { %v9970_v49 = vpop.f32.mrf.mxu3  ;;  %v9849_v9 = vpop.f32.mrf.mxu0 }
 0xab5   : > { %v22082_v27 = vadd.f32 %v9970_v49, %v9930_v0  ;;  %v9891_v53 = vadd.f32 %v9890_v24, %v9849_v9  ;;  %v14093_v49 = vor.u32 %v15194_v19, %v14092_v26  ;;  %v22935_v9 = vld [vmem:[#allocation33_spill] sm:$0xff]  ;;  %v13516_v24 = vld [vmem:[%s22448_s4 + $0xad0] sm:$0xf] }
 0xab7   : > { %10395 = vmatpush.bf16.msrb.mxu2 %v14093_v49 }
 0xaba   : > { %v9931_v51 = vpop.f32.mrf.mxu2 }
 0xabb   : > { %v9932_v16 = vadd.f32 %v9931_v51, %v9891_v53  ;;  %v9893_v48 = vpop.f32.mrf.mxu1  ;;  %v22937_v53 = vld [vmem:[#allocation19_spill] sm:$0xff]  ;;  %v14380_v51 = vld [vmem:[%s22448_s4 + $0x1190] sm:$0xf] }
 0xabc   : > { %v9972_v46 = vpop.f32.mrf.mxu3  ;;  %v9852_v41 = vpop.f32.mrf.mxu0 }
 0xabd   : > { %v22096_v47 = vadd.f32 %v9972_v46, %v9932_v16  ;;  %v9894_v0 = vadd.f32 %v9893_v48, %v9852_v41  ;;  %v13517_v16 = vor.u32 %v15050_v61, %v13516_v24  ;;  %v15266_v46 = vld [vmem:[%s22448_s4 + $0x11b0] sm:$0xf0]  ;;  %v13804_v41 = vld [vmem:[%s22448_s4 + $0xd10] sm:$0xf] }
 0xabe   : > { %10061 = vmatmul.bf16.gmra.mxu1 %v22936_v60  ;;  %v15122_v48 = vld [vmem:[%s22448_s4 + $0xd30] sm:$0xf0]  ;;  %v14381_v19 = vor.u32 %v15266_v46, %v14380_v51 }
 0xabf   : > { %10020 = vmatmul.bf16.gmra.mxu0 %v22935_v9  ;;  %10102 = vmatmul.bf16.gmra.mxu2 %v22937_v53  ;;  %v13805_v49 = vor.u32 %v15122_v48, %v13804_v41 }
 0xac0   : > { %10313 = vmatpush.bf16.msrb.mxu0 %v13517_v16  ;;  %10436 = vmatpush.bf16.msrb.mxu3 %v14381_v19 }
 0xac1   : > { %10143 = vmatmul.bf16.gmra.mxu3 %v22938_v54  ;;  %10354 = vmatpush.bf16.msrb.mxu1 %v13805_v49  ;;  %v15176_v49 = vld [vmem:[%s22448_s4 + $0xee0] sm:$0xf0] }
 0xac2   : > { %v9934_v26 = vpop.f32.mrf.mxu2 }
 0xac3   : > { %v9935_v54 = vadd.f32 %v9934_v26, %v9894_v0  ;;  %v9895_v24 = vpop.f32.mrf.mxu1  ;;  %v15185_v0 = vld [vmem:[%s22448_s4 + $0xf28] sm:$0xf0] }
 0xac4   : > { %v9975_v53 = vpop.f32.mrf.mxu3  ;;  %v9854_v60 = vpop.f32.mrf.mxu0  ;;  %v14057_v16 = vor.u32 %v15185_v0, %v14056_v52 }
 0xac5   : > { %v22120_v61 = vadd.f32 %v9975_v53, %v9935_v54  ;;  %v9896_v9 = vadd.f32 %v9895_v24, %v9854_v60  ;;  %v14344_v60 = vld [vmem:[%s22448_s4 + $0x1148] sm:$0xf] }
 0xac6   : > { %10396 = vmatpush.bf16.msrb.mxu2 %v14057_v16 }
 0xaca   : > { %v9936_v12 = vpop.f32.mrf.mxu2 }
 0xacb   : > { %v9937_v37 = vadd.f32 %v9936_v12, %v9896_v9  ;;  %v9898_v51 = vpop.f32.mrf.mxu1  ;;  %v13480_v12 = vld [vmem:[%s22448_s4 + $0xa88] sm:$0xf]  ;;  %v15041_v9 = vld [vmem:[%s22448_s4 + $0xaa8] sm:$0xf0] }
 0xacc   : > { %v9977_v5 = vpop.f32.mrf.mxu3  ;;  %v9857_v42 = vpop.f32.mrf.mxu0  ;;  %v13481_v52 = vor.u32 %v15041_v9, %v13480_v12  ;;  %v13444_v9 = vld [vmem:[%s22448_s4 + $0xa40] sm:$0xf] }
 0xacd   : > { %v22128_v46 = vadd.f32 %v9977_v5, %v9937_v37  ;;  %v9899_v41 = vadd.f32 %v9898_v51, %v9857_v42  ;;  %v13768_v5 = vld [vmem:[%s22448_s4 + $0xcc8] sm:$0xf]  ;;  %v15113_v37 = vld [vmem:[%s22448_s4 + $0xce8] sm:$0xf0] }
 0xace   : > { %10197 = vmatmul.bf16.vlgmr.msra.gmra.mxu1 %v22659_v25  ;;  %10314 = vmatpush.bf16.msrb.mxu0 %v13481_v52  ;;  %v13769_v25 = vor.u32 %v15113_v37, %v13768_v5  ;;  %v14308_v52 = vld [vmem:[%s22448_s4 + $0x1100] sm:$0xf] }
 0xacf   : > { %10156 = vmatmul.bf16.vlgmr.msra.gmra.mxu0 %v22658_v40  ;;  %10238 = vmatmul.bf16.vlgmr.msra.gmra.mxu2 %v22660_v50  ;;  %v15257_v40 = vld [vmem:[%s22448_s4 + $0x1168] sm:$0xf0] }
 0xad0   : > { %v14345_v42 = vor.u32 %v15257_v40, %v14344_v60  ;;  %10355 = vmatpush.bf16.msrb.mxu1 %v13769_v25  ;;  %v15032_v60 = vld [vmem:[%s22448_s4 + $0xa60] sm:$0xf0] }
 0xad1   : > { %10279 = vmatmul.bf16.vlgmr.msra.gmra.mxu3 %v22661_v56  ;;  %v14020_v56 = vld [vmem:[%s22448_s4 + $0xec0] sm:$0xf] }
 0xad2   : > { %v9939_v53 = vpop.f32.mrf.mxu2  ;;  %10437 = vmatpush.bf16.msrb.mxu3 %v14345_v42  ;;  %v14021_v24 = vor.u32 %v15176_v49, %v14020_v56  ;;  %v15104_v42 = vld [vmem:[%s22448_s4 + $0xca0] sm:$0xf0] }
 0xad3   : > { %v9940_v50 = vadd.f32 %v9939_v53, %v9899_v41  ;;  %v9900_v26 = vpop.f32.mrf.mxu1 }
 0xad4   : > { %v9980_v54 = vpop.f32.mrf.mxu3  ;;  %v9859_v48 = vpop.f32.mrf.mxu0  ;;  %10397 = vmatpush.bf16.msrb.mxu2 %v14021_v24  ;;  %v15023_v24 = vld [vmem:[%s22448_s4 + $0xa18] sm:$0xf0] }
 0xad5   : > { %v22152_v19 = vadd.f32 %v9980_v54, %v9940_v50  ;;  %v13984_v50 = vld [vmem:[%s22448_s4 + $0xe78] sm:$0xf]  ;;  %v15167_v54 = vld [vmem:[%s22448_s4 + $0xe98] sm:$0xf0] }
 0xad6   : > { %v13408_v48 = vld [vmem:[%s22448_s4 + $0x9f8] sm:$0xf]  ;;  %v13985_v49 = vor.u32 %v15167_v54, %v13984_v50 }
 0xad8   : > { %10398 = vmatpush.bf16.msrb.mxu2 %v13985_v49 }
 0xada   : > { %v9941_v0 = vpop.f32.mrf.mxu2 }
 0xadb   : > { %v10034_v41 = vpop.f32.mrf.mxu1  ;;  %v14272_v0 = vld [vmem:[%s22448_s4 + $0x10b8] sm:$0xf] }
 0xadc   : > { %v9982_v51 = vpop.f32.mrf.mxu3  ;;  %v9993_v16 = vpop.f32.mrf.mxu0 }
 0xadd   : > { %v15239_v51 = vld [vmem:[%s22448_s4 + $0x10d8] sm:$0xf0] }
 0xade   : > { %10200 = vmatmul.bf16.gmra.mxu1 %v22663_v38  ;;  %v13445_v38 = vor.u32 %v15032_v60, %v13444_v9  ;;  %v14273_v9 = vor.u32 %v15239_v51, %v14272_v0 }
 0xadf   : > { %10159 = vmatmul.bf16.gmra.mxu0 %v22662_v1  ;;  %10241 = vmatmul.bf16.gmra.mxu2 %v22664_v39  ;;  %v15248_v39 = vld [vmem:[%s22448_s4 + $0x1120] sm:$0xf0] }
 0xae0   : > { %v14309_v37 = vor.u32 %v15248_v39, %v14308_v52  ;;  %10315 = vmatpush.bf16.msrb.mxu0 %v13445_v38 }
 0xae1   : > { %10282 = vmatmul.bf16.gmra.mxu3 %v22665_v10  ;;  %v13732_v10 = vld [vmem:[%s22448_s4 + $0xc80] sm:$0xf] }
 0xae2   : > { %v10075_v12 = vpop.f32.mrf.mxu2  ;;  %v13733_v25 = vor.u32 %v15104_v42, %v13732_v10  ;;  %10438 = vmatpush.bf16.msrb.mxu3 %v14309_v37  ;;  %v15158_v37 = vld [vmem:[%s22448_s4 + $0xe50] sm:$0xf0] }
 0xae3   : > { %v10035_v5 = vpop.f32.mrf.mxu1  ;;  %v13409_v12 = vor.u32 %v15023_v24, %v13408_v48  ;;  %v15014_v48 = vld [vmem:[%s22448_s4 + $0x9d0] sm:$0xf0] }
 0xae4   : > { %v10116_v1 = vpop.f32.mrf.mxu3  ;;  %v9994_v40 = vpop.f32.mrf.mxu0  ;;  %10356 = vmatpush.bf16.msrb.mxu1 %v13733_v25  ;;  %v13948_v5 = vld [vmem:[%s22448_s4 + $0xe30] sm:$0xf] }
 0xae5   : > { %10316 = vmatpush.bf16.msrb.mxu0 %v13409_v12  ;;  %v15095_v1 = vld [vmem:[%s22448_s4 + $0xc58] sm:$0xf0]  ;;  %v13372_v25 = vld [vmem:[%s22448_s4 + $0x9b0] sm:$0xf]  ;;  %v13949_v54 = vor.u32 %v15158_v37, %v13948_v5 }
 0xae6   : > { %10439 = vmatpush.bf16.msrb.mxu3 %v14273_v9  ;;  %v13373_v0 = vor.u32 %v15014_v48, %v13372_v25 }
 0xae7   : > { %10399 = vmatpush.bf16.msrb.mxu2 %v13949_v54 }
 0xae9   : > { %10317 = vmatpush.bf16.msrb.mxu0 %v13373_v0 }
 0xaea   : > { %v10076_v53 = vpop.f32.mrf.mxu2 }
 0xaeb   : > { %v10037_v41 = vpop.f32.mrf.mxu1 }
 0xaec   : > { %v10117_v26 = vpop.f32.mrf.mxu3  ;;  %v9996_v56 = vpop.f32.mrf.mxu0 }
 0xaed   : > { %v9997_v16 = vadd.f32 %v9996_v56, %v21968_v23  ;;  %v13696_v23 = vld [vmem:[%s22448_s4 + $0xc38] sm:$0xf]  ;;  %v14236_v26 = vld [vmem:[%s22448_s4 + $0x1070] sm:$0xf]  ;;  %v15230_v56 = vld [vmem:[%s22448_s4 + $0x1090] sm:$0xf0] }
 0xaee   : > { %10205 = vmatmul.bf16.gmra.mxu1 %v22668_v15  ;;  %v13697_v39 = vor.u32 %v15095_v1, %v13696_v23  ;;  %v14237_v51 = vor.u32 %v15230_v56, %v14236_v26 }
 0xaef   : > { %v10038_v60 = vadd.f32 %v10037_v41, %v9997_v16  ;;  %10164 = vmatmul.bf16.gmra.mxu0 %v22667_v11  ;;  %10246 = vmatmul.bf16.gmra.mxu2 %v22669_v57  ;;  %v13660_v16 = vld [vmem:[%s22448_s4 + $0xbf0] sm:$0xf]  ;;  %v15086_v41 = vld [vmem:[%s22448_s4 + $0xc10] sm:$0xf0] }
 0xaf0   : > { %10357 = vmatpush.bf16.msrb.mxu1 %v13697_v39  ;;  %v13661_v9 = vor.u32 %v15086_v41, %v13660_v16  ;;  %10440 = vmatpush.bf16.msrb.mxu3 %v14237_v51 }
 0xaf1   : > { %10287 = vmatmul.bf16.gmra.mxu3 %v22670_v45 }
 0xaf2   : > { %v10078_v52 = vpop.f32.mrf.mxu2 }
 0xaf3   : > { %v10079_v40 = vadd.f32 %v10078_v52, %v10038_v60  ;;  %v10039_v10 = vpop.f32.mrf.mxu1 }
 0xaf4   : > { %v10119_v38 = vpop.f32.mrf.mxu3  ;;  %v9998_v11 = vpop.f32.mrf.mxu0  ;;  %10358 = vmatpush.bf16.msrb.mxu1 %v13661_v9 }
 0xaf5   : > { %v9999_v15 = vadd.f32 %v9998_v11, %v21994_v3  ;;  %v10120_v57 = vadd.f32 %v10119_v38, %v10079_v40 }
 0xaf7   : > { %v10040_v45 = vadd.f32 %v10039_v10, %v9999_v15 }
 0xafa   : > { %v10080_v42 = vpop.f32.mrf.mxu2 }
 0xafb   : > { %v10081_v53 = vadd.f32 %v10080_v42, %v10040_v45  ;;  %v10042_v24 = vpop.f32.mrf.mxu1  ;;  %v15149_v42 = vld [vmem:[%s22448_s4 + $0xe08] sm:$0xf0] }
 0xafc   : > { %v10121_v50 = vpop.f32.mrf.mxu3  ;;  %v10001_v3 = vpop.f32.mrf.mxu0 }
 0xafd   : > { %v10002_v49 = vadd.f32 %v10001_v3, %v22000_v63  ;;  %v10122_v12 = vadd.f32 %v10121_v50, %v10081_v53  ;;  %v10818_v63 = vrot.slane %v10120_v57, 5  ;;  %v14200_v50 = vld [vmem:[%s22448_s4 + $0x1028] sm:$0xf]  ;;  %v15221_v3 = vld [vmem:[%s22448_s4 + $0x1048] sm:$0xf0] }
 0xafe   : > { %10210 = vmatmul.bf16.gmra.mxu1 %v22674_v17  ;;  %v14201_v56 = vor.u32 %v15221_v3, %v14200_v50 }
 0xaff   : > { %v10043_v60 = vadd.f32 %v10042_v24, %v10002_v49  ;;  %10169 = vmatmul.bf16.gmra.mxu0 %v22673_v21  ;;  %v10819_v52 = vrot.slane %v10122_v12, 5  ;;  %10251 = vmatmul.bf16.gmra.mxu2 %v22675_v43  ;;  %v13624_v49 = vld [vmem:[%s22448_s4 + $0xba8] sm:$0xf]  ;;  %v15077_v24 = vld [vmem:[%s22448_s4 + $0xbc8] sm:$0xf0] }
 0xb00   : > { %v13625_v51 = vor.u32 %v15077_v24, %v13624_v49  ;;  %10441 = vmatpush.bf16.msrb.mxu3 %v14201_v56 }
 0xb01   : > { %10292 = vmatmul.bf16.gmra.mxu3 %v22676_v30  ;;  %v10820_v23 = vsel %vm10817_vm4, %v10818_v63, %v10819_v52 }
 0xb02   : > { %v22243_v1 = vadd.f32 %v10820_v23, %v21730_v7  ;;  %v10083_v40 = vpop.f32.mrf.mxu2  ;;  %v13912_v7 = vld [vmem:[%s22448_s4 + $0xde8] sm:$0xf]  ;;  %10359 = vmatpush.bf16.msrb.mxu1 %v13625_v51 }
 0xb03   : > { %v10084_v38 = vadd.f32 %v10083_v40, %v10043_v60  ;;  %v10044_v15 = vpop.f32.mrf.mxu1  ;;  %v13913_v53 = vor.u32 %v15149_v42, %v13912_v7  ;;  %v13588_v7 = vld [vmem:[%s22448_s4 + $0xb60] sm:$0xf]  ;;  %v15068_v42 = vld [vmem:[%s22448_s4 + $0xb80] sm:$0xf0] }
 0xb04   : > { %v10124_v11 = vpop.f32.mrf.mxu3  ;;  %v10003_v21 = vpop.f32.mrf.mxu0 }
 0xb05   : > { %v10004_v39 = vadd.f32 %v10003_v21, %v22026_v2  ;;  %v10125_v10 = vadd.f32 %v10124_v11, %v10084_v38  ;;  %v13336_v2 = vld [vmem:[%s22448_s4 + $0x968] sm:$0xf]  ;;  %10400 = vmatpush.bf16.msrb.mxu2 %v13913_v53 }
 0xb07   : > { %v10045_v17 = vadd.f32 %v10044_v15, %v10004_v39  ;;  %v10821_v57 = vrot.slane %v10125_v10, 5  ;;  %v13300_v15 = vld [vmem:[%s22448_s4 + $0x920] sm:$0xf]  ;;  %v14996_v10 = vld [vmem:[%s22448_s4 + $0x940] sm:$0xf0] }
 0xb09   : > { %v10822_v43 = vsel %vm10817_vm4, %v10819_v52, %v10821_v57 }
 0xb0a   : > { %v22248_v30 = vadd.f32 %v10822_v43, %v21735_v13  ;;  %v10085_v45 = vpop.f32.mrf.mxu2  ;;  %v15005_v13 = vld [vmem:[%s22448_s4 + $0x988] sm:$0xf0] }
 0xb0b   : > { %v10086_v5 = vadd.f32 %v10085_v45, %v10045_v17  ;;  %v10047_v48 = vpop.f32.mrf.mxu1  ;;  %v13337_v26 = vor.u32 %v15005_v13, %v13336_v2  ;;  %v13301_v45 = vor.u32 %v14996_v10, %v13300_v15 }
 0xb0c   : > { %v10126_v37 = vpop.f32.mrf.mxu3  ;;  %v10006_v25 = vpop.f32.mrf.mxu0 }
 0xb0d   : > { %v10007_v54 = vadd.f32 %v10006_v25, %v22038_v29  ;;  %v10127_v0 = vadd.f32 %v10126_v37, %v10086_v5  ;;  %10318 = vmatpush.bf16.msrb.mxu0 %v13337_v26  ;;  %v13589_v25 = vor.u32 %v15068_v42, %v13588_v7 }
 0xb0e   : > { %10215 = vmatmul.bf16.gmra.mxu1 %v22738_v55  ;;  %v15140_v55 = vld [vmem:[%s22448_s4 + $0xdc0] sm:$0xf0] }
 0xb0f   : > { %v10048_v16 = vadd.f32 %v10047_v48, %v10007_v54  ;;  %10174 = vmatmul.bf16.gmra.mxu0 %v22680_v59  ;;  %v10823_v41 = vrot.slane %v10127_v0, 5  ;;  %10256 = vmatmul.bf16.gmra.mxu2 %v22739_v36  ;;  %v13876_v59 = vld [vmem:[%s22448_s4 + $0xda0] sm:$0xf] }
 0xb10   : > { %10360 = vmatpush.bf16.msrb.mxu1 %v13589_v25 }
 0xb11   : > { %10297 = vmatmul.bf16.gmra.mxu3 %v22741_v22  ;;  %v10824_v29 = vsel %vm10817_vm4, %v10821_v57, %v10823_v41  ;;  %v13877_v22 = vor.u32 %v15140_v55, %v13876_v59  ;;  %10319 = vmatpush.bf16.msrb.mxu0 %v13301_v45  ;;  %v22942_v45 = vld [vmem:[#allocation2_spill] sm:$0xff] }
 0xb12   : > { %v22281_v12 = vadd.f32 %v10824_v29, %v21768_v8  ;;  %v10088_v9 = vpop.f32.mrf.mxu2 }
 0xb13   : > { %v10089_v60 = vadd.f32 %v10088_v9, %v10048_v16  ;;  %v10049_v23 = vpop.f32.mrf.mxu1  ;;  %10401 = vmatpush.bf16.msrb.mxu2 %v13877_v22 }
 0xb14   : > { %v10129_v36 = vpop.f32.mrf.mxu3  ;;  %v10008_v63 = vpop.f32.mrf.mxu0 }
 0xb15   : > { %v10009_v52 = vadd.f32 %v10008_v63, %v22058_v20  ;;  %v10130_v40 = vadd.f32 %v10129_v36, %v10089_v60  ;;  %v14164_v20 = vld [vmem:[%s22448_s4 + $0xfe0] sm:$0xf] }
 0xb17   : > { %v10050_v8 = vadd.f32 %v10049_v23, %v10009_v52  ;;  %v10825_v38 = vrot.slane %v10130_v40, 5 }
 0xb19   : > { %v10826_v11 = vsel %vm10817_vm4, %v10823_v41, %v10825_v38 }
 0xb1a   : > { %v22292_v21 = vadd.f32 %v10826_v11, %v21779_v62  ;;  %v10090_v39 = vpop.f32.mrf.mxu2  ;;  %v15212_v62 = vld [vmem:[%s22448_s4 + $0x1000] sm:$0xf0] }
 0xb1b   : > { %v10091_v17 = vadd.f32 %v10090_v39, %v10050_v8  ;;  %v10052_v5 = vpop.f32.mrf.mxu1  ;;  %v14165_v37 = vor.u32 %v15212_v62, %v14164_v20  ;;  %v22943_v62 = vld [vmem:[#allocation22_spill] sm:$0xff] }
 0xb1c   : > { %v10131_v57 = vpop.f32.mrf.mxu3  ;;  %v10011_v43 = vpop.f32.mrf.mxu0 }
 0xb1d   : > { %v10012_v2 = vadd.f32 %v10011_v43, %v22082_v27  ;;  %v10132_v53 = vadd.f32 %v10131_v57, %v10091_v17  ;;  %10442 = vmatpush.bf16.msrb.mxu3 %v14165_v37  ;;  %v22939_v17 = vld [vmem:[#allocation40_spill] sm:$0xff]  ;;  %v22940_v57 = vld [vmem:[#allocation41_spill] sm:$0xff] }
 0xb1e   : > { %10220 = vmatmul.bf16.gmra.mxu1 %v22720_v32  ;;  %v22941_v43 = vld [vmem:[#allocation25_spill] sm:$0xff] }
 0xb1f   : > { %v10053_v13 = vadd.f32 %v10052_v5, %v10012_v2  ;;  %10179 = vmatmul.bf16.gmra.mxu0 %v22686_v6  ;;  %v10827_v50 = vrot.slane %v10132_v53, 5  ;;  %10261 = vmatmul.bf16.gmra.mxu2 %v22721_v14 }
 0xb21   : > { %10302 = vmatmul.bf16.gmra.mxu3 %v22722_v44  ;;  %v10828_v3 = vsel %vm10817_vm4, %v10825_v38, %v10827_v50 }
 0xb22   : > { %v22319_v27 = vadd.f32 %v10828_v3, %v21806_v35  ;;  %v10093_v54 = vpop.f32.mrf.mxu2 }
 0xb23   : > { %v10094_v48 = vadd.f32 %v10093_v54, %v10053_v13  ;;  %v10054_v49 = vpop.f32.mrf.mxu1 }
 0xb24   : > { %v10134_v26 = vpop.f32.mrf.mxu3  ;;  %v10013_v56 = vpop.f32.mrf.mxu0 }
 0xb25   : > { %v10014_v6 = vadd.f32 %v10013_v56, %v22096_v47  ;;  %v10135_v24 = vadd.f32 %v10134_v26, %v10094_v48 }
 0xb27   : > { %v10055_v0 = vadd.f32 %v10054_v49, %v10014_v6  ;;  %v10829_v32 = vrot.slane %v10135_v24, 5  ;;  %v22945_v6 = vld [vmem:[#allocation12_spill] sm:$0xff]  ;;  %v22946_v49 = vld [vmem:[#allocation42_spill] sm:$0xff]  ;;  %v22947_v24 = vld [vmem:[#allocation3_spill] sm:$0xff] }
 0xb29   : > { %v10830_v14 = vsel %vm10817_vm4, %v10827_v50, %v10829_v32  ;;  %v22944_v50 = vld [vmem:[#allocation26_spill] sm:$0xff] }
 0xb2a   : > { %v22324_v44 = vadd.f32 %v10830_v14, %v21829_v33  ;;  %v10095_v51 = vpop.f32.mrf.mxu2 }
 0xb2b   : > { %v10096_v16 = vadd.f32 %v10095_v51, %v10055_v0  ;;  %v10057_v9 = vpop.f32.mrf.mxu1  ;;  %v22948_v0 = vld [vmem:[#allocation4_spill] sm:$0xff] }
 0xb2c   : > { %v10136_v41 = vpop.f32.mrf.mxu3  ;;  %v10016_v35 = vpop.f32.mrf.mxu0 }
 0xb2d   : > { %v10017_v29 = vadd.f32 %v10016_v35, %v22120_v61  ;;  %v10137_v59 = vadd.f32 %v10136_v41, %v10096_v16 }
 0xb2e   : > { %10225 = vmatmul.bf16.gmra.mxu1 %v22726_v58 }
 0xb2f   : > { %v10058_v55 = vadd.f32 %v10057_v9, %v10017_v29  ;;  %10184 = vmatmul.bf16.gmra.mxu0 %v22724_v31  ;;  %v10831_v47 = vrot.slane %v10137_v59, 5  ;;  %10266 = vmatmul.bf16.gmra.mxu2 %v22771_v18 }
 0xb31   : > { %10307 = vmatmul.bf16.gmra.mxu3 %v22873_v34  ;;  %v10832_v33 = vsel %vm10817_vm4, %v10829_v32, %v10831_v47 }
 0xb32   : > { %v22333_v60 = vadd.f32 %v10832_v33, %v21868_v4  ;;  %v10098_v36 = vpop.f32.mrf.mxu2  ;;  %v22951_v33 = vld [vmem:[#allocation10_spill] sm:$0xff] }
 0xb33   : > { %v10099_v63 = vadd.f32 %v10098_v36, %v10058_v55  ;;  %v10059_v23 = vpop.f32.mrf.mxu1  ;;  %v22949_v55 = vld [vmem:[#allocation43_spill] sm:$0xff] }
 0xb34   : > { %v10139_v61 = vpop.f32.mrf.mxu3  ;;  %v10018_v22 = vpop.f32.mrf.mxu0  ;;  %v22952_v36 = vld [vmem:[#allocation11_spill] sm:$0xff] }
 0xb35   : > { %v10019_v52 = vadd.f32 %v10018_v22, %v22128_v46  ;;  %v10140_v31 = vadd.f32 %v10139_v61, %v10099_v63 }
 0xb37   : > { %v10060_v40 = vadd.f32 %v10059_v23, %v10019_v52  ;;  %v10833_v8 = vrot.slane %v10140_v31, 5 }
 0xb39   : > { %v10834_v58 = vsel %vm10817_vm4, %v10831_v47, %v10833_v8  ;;  %v22950_v47 = vld [vmem:[#allocation44_spill] sm:$0xff] }
 0xb3a   : > { %v22338_v18 = vadd.f32 %v10834_v58, %v21873_v28  ;;  %v10100_v34 = vpop.f32.mrf.mxu2 }
 0xb3b   : > { %v10101_v38 = vadd.f32 %v10100_v34, %v10060_v40  ;;  %v10062_v15 = vpop.f32.mrf.mxu1 }
 0xb3c   : > { %v10141_v11 = vpop.f32.mrf.mxu3  ;;  %v10021_v4 = vpop.f32.mrf.mxu0 }
 0xb3d   : > { %v10022_v39 = vadd.f32 %v10021_v4, %v22152_v19  ;;  %v10142_v10 = vadd.f32 %v10141_v11, %v10101_v38 }
 0xb3e   : > { %10361 = vmatmul.bf16.vlgmr.msrb.gmra.mxu1 %v22940_v57 }
 0xb3f   : > { %v10063_v20 = vadd.f32 %v10062_v15, %v10022_v39  ;;  %10320 = vmatmul.bf16.vlgmr.msrb.gmra.mxu0 %v22939_v17  ;;  %v10835_v46 = vrot.slane %v10142_v10, 5  ;;  %10402 = vmatmul.bf16.vlgmr.msrb.gmra.mxu2 %v22941_v43  ;;  %v22953_v15 = vld [vmem:[#allocation45_spill] sm:$0xff]  ;;  %v22954_v10 = vld [vmem:[#allocation46_spill] sm:$0xff] }
 0xb40   : > { %v22956_v17 = vld [vmem:[#allocation29_spill] sm:$0xff] }
 0xb41   : > { %10443 = vmatmul.bf16.vlgmr.msrb.gmra.mxu3 %v22942_v45  ;;  %v10836_v28 = vsel %vm10817_vm4, %v10833_v8, %v10835_v46 }
 0xb42   : > { %v22347_v7 = vadd.f32 %v10836_v28, %v22943_v62  ;;  %v10103_v42 = vpop.f32.mrf.mxu2 }
 0xb43   : > { %v10104_v2 = vadd.f32 %v10103_v42, %v10063_v20  ;;  %v10064_v37 = vpop.f32.mrf.mxu1  ;;  %v22955_v20 = vld [vmem:[#allocation9_spill] sm:$0xff] }
 0xb44   : > { %v10144_v19 = vpop.f32.mrf.mxu3  ;;  %v10023_v5 = vpop.f32.mrf.mxu0 }
 0xb45   : > { %v10145_v25 = vadd.f32 %v10144_v19, %v10104_v2 }
 0xb47   : > { %v10837_v53 = vrot.slane %v10145_v25, 5 }
 0xb49   : > { %v10838_v13 = vsel %vm10817_vm4, %v10835_v46, %v10837_v53 }
 0xb4a   : > { %v22351_v3 = vadd.f32 %v10838_v13, %v22944_v50  ;;  %v10105_v54 = vpop.f32.mrf.mxu2  ;;  %v22957_v50 = vld [vmem:[#allocation5_spill] sm:$0xff] }
 0xb4b   : > { %v10198_v56 = vpop.f32.mrf.mxu1  ;;  %v22958_v54 = vld [vmem:[#allocation6_spill] sm:$0xff] }
 0xb4c   : > { %v10146_v48 = vpop.f32.mrf.mxu3  ;;  %v10157_v26 = vpop.f32.mrf.mxu0 }
 0xb4d   : > { %v22959_v48 = vld [vmem:[#allocation8_spill] sm:$0xff] }
 0xb4e   : > { %10364 = vmatmul.bf16.gmra.mxu1 %v22946_v49  ;;  %v22960_v26 = vld [vmem:[#allocation16_spill] sm:$0xff] }
 0xb4f   : > { %10323 = vmatmul.bf16.gmra.mxu0 %v22945_v6  ;;  %10405 = vmatmul.bf16.gmra.mxu2 %v22947_v24 }
 0xb51   : > { %10446 = vmatmul.bf16.gmra.mxu3 %v22948_v0 }
 0xb52   : > { %v10239_v32 = vpop.f32.mrf.mxu2 }
 0xb53   : > { %v10199_v16 = vpop.f32.mrf.mxu1 }
 0xb54   : > { %v10280_v14 = vpop.f32.mrf.mxu3  ;;  %v10158_v51 = vpop.f32.mrf.mxu0 }
 0xb5a   : > { %v10240_v41 = vpop.f32.mrf.mxu2 }
 0xb5b   : > { %v10201_v9 = vpop.f32.mrf.mxu1 }
 0xb5c   : > { %v10281_v35 = vpop.f32.mrf.mxu3  ;;  %v10160_v29 = vpop.f32.mrf.mxu0 }
 0xb5d   : > { %v10202_v59 = vadd.f32 %v10201_v9, %v10160_v29 }
 0xb5e   : > { %10369 = vmatmul.bf16.gmra.mxu1 %v22950_v47  ;;  %v22962_v47 = vld [vmem:[#allocation24_spill] sm:$0xff] }
 0xb5f   : > { %10328 = vmatmul.bf16.gmra.mxu0 %v22949_v55  ;;  %10410 = vmatmul.bf16.gmra.mxu2 %v22951_v33  ;;  %v22961_v55 = vld [vmem:[#allocation7_spill] sm:$0xff]  ;;  %v22963_v33 = vld [vmem:[#allocation17_spill] sm:$0xff] }
 0xb61   : > { %10451 = vmatmul.bf16.gmra.mxu3 %v22952_v36  ;;  %v22964_v36 = vld [vmem:[#allocation32_spill] sm:$0xff] }
 0xb62   : > { %v10242_v63 = vpop.f32.mrf.mxu2 }
 0xb63   : > { %v10243_v61 = vadd.f32 %v10242_v63, %v10202_v59  ;;  %v10203_v23 = vpop.f32.mrf.mxu1 }
 0xb64   : > { %v10283_v22 = vpop.f32.mrf.mxu3  ;;  %v10162_v52 = vpop.f32.mrf.mxu0 }
 0xb65   : > { %v22361_v31 = vadd.f32 %v10283_v22, %v10243_v61  ;;  %v10204_v40 = vadd.f32 %v10203_v23, %v10162_v52 }
 0xb6a   : > { %v10244_v8 = vpop.f32.mrf.mxu2 }
 0xb6b   : > { %v10245_v58 = vadd.f32 %v10244_v8, %v10204_v40  ;;  %v10206_v11 = vpop.f32.mrf.mxu1 }
 0xb6c   : > { %v10285_v34 = vpop.f32.mrf.mxu3  ;;  %v10165_v38 = vpop.f32.mrf.mxu0 }
 0xb6d   : > { %v22363_v4 = vadd.f32 %v10285_v34, %v10245_v58  ;;  %v10207_v39 = vadd.f32 %v10206_v11, %v10165_v38 }
 0xb6e   : > { %10374 = vmatmul.bf16.gmra.mxu1 %v22954_v10 }
 0xb6f   : > { %10333 = vmatmul.bf16.gmra.mxu0 %v22953_v15  ;;  %10415 = vmatmul.bf16.gmra.mxu2 %v22955_v20  ;;  %v22965_v20 = vld [vmem:[#allocation33_spill] sm:$0xff] }
 0xb71   : > { %10456 = vmatmul.bf16.gmra.mxu3 %v22956_v17  ;;  %v22966_v17 = vld [vmem:[#allocation18_spill] sm:$0xff] }
 0xb72   : > { %v10247_v46 = vpop.f32.mrf.mxu2 }
 0xb73   : > { %v10248_v57 = vadd.f32 %v10247_v46, %v10207_v39  ;;  %v10208_v28 = vpop.f32.mrf.mxu1  ;;  %v22967_v46 = vld [vmem:[#allocation19_spill] sm:$0xff] }
 0xb74   : > { %v10288_v43 = vpop.f32.mrf.mxu3  ;;  %v10167_v45 = vpop.f32.mrf.mxu0 }
 0xb75   : > { %v22369_v62 = vadd.f32 %v10288_v43, %v10248_v57  ;;  %v10209_v42 = vadd.f32 %v10208_v28, %v10167_v45  ;;  %v22968_v57 = vld [vmem:[#allocation34_spill] sm:$0xff] }
 0xb7a   : > { %v10249_v2 = vpop.f32.mrf.mxu2 }
 0xb7b   : > { %v10250_v19 = vadd.f32 %v10249_v2, %v10209_v42  ;;  %v10211_v25 = vpop.f32.mrf.mxu1 }
 0xb7c   : > { %v10290_v5 = vpop.f32.mrf.mxu3  ;;  %v10170_v37 = vpop.f32.mrf.mxu0 }
 0xb7d   : > { %v22371_v53 = vadd.f32 %v10290_v5, %v10250_v19  ;;  %v10212_v13 = vadd.f32 %v10211_v25, %v10170_v37 }
 0xb7e   : > { %10379 = vmatmul.bf16.gmra.mxu1 %v22958_v54 }
 0xb7f   : > { %10338 = vmatmul.bf16.gmra.mxu0 %v22957_v50  ;;  %10420 = vmatmul.bf16.gmra.mxu2 %v22959_v48 }
 0xb81   : > { %10461 = vmatmul.bf16.gmra.mxu3 %v22960_v26 }
 0xb82   : > { %v10252_v56 = vpop.f32.mrf.mxu2 }
 0xb83   : > { %v10253_v6 = vadd.f32 %v10252_v56, %v10212_v13  ;;  %v10213_v0 = vpop.f32.mrf.mxu1 }
 0xb84   : > { %v10293_v49 = vpop.f32.mrf.mxu3  ;;  %v10172_v24 = vpop.f32.mrf.mxu0 }
 0xb85   : > { %v22377_v32 = vadd.f32 %v10293_v49, %v10253_v6  ;;  %v10214_v14 = vadd.f32 %v10213_v0, %v10172_v24 }
 0xb8a   : > { %v10254_v51 = vpop.f32.mrf.mxu2 }
 0xb8b   : > { %v10255_v16 = vadd.f32 %v10254_v51, %v10214_v14  ;;  %v10216_v29 = vpop.f32.mrf.mxu1 }
 0xb8c   : > { %v10295_v41 = vpop.f32.mrf.mxu3  ;;  %v10175_v35 = vpop.f32.mrf.mxu0 }
 0xb8d   : > { %v22379_v9 = vadd.f32 %v10295_v41, %v10255_v16  ;;  %v10217_v59 = vadd.f32 %v10216_v29, %v10175_v35 }
 0xb8e   : > { %10384 = vmatmul.bf16.gmra.mxu1 %v22962_v47 }
 0xb8f   : > { %10343 = vmatmul.bf16.gmra.mxu0 %v22961_v55  ;;  %10425 = vmatmul.bf16.gmra.mxu2 %v22963_v33 }
 0xb91   : > { %10466 = vmatmul.bf16.gmra.mxu3 %v22964_v36 }
 0xb92   : > { %v10257_v63 = vpop.f32.mrf.mxu2 }
 0xb93   : > { %v10258_v61 = vadd.f32 %v10257_v63, %v10217_v59  ;;  %v10218_v23 = vpop.f32.mrf.mxu1 }
 0xb94   : > { %v10298_v22 = vpop.f32.mrf.mxu3  ;;  %v10177_v52 = vpop.f32.mrf.mxu0 }
 0xb95   : > { %v22385_v40 = vadd.f32 %v10298_v22, %v10258_v61  ;;  %v10219_v8 = vadd.f32 %v10218_v23, %v10177_v52 }
 0xb9a   : > { %v10259_v58 = vpop.f32.mrf.mxu2 }
 0xb9b   : > { %v10260_v34 = vadd.f32 %v10259_v58, %v10219_v8  ;;  %v10221_v39 = vpop.f32.mrf.mxu1 }
 0xb9c   : > { %v10300_v38 = vpop.f32.mrf.mxu3  ;;  %v10180_v11 = vpop.f32.mrf.mxu0 }
 0xb9d   : > { %v22387_v15 = vadd.f32 %v10300_v38, %v10260_v34  ;;  %v10222_v10 = vadd.f32 %v10221_v39, %v10180_v11 }
 0xb9e   : > { %10389 = vmatmul.bf16.gmra.mxu1 %v22966_v17 }
 0xb9f   : > { %10348 = vmatmul.bf16.gmra.mxu0 %v22965_v20  ;;  %10430 = vmatmul.bf16.gmra.mxu2 %v22967_v46 }
 0xba1   : > { %10471 = vmatmul.bf16.gmra.mxu3 %v22968_v57 }
 0xba2   : > { %v10262_v43 = vpop.f32.mrf.mxu2 }
 0xba3   : > { %v10263_v45 = vadd.f32 %v10262_v43, %v10222_v10  ;;  %v10223_v2 = vpop.f32.mrf.mxu1 }
 0xba4   : > { %v10303_v28 = vpop.f32.mrf.mxu3  ;;  %v10182_v42 = vpop.f32.mrf.mxu0 }
 0xba5   : > { %v22393_v19 = vadd.f32 %v10303_v28, %v10263_v45  ;;  %v10224_v5 = vadd.f32 %v10223_v2, %v10182_v42 }
 0xbaa   : > { %v10264_v37 = vpop.f32.mrf.mxu2 }
 0xbab   : > { %v10265_v25 = vadd.f32 %v10264_v37, %v10224_v5  ;;  %v10226_v54 = vpop.f32.mrf.mxu1 }
 0xbac   : > { %v10305_v13 = vpop.f32.mrf.mxu3  ;;  %v10185_v50 = vpop.f32.mrf.mxu0 }
 0xbad   : > { %v22395_v48 = vadd.f32 %v10305_v13, %v10265_v25  ;;  %v10227_v26 = vadd.f32 %v10226_v54, %v10185_v50 }
 0xbb2   : > { %v10267_v56 = vpop.f32.mrf.mxu2 }
 0xbb3   : > { %v10268_v6 = vadd.f32 %v10267_v56, %v10227_v26  ;;  %v10228_v0 = vpop.f32.mrf.mxu1 }
 0xbb4   : > { %v10308_v49 = vpop.f32.mrf.mxu3  ;;  %v10187_v24 = vpop.f32.mrf.mxu0 }
 0xbb5   : > { %v22397_v14 = vadd.f32 %v10308_v49, %v10268_v6 }
 0xbba   : > { %v10269_v51 = vpop.f32.mrf.mxu2 }
 0xbbb   : > { %v10362_v35 = vpop.f32.mrf.mxu1 }
 0xbbc   : > { %v10310_v16 = vpop.f32.mrf.mxu3  ;;  %v10321_v41 = vpop.f32.mrf.mxu0 }
 0xbc2   : > { %v10403_v29 = vpop.f32.mrf.mxu2 }
 0xbc3   : > { %v10363_v47 = vpop.f32.mrf.mxu1 }
 0xbc4   : > { %v10444_v59 = vpop.f32.mrf.mxu3  ;;  %v10322_v55 = vpop.f32.mrf.mxu0 }
 0xbca   : > { %v10404_v33 = vpop.f32.mrf.mxu2 }
 0xbcb   : > { %v10365_v61 = vpop.f32.mrf.mxu1 }
 0xbcc   : > { %v10445_v36 = vpop.f32.mrf.mxu3  ;;  %v10324_v63 = vpop.f32.mrf.mxu0 }
 0xbcd   : > { %v10325_v22 = vadd.f32 %v10324_v63, %v22361_v31 }
 0xbcf   : > { %v10366_v34 = vadd.f32 %v10365_v61, %v10325_v22 }
 0xbd2   : > { %v10406_v52 = vpop.f32.mrf.mxu2 }
 0xbd3   : > { %v10367_v58 = vpop.f32.mrf.mxu1  ;;  %v10407_v11 = vadd.f32 %v10406_v52, %v10366_v34 }
 0xbd4   : > { %v10447_v23 = vpop.f32.mrf.mxu3  ;;  %v10326_v8 = vpop.f32.mrf.mxu0 }
 0xbd5   : > { %v10327_v38 = vadd.f32 %v10326_v8, %v22363_v4  ;;  %v10448_v20 = vadd.f32 %v10447_v23, %v10407_v11 }
 0xbd7   : > { %v10368_v39 = vadd.f32 %v10367_v58, %v10327_v38  ;;  %v10871_v31 = vrot.slane %v10448_v20, 6 }
 0xbda   : > { %v10408_v10 = vpop.f32.mrf.mxu2 }
 0xbdb   : > { %v10409_v17 = vadd.f32 %v10408_v10, %v10368_v39  ;;  %v10370_v43 = vpop.f32.mrf.mxu1 }
 0xbdc   : > { %v10449_v46 = vpop.f32.mrf.mxu3  ;;  %v10329_v57 = vpop.f32.mrf.mxu0 }
 0xbdd   : > { %v10450_v45 = vadd.f32 %v10449_v46, %v10409_v17  ;;  %v10330_v28 = vadd.f32 %v10329_v57, %v22369_v62 }
 0xbdf   : > { %v10872_v42 = vrot.slane %v10450_v45, 6  ;;  %v10371_v5 = vadd.f32 %v10370_v43, %v10330_v28 }
 0xbe1   : > { %v10873_v2 = vsel %vm10870_vm5, %v10871_v31, %v10872_v42 }
 0xbe2   : > { %v10902_v4 = vadd.f32 %v10873_v2, %v22243_v1  ;;  %v10411_v37 = vpop.f32.mrf.mxu2 }
 0xbe3   : > { %v10412_v25 = vadd.f32 %v10411_v37, %v10371_v5  ;;  %v10372_v54 = vpop.f32.mrf.mxu1 }
 0xbe4   : > { %v10452_v13 = vpop.f32.mrf.mxu3  ;;  %v10331_v50 = vpop.f32.mrf.mxu0 }
 0xbe5   : > { %v10453_v26 = vadd.f32 %v10452_v13, %v10412_v25  ;;  %v10332_v56 = vadd.f32 %v10331_v50, %v22371_v53 }
 0xbe7   : > { %v10874_v6 = vrot.slane %v10453_v26, 6  ;;  %v10373_v49 = vadd.f32 %v10372_v54, %v10332_v56 }
 0xbe9   : > { %v10875_v62 = vsel %vm10870_vm5, %v10872_v42, %v10874_v6 }
 0xbea   : > { %v10903_v24 = vadd.f32 %v10875_v62, %v22248_v30  ;;  %v10413_v0 = vpop.f32.mrf.mxu2 }
 0xbeb   : > { %v10414_v1 = vadd.f32 %v10413_v0, %v10373_v49  ;;  %v10375_v35 = vpop.f32.mrf.mxu1 }
 0xbec   : > { %v10454_v51 = vpop.f32.mrf.mxu3  ;;  %v10334_v16 = vpop.f32.mrf.mxu0  ;;  %v15279_v41 = vpack.c.bf16 %v10903_v24, %v10902_v4 }
 0xbed   : > { %v10455_v53 = vadd.f32 %v10454_v51, %v10414_v1  ;;  %v10335_v29 = vadd.f32 %v10334_v16, %v22377_v32 }
 0xbee   : > { %15280 = vst [vmem:[%s22411_s13] sm:$0xff] %v15279_v41  }
 0xbef   : > { %v10876_v59 = vrot.slane %v10455_v53, 6  ;;  %v10376_v30 = vadd.f32 %v10375_v35, %v10335_v29 }
 0xbf1   : > { %v10877_v55 = vsel %vm10870_vm5, %v10874_v6, %v10876_v59 }
 0xbf2   : > { %v10904_v47 = vadd.f32 %v10877_v55, %v22281_v12  ;;  %v10416_v33 = vpop.f32.mrf.mxu2 }
 0xbf3   : > { %v10417_v36 = vadd.f32 %v10416_v33, %v10376_v30  ;;  %v10377_v22 = vpop.f32.mrf.mxu1 }
 0xbf4   : > { %v10457_v63 = vpop.f32.mrf.mxu3  ;;  %v10336_v61 = vpop.f32.mrf.mxu0 }
 0xbf5   : > { %v10458_v52 = vadd.f32 %v10457_v63, %v10417_v36  ;;  %v10337_v23 = vadd.f32 %v10336_v61, %v22379_v9 }
 0xbf7   : > { %v10878_v8 = vrot.slane %v10458_v52, 6  ;;  %v10378_v32 = vadd.f32 %v10377_v22, %v10337_v23 }
 0xbf9   : > { %v10879_v58 = vsel %vm10870_vm5, %v10876_v59, %v10878_v8 }
 0xbfa   : > { %v10905_v34 = vadd.f32 %v10879_v58, %v22292_v21  ;;  %v10418_v38 = vpop.f32.mrf.mxu2 }
 0xbfb   : > { %v10419_v11 = vadd.f32 %v10418_v38, %v10378_v32  ;;  %v10380_v20 = vpop.f32.mrf.mxu1 }
 0xbfc   : > { %v10459_v39 = vpop.f32.mrf.mxu3  ;;  %v10339_v10 = vpop.f32.mrf.mxu0  ;;  %v15284_v12 = vpack.c.bf16 %v10905_v34, %v10904_v47 }
 0xbfd   : > { %v10460_v17 = vadd.f32 %v10459_v39, %v10419_v11  ;;  %v10340_v46 = vadd.f32 %v10339_v10, %v22385_v40 }
 0xbfe   : > { %15301 = vst [vmem:[%s22411_s13 + $0x8] sm:$0xff] %v15284_v12  }
 0xbff   : > { %v10880_v57 = vrot.slane %v10460_v17, 6  ;;  %v10381_v9 = vadd.f32 %v10380_v20, %v10340_v46 }
 0xc01   : > { %v10881_v43 = vsel %vm10870_vm5, %v10878_v8, %v10880_v57 }
 0xc02   : > { %v10906_v45 = vadd.f32 %v10881_v43, %v22319_v27  ;;  %v10421_v28 = vpop.f32.mrf.mxu2 }
 0xc03   : > { %v10422_v31 = vadd.f32 %v10421_v28, %v10381_v9  ;;  %v10382_v2 = vpop.f32.mrf.mxu1 }
 0xc04   : > { %v10462_v42 = vpop.f32.mrf.mxu3  ;;  %v10341_v21 = vpop.f32.mrf.mxu0 }
 0xc05   : > { %v10463_v5 = vadd.f32 %v10462_v42, %v10422_v31  ;;  %v10342_v4 = vadd.f32 %v10341_v21, %v22387_v15 }
 0xc07   : > { %v10882_v37 = vrot.slane %v10463_v5, 6  ;;  %v10383_v40 = vadd.f32 %v10382_v2, %v10342_v4 }
 0xc09   : > { %v10883_v25 = vsel %vm10870_vm5, %v10880_v57, %v10882_v37 }
 0xc0a   : > { %v10907_v13 = vadd.f32 %v10883_v25, %v22324_v44  ;;  %v10423_v50 = vpop.f32.mrf.mxu2 }
 0xc0b   : > { %v10424_v54 = vadd.f32 %v10423_v50, %v10383_v40  ;;  %v10385_v6 = vpop.f32.mrf.mxu1 }
 0xc0c   : > { %v10464_v26 = vpop.f32.mrf.mxu3  ;;  %v10344_v56 = vpop.f32.mrf.mxu0  ;;  %v15289_v27 = vpack.c.bf16 %v10907_v13, %v10906_v45 }
 0xc0d   : > { %v10465_v62 = vadd.f32 %v10464_v26, %v10424_v54  ;;  %v10345_v49 = vadd.f32 %v10344_v56, %v22393_v19 }
 0xc0e   : > { %15302 = vst [vmem:[%s22411_s13 + $0x10] sm:$0xff] %v15289_v27  }
 0xc0f   : > { %v10884_v24 = vrot.slane %v10465_v62, 6  ;;  %v10386_v15 = vadd.f32 %v10385_v6, %v10345_v49 }
 0xc11   : > { %v10885_v0 = vsel %vm10870_vm5, %v10882_v37, %v10884_v24 }
 0xc12   : > { %v10908_v1 = vadd.f32 %v10885_v0, %v22333_v60  ;;  %v10426_v51 = vpop.f32.mrf.mxu2 }
 0xc13   : > { %v10427_v16 = vadd.f32 %v10426_v51, %v10386_v15  ;;  %v10387_v35 = vpop.f32.mrf.mxu1 }
 0xc14   : > { %v10467_v41 = vpop.f32.mrf.mxu3  ;;  %v10346_v44 = vpop.f32.mrf.mxu0 }
 0xc15   : > { %v10468_v53 = vadd.f32 %v10467_v41, %v10427_v16  ;;  %v10347_v29 = vadd.f32 %v10346_v44, %v22395_v48 }
 0xc17   : > { %v10886_v59 = vrot.slane %v10468_v53, 6  ;;  %v10388_v19 = vadd.f32 %v10387_v35, %v10347_v29 }
 0xc19   : > { %v10887_v55 = vsel %vm10870_vm5, %v10884_v24, %v10886_v59 }
 0xc1a   : > { %v10909_v30 = vadd.f32 %v10887_v55, %v22338_v18  ;;  %v10428_v47 = vpop.f32.mrf.mxu2 }
 0xc1b   : > { %v10429_v33 = vadd.f32 %v10428_v47, %v10388_v19  ;;  %v10390_v61 = vpop.f32.mrf.mxu1 }
 0xc1c   : > { %v10469_v36 = vpop.f32.mrf.mxu3  ;;  %v10349_v63 = vpop.f32.mrf.mxu0  ;;  %v15294_v60 = vpack.c.bf16 %v10909_v30, %v10908_v1 }
 0xc1d   : > { %v10470_v22 = vadd.f32 %v10469_v36, %v10429_v33  ;;  %v10350_v52 = vadd.f32 %v10349_v63, %v22397_v14 }
 0xc1e   : > { %15303 = vst [vmem:[%s22411_s13 + $0x18] sm:$0xff] %v15294_v60  }
 0xc1f   : > { %v10888_v23 = vrot.slane %v10470_v22, 6  ;;  %v10391_v8 = vadd.f32 %v10390_v61, %v10350_v52 }
 0xc21   : > { %v10889_v48 = vsel %vm10870_vm5, %v10886_v59, %v10888_v23 }
 0xc22   : > { %v10910_v58 = vadd.f32 %v10889_v48, %v22347_v7  ;;  %v10431_v32 = vpop.f32.mrf.mxu2 }
 0xc23   : > { %v10432_v34 = vadd.f32 %v10431_v32, %v10391_v8  ;;  %v10392_v11 = vpop.f32.mrf.mxu1 }
 0xc24   : > { %v10472_v18 = vpop.f32.mrf.mxu3  ;;  %v10351_v38 = vpop.f32.mrf.mxu0 }
 0xc25   : > { %v10473_v39 = vadd.f32 %v10472_v18, %v10432_v34 }
 0xc27   : > { %v10890_v10 = vrot.slane %v10473_v39, 6 }
 0xc29   : > { %v10891_v12 = vsel %vm10870_vm5, %v10888_v23, %v10890_v10 }
 0xc2a   : > { %v10911_v20 = vadd.f32 %v10891_v12, %v22351_v3  ;;  %v10433_v14 = vpop.f32.mrf.mxu2 }
 0xc2c   : > { %v10474_v17 = vpop.f32.mrf.mxu3  ;;  %v15299_v46 = vpack.c.bf16 %v10911_v20, %v10910_v58 }
 0xc2e   : > { %15304 = vst [vmem:[%s22411_s13 + $0x20] sm:$0xff] %v15299_v46  }
 0xc2f PF: > { %s16_s21 = sadd.s32 1, %s15330_s21  }
 0xc30   : > { %p13_p4 = scmp.ge.s32.totalorder %s16_s21, 4  }
 0xc32   :  { %15 = sbr.rel (!%p13_p4) target bundleno = 1 (0x1), region = 74 }

</bundles_post_ra>
